<compile_context>
chip_gen: v6e
topology: v6e:2x2x1
jax: 0.10.0
libtpu: 0.0.40
codegen_flags: <defaults>
</compile_context>

<pallas_src>
import jax
import jax.numpy as jnp
from jax.experimental import pallas as pl
from jax.experimental.pallas import tpu as pltpu

EPS = 1e-5  # BatchNorm eps (PyTorch default)


def _pick_row_tile(total_rows, bytes_per_row, budget_bytes=4 << 20, max_rows=256):
    """Largest divisor of total_rows whose tile fits a conservative VMEM budget."""
    cap = max(1, min(total_rows, max_rows, budget_bytes // max(1, bytes_per_row)))
    for d in range(cap, 0, -1):
        if total_rows % d == 0:
            return d
    return 1


# ----------------------------------------------------------------------------
# Kernel 1: ConvTranspose2d(kernel=2, stride=2) + bias.
# Rows of the input are flattened to (N*H, W, Cin) and tiled over the grid.
# One matmul (rows*W, Cin) x (Cin, 4*Cout) per tile; the 2x2 sub-pixel scatter
# is done by writing into an output laid out as (N*H, 2, W, 2*Cout), which is
# bit-identical (contiguous) to (N, 2H, 2W, Cout) -> the final reshape is free.
# ----------------------------------------------------------------------------
def _upsample_2x2_kernel(x_ref, w_ref, b_ref, o_ref):
    # x: (TH, W, Cin); w: (Cin, 4*Cout) cols ordered (a, b, o); b: (1, 4*Cout)
    # o: (TH, 2, W, 2*Cout)
    th, w_dim, cin = x_ref.shape
    two_cout = o_ref.shape[3]
    x2d = x_ref[...].reshape(th * w_dim, cin)
    y = jnp.dot(x2d, w_ref[...], preferred_element_type=jnp.float32) + b_ref[...]
    for a in range(2):
        ya = y[:, a * two_cout:(a + 1) * two_cout]          # (TH*W, 2*Cout), cols (b,o)
        o_ref[:, a, :, :] = ya.reshape(th, w_dim, two_cout).astype(o_ref.dtype)


def conv_transpose_2x2_s2(x_nhwc, w_up, b_up):
    # x: (N,H,W,Cin); w_up: (Cin,Cout,2,2) [PyTorch ConvTranspose2d layout]; b_up: (Cout,)
    N, H, W, Cin = x_nhwc.shape
    Cout = w_up.shape[1]
    # weight columns ordered (a, b, o), o fastest
    w2d = jnp.transpose(w_up, (0, 2, 3, 1)).reshape(Cin, 4 * Cout)
    b2d = jnp.tile(b_up, 4).reshape(1, 4 * Cout)

    NH = N * H
    x_rows = x_nhwc.reshape(NH, W, Cin)                     # contiguous, free
    th = _pick_row_tile(NH, W * 4 * (Cin + 8 * Cout), max_rows=512)
    grid = (NH // th,)

    out4 = pl.pallas_call(
        _upsample_2x2_kernel,
        out_shape=jax.ShapeDtypeStruct((NH, 2, W, 2 * Cout), jnp.float32),
        grid=grid,
        in_specs=[
            pl.BlockSpec((th, W, Cin), lambda i: (i, 0, 0)),
            pl.BlockSpec((Cin, 4 * Cout), lambda i: (0, 0)),
            pl.BlockSpec((1, 4 * Cout), lambda i: (0, 0)),
        ],
        out_specs=pl.BlockSpec((th, 2, W, 2 * Cout), lambda i: (i, 0, 0, 0)),
        compiler_params=pltpu.CompilerParams(dimension_semantics=("parallel",)),
    )(x_rows, w2d, b2d)
    # (N*H, 2, W, 2*Cout) -> (N, 2H, 2W, Cout): contiguous reshape, no HBM copy.
    return out4.reshape(N, 2 * H, 2 * W, Cout)


# ----------------------------------------------------------------------------
# Kernel 2: fused Conv2d(3x3, pad=1) + BatchNorm(eval) + ReLU, row-tiled.
# Halo rows come in as two extra 1-row input blocks (clamped index_map, zeroed
# at the image border in-kernel); padding is built in a VMEM scratch (no
# jnp.pad HBM pass).  The 3x3 conv is 3 matmuls with K = 3*Cin.
# ----------------------------------------------------------------------------
def _conv3x3_bn_relu_kernel(xb_ref, xt_ref, xbt_ref, w_ref, s_ref, t_ref,
                            o_ref, xpad_ref):
    # xb: (1, TH, Wo, C); xt/xbt: (1, 1, Wo, C); w: (3, 3*C, Cout)
    # s/t: (1, Cout); o: (1, TH, Wo, Cout); xpad scratch: (TH+2, Wo+2, C)
    _, th, wo, c = xb_ref.shape
    cout = o_ref.shape[3]
    r = pl.program_id(1)
    last = pl.num_programs(1) - 1

    # zero-pad columns (cheap: two (TH+2, C) stores per step)
    zcol = jnp.zeros((th + 2, c), xpad_ref.dtype)
    xpad_ref[:, 0, :] = zcol
    xpad_ref[:, wo + 1, :] = zcol
    # body rows + halo rows (halo rows are zero at the top/bottom image border)
    xpad_ref[1:th + 1, 1:wo + 1, :] = xb_ref[0]
    top = xt_ref[0, 0]
    bot = xbt_ref[0, 0]
    xpad_ref[0, 1:wo + 1, :] = jnp.where(r == 0, jnp.zeros_like(top), top)
    xpad_ref[th + 1, 1:wo + 1, :] = jnp.where(r == last, jnp.zeros_like(bot), bot)

    # 3 deep-K matmuls: for each dh, concatenate the 3 dw-shifted views along
    # the channel (lane) axis -> (TH*Wo, 3*C) x (3*C, Cout).
    acc = jnp.zeros((th * wo, cout), jnp.float32)
    for dh in range(3):
        a_dh = jnp.concatenate(
            [xpad_ref[dh:dh + th, dw:dw + wo, :] for dw in range(3)], axis=-1
        ).reshape(th * wo, 3 * c)
        acc = acc + jnp.dot(a_dh, w_ref[dh], preferred_element_type=jnp.float32)

    y = jnp.maximum(acc * s_ref[...] + t_ref[...], 0.0)     # folded BN affine + ReLU
    o_ref[0] = y.reshape(th, wo, cout).astype(o_ref.dtype)


def conv3x3_bn_relu(x_nhwc, w_hwio, scale, shift):
    N, Ho, Wo, C = x_nhwc.shape
    Cout = w_hwio.shape[-1]
    w3 = w_hwio.reshape(3, 3 * C, Cout)                     # [dh, dw*Cin + i, o]
    s2 = scale.reshape(1, Cout)
    t2 = shift.reshape(1, Cout)

    th = _pick_row_tile(Ho, Wo * 4 * (6 * C + 3 * Cout))
    grid = (N, Ho // th)

    return pl.pallas_call(
        _conv3x3_bn_relu_kernel,
        out_shape=jax.ShapeDtypeStruct((N, Ho, Wo, Cout), jnp.float32),
        grid=grid,
        in_specs=[
            pl.BlockSpec((1, th, Wo, C), lambda n, r: (n, r, 0, 0)),
            pl.BlockSpec((1, 1, Wo, C),
                         lambda n, r: (n, jnp.maximum(r * th - 1, 0), 0, 0)),
            pl.BlockSpec((1, 1, Wo, C),
                         lambda n, r: (n, jnp.minimum((r + 1) * th, Ho - 1), 0, 0)),
            pl.BlockSpec((3, 3 * C, Cout), lambda n, r: (0, 0, 0)),
            pl.BlockSpec((1, Cout), lambda n, r: (0, 0)),
            pl.BlockSpec((1, Cout), lambda n, r: (0, 0)),
        ],
        out_specs=pl.BlockSpec((1, th, Wo, Cout), lambda n, r: (n, r, 0, 0)),
        scratch_shapes=[pltpu.VMEM((th + 2, Wo + 2, C), jnp.float32)],
        compiler_params=pltpu.CompilerParams(
            dimension_semantics=("parallel", "parallel")),
    )(x_nhwc, x_nhwc, x_nhwc, w3, s2, t2)


# ----------------------------------------------------------------------------
# Parameter init (deterministic, synthetic) + full forward
# ----------------------------------------------------------------------------
def init_params(key, in_channels):
    c2 = in_channels // 2
    ks = jax.random.split(key, 10)

    def conv_block(kw, kb, kg, kbt, cin, cout):
        w = 0.2 * jax.random.normal(kw, (3, 3, cin, cout), jnp.float32)   # HWIO
        b = 0.05 * jax.random.normal(kb, (cout,), jnp.float32)
        gamma = 1.0 + 0.1 * jax.random.normal(kg, (cout,), jnp.float32)
        beta = 0.1 * jax.random.normal(kbt, (cout,), jnp.float32)
        mean = jnp.zeros((cout,), jnp.float32)     # fresh-module running stats
        var = jnp.ones((cout,), jnp.float32)
        scale = gamma / jnp.sqrt(var + EPS)
        shift = beta - mean * scale + b * scale    # fold conv bias + BN into affine
        return dict(w=w, b=b, gamma=gamma, beta=beta, mean=mean, var=var,
                    scale=scale, shift=shift)

    return dict(
        w_up=0.2 * jax.random.normal(ks[0], (in_channels, c2, 2, 2), jnp.float32),
        b_up=0.05 * jax.random.normal(ks[1], (c2,), jnp.float32),
        conv1=conv_block(ks[2], ks[3], ks[4], ks[5], c2, c2),
        conv2=conv_block(ks[6], ks[7], ks[8], ks[9], c2, c2),
    )


@jax.jit
def convup_forward(x_nchw, params):
    x = jnp.transpose(x_nchw, (0, 2, 3, 1))                       # NCHW -> NHWC
    x = conv_transpose_2x2_s2(x, params["w_up"], params["b_up"])  # (N, 2H, 2W, C/2)
    for name in ("conv1", "conv2"):
        p = params[name]
        x = conv3x3_bn_relu(x, p["w"], p["scale"], p["shift"])
    return jnp.transpose(x, (0, 3, 1, 2))                         # back to NCHW


# Pure-JAX reference (for correctness check only)
def ref_forward(x_nchw, params):
    x = jnp.transpose(x_nchw, (0, 2, 3, 1))
    N, H, W, Cin = x.shape
    Cout = params["w_up"].shape[1]
    t = jnp.einsum("nhwi,ioab->nhawbo", x, params["w_up"])
    x = t.reshape(N, 2 * H, 2 * W, Cout) + params["b_up"]
    for name in ("conv1", "conv2"):
        p = params[name]
        y = jax.lax.conv_general_dilated(
            x, p["w"], (1, 1), ((1, 1), (1, 1)),
            dimension_numbers=("NHWC", "HWIO", "NHWC"))
        y = (y + p["b"] - p["mean"]) / jnp.sqrt(p["var"] + EPS) * p["gamma"] + p["beta"]
        x = jnp.maximum(y, 0.0)
    return jnp.transpose(x, (0, 3, 1, 2))


if __name__ == "__main__":
    key = jax.random.PRNGKey(0)
    k_x, k_p = jax.random.split(key)

    batch, in_channels, spatial = 2, 4, 16
    x = jax.random.normal(k_x, (batch, in_channels, spatial, spatial), jnp.float32)
    params = init_params(k_p, in_channels)

    out = convup_forward(x, params)
    out = jax.block_until_ready(out)

    expected_shape = (batch, in_channels // 2, 2 * spatial, 2 * spatial)
    assert out.shape == expected_shape, (out.shape, expected_shape)

    ref = ref_forward(x, params)
    err = float(jnp.max(jnp.abs(out - ref)))
    assert jnp.allclose(out, ref, rtol=2e-4, atol=2e-4), err

    print("KERNEL_OK")
</pallas_src>

<mosaic_0001>
module attributes {stable_mosaic.version = 11 : i64} {
  func.func @_upsample_2x2_kernel(%arg0: i32, %arg1: memref<32x16x4xf32, #tpu.memory_space<vmem>>, %arg2: memref<4x8xf32, #tpu.memory_space<vmem>>, %arg3: memref<1x8xf32, #tpu.memory_space<vmem>>, %arg4: memref<32x2x16x4xf32, #tpu.memory_space<vmem>>) attributes {dimension_semantics = [#tpu.dimension_semantics<parallel>], iteration_bounds = array<i64: 1>, scalar_prefetch = 0 : i64, scratch_operands = 0 : i64, tpu.core_type = #tpu.core_type<tc>, window_params = [{transform_indices = @transform_0, window_bounds = array<i64: 32, 16, 4>}, {pipeline_mode = #tpu.pipeline_mode<synchronous>, transform_indices = @transform_1, window_bounds = array<i64: 4, 8>}, {pipeline_mode = #tpu.pipeline_mode<synchronous>, transform_indices = @transform_2, window_bounds = array<i64: 1, 8>}, {transform_indices = @transform_3, window_bounds = array<i64: 32, 2, 16, 4>}]} {
    %c0 = arith.constant 0 : index
    %c0_0 = arith.constant 0 : index
    %c0_1 = arith.constant 0 : index
    %0 = vector.load %arg1[%c0, %c0_0, %c0_1] : memref<32x16x4xf32, #tpu.memory_space<vmem>>, vector<32x16x4xf32>
    %1 = vector.shape_cast %0 : vector<32x16x4xf32> to vector<512x4xf32>
    %c0_2 = arith.constant 0 : index
    %c0_3 = arith.constant 0 : index
    %2 = vector.load %arg2[%c0_2, %c0_3] : memref<4x8xf32, #tpu.memory_space<vmem>>, vector<4x8xf32>
    %cst = arith.constant dense<0.000000e+00> : vector<512x8xf32>
    %3 = tpu.matmul %1, %2, %cst {dimension_numbers = #tpu.dot_dimension_numbers<[1], [0], [0], [1], [0, 0, 1, 1], [], []>} : vector<512x4xf32>, vector<4x8xf32>, vector<512x8xf32> -> vector<512x8xf32>
    %c0_4 = arith.constant 0 : index
    %c0_5 = arith.constant 0 : index
    %4 = vector.load %arg3[%c0_4, %c0_5] : memref<1x8xf32, #tpu.memory_space<vmem>>, vector<1x8xf32>
    %5 = vector.broadcast %4 : vector<1x8xf32> to vector<512x8xf32>
    %6 = arith.addf %3, %5 : vector<512x8xf32>
    %7 = vector.extract_strided_slice %6 {offsets = [0, 0], sizes = [512, 4], strides = [1, 1]} : vector<512x8xf32> to vector<512x4xf32>
    %8 = vector.shape_cast %7 : vector<512x4xf32> to vector<32x16x4xf32>
    %c0_6 = arith.constant 0 : index
    %c0_7 = arith.constant 0 : index
    %c0_8 = arith.constant 0 : index
    %c0_9 = arith.constant 0 : index
    %9 = vector.load %arg4[%c0_6, %c0_7, %c0_8, %c0_9] : memref<32x2x16x4xf32, #tpu.memory_space<vmem>>, vector<32x1x16x4xf32>
    %10 = vector.shape_cast %9 : vector<32x1x16x4xf32> to vector<32x16x4xf32>
    %11 = vector.shape_cast %8 : vector<32x16x4xf32> to vector<32x1x16x4xf32>
    tpu.vector_store %arg4[%c0_6, %c0_7, %c0_8, %c0_9], %11 {strides = array<i32>} : memref<32x2x16x4xf32, #tpu.memory_space<vmem>>, vector<32x1x16x4xf32>,
    %12 = vector.extract_strided_slice %6 {offsets = [0, 4], sizes = [512, 4], strides = [1, 1]} : vector<512x8xf32> to vector<512x4xf32>
    %13 = vector.shape_cast %12 : vector<512x4xf32> to vector<32x16x4xf32>
    %c0_10 = arith.constant 0 : index
    %c1 = arith.constant 1 : index
    %c0_11 = arith.constant 0 : index
    %c0_12 = arith.constant 0 : index
    %14 = vector.load %arg4[%c0_10, %c1, %c0_11, %c0_12] : memref<32x2x16x4xf32, #tpu.memory_space<vmem>>, vector<32x1x16x4xf32>
    %15 = vector.shape_cast %14 : vector<32x1x16x4xf32> to vector<32x16x4xf32>
    %16 = vector.shape_cast %13 : vector<32x16x4xf32> to vector<32x1x16x4xf32>
    tpu.vector_store %arg4[%c0_10, %c1, %c0_11, %c0_12], %16 {strides = array<i32>} : memref<32x2x16x4xf32, #tpu.memory_space<vmem>>, vector<32x1x16x4xf32>,
    return
  }
  func.func @transform_0(%arg0: i32) -> (i32, i32, i32) {
    %c0_i32 = arith.constant 0 : i32
    %c0_i32_0 = arith.constant 0 : i32
    %c0_i32_1 = arith.constant 0 : i32
    return %arg0, %c0_i32, %c0_i32_0 : i32, i32, i32
  }
  func.func @transform_1(%arg0: i32) -> (i32, i32) {
    %c0_i32 = arith.constant 0 : i32
    %c0_i32_0 = arith.constant 0 : i32
    %c0_i32_1 = arith.constant 0 : i32
    return %c0_i32, %c0_i32_0 : i32, i32
  }
  func.func @transform_2(%arg0: i32) -> (i32, i32) {
    %c0_i32 = arith.constant 0 : i32
    %c0_i32_0 = arith.constant 0 : i32
    %c0_i32_1 = arith.constant 0 : i32
    return %c0_i32, %c0_i32_0 : i32, i32
  }
  func.func @transform_3(%arg0: i32) -> (i32, i32, i32, i32) {
    %c0_i32 = arith.constant 0 : i32
    %c0_i32_0 = arith.constant 0 : i32
    %c0_i32_1 = arith.constant 0 : i32
    %c0_i32_2 = arith.constant 0 : i32
    return %arg0, %c0_i32, %c0_i32_0, %c0_i32_1 : i32, i32, i32, i32
  }
}

module attributes {stable_mosaic.version = 11 : i64} {
  func.func @_conv3x3_bn_relu_kernel(%arg0: i32, %arg1: i32, %arg2: memref<1x32x32x2xf32, #tpu.memory_space<vmem>>, %arg3: memref<1x1x32x2xf32, #tpu.memory_space<vmem>>, %arg4: memref<1x1x32x2xf32, #tpu.memory_space<vmem>>, %arg5: memref<3x6x2xf32, #tpu.memory_space<vmem>>, %arg6: memref<1x2xf32, #tpu.memory_space<vmem>>, %arg7: memref<1x2xf32, #tpu.memory_space<vmem>>, %arg8: memref<1x32x32x2xf32, #tpu.memory_space<vmem>>, %arg9: memref<34x34x2xf32, #tpu.memory_space<vmem>>) attributes {dimension_semantics = [#tpu.dimension_semantics<parallel>, #tpu.dimension_semantics<parallel>], iteration_bounds = array<i64: 2, 1>, scalar_prefetch = 0 : i64, scratch_operands = 1 : i64, tpu.core_type = #tpu.core_type<tc>, window_params = [{transform_indices = @transform_0, window_bounds = array<i64: 1, 32, 32, 2>}, {transform_indices = @transform_1, window_bounds = array<i64: 1, 1, 32, 2>}, {transform_indices = @transform_2, window_bounds = array<i64: 1, 1, 32, 2>}, {pipeline_mode = #tpu.pipeline_mode<synchronous>, transform_indices = @transform_3, window_bounds = array<i64: 3, 6, 2>}, {pipeline_mode = #tpu.pipeline_mode<synchronous>, transform_indices = @transform_4, window_bounds = array<i64: 1, 2>}, {pipeline_mode = #tpu.pipeline_mode<synchronous>, transform_indices = @transform_5, window_bounds = array<i64: 1, 2>}, {transform_indices = @transform_6, window_bounds = array<i64: 1, 32, 32, 2>}]} {
    %cst = arith.constant 0.000000e+00 : f32
    %0 = vector.broadcast %cst : f32 to vector<34x2xf32>
    %c0 = arith.constant 0 : index
    %c0_0 = arith.constant 0 : index
    %c0_1 = arith.constant 0 : index
    %1 = vector.load %arg9[%c0, %c0_0, %c0_1] : memref<34x34x2xf32, #tpu.memory_space<vmem>>, vector<34x1x2xf32>
    %2 = vector.shape_cast %1 : vector<34x1x2xf32> to vector<34x2xf32>
    %3 = vector.shape_cast %0 : vector<34x2xf32> to vector<34x1x2xf32>
    tpu.vector_store %arg9[%c0, %c0_0, %c0_1], %3 {strides = array<i32>} : memref<34x34x2xf32, #tpu.memory_space<vmem>>, vector<34x1x2xf32>,
    %c0_2 = arith.constant 0 : index
    %c33 = arith.constant 33 : index
    %c0_3 = arith.constant 0 : index
    %4 = vector.load %arg9[%c0_2, %c33, %c0_3] : memref<34x34x2xf32, #tpu.memory_space<vmem>>, vector<34x1x2xf32>
    %5 = vector.shape_cast %4 : vector<34x1x2xf32> to vector<34x2xf32>
    %6 = vector.shape_cast %0 : vector<34x2xf32> to vector<34x1x2xf32>
    tpu.vector_store %arg9[%c0_2, %c33, %c0_3], %6 {strides = array<i32>} : memref<34x34x2xf32, #tpu.memory_space<vmem>>, vector<34x1x2xf32>,
    %c0_4 = arith.constant 0 : index
    %c0_5 = arith.constant 0 : index
    %c0_6 = arith.constant 0 : index
    %c0_7 = arith.constant 0 : index
    %7 = vector.load %arg2[%c0_4, %c0_5, %c0_6, %c0_7] : memref<1x32x32x2xf32, #tpu.memory_space<vmem>>, vector<1x32x32x2xf32>
    %8 = vector.shape_cast %7 : vector<1x32x32x2xf32> to vector<32x32x2xf32>
    %c1 = arith.constant 1 : index
    %c1_8 = arith.constant 1 : index
    %c0_9 = arith.constant 0 : index
    %9 = vector.load %arg9[%c1, %c1_8, %c0_9] : memref<34x34x2xf32, #tpu.memory_space<vmem>>, vector<32x32x2xf32>
    tpu.vector_store %arg9[%c1, %c1_8, %c0_9], %8 {strides = array<i32>} : memref<34x34x2xf32, #tpu.memory_space<vmem>>, vector<32x32x2xf32>,
    %c0_10 = arith.constant 0 : index
    %c0_11 = arith.constant 0 : index
    %c0_12 = arith.constant 0 : index
    %c0_13 = arith.constant 0 : index
    %10 = vector.load %arg3[%c0_10, %c0_11, %c0_12, %c0_13] : memref<1x1x32x2xf32, #tpu.memory_space<vmem>>, vector<1x1x32x2xf32>
    %11 = vector.shape_cast %10 : vector<1x1x32x2xf32> to vector<32x2xf32>
    %c0_14 = arith.constant 0 : index
    %c0_15 = arith.constant 0 : index
    %c0_16 = arith.constant 0 : index
    %c0_17 = arith.constant 0 : index
    %12 = vector.load %arg4[%c0_14, %c0_15, %c0_16, %c0_17] : memref<1x1x32x2xf32, #tpu.memory_space<vmem>>, vector<1x1x32x2xf32>
    %13 = vector.shape_cast %12 : vector<1x1x32x2xf32> to vector<32x2xf32>
    %c0_i32 = arith.constant 0 : i32
    %14 = arith.cmpi eq, %arg1, %c0_i32 : i32
    %cst_18 = arith.constant 0.000000e+00 : f32
    %15 = vector.broadcast %cst_18 : f32 to vector<32x2xf32>
    %16 = arith.select %14, %15, %11 : vector<32x2xf32>
    %c0_19 = arith.constant 0 : index
    %c1_20 = arith.constant 1 : index
    %c0_21 = arith.constant 0 : index
    %17 = vector.load %arg9[%c0_19, %c1_20, %c0_21] : memref<34x34x2xf32, #tpu.memory_space<vmem>>, vector<1x32x2xf32>
    %18 = vector.shape_cast %17 : vector<1x32x2xf32> to vector<32x2xf32>
    %19 = vector.shape_cast %16 : vector<32x2xf32> to vector<1x32x2xf32>
    tpu.vector_store %arg9[%c0_19, %c1_20, %c0_21], %19 {strides = array<i32>} : memref<34x34x2xf32, #tpu.memory_space<vmem>>, vector<1x32x2xf32>,
    %c0_i32_22 = arith.constant 0 : i32
    %20 = arith.cmpi eq, %arg1, %c0_i32_22 : i32
    %cst_23 = arith.constant 0.000000e+00 : f32
    %21 = vector.broadcast %cst_23 : f32 to vector<32x2xf32>
    %22 = arith.select %20, %21, %13 : vector<32x2xf32>
    %c33_24 = arith.constant 33 : index
    %c1_25 = arith.constant 1 : index
    %c0_26 = arith.constant 0 : index
    %23 = vector.load %arg9[%c33_24, %c1_25, %c0_26] : memref<34x34x2xf32, #tpu.memory_space<vmem>>, vector<1x32x2xf32>
    %24 = vector.shape_cast %23 : vector<1x32x2xf32> to vector<32x2xf32>
    %25 = vector.shape_cast %22 : vector<32x2xf32> to vector<1x32x2xf32>
    tpu.vector_store %arg9[%c33_24, %c1_25, %c0_26], %25 {strides = array<i32>} : memref<34x34x2xf32, #tpu.memory_space<vmem>>, vector<1x32x2xf32>,
    %cst_27 = arith.constant 0.000000e+00 : f32
    %26 = vector.broadcast %cst_27 : f32 to vector<1024x2xf32>
    %c0_28 = arith.constant 0 : index
    %c0_29 = arith.constant 0 : index
    %c0_30 = arith.constant 0 : index
    %27 = vector.load %arg9[%c0_28, %c0_29, %c0_30] : memref<34x34x2xf32, #tpu.memory_space<vmem>>, vector<32x32x2xf32>
    %c0_31 = arith.constant 0 : index
    %c1_32 = arith.constant 1 : index
    %c0_33 = arith.constant 0 : index
    %28 = vector.load %arg9[%c0_31, %c1_32, %c0_33] : memref<34x34x2xf32, #tpu.memory_space<vmem>>, vector<32x32x2xf32>
    %c0_34 = arith.constant 0 : index
    %c2 = arith.constant 2 : index
    %c0_35 = arith.constant 0 : index
    %29 = vector.load %arg9[%c0_34, %c2, %c0_35] : memref<34x34x2xf32, #tpu.memory_space<vmem>>, vector<32x32x2xf32>
    %30 = tpu.concatenate %27, %28, %29 in 2 : vector<32x32x2xf32>, vector<32x32x2xf32>, vector<32x32x2xf32> -> vector<32x32x6xf32>
    %31 = vector.shape_cast %30 : vector<32x32x6xf32> to vector<1024x6xf32>
    %c0_36 = arith.constant 0 : index
    %c0_37 = arith.constant 0 : index
    %c0_38 = arith.constant 0 : index
    %32 = vector.load %arg5[%c0_36, %c0_37, %c0_38] : memref<3x6x2xf32, #tpu.memory_space<vmem>>, vector<1x6x2xf32>
    %33 = vector.shape_cast %32 : vector<1x6x2xf32> to vector<6x2xf32>
    %cst_39 = arith.constant dense<0.000000e+00> : vector<1024x2xf32>
    %34 = tpu.matmul %31, %33, %cst_39 {dimension_numbers = #tpu.dot_dimension_numbers<[1], [0], [0], [1], [0, 0, 1, 1], [], []>} : vector<1024x6xf32>, vector<6x2xf32>, vector<1024x2xf32> -> vector<1024x2xf32>
    %35 = arith.addf %26, %34 : vector<1024x2xf32>
    %c1_40 = arith.constant 1 : index
    %c0_41 = arith.constant 0 : index
    %c0_42 = arith.constant 0 : index
    %36 = vector.load %arg9[%c1_40, %c0_41, %c0_42] : memref<34x34x2xf32, #tpu.memory_space<vmem>>, vector<32x32x2xf32>
    %c1_43 = arith.constant 1 : index
    %c1_44 = arith.constant 1 : index
    %c0_45 = arith.constant 0 : index
    %37 = vector.load %arg9[%c1_43, %c1_44, %c0_45] : memref<34x34x2xf32, #tpu.memory_space<vmem>>, vector<32x32x2xf32>
    %c1_46 = arith.constant 1 : index
    %c2_47 = arith.constant 2 : index
    %c0_48 = arith.constant 0 : index
    %38 = vector.load %arg9[%c1_46, %c2_47, %c0_48] : memref<34x34x2xf32, #tpu.memory_space<vmem>>, vector<32x32x2xf32>
    %39 = tpu.concatenate %36, %37, %38 in 2 : vector<32x32x2xf32>, vector<32x32x2xf32>, vector<32x32x2xf32> -> vector<32x32x6xf32>
    %40 = vector.shape_cast %39 : vector<32x32x6xf32> to vector<1024x6xf32>
    %c1_49 = arith.constant 1 : index
    %c0_50 = arith.constant 0 : index
    %c0_51 = arith.constant 0 : index
    %41 = vector.load %arg5[%c1_49, %c0_50, %c0_51] : memref<3x6x2xf32, #tpu.memory_space<vmem>>, vector<1x6x2xf32>
    %42 = vector.shape_cast %41 : vector<1x6x2xf32> to vector<6x2xf32>
    %cst_52 = arith.constant dense<0.000000e+00> : vector<1024x2xf32>
    %43 = tpu.matmul %40, %42, %cst_52 {dimension_numbers = #tpu.dot_dimension_numbers<[1], [0], [0], [1], [0, 0, 1, 1], [], []>} : vector<1024x6xf32>, vector<6x2xf32>, vector<1024x2xf32> -> vector<1024x2xf32>
    %44 = arith.addf %35, %43 : vector<1024x2xf32>
    %c2_53 = arith.constant 2 : index
    %c0_54 = arith.constant 0 : index
    %c0_55 = arith.constant 0 : index
    %45 = vector.load %arg9[%c2_53, %c0_54, %c0_55] : memref<34x34x2xf32, #tpu.memory_space<vmem>>, vector<32x32x2xf32>
    %c2_56 = arith.constant 2 : index
    %c1_57 = arith.constant 1 : index
    %c0_58 = arith.constant 0 : index
    %46 = vector.load %arg9[%c2_56, %c1_57, %c0_58] : memref<34x34x2xf32, #tpu.memory_space<vmem>>, vector<32x32x2xf32>
    %c2_59 = arith.constant 2 : index
    %c2_60 = arith.constant 2 : index
    %c0_61 = arith.constant 0 : index
    %47 = vector.load %arg9[%c2_59, %c2_60, %c0_61] : memref<34x34x2xf32, #tpu.memory_space<vmem>>, vector<32x32x2xf32>
    %48 = tpu.concatenate %45, %46, %47 in 2 : vector<32x32x2xf32>, vector<32x32x2xf32>, vector<32x32x2xf32> -> vector<32x32x6xf32>
    %49 = vector.shape_cast %48 : vector<32x32x6xf32> to vector<1024x6xf32>
    %c2_62 = arith.constant 2 : index
    %c0_63 = arith.constant 0 : index
    %c0_64 = arith.constant 0 : index
    %50 = vector.load %arg5[%c2_62, %c0_63, %c0_64] : memref<3x6x2xf32, #tpu.memory_space<vmem>>, vector<1x6x2xf32>
    %51 = vector.shape_cast %50 : vector<1x6x2xf32> to vector<6x2xf32>
    %cst_65 = arith.constant dense<0.000000e+00> : vector<1024x2xf32>
    %52 = tpu.matmul %49, %51, %cst_65 {dimension_numbers = #tpu.dot_dimension_numbers<[1], [0], [0], [1], [0, 0, 1, 1], [], []>} : vector<1024x6xf32>, vector<6x2xf32>, vector<1024x2xf32> -> vector<1024x2xf32>
    %53 = arith.addf %44, %52 : vector<1024x2xf32>
    %c0_66 = arith.constant 0 : index
    %c0_67 = arith.constant 0 : index
    %54 = vector.load %arg6[%c0_66, %c0_67] : memref<1x2xf32, #tpu.memory_space<vmem>>, vector<1x2xf32>
    %55 = vector.broadcast %54 : vector<1x2xf32> to vector<1024x2xf32>
    %56 = arith.mulf %53, %55 : vector<1024x2xf32>
    %c0_68 = arith.constant 0 : index
    %c0_69 = arith.constant 0 : index
    %57 = vector.load %arg7[%c0_68, %c0_69] : memref<1x2xf32, #tpu.memory_space<vmem>>, vector<1x2xf32>
    %58 = vector.broadcast %57 : vector<1x2xf32> to vector<1024x2xf32>
    %59 = arith.addf %56, %58 : vector<1024x2xf32>
    %cst_70 = arith.constant 0.000000e+00 : f32
    %60 = vector.broadcast %cst_70 : f32 to vector<1024x2xf32>
    %61 = arith.maximumf %59, %60 : vector<1024x2xf32>
    %62 = vector.shape_cast %61 : vector<1024x2xf32> to vector<32x32x2xf32>
    %c0_71 = arith.constant 0 : index
    %c0_72 = arith.constant 0 : index
    %c0_73 = arith.constant 0 : index
    %c0_74 = arith.constant 0 : index
    %63 = vector.load %arg8[%c0_71, %c0_72, %c0_73, %c0_74] : memref<1x32x32x2xf32, #tpu.memory_space<vmem>>, vector<1x32x32x2xf32>
    %64 = vector.shape_cast %63 : vector<1x32x32x2xf32> to vector<32x32x2xf32>
    %65 = vector.shape_cast %62 : vector<32x32x2xf32> to vector<1x32x32x2xf32>
    tpu.vector_store %arg8[%c0_71, %c0_72, %c0_73, %c0_74], %65 {strides = array<i32>} : memref<1x32x32x2xf32, #tpu.memory_space<vmem>>, vector<1x32x32x2xf32>,
    return
  }
  func.func @transform_0(%arg0: i32, %arg1: i32) -> (i32, i32, i32, i32) {
    %c0_i32 = arith.constant 0 : i32
    %c0_i32_0 = arith.constant 0 : i32
    %c0_i32_1 = arith.constant 0 : i32
    return %arg0, %arg1, %c0_i32, %c0_i32_0 : i32, i32, i32, i32
  }
  func.func @transform_1(%arg0: i32, %arg1: i32) -> (i32, i32, i32, i32) {
    %c32_i32 = arith.constant 32 : i32
    %0 = arith.muli %arg1, %c32_i32 : i32
    %c1_i32 = arith.constant 1 : i32
    %1 = arith.subi %0, %c1_i32 : i32
    %c0_i32 = arith.constant 0 : i32
    %2 = arith.maxsi %1, %c0_i32 : i32
    %c0_i32_0 = arith.constant 0 : i32
    %c0_i32_1 = arith.constant 0 : i32
    %c0_i32_2 = arith.constant 0 : i32
    return %arg0, %2, %c0_i32_0, %c0_i32_1 : i32, i32, i32, i32
  }
  func.func @transform_2(%arg0: i32, %arg1: i32) -> (i32, i32, i32, i32) {
    %c1_i32 = arith.constant 1 : i32
    %0 = arith.addi %arg1, %c1_i32 : i32
    %c32_i32 = arith.constant 32 : i32
    %1 = arith.muli %0, %c32_i32 : i32
    %c31_i32 = arith.constant 31 : i32
    %2 = arith.minsi %1, %c31_i32 : i32
    %c0_i32 = arith.constant 0 : i32
    %c0_i32_0 = arith.constant 0 : i32
    %c0_i32_1 = arith.constant 0 : i32
    return %arg0, %2, %c0_i32, %c0_i32_0 : i32, i32, i32, i32
  }
  func.func @transform_3(%arg0: i32, %arg1: i32) -> (i32, i32, i32) {
    %c0_i32 = arith.constant 0 : i32
    %c0_i32_0 = arith.constant 0 : i32
    %c0_i32_1 = arith.constant 0 : i32
    %c0_i32_2 = arith.constant 0 : i32
    return %c0_i32, %c0_i32_0, %c0_i32_1 : i32, i32, i32
  }
  func.func @transform_4(%arg0: i32, %arg1: i32) -> (i32, i32) {
    %c0_i32 = arith.constant 0 : i32
    %c0_i32_0 = arith.constant 0 : i32
    %c0_i32_1 = arith.constant 0 : i32
    return %c0_i32, %c0_i32_0 : i32, i32
  }
  func.func @transform_5(%arg0: i32, %arg1: i32) -> (i32, i32) {
    %c0_i32 = arith.constant 0 : i32
    %c0_i32_0 = arith.constant 0 : i32
    %c0_i32_1 = arith.constant 0 : i32
    return %c0_i32, %c0_i32_0 : i32, i32
  }
  func.func @transform_6(%arg0: i32, %arg1: i32) -> (i32, i32, i32, i32) {
    %c0_i32 = arith.constant 0 : i32
    %c0_i32_0 = arith.constant 0 : i32
    %c0_i32_1 = arith.constant 0 : i32
    return %arg0, %arg1, %c0_i32, %c0_i32_0 : i32, i32, i32, i32
  }
}

</mosaic_0001>

<bundles_post_ra>
// kernel: tile.8
= control target key start
LH: loop header
LB: loop body
LE: loop exit
PB: predicated region body
PF: predicated region fallthrough
CT: control target
= control target key end

     0   :  { %s22_s0 = inlined_call_operand.vmem [shape: f32[2], index: 0, kind: input, shape index: {}]   ;;  %s23_s1 = inlined_call_operand.vmem [shape: f32[4,2], index: 1, kind: output, shape index: {}]  }
   0x1   :  { %v4_v0 = vld [vmem:[%s22_s0] ss:$0 sm:$0xff] }
   0x2   :  { %5 = vst [vmem:[%s23_s1] sm:$0xf] %v4_v0 }

// kernel: tile.9
= control target key start
LH: loop header
LB: loop body
LE: loop exit
PB: predicated region body
PF: predicated region fallthrough
CT: control target
= control target key end

     0   :  { %vm8_vm0 = vcmask 15360   ;;  %s40_s8 = smov 2   ;;  %s41_s9 = smov 4   ;;  %vm14_vm1 = vcmask 64560   ;;  %vm20_vm2 = vcmask 48160   ;;  %vm26_vm3 = vcmask 31760   ;;  %s58_s0 = inlined_call_operand.vmem [shape: f32[4,2], index: 0, kind: input, shape index: {}]   ;;  %s59_s1 = inlined_call_operand.vmem [shape: f32[1,8], index: 1, kind: output, shape index: {}]  }
   0x1   :  { %v5_v0 = vld [vmem:[%s58_s0] sm:$0xf]  ;;  %s39_s0 = smov 6  }
   0x2   :  { %6 = vst [vmem:[#allocation1] sm:$0xf] %v5_v0 }
   0x9   :  { %v11_v1 = vld [vmem:[#allocation1 + $0x3] sm:$0x1]   ;;  %v23_v2 = vld [vmem:[#allocation1 + $0x1] sm:$0x1]   ;;  %v7_v3 = vld [vmem:[#allocation1] sm:$0x1]  }
   0xa   :  { %12 = vrot.lane.b32.xlu0 %v11_v1, %s39_s0  ;;  %24 = vrot.lane.b32.xlu1 %v23_v2, %s40_s8  ;;  %v17_v4 = vld [vmem:[#allocation1 + $0x2] sm:$0x1]   ;;  %9 = vst.msk [vmem:[#allocation0] sm:$0x1] %vm8_vm0, %v7_v3  }
   0xe   :  { %18 = vrot.lane.b32.xlu0 %v17_v4, %s41_s9 }
  0x7c   :  { %v13_v5 = vpop.permute.xlu0 %12   ;;  %v25_v6 = vpop.permute.xlu1 %24  }
  0x7d   :  { %15 = vst.msk [vmem:[#allocation0] sm:$0x1] %vm14_vm1, %v13_v5  }
  0x80   :  { %v19_v7 = vpop.permute.xlu0 %18  }
  0x81   :  { %21 = vst.msk [vmem:[#allocation0] sm:$0x1] %vm20_vm2, %v19_v7  }
  0x82   :  { %27 = vst.msk [vmem:[#allocation0] sm:$0x1] %vm26_vm3, %v25_v6  }
  0x89   :  { %v32_v8 = vld [vmem:[#allocation0] sm:$0x1] }
  0x8a   :  { %35 = vst [vmem:[%s59_s1] sm:$0x1] %v32_v8 }

// kernel: convup_forward.3
= control target key start
LH: loop header
LB: loop body
LE: loop exit
PB: predicated region body
PF: predicated region fallthrough
CT: control target
= control target key end

     0   :  { %vm279_vm0 = vcmask 1043456   ;;  %vm86_vm1 = vcmask 31744   ;;  %s2414_s1 = inlined_call_operand.vmem [shape: f32[4,8], index: 1, kind: input, shape index: {}]   ;;  %s2415_s0 = inlined_call_operand.vmem [shape: f32[32,16,4], index: 0, kind: input, shape index: {}]   ;;  %s2416_s2 = inlined_call_operand.vmem [shape: f32[1,8], index: 2, kind: input, shape index: {}]   ;;  %s2417_s3 = inlined_call_operand.vmem [shape: f32[32,2,16,4], index: 3, kind: output, shape index: {}]  }
   0x1   :  { %v78_v0 = vld [vmem:[%s2414_s1] sm:$0xf]  ;;  %v15_v3 = vld [vmem:[%s2415_s0 + $0x8] sm:$0xff]  ;;  %v16_v5 = vld [vmem:[%s2415_s0 + $0x10] sm:$0xff] }
   0x2   :  { %v14_v1 = vld [vmem:[%s2415_s0] sm:$0xff]  ;;  %1252 = vmatprep.subr.msk.mxu0 %vm279_vm0, %v78_v0  ;;  %1350 = vmatprep.subr.msk.mxu1 %vm279_vm0, %v78_v0  ;;  %v47_v4 = vld [vmem:[%s2415_s0 + $0x108] sm:$0xff]  ;;  %v48_v6 = vld [vmem:[%s2415_s0 + $0x110] sm:$0xff] }
   0x3   :  { %v46_v2 = vld [vmem:[%s2415_s0 + $0x100] sm:$0xff]  ;;  %1253 = vmatpush3.msk.msra.mxu0 %vm279_vm0, %v78_v0  ;;  %1351 = vmatpush3.msk.msra.mxu1 %vm279_vm0, %v78_v0  ;;  %v17_v7 = vld [vmem:[%s2415_s0 + $0x18] sm:$0xff]  ;;  %v19_v11 = vld [vmem:[%s2415_s0 + $0x28] sm:$0xff] }
   0x4   :  { %1254 = vmatprep.mubr.msk.f32.mxu0 %vm86_vm1, %v14_v1  ;;  %1302 = vmatprep.mubr.msk.f32.mxu1 %vm86_vm1, %v46_v2  ;;  %v49_v8 = vld [vmem:[%s2415_s0 + $0x118] sm:$0xff]  ;;  %v18_v9 = vld [vmem:[%s2415_s0 + $0x20] sm:$0xff]  ;;  %v51_v12 = vld [vmem:[%s2415_s0 + $0x128] sm:$0xff] }
   0x5   :  { %1255 = vmatmul.mubr.msk.f32.vlgmr.msra.gmra.mxu0 %vm86_vm1, %v15_v3  ;;  %1303 = vmatmul.mubr.msk.f32.vlgmr.msra.gmra.mxu1 %vm86_vm1, %v47_v4  ;;  %v50_v10 = vld [vmem:[%s2415_s0 + $0x120] sm:$0xff]  ;;  %v20_v13 = vld [vmem:[%s2415_s0 + $0x30] sm:$0xff]  ;;  %v21_v15 = vld [vmem:[%s2415_s0 + $0x38] sm:$0xff] }
   0x6   :  { %1257 = vmatprep.mubr.msk.f32.mxu0 %vm86_vm1, %v16_v5  ;;  %1305 = vmatprep.mubr.msk.f32.mxu1 %vm86_vm1, %v48_v6  ;;  %v52_v14 = vld [vmem:[%s2415_s0 + $0x130] sm:$0xff]  ;;  %v53_v16 = vld [vmem:[%s2415_s0 + $0x138] sm:$0xff]  ;;  %v22_v17 = vld [vmem:[%s2415_s0 + $0x40] sm:$0xff] }
   0x7   :  { %v54_v18 = vld [vmem:[%s2415_s0 + $0x140] sm:$0xff]  ;;  %v23_v19 = vld [vmem:[%s2415_s0 + $0x48] sm:$0xff]  ;;  %v24_v21 = vld [vmem:[%s2415_s0 + $0x50] sm:$0xff] }
   0x8   :  { %v55_v20 = vld [vmem:[%s2415_s0 + $0x148] sm:$0xff]  ;;  %v56_v22 = vld [vmem:[%s2415_s0 + $0x150] sm:$0xff]  ;;  %v25_v23 = vld [vmem:[%s2415_s0 + $0x58] sm:$0xff] }
   0x9   :  { %1258 = vmatmul.mubr.msk.f32.gmra.mxu0 %vm86_vm1, %v17_v7  ;;  %1306 = vmatmul.mubr.msk.f32.gmra.mxu1 %vm86_vm1, %v49_v8  ;;  %v57_v24 = vld [vmem:[%s2415_s0 + $0x158] sm:$0xff]  ;;  %v26_v25 = vld [vmem:[%s2415_s0 + $0x60] sm:$0xff]  ;;  %v27_v27 = vld [vmem:[%s2415_s0 + $0x68] sm:$0xff] }
   0xa   :  { %1260 = vmatprep.mubr.msk.f32.mxu0 %vm86_vm1, %v18_v9  ;;  %1308 = vmatprep.mubr.msk.f32.mxu1 %vm86_vm1, %v50_v10  ;;  %v58_v26 = vld [vmem:[%s2415_s0 + $0x160] sm:$0xff]  ;;  %v59_v28 = vld [vmem:[%s2415_s0 + $0x168] sm:$0xff]  ;;  %v28_v29 = vld [vmem:[%s2415_s0 + $0x70] sm:$0xff] }
   0xb   :  { %v60_v30 = vld [vmem:[%s2415_s0 + $0x170] sm:$0xff]  ;;  %v29_v31 = vld [vmem:[%s2415_s0 + $0x78] sm:$0xff]  ;;  %v30_v33 = vld [vmem:[%s2415_s0 + $0x80] sm:$0xff] }
   0xc   :  { %v61_v32 = vld [vmem:[%s2415_s0 + $0x178] sm:$0xff]  ;;  %v62_v34 = vld [vmem:[%s2415_s0 + $0x180] sm:$0xff]  ;;  %v31_v35 = vld [vmem:[%s2415_s0 + $0x88] sm:$0xff] }
   0xd   :  { %1261 = vmatmul.mubr.msk.f32.gmra.mxu0 %vm86_vm1, %v19_v11  ;;  %1309 = vmatmul.mubr.msk.f32.gmra.mxu1 %vm86_vm1, %v51_v12  ;;  %v63_v36 = vld [vmem:[%s2415_s0 + $0x188] sm:$0xff]  ;;  %v32_v37 = vld [vmem:[%s2415_s0 + $0x90] sm:$0xff]  ;;  %v33_v39 = vld [vmem:[%s2415_s0 + $0x98] sm:$0xff] }
   0xe   :  { %1263 = vmatprep.mubr.msk.f32.mxu0 %vm86_vm1, %v20_v13  ;;  %1311 = vmatprep.mubr.msk.f32.mxu1 %vm86_vm1, %v52_v14  ;;  %v64_v38 = vld [vmem:[%s2415_s0 + $0x190] sm:$0xff]  ;;  %v65_v40 = vld [vmem:[%s2415_s0 + $0x198] sm:$0xff]  ;;  %v34_v41 = vld [vmem:[%s2415_s0 + $0xa0] sm:$0xff] }
   0xf   :  { %v66_v42 = vld [vmem:[%s2415_s0 + $0x1a0] sm:$0xff]  ;;  %v35_v43 = vld [vmem:[%s2415_s0 + $0xa8] sm:$0xff]  ;;  %v36_v45 = vld [vmem:[%s2415_s0 + $0xb0] sm:$0xff] }
  0x10   :  { %v67_v44 = vld [vmem:[%s2415_s0 + $0x1a8] sm:$0xff]  ;;  %v68_v46 = vld [vmem:[%s2415_s0 + $0x1b0] sm:$0xff]  ;;  %v37_v47 = vld [vmem:[%s2415_s0 + $0xb8] sm:$0xff] }
  0x11   :  { %1264 = vmatmul.mubr.msk.f32.gmra.mxu0 %vm86_vm1, %v21_v15  ;;  %1312 = vmatmul.mubr.msk.f32.gmra.mxu1 %vm86_vm1, %v53_v16  ;;  %v69_v48 = vld [vmem:[%s2415_s0 + $0x1b8] sm:$0xff]  ;;  %v38_v49 = vld [vmem:[%s2415_s0 + $0xc0] sm:$0xff]  ;;  %v39_v51 = vld [vmem:[%s2415_s0 + $0xc8] sm:$0xff] }
  0x12   :  { %1266 = vmatprep.mubr.msk.f32.mxu0 %vm86_vm1, %v22_v17  ;;  %1314 = vmatprep.mubr.msk.f32.mxu1 %vm86_vm1, %v54_v18  ;;  %v70_v50 = vld [vmem:[%s2415_s0 + $0x1c0] sm:$0xff]  ;;  %v71_v52 = vld [vmem:[%s2415_s0 + $0x1c8] sm:$0xff]  ;;  %v40_v53 = vld [vmem:[%s2415_s0 + $0xd0] sm:$0xff] }
  0x13   :  { %v72_v54 = vld [vmem:[%s2415_s0 + $0x1d0] sm:$0xff]  ;;  %v41_v55 = vld [vmem:[%s2415_s0 + $0xd8] sm:$0xff]  ;;  %v42_v57 = vld [vmem:[%s2415_s0 + $0xe0] sm:$0xff] }
  0x14   :  { %v73_v56 = vld [vmem:[%s2415_s0 + $0x1d8] sm:$0xff]  ;;  %v74_v58 = vld [vmem:[%s2415_s0 + $0x1e0] sm:$0xff]  ;;  %v43_v59 = vld [vmem:[%s2415_s0 + $0xe8] sm:$0xff] }
  0x15   :  { %1267 = vmatmul.mubr.msk.f32.gmra.mxu0 %vm86_vm1, %v23_v19  ;;  %1315 = vmatmul.mubr.msk.f32.gmra.mxu1 %vm86_vm1, %v55_v20  ;;  %v75_v60 = vld [vmem:[%s2415_s0 + $0x1e8] sm:$0xff]  ;;  %v44_v61 = vld [vmem:[%s2415_s0 + $0xf0] sm:$0xff]  ;;  %v45_v63 = vld [vmem:[%s2415_s0 + $0xf8] sm:$0xff] }
  0x16   :  { %1269 = vmatprep.mubr.msk.f32.mxu0 %vm86_vm1, %v24_v21  ;;  %1317 = vmatprep.mubr.msk.f32.mxu1 %vm86_vm1, %v56_v22  ;;  %v76_v62 = vld [vmem:[%s2415_s0 + $0x1f0] sm:$0xff]  ;;  %v77_v0 = vld [vmem:[%s2415_s0 + $0x1f8] sm:$0xff]  ;;  %v1636_v1 = vld [vmem:[%s2416_s2] ss:$0 sm:$0xff]  ;;  %s1353_s2 = smov 124  }
  0x19   :  { %1270 = vmatmul.mubr.msk.f32.gmra.mxu0 %vm86_vm1, %v25_v23  ;;  %1318 = vmatmul.mubr.msk.f32.gmra.mxu1 %vm86_vm1, %v57_v24 }
  0x1a   :  { %1272 = vmatprep.mubr.msk.f32.mxu0 %vm86_vm1, %v26_v25  ;;  %1320 = vmatprep.mubr.msk.f32.mxu1 %vm86_vm1, %v58_v26 }
  0x1d   :  { %1273 = vmatmul.mubr.msk.f32.gmra.mxu0 %vm86_vm1, %v27_v27  ;;  %1321 = vmatmul.mubr.msk.f32.gmra.mxu1 %vm86_vm1, %v59_v28 }
  0x1e   :  { %1275 = vmatprep.mubr.msk.f32.mxu0 %vm86_vm1, %v28_v29  ;;  %1323 = vmatprep.mubr.msk.f32.mxu1 %vm86_vm1, %v60_v30 }
  0x21   :  { %1276 = vmatmul.mubr.msk.f32.gmra.mxu0 %vm86_vm1, %v29_v31  ;;  %1324 = vmatmul.mubr.msk.f32.gmra.mxu1 %vm86_vm1, %v61_v32 }
  0x22   :  { %1278 = vmatprep.mubr.msk.f32.mxu0 %vm86_vm1, %v30_v33  ;;  %1326 = vmatprep.mubr.msk.f32.mxu1 %vm86_vm1, %v62_v34 }
  0x25   :  { %1279 = vmatmul.mubr.msk.f32.gmra.mxu0 %vm86_vm1, %v31_v35  ;;  %1327 = vmatmul.mubr.msk.f32.gmra.mxu1 %vm86_vm1, %v63_v36 }
  0x26   :  { %1281 = vmatprep.mubr.msk.f32.mxu0 %vm86_vm1, %v32_v37  ;;  %1329 = vmatprep.mubr.msk.f32.mxu1 %vm86_vm1, %v64_v38 }
  0x29   :  { %1282 = vmatmul.mubr.msk.f32.gmra.mxu0 %vm86_vm1, %v33_v39  ;;  %1330 = vmatmul.mubr.msk.f32.gmra.mxu1 %vm86_vm1, %v65_v40 }
  0x2a   :  { %1284 = vmatprep.mubr.msk.f32.mxu0 %vm86_vm1, %v34_v41  ;;  %1332 = vmatprep.mubr.msk.f32.mxu1 %vm86_vm1, %v66_v42 }
  0x2d   :  { %1285 = vmatmul.mubr.msk.f32.gmra.mxu0 %vm86_vm1, %v35_v43  ;;  %1333 = vmatmul.mubr.msk.f32.gmra.mxu1 %vm86_vm1, %v67_v44 }
  0x2e   :  { %1287 = vmatprep.mubr.msk.f32.mxu0 %vm86_vm1, %v36_v45  ;;  %1335 = vmatprep.mubr.msk.f32.mxu1 %vm86_vm1, %v68_v46 }
  0x31   :  { %1288 = vmatmul.mubr.msk.f32.gmra.mxu0 %vm86_vm1, %v37_v47  ;;  %1336 = vmatmul.mubr.msk.f32.gmra.mxu1 %vm86_vm1, %v69_v48 }
  0x32   :  { %1290 = vmatprep.mubr.msk.f32.mxu0 %vm86_vm1, %v38_v49  ;;  %1338 = vmatprep.mubr.msk.f32.mxu1 %vm86_vm1, %v70_v50 }
  0x35   :  { %1291 = vmatmul.mubr.msk.f32.gmra.mxu0 %vm86_vm1, %v39_v51  ;;  %1339 = vmatmul.mubr.msk.f32.gmra.mxu1 %vm86_vm1, %v71_v52 }
  0x36   :  { %1293 = vmatprep.mubr.msk.f32.mxu0 %vm86_vm1, %v40_v53  ;;  %1341 = vmatprep.mubr.msk.f32.mxu1 %vm86_vm1, %v72_v54 }
  0x39   :  { %1294 = vmatmul.mubr.msk.f32.gmra.mxu0 %vm86_vm1, %v41_v55  ;;  %1342 = vmatmul.mubr.msk.f32.gmra.mxu1 %vm86_vm1, %v73_v56 }
  0x3a   :  { %1296 = vmatprep.mubr.msk.f32.mxu0 %vm86_vm1, %v42_v57  ;;  %1344 = vmatprep.mubr.msk.f32.mxu1 %vm86_vm1, %v74_v58 }
  0x3d   :  { %1297 = vmatmul.mubr.msk.f32.gmra.mxu0 %vm86_vm1, %v43_v59  ;;  %1345 = vmatmul.mubr.msk.f32.gmra.mxu1 %vm86_vm1, %v75_v60 }
  0x3e   :  { %1299 = vmatprep.mubr.msk.f32.mxu0 %vm86_vm1, %v44_v61  ;;  %1347 = vmatprep.mubr.msk.f32.mxu1 %vm86_vm1, %v76_v62 }
  0x41   :  { %1300 = vmatmul.mubr.msk.f32.gmra.mxu0 %vm86_vm1, %v45_v63  ;;  %1348 = vmatmul.mubr.msk.f32.gmra.mxu1 %vm86_vm1, %v77_v0 }
  0xc5   :  { %v1256_v2 = vpop.f32.mrf.mxu0  ;;  %v1304_v3 = vpop.f32.mrf.mxu1 }
  0xc6   :  { %v355_v4 = vadd.f32 %v1256_v2, %v1636_v1  ;;  %v515_v5 = vadd.f32 %v1304_v3, %v1636_v1 }
  0xc7   :  { %v349_v6 = vpop.f32.mrf.mxu0  ;;  %v509_v7 = vpop.f32.mrf.mxu1 }
  0xc8   :  { %669 = vst.msk [vmem:[%s2417_s3 + $0x8] sm:$0xff] %vm86_vm1, %v355_v4  ;;  %701 = vst.msk [vmem:[%s2417_s3 + $0x208] sm:$0xff] %vm86_vm1, %v515_v5  ;;  %v350_v8 = vadd.f32 %v1636_v1, %v349_v6  ;;  %v510_v9 = vadd.f32 %v1636_v1, %v509_v7  ;;  %862 = vrot.lane.b32.xlu1 %v515_v5, %s1353_s2  ;;  %798 = vrot.lane.b32.xlu0 %v355_v4, %s1353_s2 }
  0xc9   :  { %v1259_v10 = vpop.f32.mrf.mxu0  ;;  %v1307_v11 = vpop.f32.mrf.mxu1 }
  0xca   :  { %668 = vst.msk [vmem:[%s2417_s3] sm:$0xff] %vm86_vm1, %v350_v8  ;;  %700 = vst.msk [vmem:[%s2417_s3 + $0x200] sm:$0xff] %vm86_vm1, %v510_v9  ;;  %v365_v12 = vadd.f32 %v1259_v10, %v1636_v1  ;;  %v525_v13 = vadd.f32 %v1307_v11, %v1636_v1 }
  0xcb   :  { %v359_v14 = vpop.f32.mrf.mxu0  ;;  %v519_v15 = vpop.f32.mrf.mxu1 }
  0xcc   :  { %671 = vst.msk [vmem:[%s2417_s3 + $0x28] sm:$0xff] %vm86_vm1, %v365_v12  ;;  %v360_v16 = vadd.f32 %v1636_v1, %v359_v14  ;;  %703 = vst.msk [vmem:[%s2417_s3 + $0x228] sm:$0xff] %vm86_vm1, %v525_v13  ;;  %802 = vrot.lane.b32.xlu1 %v365_v12, %s1353_s2  ;;  %796 = vrot.lane.b32.xlu0 %v350_v8, %s1353_s2  ;;  %v520_v17 = vadd.f32 %v1636_v1, %v519_v15 }
  0xcd   :  { %v1262_v18 = vpop.f32.mrf.mxu0  ;;  %v1310_v19 = vpop.f32.mrf.mxu1 }
  0xce   :  { %670 = vst.msk [vmem:[%s2417_s3 + $0x20] sm:$0xff] %vm86_vm1, %v360_v16  ;;  %702 = vst.msk [vmem:[%s2417_s3 + $0x220] sm:$0xff] %vm86_vm1, %v520_v17  ;;  %v375_v20 = vadd.f32 %v1262_v18, %v1636_v1  ;;  %v535_v21 = vadd.f32 %v1310_v19, %v1636_v1 }
  0xcf   :  { %v369_v22 = vpop.f32.mrf.mxu0  ;;  %v529_v23 = vpop.f32.mrf.mxu1 }
  0xd0   :  { %866 = vrot.lane.b32.xlu1 %v525_v13, %s1353_s2  ;;  %860 = vrot.lane.b32.xlu0 %v510_v9, %s1353_s2  ;;  %673 = vst.msk [vmem:[%s2417_s3 + $0x48] sm:$0xff] %vm86_vm1, %v375_v20  ;;  %v370_v24 = vadd.f32 %v1636_v1, %v369_v22  ;;  %705 = vst.msk [vmem:[%s2417_s3 + $0x248] sm:$0xff] %vm86_vm1, %v535_v21  ;;  %v530_v25 = vadd.f32 %v1636_v1, %v529_v23 }
  0xd1   :  { %v1265_v26 = vpop.f32.mrf.mxu0  ;;  %v1313_v27 = vpop.f32.mrf.mxu1 }
  0xd2   :  { %672 = vst.msk [vmem:[%s2417_s3 + $0x40] sm:$0xff] %vm86_vm1, %v370_v24  ;;  %704 = vst.msk [vmem:[%s2417_s3 + $0x240] sm:$0xff] %vm86_vm1, %v530_v25  ;;  %v385_v28 = vadd.f32 %v1265_v26, %v1636_v1  ;;  %v545_v29 = vadd.f32 %v1313_v27, %v1636_v1 }
  0xd3   :  { %v379_v30 = vpop.f32.mrf.mxu0  ;;  %v539_v31 = vpop.f32.mrf.mxu1 }
  0xd4   :  { %800 = vrot.lane.b32.xlu1 %v360_v16, %s1353_s2  ;;  %864 = vrot.lane.b32.xlu0 %v520_v17, %s1353_s2  ;;  %675 = vst.msk [vmem:[%s2417_s3 + $0x68] sm:$0xff] %vm86_vm1, %v385_v28  ;;  %v380_v32 = vadd.f32 %v1636_v1, %v379_v30  ;;  %707 = vst.msk [vmem:[%s2417_s3 + $0x268] sm:$0xff] %vm86_vm1, %v545_v29  ;;  %v540_v33 = vadd.f32 %v1636_v1, %v539_v31 }
  0xd5   :  { %v1268_v34 = vpop.f32.mrf.mxu0  ;;  %v1316_v35 = vpop.f32.mrf.mxu1 }
  0xd6   :  { %674 = vst.msk [vmem:[%s2417_s3 + $0x60] sm:$0xff] %vm86_vm1, %v380_v32  ;;  %706 = vst.msk [vmem:[%s2417_s3 + $0x260] sm:$0xff] %vm86_vm1, %v540_v33  ;;  %v395_v36 = vadd.f32 %v1268_v34, %v1636_v1  ;;  %v1728_v37 = vadd.f32 %v1316_v35, %v1636_v1 }
  0xd7   :  { %v389_v38 = vpop.f32.mrf.mxu0  ;;  %v549_v39 = vpop.f32.mrf.mxu1 }
  0xd8   :  { %806 = vrot.lane.b32.xlu1 %v375_v20, %s1353_s2  ;;  %804 = vrot.lane.b32.xlu0 %v370_v24, %s1353_s2  ;;  %677 = vst.msk [vmem:[%s2417_s3 + $0x88] sm:$0xff] %vm86_vm1, %v395_v36  ;;  %v390_v40 = vadd.f32 %v1636_v1, %v389_v38  ;;  %709 = vst.msk [vmem:[%s2417_s3 + $0x288] sm:$0xff] %vm86_vm1, %v1728_v37  ;;  %v1743_v41 = vadd.f32 %v1636_v1, %v549_v39 }
  0xd9   :  { %v1271_v42 = vpop.f32.mrf.mxu0  ;;  %v1319_v43 = vpop.f32.mrf.mxu1 }
  0xda   :  { %676 = vst.msk [vmem:[%s2417_s3 + $0x80] sm:$0xff] %vm86_vm1, %v390_v40  ;;  %708 = vst.msk [vmem:[%s2417_s3 + $0x280] sm:$0xff] %vm86_vm1, %v1743_v41  ;;  %v1755_v44 = vadd.f32 %v1271_v42, %v1636_v1  ;;  %v1758_v45 = vadd.f32 %v1319_v43, %v1636_v1 }
  0xdb   :  { %v399_v46 = vpop.f32.mrf.mxu0  ;;  %v559_v47 = vpop.f32.mrf.mxu1 }
  0xdc   :  { %870 = vrot.lane.b32.xlu1 %v535_v21, %s1353_s2  ;;  %868 = vrot.lane.b32.xlu0 %v530_v25, %s1353_s2  ;;  %679 = vst.msk [vmem:[%s2417_s3 + $0xa8] sm:$0xff] %vm86_vm1, %v1755_v44  ;;  %v1768_v48 = vadd.f32 %v1636_v1, %v399_v46  ;;  %711 = vst.msk [vmem:[%s2417_s3 + $0x2a8] sm:$0xff] %vm86_vm1, %v1758_v45  ;;  %v1776_v49 = vadd.f32 %v1636_v1, %v559_v47 }
  0xdd   :  { %v1274_v50 = vpop.f32.mrf.mxu0  ;;  %v1322_v51 = vpop.f32.mrf.mxu1 }
  0xde   :  { %678 = vst.msk [vmem:[%s2417_s3 + $0xa0] sm:$0xff] %vm86_vm1, %v1768_v48  ;;  %710 = vst.msk [vmem:[%s2417_s3 + $0x2a0] sm:$0xff] %vm86_vm1, %v1776_v49  ;;  %v1789_v52 = vadd.f32 %v1274_v50, %v1636_v1  ;;  %v1792_v53 = vadd.f32 %v1322_v51, %v1636_v1 }
  0xdf   :  { %v409_v54 = vpop.f32.mrf.mxu0  ;;  %v569_v55 = vpop.f32.mrf.mxu1 }
  0xe0   :  { %810 = vrot.lane.b32.xlu1 %v385_v28, %s1353_s2  ;;  %808 = vrot.lane.b32.xlu0 %v380_v32, %s1353_s2  ;;  %681 = vst.msk [vmem:[%s2417_s3 + $0xc8] sm:$0xff] %vm86_vm1, %v1789_v52  ;;  %v1802_v56 = vadd.f32 %v1636_v1, %v409_v54  ;;  %713 = vst.msk [vmem:[%s2417_s3 + $0x2c8] sm:$0xff] %vm86_vm1, %v1792_v53  ;;  %v1810_v57 = vadd.f32 %v1636_v1, %v569_v55 }
  0xe1   :  { %v1277_v58 = vpop.f32.mrf.mxu0  ;;  %v1325_v59 = vpop.f32.mrf.mxu1 }
  0xe2   :  { %680 = vst.msk [vmem:[%s2417_s3 + $0xc0] sm:$0xff] %vm86_vm1, %v1802_v56  ;;  %712 = vst.msk [vmem:[%s2417_s3 + $0x2c0] sm:$0xff] %vm86_vm1, %v1810_v57  ;;  %v1823_v60 = vadd.f32 %v1277_v58, %v1636_v1  ;;  %v1826_v61 = vadd.f32 %v1325_v59, %v1636_v1 }
  0xe3   :  { %v419_v62 = vpop.f32.mrf.mxu0  ;;  %v579_v63 = vpop.f32.mrf.mxu1 }
  0xe4   :  { %874 = vrot.lane.b32.xlu1 %v545_v29, %s1353_s2  ;;  %872 = vrot.lane.b32.xlu0 %v540_v33, %s1353_s2  ;;  %683 = vst.msk [vmem:[%s2417_s3 + $0xe8] sm:$0xff] %vm86_vm1, %v1823_v60  ;;  %v1836_v0 = vadd.f32 %v1636_v1, %v419_v62  ;;  %715 = vst.msk [vmem:[%s2417_s3 + $0x2e8] sm:$0xff] %vm86_vm1, %v1826_v61  ;;  %v1844_v2 = vadd.f32 %v1636_v1, %v579_v63 }
  0xe5   :  { %v1280_v3 = vpop.f32.mrf.mxu0  ;;  %v1328_v4 = vpop.f32.mrf.mxu1 }
  0xe6   :  { %682 = vst.msk [vmem:[%s2417_s3 + $0xe0] sm:$0xff] %vm86_vm1, %v1836_v0  ;;  %714 = vst.msk [vmem:[%s2417_s3 + $0x2e0] sm:$0xff] %vm86_vm1, %v1844_v2  ;;  %v1857_v5 = vadd.f32 %v1280_v3, %v1636_v1  ;;  %v1860_v6 = vadd.f32 %v1328_v4, %v1636_v1 }
  0xe7   :  { %v429_v7 = vpop.f32.mrf.mxu0  ;;  %v589_v8 = vpop.f32.mrf.mxu1 }
  0xe8   :  { %814 = vrot.lane.b32.xlu1 %v395_v36, %s1353_s2  ;;  %812 = vrot.lane.b32.xlu0 %v390_v40, %s1353_s2  ;;  %685 = vst.msk [vmem:[%s2417_s3 + $0x108] sm:$0xff] %vm86_vm1, %v1857_v5  ;;  %v1870_v9 = vadd.f32 %v1636_v1, %v429_v7  ;;  %717 = vst.msk [vmem:[%s2417_s3 + $0x308] sm:$0xff] %vm86_vm1, %v1860_v6  ;;  %v1878_v10 = vadd.f32 %v1636_v1, %v589_v8 }
  0xe9   :  { %v1283_v11 = vpop.f32.mrf.mxu0  ;;  %v1331_v12 = vpop.f32.mrf.mxu1 }
  0xea   :  { %684 = vst.msk [vmem:[%s2417_s3 + $0x100] sm:$0xff] %vm86_vm1, %v1870_v9  ;;  %716 = vst.msk [vmem:[%s2417_s3 + $0x300] sm:$0xff] %vm86_vm1, %v1878_v10  ;;  %v1891_v13 = vadd.f32 %v1283_v11, %v1636_v1  ;;  %v1894_v14 = vadd.f32 %v1331_v12, %v1636_v1 }
  0xeb   :  { %v439_v15 = vpop.f32.mrf.mxu0  ;;  %v599_v16 = vpop.f32.mrf.mxu1 }
  0xec   :  { %878 = vrot.lane.b32.xlu1 %v1728_v37, %s1353_s2  ;;  %876 = vrot.lane.b32.xlu0 %v1743_v41, %s1353_s2  ;;  %687 = vst.msk [vmem:[%s2417_s3 + $0x128] sm:$0xff] %vm86_vm1, %v1891_v13  ;;  %v1906_v17 = vadd.f32 %v1636_v1, %v439_v15  ;;  %719 = vst.msk [vmem:[%s2417_s3 + $0x328] sm:$0xff] %vm86_vm1, %v1894_v14  ;;  %v1914_v18 = vadd.f32 %v1636_v1, %v599_v16 }
  0xed   :  { %v1286_v19 = vpop.f32.mrf.mxu0  ;;  %v1334_v20 = vpop.f32.mrf.mxu1 }
  0xee   :  { %686 = vst.msk [vmem:[%s2417_s3 + $0x120] sm:$0xff] %vm86_vm1, %v1906_v17  ;;  %718 = vst.msk [vmem:[%s2417_s3 + $0x320] sm:$0xff] %vm86_vm1, %v1914_v18  ;;  %v1927_v21 = vadd.f32 %v1286_v19, %v1636_v1  ;;  %v1930_v22 = vadd.f32 %v1334_v20, %v1636_v1 }
  0xef   :  { %v449_v23 = vpop.f32.mrf.mxu0  ;;  %v609_v24 = vpop.f32.mrf.mxu1 }
  0xf0   :  { %818 = vrot.lane.b32.xlu1 %v1755_v44, %s1353_s2  ;;  %816 = vrot.lane.b32.xlu0 %v1768_v48, %s1353_s2  ;;  %689 = vst.msk [vmem:[%s2417_s3 + $0x148] sm:$0xff] %vm86_vm1, %v1927_v21  ;;  %v1942_v25 = vadd.f32 %v1636_v1, %v449_v23  ;;  %721 = vst.msk [vmem:[%s2417_s3 + $0x348] sm:$0xff] %vm86_vm1, %v1930_v22  ;;  %v1950_v26 = vadd.f32 %v1636_v1, %v609_v24 }
  0xf1   :  { %v1289_v27 = vpop.f32.mrf.mxu0  ;;  %v1337_v28 = vpop.f32.mrf.mxu1 }
  0xf2   :  { %688 = vst.msk [vmem:[%s2417_s3 + $0x140] sm:$0xff] %vm86_vm1, %v1942_v25  ;;  %720 = vst.msk [vmem:[%s2417_s3 + $0x340] sm:$0xff] %vm86_vm1, %v1950_v26  ;;  %v1963_v29 = vadd.f32 %v1289_v27, %v1636_v1  ;;  %v1966_v30 = vadd.f32 %v1337_v28, %v1636_v1 }
  0xf3   :  { %v459_v31 = vpop.f32.mrf.mxu0  ;;  %v619_v32 = vpop.f32.mrf.mxu1 }
  0xf4   :  { %882 = vrot.lane.b32.xlu1 %v1758_v45, %s1353_s2  ;;  %880 = vrot.lane.b32.xlu0 %v1776_v49, %s1353_s2  ;;  %691 = vst.msk [vmem:[%s2417_s3 + $0x168] sm:$0xff] %vm86_vm1, %v1963_v29  ;;  %v1978_v33 = vadd.f32 %v1636_v1, %v459_v31  ;;  %723 = vst.msk [vmem:[%s2417_s3 + $0x368] sm:$0xff] %vm86_vm1, %v1966_v30  ;;  %v1986_v34 = vadd.f32 %v1636_v1, %v619_v32 }
  0xf5   :  { %v1292_v35 = vpop.f32.mrf.mxu0  ;;  %v1340_v36 = vpop.f32.mrf.mxu1 }
  0xf6   :  { %690 = vst.msk [vmem:[%s2417_s3 + $0x160] sm:$0xff] %vm86_vm1, %v1978_v33  ;;  %722 = vst.msk [vmem:[%s2417_s3 + $0x360] sm:$0xff] %vm86_vm1, %v1986_v34  ;;  %v1999_v37 = vadd.f32 %v1292_v35, %v1636_v1  ;;  %v2002_v38 = vadd.f32 %v1340_v36, %v1636_v1 }
  0xf7   :  { %v469_v39 = vpop.f32.mrf.mxu0  ;;  %v629_v40 = vpop.f32.mrf.mxu1 }
  0xf8   :  { %822 = vrot.lane.b32.xlu1 %v1789_v52, %s1353_s2  ;;  %820 = vrot.lane.b32.xlu0 %v1802_v56, %s1353_s2  ;;  %693 = vst.msk [vmem:[%s2417_s3 + $0x188] sm:$0xff] %vm86_vm1, %v1999_v37  ;;  %v2014_v41 = vadd.f32 %v1636_v1, %v469_v39  ;;  %725 = vst.msk [vmem:[%s2417_s3 + $0x388] sm:$0xff] %vm86_vm1, %v2002_v38  ;;  %v2022_v42 = vadd.f32 %v1636_v1, %v629_v40 }
  0xf9   :  { %v1295_v43 = vpop.f32.mrf.mxu0  ;;  %v1343_v44 = vpop.f32.mrf.mxu1 }
  0xfa   :  { %692 = vst.msk [vmem:[%s2417_s3 + $0x180] sm:$0xff] %vm86_vm1, %v2014_v41  ;;  %724 = vst.msk [vmem:[%s2417_s3 + $0x380] sm:$0xff] %vm86_vm1, %v2022_v42  ;;  %v485_v45 = vadd.f32 %v1295_v43, %v1636_v1  ;;  %v645_v46 = vadd.f32 %v1343_v44, %v1636_v1 }
  0xfb   :  { %v479_v47 = vpop.f32.mrf.mxu0  ;;  %v639_v48 = vpop.f32.mrf.mxu1 }
  0xfc   :  { %886 = vrot.lane.b32.xlu1 %v1792_v53, %s1353_s2  ;;  %884 = vrot.lane.b32.xlu0 %v1810_v57, %s1353_s2  ;;  %695 = vst.msk [vmem:[%s2417_s3 + $0x1a8] sm:$0xff] %vm86_vm1, %v485_v45  ;;  %v480_v49 = vadd.f32 %v1636_v1, %v479_v47  ;;  %727 = vst.msk [vmem:[%s2417_s3 + $0x3a8] sm:$0xff] %vm86_vm1, %v645_v46  ;;  %v640_v50 = vadd.f32 %v1636_v1, %v639_v48 }
  0xfd   :  { %v1298_v51 = vpop.f32.mrf.mxu0  ;;  %v1346_v52 = vpop.f32.mrf.mxu1 }
  0xfe   :  { %694 = vst.msk [vmem:[%s2417_s3 + $0x1a0] sm:$0xff] %vm86_vm1, %v480_v49  ;;  %726 = vst.msk [vmem:[%s2417_s3 + $0x3a0] sm:$0xff] %vm86_vm1, %v640_v50  ;;  %v495_v53 = vadd.f32 %v1298_v51, %v1636_v1  ;;  %v655_v54 = vadd.f32 %v1346_v52, %v1636_v1 }
  0xff   :  { %v489_v55 = vpop.f32.mrf.mxu0  ;;  %v649_v56 = vpop.f32.mrf.mxu1 }
 0x100   :  { %826 = vrot.lane.b32.xlu1 %v1823_v60, %s1353_s2  ;;  %824 = vrot.lane.b32.xlu0 %v1836_v0, %s1353_s2  ;;  %697 = vst.msk [vmem:[%s2417_s3 + $0x1c8] sm:$0xff] %vm86_vm1, %v495_v53  ;;  %v490_v57 = vadd.f32 %v1636_v1, %v489_v55  ;;  %729 = vst.msk [vmem:[%s2417_s3 + $0x3c8] sm:$0xff] %vm86_vm1, %v655_v54  ;;  %v650_v58 = vadd.f32 %v1636_v1, %v649_v56 }
 0x101   :  { %v1301_v59 = vpop.f32.mrf.mxu0  ;;  %v1349_v62 = vpop.f32.mrf.mxu1 }
 0x102   :  { %696 = vst.msk [vmem:[%s2417_s3 + $0x1c0] sm:$0xff] %vm86_vm1, %v490_v57  ;;  %728 = vst.msk [vmem:[%s2417_s3 + $0x3c0] sm:$0xff] %vm86_vm1, %v650_v58  ;;  %v505_v60 = vadd.f32 %v1301_v59, %v1636_v1  ;;  %v665_v63 = vadd.f32 %v1349_v62, %v1636_v1 }
 0x103   :  { %v499_v0 = vpop.f32.mrf.mxu0  ;;  %v659_v3 = vpop.f32.mrf.mxu1 }
 0x104   :  { %890 = vrot.lane.b32.xlu1 %v1826_v61, %s1353_s2  ;;  %888 = vrot.lane.b32.xlu0 %v1844_v2, %s1353_s2  ;;  %699 = vst.msk [vmem:[%s2417_s3 + $0x1e8] sm:$0xff] %vm86_vm1, %v505_v60  ;;  %v500_v4 = vadd.f32 %v1636_v1, %v499_v0  ;;  %731 = vst.msk [vmem:[%s2417_s3 + $0x3e8] sm:$0xff] %vm86_vm1, %v665_v63  ;;  %v660_v7 = vadd.f32 %v1636_v1, %v659_v3 }
 0x106   :  { %698 = vst.msk [vmem:[%s2417_s3 + $0x1e0] sm:$0xff] %vm86_vm1, %v500_v4  ;;  %730 = vst.msk [vmem:[%s2417_s3 + $0x3e0] sm:$0xff] %vm86_vm1, %v660_v7 }
 0x108   :  { %830 = vrot.lane.b32.xlu1 %v1857_v5, %s1353_s2  ;;  %828 = vrot.lane.b32.xlu0 %v1870_v9, %s1353_s2 }
 0x10c   :  { %894 = vrot.lane.b32.xlu1 %v1860_v6, %s1353_s2  ;;  %892 = vrot.lane.b32.xlu0 %v1878_v10, %s1353_s2 }
 0x110   :  { %834 = vrot.lane.b32.xlu1 %v1891_v13, %s1353_s2  ;;  %832 = vrot.lane.b32.xlu0 %v1906_v17, %s1353_s2 }
 0x114   :  { %898 = vrot.lane.b32.xlu1 %v1894_v14, %s1353_s2  ;;  %896 = vrot.lane.b32.xlu0 %v1914_v18, %s1353_s2 }
 0x118   :  { %838 = vrot.lane.b32.xlu1 %v1927_v21, %s1353_s2  ;;  %836 = vrot.lane.b32.xlu0 %v1942_v25, %s1353_s2 }
 0x11c   :  { %902 = vrot.lane.b32.xlu1 %v1930_v22, %s1353_s2  ;;  %900 = vrot.lane.b32.xlu0 %v1950_v26, %s1353_s2 }
 0x120   :  { %842 = vrot.lane.b32.xlu1 %v1963_v29, %s1353_s2  ;;  %840 = vrot.lane.b32.xlu0 %v1978_v33, %s1353_s2 }
 0x124   :  { %906 = vrot.lane.b32.xlu1 %v1966_v30, %s1353_s2  ;;  %904 = vrot.lane.b32.xlu0 %v1986_v34, %s1353_s2 }
 0x128   :  { %846 = vrot.lane.b32.xlu1 %v1999_v37, %s1353_s2  ;;  %844 = vrot.lane.b32.xlu0 %v2014_v41, %s1353_s2 }
 0x12c   :  { %910 = vrot.lane.b32.xlu1 %v2002_v38, %s1353_s2  ;;  %908 = vrot.lane.b32.xlu0 %v2022_v42, %s1353_s2 }
 0x130   :  { %850 = vrot.lane.b32.xlu1 %v485_v45, %s1353_s2  ;;  %848 = vrot.lane.b32.xlu0 %v480_v49, %s1353_s2 }
 0x134   :  { %914 = vrot.lane.b32.xlu1 %v645_v46, %s1353_s2  ;;  %912 = vrot.lane.b32.xlu0 %v640_v50, %s1353_s2 }
 0x138   :  { %854 = vrot.lane.b32.xlu1 %v495_v53, %s1353_s2  ;;  %852 = vrot.lane.b32.xlu0 %v490_v57, %s1353_s2 }
 0x13a   :  { %v863_v1 = vpop.permute.xlu1 %862  ;;  %v799_v61 = vpop.permute.xlu0 %798 }
 0x13b   :  { %1156 = vst.msk [vmem:[%s2417_s3 + $0x218] sm:$0xff] %vm86_vm1, %v863_v1  ;;  %1124 = vst.msk [vmem:[%s2417_s3 + $0x18] sm:$0xff] %vm86_vm1, %v799_v61 }
 0x13c   :  { %918 = vrot.lane.b32.xlu1 %v655_v54, %s1353_s2  ;;  %916 = vrot.lane.b32.xlu0 %v650_v58, %s1353_s2 }
 0x13e   :  { %v803_v2 = vpop.permute.xlu1 %802  ;;  %v797_v5 = vpop.permute.xlu0 %796 }
 0x13f   :  { %1126 = vst.msk [vmem:[%s2417_s3 + $0x38] sm:$0xff] %vm86_vm1, %v803_v2  ;;  %1123 = vst.msk [vmem:[%s2417_s3 + $0x10] sm:$0xff] %vm86_vm1, %v797_v5 }
 0x140   :  { %858 = vrot.lane.b32.xlu1 %v505_v60, %s1353_s2  ;;  %856 = vrot.lane.b32.xlu0 %v500_v4, %s1353_s2 }
 0x142   :  { %v867_v6 = vpop.permute.xlu1 %866  ;;  %v861_v8 = vpop.permute.xlu0 %860 }
 0x143   :  { %1158 = vst.msk [vmem:[%s2417_s3 + $0x238] sm:$0xff] %vm86_vm1, %v867_v6  ;;  %1155 = vst.msk [vmem:[%s2417_s3 + $0x210] sm:$0xff] %vm86_vm1, %v861_v8 }
 0x144   :  { %922 = vrot.lane.b32.xlu1 %v665_v63, %s1353_s2  ;;  %920 = vrot.lane.b32.xlu0 %v660_v7, %s1353_s2 }
 0x146   :  { %v801_v9 = vpop.permute.xlu1 %800  ;;  %v865_v10 = vpop.permute.xlu0 %864 }
 0x147   :  { %1125 = vst.msk [vmem:[%s2417_s3 + $0x30] sm:$0xff] %vm86_vm1, %v801_v9  ;;  %1157 = vst.msk [vmem:[%s2417_s3 + $0x230] sm:$0xff] %vm86_vm1, %v865_v10 }
 0x14a   :  { %v807_v11 = vpop.permute.xlu1 %806  ;;  %v805_v12 = vpop.permute.xlu0 %804 }
 0x14b   :  { %1128 = vst.msk [vmem:[%s2417_s3 + $0x58] sm:$0xff] %vm86_vm1, %v807_v11  ;;  %1127 = vst.msk [vmem:[%s2417_s3 + $0x50] sm:$0xff] %vm86_vm1, %v805_v12 }
 0x14e   :  { %v871_v13 = vpop.permute.xlu1 %870  ;;  %v869_v14 = vpop.permute.xlu0 %868 }
 0x14f   :  { %1160 = vst.msk [vmem:[%s2417_s3 + $0x258] sm:$0xff] %vm86_vm1, %v871_v13  ;;  %1159 = vst.msk [vmem:[%s2417_s3 + $0x250] sm:$0xff] %vm86_vm1, %v869_v14 }
 0x152   :  { %v811_v15 = vpop.permute.xlu1 %810  ;;  %v809_v16 = vpop.permute.xlu0 %808 }
 0x153   :  { %1130 = vst.msk [vmem:[%s2417_s3 + $0x78] sm:$0xff] %vm86_vm1, %v811_v15  ;;  %1129 = vst.msk [vmem:[%s2417_s3 + $0x70] sm:$0xff] %vm86_vm1, %v809_v16 }
 0x156   :  { %v875_v17 = vpop.permute.xlu1 %874  ;;  %v873_v18 = vpop.permute.xlu0 %872 }
 0x157   :  { %1162 = vst.msk [vmem:[%s2417_s3 + $0x278] sm:$0xff] %vm86_vm1, %v875_v17  ;;  %1161 = vst.msk [vmem:[%s2417_s3 + $0x270] sm:$0xff] %vm86_vm1, %v873_v18 }
 0x15a   :  { %v815_v19 = vpop.permute.xlu1 %814  ;;  %v813_v20 = vpop.permute.xlu0 %812 }
 0x15b   :  { %1132 = vst.msk [vmem:[%s2417_s3 + $0x98] sm:$0xff] %vm86_vm1, %v815_v19  ;;  %1131 = vst.msk [vmem:[%s2417_s3 + $0x90] sm:$0xff] %vm86_vm1, %v813_v20 }
 0x15e   :  { %v879_v21 = vpop.permute.xlu1 %878  ;;  %v877_v22 = vpop.permute.xlu0 %876 }
 0x15f   :  { %1164 = vst.msk [vmem:[%s2417_s3 + $0x298] sm:$0xff] %vm86_vm1, %v879_v21  ;;  %1163 = vst.msk [vmem:[%s2417_s3 + $0x290] sm:$0xff] %vm86_vm1, %v877_v22 }
 0x162   :  { %v819_v23 = vpop.permute.xlu1 %818  ;;  %v817_v24 = vpop.permute.xlu0 %816 }
 0x163   :  { %1134 = vst.msk [vmem:[%s2417_s3 + $0xb8] sm:$0xff] %vm86_vm1, %v819_v23  ;;  %1133 = vst.msk [vmem:[%s2417_s3 + $0xb0] sm:$0xff] %vm86_vm1, %v817_v24 }
 0x166   :  { %v883_v25 = vpop.permute.xlu1 %882  ;;  %v881_v26 = vpop.permute.xlu0 %880 }
 0x167   :  { %1166 = vst.msk [vmem:[%s2417_s3 + $0x2b8] sm:$0xff] %vm86_vm1, %v883_v25  ;;  %1165 = vst.msk [vmem:[%s2417_s3 + $0x2b0] sm:$0xff] %vm86_vm1, %v881_v26 }
 0x16a   :  { %v823_v27 = vpop.permute.xlu1 %822  ;;  %v821_v28 = vpop.permute.xlu0 %820 }
 0x16b   :  { %1136 = vst.msk [vmem:[%s2417_s3 + $0xd8] sm:$0xff] %vm86_vm1, %v823_v27  ;;  %1135 = vst.msk [vmem:[%s2417_s3 + $0xd0] sm:$0xff] %vm86_vm1, %v821_v28 }
 0x16e   :  { %v887_v29 = vpop.permute.xlu1 %886  ;;  %v885_v30 = vpop.permute.xlu0 %884 }
 0x16f   :  { %1168 = vst.msk [vmem:[%s2417_s3 + $0x2d8] sm:$0xff] %vm86_vm1, %v887_v29  ;;  %1167 = vst.msk [vmem:[%s2417_s3 + $0x2d0] sm:$0xff] %vm86_vm1, %v885_v30 }
 0x172   :  { %v827_v31 = vpop.permute.xlu1 %826  ;;  %v825_v32 = vpop.permute.xlu0 %824 }
 0x173   :  { %1138 = vst.msk [vmem:[%s2417_s3 + $0xf8] sm:$0xff] %vm86_vm1, %v827_v31  ;;  %1137 = vst.msk [vmem:[%s2417_s3 + $0xf0] sm:$0xff] %vm86_vm1, %v825_v32 }
 0x176   :  { %v891_v33 = vpop.permute.xlu1 %890  ;;  %v889_v34 = vpop.permute.xlu0 %888 }
 0x177   :  { %1170 = vst.msk [vmem:[%s2417_s3 + $0x2f8] sm:$0xff] %vm86_vm1, %v891_v33  ;;  %1169 = vst.msk [vmem:[%s2417_s3 + $0x2f0] sm:$0xff] %vm86_vm1, %v889_v34 }
 0x17a   :  { %v831_v35 = vpop.permute.xlu1 %830  ;;  %v829_v36 = vpop.permute.xlu0 %828 }
 0x17b   :  { %1140 = vst.msk [vmem:[%s2417_s3 + $0x118] sm:$0xff] %vm86_vm1, %v831_v35  ;;  %1139 = vst.msk [vmem:[%s2417_s3 + $0x110] sm:$0xff] %vm86_vm1, %v829_v36 }
 0x17e   :  { %v895_v37 = vpop.permute.xlu1 %894  ;;  %v893_v38 = vpop.permute.xlu0 %892 }
 0x17f   :  { %1172 = vst.msk [vmem:[%s2417_s3 + $0x318] sm:$0xff] %vm86_vm1, %v895_v37  ;;  %1171 = vst.msk [vmem:[%s2417_s3 + $0x310] sm:$0xff] %vm86_vm1, %v893_v38 }
 0x182   :  { %v835_v39 = vpop.permute.xlu1 %834  ;;  %v833_v40 = vpop.permute.xlu0 %832 }
 0x183   :  { %1142 = vst.msk [vmem:[%s2417_s3 + $0x138] sm:$0xff] %vm86_vm1, %v835_v39  ;;  %1141 = vst.msk [vmem:[%s2417_s3 + $0x130] sm:$0xff] %vm86_vm1, %v833_v40 }
 0x186   :  { %v899_v41 = vpop.permute.xlu1 %898  ;;  %v897_v42 = vpop.permute.xlu0 %896 }
 0x187   :  { %1174 = vst.msk [vmem:[%s2417_s3 + $0x338] sm:$0xff] %vm86_vm1, %v899_v41  ;;  %1173 = vst.msk [vmem:[%s2417_s3 + $0x330] sm:$0xff] %vm86_vm1, %v897_v42 }
 0x18a   :  { %v839_v43 = vpop.permute.xlu1 %838  ;;  %v837_v44 = vpop.permute.xlu0 %836 }
 0x18b   :  { %1144 = vst.msk [vmem:[%s2417_s3 + $0x158] sm:$0xff] %vm86_vm1, %v839_v43  ;;  %1143 = vst.msk [vmem:[%s2417_s3 + $0x150] sm:$0xff] %vm86_vm1, %v837_v44 }
 0x18e   :  { %v903_v45 = vpop.permute.xlu1 %902  ;;  %v901_v46 = vpop.permute.xlu0 %900 }
 0x18f   :  { %1176 = vst.msk [vmem:[%s2417_s3 + $0x358] sm:$0xff] %vm86_vm1, %v903_v45  ;;  %1175 = vst.msk [vmem:[%s2417_s3 + $0x350] sm:$0xff] %vm86_vm1, %v901_v46 }
 0x192   :  { %v843_v47 = vpop.permute.xlu1 %842  ;;  %v841_v48 = vpop.permute.xlu0 %840 }
 0x193   :  { %1146 = vst.msk [vmem:[%s2417_s3 + $0x178] sm:$0xff] %vm86_vm1, %v843_v47  ;;  %1145 = vst.msk [vmem:[%s2417_s3 + $0x170] sm:$0xff] %vm86_vm1, %v841_v48 }
 0x196   :  { %v907_v49 = vpop.permute.xlu1 %906  ;;  %v905_v50 = vpop.permute.xlu0 %904 }
 0x197   :  { %1178 = vst.msk [vmem:[%s2417_s3 + $0x378] sm:$0xff] %vm86_vm1, %v907_v49  ;;  %1177 = vst.msk [vmem:[%s2417_s3 + $0x370] sm:$0xff] %vm86_vm1, %v905_v50 }
 0x19a   :  { %v847_v51 = vpop.permute.xlu1 %846  ;;  %v845_v52 = vpop.permute.xlu0 %844 }
 0x19b   :  { %1148 = vst.msk [vmem:[%s2417_s3 + $0x198] sm:$0xff] %vm86_vm1, %v847_v51  ;;  %1147 = vst.msk [vmem:[%s2417_s3 + $0x190] sm:$0xff] %vm86_vm1, %v845_v52 }
 0x19e   :  { %v911_v53 = vpop.permute.xlu1 %910  ;;  %v909_v54 = vpop.permute.xlu0 %908 }
 0x19f   :  { %1180 = vst.msk [vmem:[%s2417_s3 + $0x398] sm:$0xff] %vm86_vm1, %v911_v53  ;;  %1179 = vst.msk [vmem:[%s2417_s3 + $0x390] sm:$0xff] %vm86_vm1, %v909_v54 }
 0x1a2   :  { %v851_v55 = vpop.permute.xlu1 %850  ;;  %v849_v56 = vpop.permute.xlu0 %848 }
 0x1a3   :  { %1150 = vst.msk [vmem:[%s2417_s3 + $0x1b8] sm:$0xff] %vm86_vm1, %v851_v55  ;;  %1149 = vst.msk [vmem:[%s2417_s3 + $0x1b0] sm:$0xff] %vm86_vm1, %v849_v56 }
 0x1a6   :  { %v915_v57 = vpop.permute.xlu1 %914  ;;  %v913_v58 = vpop.permute.xlu0 %912 }
 0x1a7   :  { %1182 = vst.msk [vmem:[%s2417_s3 + $0x3b8] sm:$0xff] %vm86_vm1, %v915_v57  ;;  %1181 = vst.msk [vmem:[%s2417_s3 + $0x3b0] sm:$0xff] %vm86_vm1, %v913_v58 }
 0x1aa   :  { %v855_v59 = vpop.permute.xlu1 %854  ;;  %v853_v62 = vpop.permute.xlu0 %852 }
 0x1ab   :  { %1152 = vst.msk [vmem:[%s2417_s3 + $0x1d8] sm:$0xff] %vm86_vm1, %v855_v59  ;;  %1151 = vst.msk [vmem:[%s2417_s3 + $0x1d0] sm:$0xff] %vm86_vm1, %v853_v62 }
 0x1ae   :  { %v919_v60 = vpop.permute.xlu1 %918  ;;  %v917_v63 = vpop.permute.xlu0 %916 }
 0x1af   :  { %1184 = vst.msk [vmem:[%s2417_s3 + $0x3d8] sm:$0xff] %vm86_vm1, %v919_v60  ;;  %1183 = vst.msk [vmem:[%s2417_s3 + $0x3d0] sm:$0xff] %vm86_vm1, %v917_v63 }
 0x1b2   :  { %v859_v0 = vpop.permute.xlu1 %858  ;;  %v857_v3 = vpop.permute.xlu0 %856 }
 0x1b3   :  { %1154 = vst.msk [vmem:[%s2417_s3 + $0x1f8] sm:$0xff] %vm86_vm1, %v859_v0  ;;  %1153 = vst.msk [vmem:[%s2417_s3 + $0x1f0] sm:$0xff] %vm86_vm1, %v857_v3 }
 0x1b6   :  { %v923_v4 = vpop.permute.xlu1 %922  ;;  %v921_v7 = vpop.permute.xlu0 %920 }
 0x1b7   :  { %1186 = vst.msk [vmem:[%s2417_s3 + $0x3f8] sm:$0xff] %vm86_vm1, %v923_v4  ;;  %1185 = vst.msk [vmem:[%s2417_s3 + $0x3f0] sm:$0xff] %vm86_vm1, %v921_v7 }

// kernel: convup_forward.4
= control target key start
LH: loop header
LB: loop body
LE: loop exit
PB: predicated region body
PF: predicated region fallthrough
CT: control target
= control target key end

     0   :  { %s11322_s21 = smov 0   ;;  %s11324_s22 = smov 0   ;;  %s15805_s0 = inlined_call_operand.vmem [shape: f32[2,32,32,2], index: 0, kind: input, shape index: {}, may-alias: {0,1,2}]   ;;  %s15806_s1 = inlined_call_operand.vmem [shape: f32[2,32,32,2], index: 1, kind: input, shape index: {}, may-alias: {0,1,2}]   ;;  %s15807_s2 = inlined_call_operand.vmem [shape: f32[2,32,32,2], index: 2, kind: input, shape index: {}, may-alias: {0,1,2}]   ;;  %s15808_s3 = inlined_call_operand.vmem [shape: f32[3,6,2], index: 3, kind: input, shape index: {}]   ;;  %s15809_s4 = inlined_call_operand.vmem [shape: f32[1,2], index: 4, kind: input, shape index: {}]   ;;  %s15810_s5 = inlined_call_operand.vmem [shape: f32[1,2], index: 5, kind: input, shape index: {}]   ;;  %s15811_s6 = inlined_call_operand.vmem [shape: f32[2,32,32,2], index: 6, kind: output, shape index: {}]  }
   0x1   :  { %s11326_s1 = smov 0  }
   0x2 LB: > { %s28_s2 = sadd.s32 1, %s11278_s22  ;;  %p9849_p0 = scmp.ge.s32.totalorder %s11282_s1, 1  ;;  %s11282_s1 = sphi %s11326_s1, %s16_s1   ;;  %s11278_s22 = sphi %s11324_s22, %s16657_s22   ;;  %s11274_s21 = sphi %s11322_s21, %s16656_s21  }
   0x3   : > { %p30_p1 = scmp.ge.s32.totalorder %s28_s2, 2  ;;  %p298_p2 = scmp.lt.s32.totalorder %s11282_s1, 3 }
   0x5   : > { %s16659_s2 = smov (%p30_p1, %s28_s2), 0  ;;  %p299_p3 = pnand %p9849_p0, %p298_p2 }
   0x7   : > { %302 = sbr.rel (%p299_p3) target bundleno = 1905 (0x771), region = 44 }
   0xc   : > { %vm618_vm0 = vcmask 15360   ;;  %p365_p4 = scmp.lt.s32.totalorder %s11274_s21, 1  ;;  %vm420_vm1 = vcmask 8192   ;;  %v11284_v0 = vmov 0.0   ;;  %s11285_s27 = smov 2   ;;  %vm4493_vm2 = vcmask 1045504  }
   0xd   : > { %765 = vst.msk [vmem:[#allocation2 + $0x11] sm:$0xff] %vm618_vm0, %v11284_v0  ;;  %763 = vst.msk [vmem:[#allocation2 + $0x1] sm:$0xff] %vm618_vm0, %v11284_v0  ;;  %s11286_s28 = smov 4   ;;  %vm2312_vm3 = vcmask 31744   ;;  %vm4108_vm4 = vcmask 48128  }
   0xe   : > { %764 = vst.msk [vmem:[#allocation2 + $0x9] sm:$0xff] %vm618_vm0, %v11284_v0  ;;  %766 = vst.msk [vmem:[#allocation2 + $0x19] sm:$0xff] %vm618_vm0, %v11284_v0  ;;  %s16661_s21 = smov (!%p365_p4, %s11274_s21), 1 }
   0xf   : > { %772 = vst.msk [vmem:[#allocation2 + $0x529] sm:$0xff] %vm618_vm0, %v11284_v0  ;;  %773 = vst.msk [vmem:[#allocation2 + $0x531] sm:$0xff] %vm618_vm0, %v11284_v0  ;;  %s10251_s23 = sshll.u32 %s16661_s21, 10 }
  0x10   : > { %774 = vst.msk [vmem:[#allocation2 + $0x539] sm:$0xff] %vm618_vm0, %v11284_v0  ;;  %775 = vst.msk [vmem:[#allocation2 + $0x541] sm:$0xff] %vm618_vm0, %v11284_v0  ;;  %s11506_s26 = scalar_lea.vmem %s15805_s0, %s10251_s23  ;;  %s14690_s17 = scalar_lea.vmem %s15811_s6, %s10251_s23 }
  0x11   : > { %421 = vst.msk [vmem:[#allocation2] sm:$0x1] %vm420_vm1, %v11284_v0  ;;  %422 = vst.msk [vmem:[#allocation2 + $0x28] sm:$0x1] %vm420_vm1, %v11284_v0  ;;  %v490_v1 = vld [vmem:[%s11506_s26 + $0x8] sm:$0xff]  ;;  %v489_v2 = vld [vmem:[%s11506_s26] sm:$0xff] }
  0x12   : > { %423 = vst.msk [vmem:[#allocation2 + $0x50] sm:$0x1] %vm420_vm1, %v11284_v0  ;;  %424 = vst.msk [vmem:[#allocation2 + $0x78] sm:$0x1] %vm420_vm1, %v11284_v0  ;;  %v492_v3 = vld [vmem:[%s11506_s26 + $0x18] sm:$0xff]  ;;  %v491_v4 = vld [vmem:[%s11506_s26 + $0x10] sm:$0xff] }
  0x13   : > { %425 = vst.msk [vmem:[#allocation2 + $0xa0] sm:$0x1] %vm420_vm1, %v11284_v0  ;;  %426 = vst.msk [vmem:[#allocation2 + $0xc8] sm:$0x1] %vm420_vm1, %v11284_v0  ;;  %v494_v5 = vld [vmem:[%s11506_s26 + $0x28] sm:$0xff]  ;;  %v493_v6 = vld [vmem:[%s11506_s26 + $0x20] sm:$0xff] }
  0x14   : > { %427 = vst.msk [vmem:[#allocation2 + $0xf0] sm:$0x1] %vm420_vm1, %v11284_v0  ;;  %428 = vst.msk [vmem:[#allocation2 + $0x118] sm:$0x1] %vm420_vm1, %v11284_v0  ;;  %v906_v7 = vld [vmem:[#allocation2 + $0x11] sm:$0xff]  ;;  %v904_v8 = vld [vmem:[#allocation2 + $0x1] sm:$0xff] }
  0x15   : > { %429 = vst.msk [vmem:[#allocation2 + $0x140] sm:$0x1] %vm420_vm1, %v11284_v0  ;;  %430 = vst.msk [vmem:[#allocation2 + $0x168] sm:$0x1] %vm420_vm1, %v11284_v0  ;;  %v907_v9 = vld [vmem:[#allocation2 + $0x19] sm:$0xff]  ;;  %1292 = vrot.lane.b32.xlu1 %v906_v7, %s11285_s27  ;;  %1288 = vrot.lane.b32.xlu0 %v904_v8, %s11285_s27  ;;  %v905_v10 = vld [vmem:[#allocation2 + $0x9] sm:$0xff] }
  0x16   : > { %431 = vst.msk [vmem:[#allocation2 + $0x190] sm:$0x1] %vm420_vm1, %v11284_v0  ;;  %432 = vst.msk [vmem:[#allocation2 + $0x1b8] sm:$0x1] %vm420_vm1, %v11284_v0  ;;  %v496_v11 = vld [vmem:[%s11506_s26 + $0x38] sm:$0xff]  ;;  %v495_v12 = vld [vmem:[%s11506_s26 + $0x30] sm:$0xff] }
  0x17   : > { %433 = vst.msk [vmem:[#allocation2 + $0x1e0] sm:$0x1] %vm420_vm1, %v11284_v0  ;;  %434 = vst.msk [vmem:[#allocation2 + $0x208] sm:$0x1] %vm420_vm1, %v11284_v0  ;;  %v498_v13 = vld [vmem:[%s11506_s26 + $0x48] sm:$0xff]  ;;  %v497_v14 = vld [vmem:[%s11506_s26 + $0x40] sm:$0xff] }
  0x18   : > { %435 = vst.msk [vmem:[#allocation2 + $0x230] sm:$0x1] %vm420_vm1, %v11284_v0  ;;  %436 = vst.msk [vmem:[#allocation2 + $0x258] sm:$0x1] %vm420_vm1, %v11284_v0  ;;  %v500_v15 = vld [vmem:[%s11506_s26 + $0x58] sm:$0xff]  ;;  %v499_v16 = vld [vmem:[%s11506_s26 + $0x50] sm:$0xff] }
  0x19   : > { %437 = vst.msk [vmem:[#allocation2 + $0x280] sm:$0x1] %vm420_vm1, %v11284_v0  ;;  %438 = vst.msk [vmem:[#allocation2 + $0x2a8] sm:$0x1] %vm420_vm1, %v11284_v0  ;;  %v502_v17 = vld [vmem:[%s11506_s26 + $0x68] sm:$0xff]  ;;  %v501_v18 = vld [vmem:[%s11506_s26 + $0x60] sm:$0xff]  ;;  %1294 = vrot.lane.b32.xlu1 %v907_v9, %s11285_s27  ;;  %1290 = vrot.lane.b32.xlu0 %v905_v10, %s11285_s27 }
  0x1a   : > { %439 = vst.msk [vmem:[#allocation2 + $0x2d0] sm:$0x1] %vm420_vm1, %v11284_v0  ;;  %440 = vst.msk [vmem:[#allocation2 + $0x2f8] sm:$0x1] %vm420_vm1, %v11284_v0  ;;  %v504_v19 = vld [vmem:[%s11506_s26 + $0x78] sm:$0xff]  ;;  %v503_v20 = vld [vmem:[%s11506_s26 + $0x70] sm:$0xff] }
  0x1b   : > { %441 = vst.msk [vmem:[#allocation2 + $0x320] sm:$0x1] %vm420_vm1, %v11284_v0  ;;  %442 = vst.msk [vmem:[#allocation2 + $0x348] sm:$0x1] %vm420_vm1, %v11284_v0  ;;  %v506_v21 = vld [vmem:[%s11506_s26 + $0x88] sm:$0xff]  ;;  %v505_v22 = vld [vmem:[%s11506_s26 + $0x80] sm:$0xff] }
  0x1c   : > { %443 = vst.msk [vmem:[#allocation2 + $0x370] sm:$0x1] %vm420_vm1, %v11284_v0  ;;  %444 = vst.msk [vmem:[#allocation2 + $0x398] sm:$0x1] %vm420_vm1, %v11284_v0  ;;  %v508_v23 = vld [vmem:[%s11506_s26 + $0x98] sm:$0xff]  ;;  %v507_v26 = vld [vmem:[%s11506_s26 + $0x90] sm:$0xff] }
  0x1d   : > { %445 = vst.msk [vmem:[#allocation2 + $0x3c0] sm:$0x1] %vm420_vm1, %v11284_v0  ;;  %446 = vst.msk [vmem:[#allocation2 + $0x3e8] sm:$0x1] %vm420_vm1, %v11284_v0  ;;  %v510_v27 = vld [vmem:[%s11506_s26 + $0xa8] sm:$0xff]  ;;  %v509_v28 = vld [vmem:[%s11506_s26 + $0xa0] sm:$0xff] }
  0x1e   : > { %447 = vst.msk [vmem:[#allocation2 + $0x410] sm:$0x1] %vm420_vm1, %v11284_v0  ;;  %448 = vst.msk [vmem:[#allocation2 + $0x438] sm:$0x1] %vm420_vm1, %v11284_v0  ;;  %v512_v29 = vld [vmem:[%s11506_s26 + $0xb8] sm:$0xff]  ;;  %v511_v34 = vld [vmem:[%s11506_s26 + $0xb0] sm:$0xff] }
  0x1f   : > { %449 = vst.msk [vmem:[#allocation2 + $0x460] sm:$0x1] %vm420_vm1, %v11284_v0  ;;  %450 = vst.msk [vmem:[#allocation2 + $0x488] sm:$0x1] %vm420_vm1, %v11284_v0  ;;  %v514_v35 = vld [vmem:[%s11506_s26 + $0xc8] sm:$0xff]  ;;  %v513_v36 = vld [vmem:[%s11506_s26 + $0xc0] sm:$0xff] }
  0x20   : > { %451 = vst.msk [vmem:[#allocation2 + $0x4b0] sm:$0x1] %vm420_vm1, %v11284_v0  ;;  %452 = vst.msk [vmem:[#allocation2 + $0x4d8] sm:$0x1] %vm420_vm1, %v11284_v0  ;;  %v516_v37 = vld [vmem:[%s11506_s26 + $0xd8] sm:$0xff]  ;;  %v515_v38 = vld [vmem:[%s11506_s26 + $0xd0] sm:$0xff] }
  0x21   : > { %453 = vst.msk [vmem:[#allocation2 + $0x500] sm:$0x1] %vm420_vm1, %v11284_v0  ;;  %454 = vst.msk [vmem:[#allocation2 + $0x528] sm:$0x1] %vm420_vm1, %v11284_v0  ;;  %v518_v39 = vld [vmem:[%s11506_s26 + $0xe8] sm:$0xff]  ;;  %v517_v40 = vld [vmem:[%s11506_s26 + $0xe0] sm:$0xff] }
  0x22   : > { %455 = vst.msk [vmem:[#allocation2 + $0x21] sm:$0x1] %vm420_vm1, %v11284_v0  ;;  %456 = vst.msk [vmem:[#allocation2 + $0x49] sm:$0x1] %vm420_vm1, %v11284_v0  ;;  %v520_v43 = vld [vmem:[%s11506_s26 + $0xf8] sm:$0xff]  ;;  %v519_v44 = vld [vmem:[%s11506_s26 + $0xf0] sm:$0xff] }
  0x23   : > { %457 = vst.msk [vmem:[#allocation2 + $0x71] sm:$0x1] %vm420_vm1, %v11284_v0  ;;  %458 = vst.msk [vmem:[#allocation2 + $0x99] sm:$0x1] %vm420_vm1, %v11284_v0  ;;  %v522_v45 = vld [vmem:[%s11506_s26 + $0x108] sm:$0xff]  ;;  %v521_v46 = vld [vmem:[%s11506_s26 + $0x100] sm:$0xff] }
  0x24   : > { %459 = vst.msk [vmem:[#allocation2 + $0xc1] sm:$0x1] %vm420_vm1, %v11284_v0  ;;  %460 = vst.msk [vmem:[#allocation2 + $0xe9] sm:$0x1] %vm420_vm1, %v11284_v0  ;;  %v524_v47 = vld [vmem:[%s11506_s26 + $0x118] sm:$0xff]  ;;  %v523_v48 = vld [vmem:[%s11506_s26 + $0x110] sm:$0xff] }
  0x25   : > { %461 = vst.msk [vmem:[#allocation2 + $0x111] sm:$0x1] %vm420_vm1, %v11284_v0  ;;  %462 = vst.msk [vmem:[#allocation2 + $0x139] sm:$0x1] %vm420_vm1, %v11284_v0  ;;  %v526_v49 = vld [vmem:[%s11506_s26 + $0x128] sm:$0xff]  ;;  %v525_v50 = vld [vmem:[%s11506_s26 + $0x120] sm:$0xff] }
  0x26   : > { %463 = vst.msk [vmem:[#allocation2 + $0x161] sm:$0x1] %vm420_vm1, %v11284_v0  ;;  %464 = vst.msk [vmem:[#allocation2 + $0x189] sm:$0x1] %vm420_vm1, %v11284_v0  ;;  %v528_v51 = vld [vmem:[%s11506_s26 + $0x138] sm:$0xff]  ;;  %v527_v52 = vld [vmem:[%s11506_s26 + $0x130] sm:$0xff] }
  0x27   : > { %465 = vst.msk [vmem:[#allocation2 + $0x1b1] sm:$0x1] %vm420_vm1, %v11284_v0  ;;  %466 = vst.msk [vmem:[#allocation2 + $0x1d9] sm:$0x1] %vm420_vm1, %v11284_v0  ;;  %v530_v53 = vld [vmem:[%s11506_s26 + $0x148] sm:$0xff]  ;;  %v529_v54 = vld [vmem:[%s11506_s26 + $0x140] sm:$0xff] }
  0x28   : > { %467 = vst.msk [vmem:[#allocation2 + $0x201] sm:$0x1] %vm420_vm1, %v11284_v0  ;;  %468 = vst.msk [vmem:[#allocation2 + $0x229] sm:$0x1] %vm420_vm1, %v11284_v0  ;;  %v532_v55 = vld [vmem:[%s11506_s26 + $0x158] sm:$0xff]  ;;  %v531_v58 = vld [vmem:[%s11506_s26 + $0x150] sm:$0xff] }
  0x29   : > { %469 = vst.msk [vmem:[#allocation2 + $0x251] sm:$0x1] %vm420_vm1, %v11284_v0  ;;  %470 = vst.msk [vmem:[#allocation2 + $0x279] sm:$0x1] %vm420_vm1, %v11284_v0  ;;  %v534_v59 = vld [vmem:[%s11506_s26 + $0x168] sm:$0xff]  ;;  %v533_v60 = vld [vmem:[%s11506_s26 + $0x160] sm:$0xff] }
  0x2a   : > { %471 = vst.msk [vmem:[#allocation2 + $0x2a1] sm:$0x1] %vm420_vm1, %v11284_v0  ;;  %472 = vst.msk [vmem:[#allocation2 + $0x2c9] sm:$0x1] %vm420_vm1, %v11284_v0  ;;  %v536_v61 = vld [vmem:[%s11506_s26 + $0x178] sm:$0xff]  ;;  %v542_v7 = vld [vmem:[%s11506_s26 + $0x1a8] sm:$0xff] }
  0x2b   : > { %473 = vst.msk [vmem:[#allocation2 + $0x2f1] sm:$0x1] %vm420_vm1, %v11284_v0  ;;  %474 = vst.msk [vmem:[#allocation2 + $0x319] sm:$0x1] %vm420_vm1, %v11284_v0  ;;  %v541_v8 = vld [vmem:[%s11506_s26 + $0x1a0] sm:$0xff]  ;;  %v544_v9 = vld [vmem:[%s11506_s26 + $0x1b8] sm:$0xff] }
  0x2c   : > { %475 = vst.msk [vmem:[#allocation2 + $0x341] sm:$0x1] %vm420_vm1, %v11284_v0  ;;  %476 = vst.msk [vmem:[#allocation2 + $0x369] sm:$0x1] %vm420_vm1, %v11284_v0 }
  0x2d   : > { %477 = vst.msk [vmem:[#allocation2 + $0x391] sm:$0x1] %vm420_vm1, %v11284_v0  ;;  %478 = vst.msk [vmem:[#allocation2 + $0x3b9] sm:$0x1] %vm420_vm1, %v11284_v0 }
  0x2e   : > { %479 = vst.msk [vmem:[#allocation2 + $0x3e1] sm:$0x1] %vm420_vm1, %v11284_v0  ;;  %480 = vst.msk [vmem:[#allocation2 + $0x409] sm:$0x1] %vm420_vm1, %v11284_v0 }
  0x2f   : > { %481 = vst.msk [vmem:[#allocation2 + $0x431] sm:$0x1] %vm420_vm1, %v11284_v0  ;;  %482 = vst.msk [vmem:[#allocation2 + $0x459] sm:$0x1] %vm420_vm1, %v11284_v0 }
  0x30   : > { %483 = vst.msk [vmem:[#allocation2 + $0x481] sm:$0x1] %vm420_vm1, %v11284_v0  ;;  %484 = vst.msk [vmem:[#allocation2 + $0x4a9] sm:$0x1] %vm420_vm1, %v11284_v0 }
  0x31   : > { %485 = vst.msk [vmem:[#allocation2 + $0x4d1] sm:$0x1] %vm420_vm1, %v11284_v0  ;;  %486 = vst.msk [vmem:[#allocation2 + $0x4f9] sm:$0x1] %vm420_vm1, %v11284_v0 }
  0x32   : > { %487 = vst.msk [vmem:[#allocation2 + $0x521] sm:$0x1] %vm420_vm1, %v11284_v0  ;;  %488 = vst.msk [vmem:[#allocation2 + $0x549] sm:$0x1] %vm420_vm1, %v11284_v0 }
  0x33   : > { %620 = vst.msk [vmem:[#allocation2 + $0x31] sm:$0xff] %vm618_vm0, %v490_v1  ;;  %619 = vst.msk [vmem:[#allocation2 + $0x29] sm:$0xff] %vm618_vm0, %v489_v2  ;;  %v535_v2 = vld [vmem:[%s11506_s26 + $0x170] sm:$0xff] }
  0x34   : > { %622 = vst.msk [vmem:[#allocation2 + $0x41] sm:$0xff] %vm618_vm0, %v492_v3  ;;  %621 = vst.msk [vmem:[#allocation2 + $0x39] sm:$0xff] %vm618_vm0, %v491_v4  ;;  %v538_v3 = vld [vmem:[%s11506_s26 + $0x188] sm:$0xff]  ;;  %v537_v4 = vld [vmem:[%s11506_s26 + $0x180] sm:$0xff] }
  0x35   : > { %624 = vst.msk [vmem:[#allocation2 + $0x59] sm:$0xff] %vm618_vm0, %v494_v5  ;;  %623 = vst.msk [vmem:[#allocation2 + $0x51] sm:$0xff] %vm618_vm0, %v493_v6  ;;  %v540_v5 = vld [vmem:[%s11506_s26 + $0x198] sm:$0xff]  ;;  %v539_v6 = vld [vmem:[%s11506_s26 + $0x190] sm:$0xff] }
  0x36   : > { %626 = vst.msk [vmem:[#allocation2 + $0x69] sm:$0xff] %vm618_vm0, %v496_v11  ;;  %625 = vst.msk [vmem:[#allocation2 + $0x61] sm:$0xff] %vm618_vm0, %v495_v12  ;;  %v543_v12 = vld [vmem:[%s11506_s26 + $0x1b0] sm:$0xff] }
  0x37   : > { %628 = vst.msk [vmem:[#allocation2 + $0x81] sm:$0xff] %vm618_vm0, %v498_v13  ;;  %627 = vst.msk [vmem:[#allocation2 + $0x79] sm:$0xff] %vm618_vm0, %v497_v14  ;;  %v546_v13 = vld [vmem:[%s11506_s26 + $0x1c8] sm:$0xff]  ;;  %v545_v14 = vld [vmem:[%s11506_s26 + $0x1c0] sm:$0xff] }
  0x38   : > { %630 = vst.msk [vmem:[#allocation2 + $0x91] sm:$0xff] %vm618_vm0, %v500_v15  ;;  %629 = vst.msk [vmem:[#allocation2 + $0x89] sm:$0xff] %vm618_vm0, %v499_v16  ;;  %v548_v15 = vld [vmem:[%s11506_s26 + $0x1d8] sm:$0xff]  ;;  %v547_v16 = vld [vmem:[%s11506_s26 + $0x1d0] sm:$0xff] }
  0x39   : > { %632 = vst.msk [vmem:[#allocation2 + $0xa9] sm:$0xff] %vm618_vm0, %v502_v17  ;;  %631 = vst.msk [vmem:[#allocation2 + $0xa1] sm:$0xff] %vm618_vm0, %v501_v18 }
  0x3a   : > { %634 = vst.msk [vmem:[#allocation2 + $0xb9] sm:$0xff] %vm618_vm0, %v504_v19  ;;  %633 = vst.msk [vmem:[#allocation2 + $0xb1] sm:$0xff] %vm618_vm0, %v503_v20  ;;  %v909_v24 = vld [vmem:[#allocation2 + $0x31] sm:$0xff]  ;;  %v908_v25 = vld [vmem:[#allocation2 + $0x29] sm:$0xff] }
  0x3b   : > { %636 = vst.msk [vmem:[#allocation2 + $0xd1] sm:$0xff] %vm618_vm0, %v506_v21  ;;  %635 = vst.msk [vmem:[#allocation2 + $0xc9] sm:$0xff] %vm618_vm0, %v505_v22  ;;  %1298 = vrot.lane.b32.xlu1 %v909_v24, %s11285_s27  ;;  %1296 = vrot.lane.b32.xlu0 %v908_v25, %s11285_s27  ;;  %v911_v30 = vld [vmem:[#allocation2 + $0x41] sm:$0xff]  ;;  %v910_v31 = vld [vmem:[#allocation2 + $0x39] sm:$0xff] }
  0x3c   : > { %638 = vst.msk [vmem:[#allocation2 + $0xe1] sm:$0xff] %vm618_vm0, %v508_v23  ;;  %637 = vst.msk [vmem:[#allocation2 + $0xd9] sm:$0xff] %vm618_vm0, %v507_v26  ;;  %v913_v32 = vld [vmem:[#allocation2 + $0x59] sm:$0xff]  ;;  %v912_v33 = vld [vmem:[#allocation2 + $0x51] sm:$0xff] }
  0x3d   : > { %640 = vst.msk [vmem:[#allocation2 + $0xf9] sm:$0xff] %vm618_vm0, %v510_v27  ;;  %639 = vst.msk [vmem:[#allocation2 + $0xf1] sm:$0xff] %vm618_vm0, %v509_v28  ;;  %v915_v41 = vld [vmem:[#allocation2 + $0x69] sm:$0xff]  ;;  %v914_v42 = vld [vmem:[#allocation2 + $0x61] sm:$0xff] }
  0x3e   : > { %642 = vst.msk [vmem:[#allocation2 + $0x109] sm:$0xff] %vm618_vm0, %v512_v29  ;;  %641 = vst.msk [vmem:[#allocation2 + $0x101] sm:$0xff] %vm618_vm0, %v511_v34  ;;  %v917_v56 = vld [vmem:[#allocation2 + $0x81] sm:$0xff]  ;;  %v916_v57 = vld [vmem:[#allocation2 + $0x79] sm:$0xff] }
  0x3f   : > { %1302 = vrot.lane.b32.xlu1 %v911_v30, %s11285_s27  ;;  %1300 = vrot.lane.b32.xlu0 %v910_v31, %s11285_s27  ;;  %644 = vst.msk [vmem:[#allocation2 + $0x121] sm:$0xff] %vm618_vm0, %v514_v35  ;;  %643 = vst.msk [vmem:[#allocation2 + $0x119] sm:$0xff] %vm618_vm0, %v513_v36  ;;  %v919_v62 = vld [vmem:[#allocation2 + $0x91] sm:$0xff]  ;;  %v918_v63 = vld [vmem:[#allocation2 + $0x89] sm:$0xff] }
  0x40   : > { %646 = vst.msk [vmem:[#allocation2 + $0x131] sm:$0xff] %vm618_vm0, %v516_v37  ;;  %645 = vst.msk [vmem:[#allocation2 + $0x129] sm:$0xff] %vm618_vm0, %v515_v38  ;;  %v921_v0 = vld [vmem:[#allocation2 + $0xa9] sm:$0xff]  ;;  %v920_v1 = vld [vmem:[#allocation2 + $0xa1] sm:$0xff] }
  0x41   : > { %648 = vst.msk [vmem:[#allocation2 + $0x149] sm:$0xff] %vm618_vm0, %v518_v39  ;;  %647 = vst.msk [vmem:[#allocation2 + $0x141] sm:$0xff] %vm618_vm0, %v517_v40  ;;  %v923_v10 = vld [vmem:[#allocation2 + $0xb9] sm:$0xff]  ;;  %v922_v11 = vld [vmem:[#allocation2 + $0xb1] sm:$0xff] }
  0x42   : > { %650 = vst.msk [vmem:[#allocation2 + $0x159] sm:$0xff] %vm618_vm0, %v520_v43  ;;  %649 = vst.msk [vmem:[#allocation2 + $0x151] sm:$0xff] %vm618_vm0, %v519_v44  ;;  %v925_v17 = vld [vmem:[#allocation2 + $0xd1] sm:$0xff]  ;;  %v924_v18 = vld [vmem:[#allocation2 + $0xc9] sm:$0xff] }
  0x43   : > { %1306 = vrot.lane.b32.xlu1 %v913_v32, %s11285_s27  ;;  %1304 = vrot.lane.b32.xlu0 %v912_v33, %s11285_s27  ;;  %652 = vst.msk [vmem:[#allocation2 + $0x171] sm:$0xff] %vm618_vm0, %v522_v45  ;;  %651 = vst.msk [vmem:[#allocation2 + $0x169] sm:$0xff] %vm618_vm0, %v521_v46  ;;  %v550_v19 = vld [vmem:[%s11506_s26 + $0x1e8] sm:$0xff]  ;;  %v549_v20 = vld [vmem:[%s11506_s26 + $0x1e0] sm:$0xff] }
  0x44   : > { %654 = vst.msk [vmem:[#allocation2 + $0x181] sm:$0xff] %vm618_vm0, %v524_v47  ;;  %653 = vst.msk [vmem:[#allocation2 + $0x179] sm:$0xff] %vm618_vm0, %v523_v48  ;;  %v552_v21 = vld [vmem:[%s11506_s26 + $0x1f8] sm:$0xff]  ;;  %v927_v22 = vld [vmem:[#allocation2 + $0xe1] sm:$0xff] }
  0x45   : > { %656 = vst.msk [vmem:[#allocation2 + $0x199] sm:$0xff] %vm618_vm0, %v526_v49  ;;  %655 = vst.msk [vmem:[#allocation2 + $0x191] sm:$0xff] %vm618_vm0, %v525_v50  ;;  %v926_v23 = vld [vmem:[#allocation2 + $0xd9] sm:$0xff]  ;;  %v551_v24 = vld [vmem:[%s11506_s26 + $0x1f0] sm:$0xff] }
  0x46   : > { %658 = vst.msk [vmem:[#allocation2 + $0x1a9] sm:$0xff] %vm618_vm0, %v528_v51  ;;  %657 = vst.msk [vmem:[#allocation2 + $0x1a1] sm:$0xff] %vm618_vm0, %v527_v52  ;;  %v554_v25 = vld [vmem:[%s11506_s26 + $0x208] sm:$0xff]  ;;  %v929_v26 = vld [vmem:[#allocation2 + $0xf9] sm:$0xff] }
  0x47   : > { %1310 = vrot.lane.b32.xlu1 %v915_v41, %s11285_s27  ;;  %1308 = vrot.lane.b32.xlu0 %v914_v42, %s11285_s27  ;;  %660 = vst.msk [vmem:[#allocation2 + $0x1c1] sm:$0xff] %vm618_vm0, %v530_v53  ;;  %659 = vst.msk [vmem:[#allocation2 + $0x1b9] sm:$0xff] %vm618_vm0, %v529_v54  ;;  %v553_v27 = vld [vmem:[%s11506_s26 + $0x200] sm:$0xff]  ;;  %v928_v28 = vld [vmem:[#allocation2 + $0xf1] sm:$0xff] }
  0x48   : > { %662 = vst.msk [vmem:[#allocation2 + $0x1d1] sm:$0xff] %vm618_vm0, %v532_v55  ;;  %661 = vst.msk [vmem:[#allocation2 + $0x1c9] sm:$0xff] %vm618_vm0, %v531_v58  ;;  %v556_v29 = vld [vmem:[%s11506_s26 + $0x218] sm:$0xff]  ;;  %v555_v30 = vld [vmem:[%s11506_s26 + $0x210] sm:$0xff] }
  0x49   : > { %664 = vst.msk [vmem:[#allocation2 + $0x1e9] sm:$0xff] %vm618_vm0, %v534_v59  ;;  %663 = vst.msk [vmem:[#allocation2 + $0x1e1] sm:$0xff] %vm618_vm0, %v533_v60  ;;  %v558_v31 = vld [vmem:[%s11506_s26 + $0x228] sm:$0xff]  ;;  %v557_v32 = vld [vmem:[%s11506_s26 + $0x220] sm:$0xff] }
  0x4a   : > { %666 = vst.msk [vmem:[#allocation2 + $0x1f9] sm:$0xff] %vm618_vm0, %v536_v61  ;;  %665 = vst.msk [vmem:[#allocation2 + $0x1f1] sm:$0xff] %vm618_vm0, %v535_v2  ;;  %v560_v33 = vld [vmem:[%s11506_s26 + $0x238] sm:$0xff]  ;;  %v931_v34 = vld [vmem:[#allocation2 + $0x109] sm:$0xff] }
  0x4b   : > { %1314 = vrot.lane.b32.xlu1 %v917_v56, %s11285_s27  ;;  %1312 = vrot.lane.b32.xlu0 %v916_v57, %s11285_s27  ;;  %668 = vst.msk [vmem:[#allocation2 + $0x211] sm:$0xff] %vm618_vm0, %v538_v3  ;;  %667 = vst.msk [vmem:[#allocation2 + $0x209] sm:$0xff] %vm618_vm0, %v537_v4  ;;  %v930_v35 = vld [vmem:[#allocation2 + $0x101] sm:$0xff]  ;;  %v559_v36 = vld [vmem:[%s11506_s26 + $0x230] sm:$0xff] }
  0x4c   : > { %670 = vst.msk [vmem:[#allocation2 + $0x221] sm:$0xff] %vm618_vm0, %v540_v5  ;;  %669 = vst.msk [vmem:[#allocation2 + $0x219] sm:$0xff] %vm618_vm0, %v539_v6  ;;  %v562_v37 = vld [vmem:[%s11506_s26 + $0x248] sm:$0xff]  ;;  %v561_v38 = vld [vmem:[%s11506_s26 + $0x240] sm:$0xff] }
  0x4d   : > { %672 = vst.msk [vmem:[#allocation2 + $0x239] sm:$0xff] %vm618_vm0, %v542_v7  ;;  %671 = vst.msk [vmem:[#allocation2 + $0x231] sm:$0xff] %vm618_vm0, %v541_v8  ;;  %v564_v39 = vld [vmem:[%s11506_s26 + $0x258] sm:$0xff]  ;;  %v563_v40 = vld [vmem:[%s11506_s26 + $0x250] sm:$0xff] }
  0x4e   : > { %674 = vst.msk [vmem:[#allocation2 + $0x249] sm:$0xff] %vm618_vm0, %v544_v9  ;;  %673 = vst.msk [vmem:[#allocation2 + $0x241] sm:$0xff] %vm618_vm0, %v543_v12  ;;  %v933_v41 = vld [vmem:[#allocation2 + $0x121] sm:$0xff]  ;;  %v932_v42 = vld [vmem:[#allocation2 + $0x119] sm:$0xff] }
  0x4f   : > { %1318 = vrot.lane.b32.xlu1 %v919_v62, %s11285_s27  ;;  %1316 = vrot.lane.b32.xlu0 %v918_v63, %s11285_s27  ;;  %676 = vst.msk [vmem:[#allocation2 + $0x261] sm:$0xff] %vm618_vm0, %v546_v13  ;;  %675 = vst.msk [vmem:[#allocation2 + $0x259] sm:$0xff] %vm618_vm0, %v545_v14  ;;  %v566_v43 = vld [vmem:[%s11506_s26 + $0x268] sm:$0xff]  ;;  %v565_v44 = vld [vmem:[%s11506_s26 + $0x260] sm:$0xff] }
  0x50   : > { %678 = vst.msk [vmem:[#allocation2 + $0x271] sm:$0xff] %vm618_vm0, %v548_v15  ;;  %677 = vst.msk [vmem:[#allocation2 + $0x269] sm:$0xff] %vm618_vm0, %v547_v16  ;;  %v568_v45 = vld [vmem:[%s11506_s26 + $0x278] sm:$0xff]  ;;  %v934_v47 = vld [vmem:[#allocation2 + $0x129] sm:$0xff] }
  0x51   : > { %680 = vst.msk [vmem:[#allocation2 + $0x289] sm:$0xff] %vm618_vm0, %v550_v19  ;;  %679 = vst.msk [vmem:[#allocation2 + $0x281] sm:$0xff] %vm618_vm0, %v549_v20  ;;  %v935_v46 = vld [vmem:[#allocation2 + $0x131] sm:$0xff]  ;;  %v570_v49 = vld [vmem:[%s11506_s26 + $0x288] sm:$0xff] }
  0x52   : > { %682 = vst.msk [vmem:[#allocation2 + $0x299] sm:$0xff] %vm618_vm0, %v552_v21  ;;  %681 = vst.msk [vmem:[#allocation2 + $0x291] sm:$0xff] %vm618_vm0, %v551_v24  ;;  %v567_v48 = vld [vmem:[%s11506_s26 + $0x270] sm:$0xff]  ;;  %v569_v50 = vld [vmem:[%s11506_s26 + $0x280] sm:$0xff] }
  0x53   : > { %1322 = vrot.lane.b32.xlu1 %v921_v0, %s11285_s27  ;;  %1320 = vrot.lane.b32.xlu0 %v920_v1, %s11285_s27  ;;  %684 = vst.msk [vmem:[#allocation2 + $0x2b1] sm:$0xff] %vm618_vm0, %v554_v25  ;;  %683 = vst.msk [vmem:[#allocation2 + $0x2a9] sm:$0xff] %vm618_vm0, %v553_v27  ;;  %v937_v51 = vld [vmem:[#allocation2 + $0x149] sm:$0xff]  ;;  %v936_v52 = vld [vmem:[#allocation2 + $0x141] sm:$0xff] }
  0x54   : > { %686 = vst.msk [vmem:[#allocation2 + $0x2c1] sm:$0xff] %vm618_vm0, %v556_v29  ;;  %685 = vst.msk [vmem:[#allocation2 + $0x2b9] sm:$0xff] %vm618_vm0, %v555_v30  ;;  %v572_v53 = vld [vmem:[%s11506_s26 + $0x298] sm:$0xff]  ;;  %v571_v54 = vld [vmem:[%s11506_s26 + $0x290] sm:$0xff] }
  0x55   : > { %688 = vst.msk [vmem:[#allocation2 + $0x2d9] sm:$0xff] %vm618_vm0, %v558_v31  ;;  %687 = vst.msk [vmem:[#allocation2 + $0x2d1] sm:$0xff] %vm618_vm0, %v557_v32  ;;  %v574_v55 = vld [vmem:[%s11506_s26 + $0x2a8] sm:$0xff]  ;;  %v573_v56 = vld [vmem:[%s11506_s26 + $0x2a0] sm:$0xff] }
  0x56   : > { %690 = vst.msk [vmem:[#allocation2 + $0x2e9] sm:$0xff] %vm618_vm0, %v560_v33  ;;  %689 = vst.msk [vmem:[#allocation2 + $0x2e1] sm:$0xff] %vm618_vm0, %v559_v36  ;;  %v576_v57 = vld [vmem:[%s11506_s26 + $0x2b8] sm:$0xff]  ;;  %v575_v60 = vld [vmem:[%s11506_s26 + $0x2b0] sm:$0xff] }
  0x57   : > { %1326 = vrot.lane.b32.xlu1 %v923_v10, %s11285_s27  ;;  %1324 = vrot.lane.b32.xlu0 %v922_v11, %s11285_s27  ;;  %692 = vst.msk [vmem:[#allocation2 + $0x301] sm:$0xff] %vm618_vm0, %v562_v37  ;;  %691 = vst.msk [vmem:[#allocation2 + $0x2f9] sm:$0xff] %vm618_vm0, %v561_v38  ;;  %v939_v58 = vld [vmem:[#allocation2 + $0x159] sm:$0xff]  ;;  %v938_v59 = vld [vmem:[#allocation2 + $0x151] sm:$0xff] }
  0x58   : > { %694 = vst.msk [vmem:[#allocation2 + $0x311] sm:$0xff] %vm618_vm0, %v564_v39  ;;  %693 = vst.msk [vmem:[#allocation2 + $0x309] sm:$0xff] %vm618_vm0, %v563_v40  ;;  %v578_v61 = vld [vmem:[%s11506_s26 + $0x2c8] sm:$0xff]  ;;  %v577_v62 = vld [vmem:[%s11506_s26 + $0x2c0] sm:$0xff] }
  0x59   : > { %696 = vst.msk [vmem:[#allocation2 + $0x329] sm:$0xff] %vm618_vm0, %v566_v43  ;;  %695 = vst.msk [vmem:[#allocation2 + $0x321] sm:$0xff] %vm618_vm0, %v565_v44  ;;  %v580_v63 = vld [vmem:[%s11506_s26 + $0x2d8] sm:$0xff]  ;;  %v579_v0 = vld [vmem:[%s11506_s26 + $0x2d0] sm:$0xff] }
  0x5a   : > { %698 = vst.msk [vmem:[#allocation2 + $0x339] sm:$0xff] %vm618_vm0, %v568_v45  ;;  %697 = vst.msk [vmem:[#allocation2 + $0x331] sm:$0xff] %vm618_vm0, %v567_v48  ;;  %v941_v1 = vld [vmem:[#allocation2 + $0x171] sm:$0xff]  ;;  %v940_v2 = vld [vmem:[#allocation2 + $0x169] sm:$0xff] }
  0x5b   : > { %1330 = vrot.lane.b32.xlu1 %v925_v17, %s11285_s27  ;;  %1328 = vrot.lane.b32.xlu0 %v924_v18, %s11285_s27  ;;  %700 = vst.msk [vmem:[#allocation2 + $0x351] sm:$0xff] %vm618_vm0, %v570_v49  ;;  %699 = vst.msk [vmem:[#allocation2 + $0x349] sm:$0xff] %vm618_vm0, %v569_v50  ;;  %v582_v3 = vld [vmem:[%s11506_s26 + $0x2e8] sm:$0xff]  ;;  %v581_v4 = vld [vmem:[%s11506_s26 + $0x2e0] sm:$0xff] }
  0x5c   : > { %702 = vst.msk [vmem:[#allocation2 + $0x361] sm:$0xff] %vm618_vm0, %v572_v53  ;;  %701 = vst.msk [vmem:[#allocation2 + $0x359] sm:$0xff] %vm618_vm0, %v571_v54  ;;  %v584_v5 = vld [vmem:[%s11506_s26 + $0x2f8] sm:$0xff]  ;;  %v943_v6 = vld [vmem:[#allocation2 + $0x181] sm:$0xff] }
  0x5d   : > { %704 = vst.msk [vmem:[#allocation2 + $0x379] sm:$0xff] %vm618_vm0, %v574_v55  ;;  %703 = vst.msk [vmem:[#allocation2 + $0x371] sm:$0xff] %vm618_vm0, %v573_v56  ;;  %v942_v7 = vld [vmem:[#allocation2 + $0x179] sm:$0xff]  ;;  %v583_v8 = vld [vmem:[%s11506_s26 + $0x2f0] sm:$0xff] }
  0x5e   : > { %706 = vst.msk [vmem:[#allocation2 + $0x389] sm:$0xff] %vm618_vm0, %v576_v57  ;;  %705 = vst.msk [vmem:[#allocation2 + $0x381] sm:$0xff] %vm618_vm0, %v575_v60  ;;  %v586_v9 = vld [vmem:[%s11506_s26 + $0x308] sm:$0xff]  ;;  %v585_v10 = vld [vmem:[%s11506_s26 + $0x300] sm:$0xff] }
  0x5f   : > { %1334 = vrot.lane.b32.xlu1 %v927_v22, %s11285_s27  ;;  %1332 = vrot.lane.b32.xlu0 %v926_v23, %s11285_s27  ;;  %708 = vst.msk [vmem:[#allocation2 + $0x3a1] sm:$0xff] %vm618_vm0, %v578_v61  ;;  %707 = vst.msk [vmem:[#allocation2 + $0x399] sm:$0xff] %vm618_vm0, %v577_v62  ;;  %v945_v11 = vld [vmem:[#allocation2 + $0x199] sm:$0xff]  ;;  %v944_v12 = vld [vmem:[#allocation2 + $0x191] sm:$0xff] }
  0x60   : > { %710 = vst.msk [vmem:[#allocation2 + $0x3b1] sm:$0xff] %vm618_vm0, %v580_v63  ;;  %709 = vst.msk [vmem:[#allocation2 + $0x3a9] sm:$0xff] %vm618_vm0, %v579_v0  ;;  %v588_v13 = vld [vmem:[%s11506_s26 + $0x318] sm:$0xff]  ;;  %v587_v14 = vld [vmem:[%s11506_s26 + $0x310] sm:$0xff] }
  0x61   : > { %712 = vst.msk [vmem:[#allocation2 + $0x3c9] sm:$0xff] %vm618_vm0, %v582_v3  ;;  %711 = vst.msk [vmem:[#allocation2 + $0x3c1] sm:$0xff] %vm618_vm0, %v581_v4  ;;  %v590_v15 = vld [vmem:[%s11506_s26 + $0x328] sm:$0xff]  ;;  %v589_v16 = vld [vmem:[%s11506_s26 + $0x320] sm:$0xff] }
  0x62   : > { %714 = vst.msk [vmem:[#allocation2 + $0x3d9] sm:$0xff] %vm618_vm0, %v584_v5  ;;  %713 = vst.msk [vmem:[#allocation2 + $0x3d1] sm:$0xff] %vm618_vm0, %v583_v8  ;;  %v592_v17 = vld [vmem:[%s11506_s26 + $0x338] sm:$0xff]  ;;  %v947_v18 = vld [vmem:[#allocation2 + $0x1a9] sm:$0xff] }
  0x63   : > { %1338 = vrot.lane.b32.xlu1 %v929_v26, %s11285_s27  ;;  %1336 = vrot.lane.b32.xlu0 %v928_v28, %s11285_s27  ;;  %716 = vst.msk [vmem:[#allocation2 + $0x3f1] sm:$0xff] %vm618_vm0, %v586_v9  ;;  %715 = vst.msk [vmem:[#allocation2 + $0x3e9] sm:$0xff] %vm618_vm0, %v585_v10  ;;  %v591_v19 = vld [vmem:[%s11506_s26 + $0x330] sm:$0xff]  ;;  %v946_v20 = vld [vmem:[#allocation2 + $0x1a1] sm:$0xff] }
  0x64   : > { %718 = vst.msk [vmem:[#allocation2 + $0x401] sm:$0xff] %vm618_vm0, %v588_v13  ;;  %717 = vst.msk [vmem:[#allocation2 + $0x3f9] sm:$0xff] %vm618_vm0, %v587_v14  ;;  %v594_v21 = vld [vmem:[%s11506_s26 + $0x348] sm:$0xff]  ;;  %v593_v22 = vld [vmem:[%s11506_s26 + $0x340] sm:$0xff] }
  0x65   : > { %720 = vst.msk [vmem:[#allocation2 + $0x419] sm:$0xff] %vm618_vm0, %v590_v15  ;;  %719 = vst.msk [vmem:[#allocation2 + $0x411] sm:$0xff] %vm618_vm0, %v589_v16  ;;  %v596_v23 = vld [vmem:[%s11506_s26 + $0x358] sm:$0xff]  ;;  %v595_v24 = vld [vmem:[%s11506_s26 + $0x350] sm:$0xff] }
  0x66   : > { %722 = vst.msk [vmem:[#allocation2 + $0x429] sm:$0xff] %vm618_vm0, %v592_v17  ;;  %721 = vst.msk [vmem:[#allocation2 + $0x421] sm:$0xff] %vm618_vm0, %v591_v19  ;;  %v949_v25 = vld [vmem:[#allocation2 + $0x1c1] sm:$0xff]  ;;  %v948_v26 = vld [vmem:[#allocation2 + $0x1b9] sm:$0xff] }
  0x67   : > { %1342 = vrot.lane.b32.xlu1 %v931_v34, %s11285_s27  ;;  %1340 = vrot.lane.b32.xlu0 %v930_v35, %s11285_s27  ;;  %724 = vst.msk [vmem:[#allocation2 + $0x441] sm:$0xff] %vm618_vm0, %v594_v21  ;;  %723 = vst.msk [vmem:[#allocation2 + $0x439] sm:$0xff] %vm618_vm0, %v593_v22  ;;  %v598_v27 = vld [vmem:[%s11506_s26 + $0x368] sm:$0xff]  ;;  %v597_v28 = vld [vmem:[%s11506_s26 + $0x360] sm:$0xff] }
  0x68   : > { %726 = vst.msk [vmem:[#allocation2 + $0x451] sm:$0xff] %vm618_vm0, %v596_v23  ;;  %725 = vst.msk [vmem:[#allocation2 + $0x449] sm:$0xff] %vm618_vm0, %v595_v24  ;;  %v951_v29 = vld [vmem:[#allocation2 + $0x1d1] sm:$0xff]  ;;  %v950_v30 = vld [vmem:[#allocation2 + $0x1c9] sm:$0xff] }
  0x69   : > { %728 = vst.msk [vmem:[#allocation2 + $0x469] sm:$0xff] %vm618_vm0, %v598_v27  ;;  %727 = vst.msk [vmem:[#allocation2 + $0x461] sm:$0xff] %vm618_vm0, %v597_v28  ;;  %v600_v31 = vld [vmem:[%s11506_s26 + $0x378] sm:$0xff]  ;;  %v599_v32 = vld [vmem:[%s11506_s26 + $0x370] sm:$0xff] }
  0x6a   : > { %730 = vst.msk [vmem:[#allocation2 + $0x479] sm:$0xff] %vm618_vm0, %v600_v31  ;;  %729 = vst.msk [vmem:[#allocation2 + $0x471] sm:$0xff] %vm618_vm0, %v599_v32  ;;  %v953_v33 = vld [vmem:[#allocation2 + $0x1e9] sm:$0xff]  ;;  %v952_v34 = vld [vmem:[#allocation2 + $0x1e1] sm:$0xff] }
  0x6b   : > { %1346 = vrot.lane.b32.xlu1 %v933_v41, %s11285_s27  ;;  %1344 = vrot.lane.b32.xlu0 %v932_v42, %s11285_s27  ;;  %v602_v35 = vld [vmem:[%s11506_s26 + $0x388] sm:$0xff]  ;;  %v601_v36 = vld [vmem:[%s11506_s26 + $0x380] sm:$0xff]  ;;  %v954_v38 = vld [vmem:[#allocation2 + $0x1f1] sm:$0xff] }
  0x6c   : > { %732 = vst.msk [vmem:[#allocation2 + $0x491] sm:$0xff] %vm618_vm0, %v602_v35  ;;  %v955_v37 = vld [vmem:[#allocation2 + $0x1f9] sm:$0xff]  ;;  %731 = vst.msk [vmem:[#allocation2 + $0x489] sm:$0xff] %vm618_vm0, %v601_v36  ;;  %v603_v40 = vld [vmem:[%s11506_s26 + $0x390] sm:$0xff] }
  0x6d   : > { %v604_v39 = vld [vmem:[%s11506_s26 + $0x398] sm:$0xff]  ;;  %v956_v42 = vld [vmem:[#allocation2 + $0x209] sm:$0xff]  ;;  %733 = vst.msk [vmem:[#allocation2 + $0x499] sm:$0xff] %vm618_vm0, %v603_v40  ;;  %v605_v44 = vld [vmem:[%s11506_s26 + $0x3a0] sm:$0xff] }
  0x6e   : > { %734 = vst.msk [vmem:[#allocation2 + $0x4a1] sm:$0xff] %vm618_vm0, %v604_v39  ;;  %v957_v41 = vld [vmem:[#allocation2 + $0x211] sm:$0xff]  ;;  %v606_v43 = vld [vmem:[%s11506_s26 + $0x3a8] sm:$0xff]  ;;  %735 = vst.msk [vmem:[#allocation2 + $0x4b1] sm:$0xff] %vm618_vm0, %v605_v44 }
  0x6f   : > { %1350 = vrot.lane.b32.xlu1 %v935_v46, %s11285_s27  ;;  %1348 = vrot.lane.b32.xlu0 %v934_v47, %s11285_s27  ;;  %736 = vst.msk [vmem:[#allocation2 + $0x4b9] sm:$0xff] %vm618_vm0, %v606_v43  ;;  %v959_v45 = vld [vmem:[#allocation2 + $0x221] sm:$0xff]  ;;  %v958_v46 = vld [vmem:[#allocation2 + $0x219] sm:$0xff]  ;;  %v607_v48 = vld [vmem:[%s11506_s26 + $0x3b0] sm:$0xff] }
  0x70   : > { %v608_v47 = vld [vmem:[%s11506_s26 + $0x3b8] sm:$0xff]  ;;  %737 = vst.msk [vmem:[#allocation2 + $0x4c1] sm:$0xff] %vm618_vm0, %v607_v48  ;;  %v963_v53 = vld [vmem:[#allocation2 + $0x249] sm:$0xff]  ;;  %v962_v54 = vld [vmem:[#allocation2 + $0x241] sm:$0xff] }
  0x71   : > { %738 = vst.msk [vmem:[#allocation2 + $0x4c9] sm:$0xff] %vm618_vm0, %v608_v47  ;;  %v961_v49 = vld [vmem:[#allocation2 + $0x239] sm:$0xff]  ;;  %v960_v50 = vld [vmem:[#allocation2 + $0x231] sm:$0xff]  ;;  %v966_v0 = vld [vmem:[#allocation2 + $0x269] sm:$0xff] }
  0x72   : > { %v612_v57 = vld [vmem:[%s11506_s26 + $0x3d8] sm:$0xff]  ;;  %v969_v3 = vld [vmem:[#allocation2 + $0x289] sm:$0xff]  ;;  %v968_v4 = vld [vmem:[#allocation2 + $0x281] sm:$0xff] }
  0x73   : > { %1354 = vrot.lane.b32.xlu1 %v937_v51, %s11285_s27  ;;  %1352 = vrot.lane.b32.xlu0 %v936_v52, %s11285_s27  ;;  %v610_v51 = vld [vmem:[%s11506_s26 + $0x3c8] sm:$0xff]  ;;  %v609_v52 = vld [vmem:[%s11506_s26 + $0x3c0] sm:$0xff]  ;;  %742 = vst.msk [vmem:[#allocation2 + $0x4f1] sm:$0xff] %vm618_vm0, %v612_v57  ;;  %v967_v63 = vld [vmem:[#allocation2 + $0x271] sm:$0xff] }
  0x74   : > { %740 = vst.msk [vmem:[#allocation2 + $0x4e1] sm:$0xff] %vm618_vm0, %v610_v51  ;;  %739 = vst.msk [vmem:[#allocation2 + $0x4d9] sm:$0xff] %vm618_vm0, %v609_v52  ;;  %v964_v60 = vld [vmem:[#allocation2 + $0x259] sm:$0xff]  ;;  %v970_v8 = vld [vmem:[#allocation2 + $0x291] sm:$0xff] }
  0x75   : > { %v975_v15 = vld [vmem:[#allocation2 + $0x2c1] sm:$0xff]  ;;  %v974_v16 = vld [vmem:[#allocation2 + $0x2b9] sm:$0xff]  ;;  %v979_v23 = vld [vmem:[#allocation2 + $0x2e9] sm:$0xff] }
  0x76   : > { %v977_v19 = vld [vmem:[#allocation2 + $0x2d9] sm:$0xff]  ;;  %v978_v24 = vld [vmem:[#allocation2 + $0x2e1] sm:$0xff]  ;;  %v983_v31 = vld [vmem:[#allocation2 + $0x311] sm:$0xff] }
  0x77   : > { %1358 = vrot.lane.b32.xlu1 %v939_v58, %s11285_s27  ;;  %1356 = vrot.lane.b32.xlu0 %v938_v59, %s11285_s27  ;;  %v611_v58 = vld [vmem:[%s11506_s26 + $0x3d0] sm:$0xff]  ;;  %v965_v59 = vld [vmem:[#allocation2 + $0x261] sm:$0xff]  ;;  %v980_v28 = vld [vmem:[#allocation2 + $0x2f9] sm:$0xff] }
  0x78   : > { %741 = vst.msk [vmem:[#allocation2 + $0x4e9] sm:$0xff] %vm618_vm0, %v611_v58  ;;  %v981_v27 = vld [vmem:[#allocation2 + $0x301] sm:$0xff]  ;;  %v982_v32 = vld [vmem:[#allocation2 + $0x309] sm:$0xff]  ;;  %v987_v39 = vld [vmem:[#allocation2 + $0x339] sm:$0xff] }
  0x79   : > { %v985_v35 = vld [vmem:[#allocation2 + $0x329] sm:$0xff]  ;;  %v984_v36 = vld [vmem:[#allocation2 + $0x321] sm:$0xff]  ;;  %v986_v40 = vld [vmem:[#allocation2 + $0x331] sm:$0xff] }
  0x7a   : > { %v989_v43 = vld [vmem:[#allocation2 + $0x351] sm:$0xff]  ;;  %v988_v44 = vld [vmem:[#allocation2 + $0x349] sm:$0xff]  ;;  %v991_v47 = vld [vmem:[#allocation2 + $0x361] sm:$0xff] }
  0x7b   : > { %1362 = vrot.lane.b32.xlu1 %v941_v1, %s11285_s27  ;;  %1360 = vrot.lane.b32.xlu0 %v940_v2, %s11285_s27  ;;  %v990_v48 = vld [vmem:[#allocation2 + $0x359] sm:$0xff]  ;;  %v992_v52 = vld [vmem:[#allocation2 + $0x371] sm:$0xff]  ;;  %v995_v57 = vld [vmem:[#allocation2 + $0x389] sm:$0xff] }
  0x7c   : > { %v993_v51 = vld [vmem:[#allocation2 + $0x379] sm:$0xff]  ;;  %v994_v58 = vld [vmem:[#allocation2 + $0x381] sm:$0xff] }
  0x7f   : > { %1366 = vrot.lane.b32.xlu1 %v943_v6, %s11285_s27  ;;  %1364 = vrot.lane.b32.xlu0 %v942_v7, %s11285_s27  ;;  %v971_v7 = vld [vmem:[#allocation2 + $0x299] sm:$0xff] }
  0x83   : > { %1370 = vrot.lane.b32.xlu1 %v945_v11, %s11285_s27  ;;  %1368 = vrot.lane.b32.xlu0 %v944_v12, %s11285_s27  ;;  %v973_v11 = vld [vmem:[#allocation2 + $0x2b1] sm:$0xff]  ;;  %v972_v12 = vld [vmem:[#allocation2 + $0x2a9] sm:$0xff] }
  0x87   : > { %1374 = vrot.lane.b32.xlu1 %v947_v18, %s11285_s27  ;;  %1372 = vrot.lane.b32.xlu0 %v946_v20, %s11285_s27  ;;  %v11810_v55 = vpop.permute.xlu1 %1292  ;;  %v11812_v56 = vpop.permute.xlu0 %1288  ;;  %v976_v20 = vld [vmem:[#allocation2 + $0x2d1] sm:$0xff] }
  0x88   : > { %15812 = vst [vmem:[#allocation3_spill] sm:$0xff] %v11810_v55  ;;  %15813 = vst [vmem:[#allocation4_spill] sm:$0xff] %v11812_v56 }
  0x8b   : > { %1378 = vrot.lane.b32.xlu1 %v949_v25, %s11285_s27  ;;  %1376 = vrot.lane.b32.xlu0 %v948_v26, %s11285_s27  ;;  %v11820_v61 = vpop.permute.xlu1 %1294  ;;  %v11822_v62 = vpop.permute.xlu0 %1290 }
  0x8c   : > { %15814 = vst [vmem:[#allocation5_spill] sm:$0xff] %v11820_v61  ;;  %15815 = vst [vmem:[#allocation6_spill] sm:$0xff] %v11822_v62 }
  0x8f   : > { %1382 = vrot.lane.b32.xlu1 %v951_v29, %s11285_s27  ;;  %1380 = vrot.lane.b32.xlu0 %v950_v30, %s11285_s27 }
  0x93   : > { %1386 = vrot.lane.b32.xlu1 %v953_v33, %s11285_s27  ;;  %1384 = vrot.lane.b32.xlu0 %v952_v34, %s11285_s27 }
  0x97   : > { %1390 = vrot.lane.b32.xlu1 %v955_v37, %s11285_s27  ;;  %1388 = vrot.lane.b32.xlu0 %v954_v38, %s11285_s27 }
  0x9b   : > { %1394 = vrot.lane.b32.xlu1 %v957_v41, %s11285_s27  ;;  %1392 = vrot.lane.b32.xlu0 %v956_v42, %s11285_s27 }
  0x9f   : > { %1398 = vrot.lane.b32.xlu1 %v959_v45, %s11285_s27  ;;  %1396 = vrot.lane.b32.xlu0 %v958_v46, %s11285_s27 }
  0xa3   : > { %1402 = vrot.lane.b32.xlu1 %v961_v49, %s11285_s27  ;;  %1400 = vrot.lane.b32.xlu0 %v960_v50, %s11285_s27 }
  0xa7   : > { %1406 = vrot.lane.b32.xlu1 %v963_v53, %s11285_s27  ;;  %1404 = vrot.lane.b32.xlu0 %v962_v54, %s11285_s27 }
  0xab   : > { %1410 = vrot.lane.b32.xlu1 %v965_v59, %s11285_s27  ;;  %1408 = vrot.lane.b32.xlu0 %v964_v60, %s11285_s27 }
  0xad   : > { %v11826_v1 = vpop.permute.xlu1 %1298  ;;  %v11828_v2 = vpop.permute.xlu0 %1296 }
  0xae   : > { %15816 = vst [vmem:[#allocation7_spill] sm:$0xff] %v11826_v1  ;;  %15817 = vst [vmem:[#allocation8_spill] sm:$0xff] %v11828_v2 }
  0xaf   : > { %1414 = vrot.lane.b32.xlu1 %v967_v63, %s11285_s27  ;;  %1412 = vrot.lane.b32.xlu0 %v966_v0, %s11285_s27  ;;  %v997_v63 = vld [vmem:[#allocation2 + $0x3a1] sm:$0xff]  ;;  %v996_v0 = vld [vmem:[#allocation2 + $0x399] sm:$0xff] }
  0xb1   : > { %v11832_v5 = vpop.permute.xlu1 %1302  ;;  %v11834_v6 = vpop.permute.xlu0 %1300 }
  0xb2   : > { %15818 = vst [vmem:[#allocation9_spill] sm:$0xff] %v11832_v5  ;;  %15819 = vst [vmem:[#allocation10_spill] sm:$0xff] %v11834_v6 }
  0xb3   : > { %1418 = vrot.lane.b32.xlu1 %v969_v3, %s11285_s27  ;;  %1416 = vrot.lane.b32.xlu0 %v968_v4, %s11285_s27 }
  0xb5   : > { %v11838_v9 = vpop.permute.xlu1 %1306  ;;  %v11840_v10 = vpop.permute.xlu0 %1304 }
  0xb6   : > { %15820 = vst [vmem:[#allocation11_spill] sm:$0xff] %v11838_v9  ;;  %15821 = vst [vmem:[#allocation12_spill] sm:$0xff] %v11840_v10 }
  0xb7   : > { %1422 = vrot.lane.b32.xlu1 %v971_v7, %s11285_s27  ;;  %1420 = vrot.lane.b32.xlu0 %v970_v8, %s11285_s27  ;;  %v999_v7 = vld [vmem:[#allocation2 + $0x3b1] sm:$0xff]  ;;  %v998_v8 = vld [vmem:[#allocation2 + $0x3a9] sm:$0xff] }
  0xb9   : > { %v11844_v13 = vpop.permute.xlu1 %1310  ;;  %v11846_v14 = vpop.permute.xlu0 %1308 }
  0xba   : > { %15822 = vst [vmem:[#allocation13_spill] sm:$0xff] %v11844_v13  ;;  %15823 = vst [vmem:[#allocation14_spill] sm:$0xff] %v11846_v14 }
  0xbb   : > { %1426 = vrot.lane.b32.xlu1 %v973_v11, %s11285_s27  ;;  %1424 = vrot.lane.b32.xlu0 %v972_v12, %s11285_s27 }
  0xbd   : > { %v11850_v17 = vpop.permute.xlu1 %1314  ;;  %v11852_v18 = vpop.permute.xlu0 %1312 }
  0xbe   : > { %15824 = vst [vmem:[#allocation15_spill] sm:$0xff] %v11850_v17  ;;  %15825 = vst [vmem:[#allocation16_spill] sm:$0xff] %v11852_v18 }
  0xbf   : > { %1430 = vrot.lane.b32.xlu1 %v975_v15, %s11285_s27  ;;  %1428 = vrot.lane.b32.xlu0 %v974_v16, %s11285_s27  ;;  %v1001_v15 = vld [vmem:[#allocation2 + $0x3c9] sm:$0xff]  ;;  %v1000_v16 = vld [vmem:[#allocation2 + $0x3c1] sm:$0xff] }
  0xc1   : > { %v11856_v21 = vpop.permute.xlu1 %1318  ;;  %v11858_v22 = vpop.permute.xlu0 %1316 }
  0xc2   : > { %15826 = vst [vmem:[#allocation17_spill] sm:$0xff] %v11856_v21  ;;  %15827 = vst [vmem:[#allocation18_spill] sm:$0xff] %v11858_v22 }
  0xc3   : > { %1434 = vrot.lane.b32.xlu1 %v977_v19, %s11285_s27  ;;  %1432 = vrot.lane.b32.xlu0 %v976_v20, %s11285_s27 }
  0xc5   : > { %v11862_v25 = vpop.permute.xlu1 %1322  ;;  %v11864_v26 = vpop.permute.xlu0 %1320 }
  0xc6   : > { %15828 = vst [vmem:[#allocation19_spill] sm:$0xff] %v11862_v25  ;;  %15829 = vst [vmem:[#allocation20_spill] sm:$0xff] %v11864_v26 }
  0xc7   : > { %1438 = vrot.lane.b32.xlu1 %v979_v23, %s11285_s27  ;;  %1436 = vrot.lane.b32.xlu0 %v978_v24, %s11285_s27  ;;  %v1003_v23 = vld [vmem:[#allocation2 + $0x3d9] sm:$0xff]  ;;  %v1002_v24 = vld [vmem:[#allocation2 + $0x3d1] sm:$0xff] }
  0xc9   : > { %v11868_v29 = vpop.permute.xlu1 %1326  ;;  %v11870_v30 = vpop.permute.xlu0 %1324 }
  0xca   : > { %15830 = vst [vmem:[#allocation21_spill] sm:$0xff] %v11868_v29  ;;  %15831 = vst [vmem:[#allocation22_spill] sm:$0xff] %v11870_v30 }
  0xcb   : > { %1442 = vrot.lane.b32.xlu1 %v981_v27, %s11285_s27  ;;  %1440 = vrot.lane.b32.xlu0 %v980_v28, %s11285_s27 }
  0xcd   : > { %v11874_v33 = vpop.permute.xlu1 %1330  ;;  %v11876_v34 = vpop.permute.xlu0 %1328 }
  0xce   : > { %15832 = vst [vmem:[#allocation23_spill] sm:$0xff] %v11874_v33  ;;  %15833 = vst [vmem:[#allocation24_spill] sm:$0xff] %v11876_v34 }
  0xcf   : > { %1446 = vrot.lane.b32.xlu1 %v983_v31, %s11285_s27  ;;  %1444 = vrot.lane.b32.xlu0 %v982_v32, %s11285_s27  ;;  %v1005_v31 = vld [vmem:[#allocation2 + $0x3f1] sm:$0xff]  ;;  %v1004_v32 = vld [vmem:[#allocation2 + $0x3e9] sm:$0xff] }
  0xd1   : > { %v11880_v37 = vpop.permute.xlu1 %1334  ;;  %v11882_v38 = vpop.permute.xlu0 %1332 }
  0xd2   : > { %15834 = vst [vmem:[#allocation25_spill] sm:$0xff] %v11880_v37  ;;  %15835 = vst [vmem:[#allocation26_spill] sm:$0xff] %v11882_v38 }
  0xd3   : > { %1450 = vrot.lane.b32.xlu1 %v985_v35, %s11285_s27  ;;  %1448 = vrot.lane.b32.xlu0 %v984_v36, %s11285_s27 }
  0xd5   : > { %v11886_v41 = vpop.permute.xlu1 %1338  ;;  %v11888_v42 = vpop.permute.xlu0 %1336 }
  0xd6   : > { %15836 = vst [vmem:[#allocation27_spill] sm:$0xff] %v11886_v41  ;;  %15837 = vst [vmem:[#allocation28_spill] sm:$0xff] %v11888_v42 }
  0xd7   : > { %1454 = vrot.lane.b32.xlu1 %v987_v39, %s11285_s27  ;;  %1452 = vrot.lane.b32.xlu0 %v986_v40, %s11285_s27  ;;  %v1007_v39 = vld [vmem:[#allocation2 + $0x401] sm:$0xff]  ;;  %v1006_v40 = vld [vmem:[#allocation2 + $0x3f9] sm:$0xff] }
  0xd9   : > { %v11892_v45 = vpop.permute.xlu1 %1342  ;;  %v11894_v46 = vpop.permute.xlu0 %1340 }
  0xda   : > { %15838 = vst [vmem:[#allocation29_spill] sm:$0xff] %v11892_v45  ;;  %15839 = vst [vmem:[#allocation30_spill] sm:$0xff] %v11894_v46 }
  0xdb   : > { %1458 = vrot.lane.b32.xlu1 %v989_v43, %s11285_s27  ;;  %1456 = vrot.lane.b32.xlu0 %v988_v44, %s11285_s27 }
  0xdd   : > { %v11898_v49 = vpop.permute.xlu1 %1346  ;;  %v11900_v50 = vpop.permute.xlu0 %1344 }
  0xde   : > { %15840 = vst [vmem:[#allocation31_spill] sm:$0xff] %v11898_v49  ;;  %15841 = vst [vmem:[#allocation32_spill] sm:$0xff] %v11900_v50 }
  0xdf   : > { %1462 = vrot.lane.b32.xlu1 %v991_v47, %s11285_s27  ;;  %1460 = vrot.lane.b32.xlu0 %v990_v48, %s11285_s27  ;;  %v1009_v47 = vld [vmem:[#allocation2 + $0x419] sm:$0xff]  ;;  %v1008_v48 = vld [vmem:[#allocation2 + $0x411] sm:$0xff] }
  0xe1   : > { %v11904_v53 = vpop.permute.xlu1 %1350  ;;  %v11906_v54 = vpop.permute.xlu0 %1348 }
  0xe2   : > { %15842 = vst [vmem:[#allocation33_spill] sm:$0xff] %v11904_v53  ;;  %15843 = vst [vmem:[#allocation34_spill] sm:$0xff] %v11906_v54 }
  0xe3   : > { %1466 = vrot.lane.b32.xlu1 %v993_v51, %s11285_s27  ;;  %1464 = vrot.lane.b32.xlu0 %v992_v52, %s11285_s27 }
  0xe5   : > { %v11910_v59 = vpop.permute.xlu1 %1354  ;;  %v11912_v60 = vpop.permute.xlu0 %1352 }
  0xe6   : > { %15844 = vst [vmem:[#allocation35_spill] sm:$0xff] %v11910_v59  ;;  %15845 = vst [vmem:[#allocation36_spill] sm:$0xff] %v11912_v60 }
  0xe7   : > { %1470 = vrot.lane.b32.xlu1 %v995_v57, %s11285_s27  ;;  %1468 = vrot.lane.b32.xlu0 %v994_v58, %s11285_s27  ;;  %v1011_v57 = vld [vmem:[#allocation2 + $0x429] sm:$0xff]  ;;  %v1010_v58 = vld [vmem:[#allocation2 + $0x421] sm:$0xff] }
  0xe9   : > { %v11916_v3 = vpop.permute.xlu1 %1358  ;;  %v11918_v4 = vpop.permute.xlu0 %1356 }
  0xea   : > { %15846 = vst [vmem:[#allocation37_spill] sm:$0xff] %v11916_v3  ;;  %15847 = vst [vmem:[#allocation38_spill] sm:$0xff] %v11918_v4 }
  0xeb   : > { %1474 = vrot.lane.b32.xlu1 %v997_v63, %s11285_s27  ;;  %1472 = vrot.lane.b32.xlu0 %v996_v0, %s11285_s27 }
  0xed   : > { %v11922_v11 = vpop.permute.xlu1 %1362  ;;  %v11924_v12 = vpop.permute.xlu0 %1360 }
  0xee   : > { %15848 = vst [vmem:[#allocation39_spill] sm:$0xff] %v11922_v11  ;;  %15849 = vst [vmem:[#allocation40_spill] sm:$0xff] %v11924_v12 }
  0xef   : > { %1478 = vrot.lane.b32.xlu1 %v999_v7, %s11285_s27  ;;  %1476 = vrot.lane.b32.xlu0 %v998_v8, %s11285_s27  ;;  %v1013_v7 = vld [vmem:[#allocation2 + $0x441] sm:$0xff]  ;;  %v1012_v8 = vld [vmem:[#allocation2 + $0x439] sm:$0xff] }
  0xf1   : > { %v11928_v19 = vpop.permute.xlu1 %1366  ;;  %v11930_v20 = vpop.permute.xlu0 %1364 }
  0xf2   : > { %15850 = vst [vmem:[#allocation41_spill] sm:$0xff] %v11928_v19  ;;  %15851 = vst [vmem:[#allocation42_spill] sm:$0xff] %v11930_v20 }
  0xf3   : > { %1482 = vrot.lane.b32.xlu1 %v1001_v15, %s11285_s27  ;;  %1480 = vrot.lane.b32.xlu0 %v1000_v16, %s11285_s27 }
  0xf5   : > { %v11934_v27 = vpop.permute.xlu1 %1370  ;;  %v11936_v28 = vpop.permute.xlu0 %1368 }
  0xf6   : > { %15852 = vst [vmem:[#allocation43_spill] sm:$0xff] %v11934_v27  ;;  %15853 = vst [vmem:[#allocation44_spill] sm:$0xff] %v11936_v28 }
  0xf7   : > { %1486 = vrot.lane.b32.xlu1 %v1003_v23, %s11285_s27  ;;  %1484 = vrot.lane.b32.xlu0 %v1002_v24, %s11285_s27  ;;  %v1015_v23 = vld [vmem:[#allocation2 + $0x451] sm:$0xff]  ;;  %v1014_v24 = vld [vmem:[#allocation2 + $0x449] sm:$0xff] }
  0xf9   : > { %v11940_v35 = vpop.permute.xlu1 %1374  ;;  %v11942_v36 = vpop.permute.xlu0 %1372 }
  0xfa   : > { %15854 = vst [vmem:[#allocation45_spill] sm:$0xff] %v11940_v35  ;;  %15855 = vst [vmem:[#allocation46_spill] sm:$0xff] %v11942_v36 }
  0xfb   : > { %1490 = vrot.lane.b32.xlu1 %v1005_v31, %s11285_s27  ;;  %1488 = vrot.lane.b32.xlu0 %v1004_v32, %s11285_s27 }
  0xfd   : > { %v11946_v43 = vpop.permute.xlu1 %1378  ;;  %v11948_v44 = vpop.permute.xlu0 %1376 }
  0xfe   : > { %15856 = vst [vmem:[#allocation47_spill] sm:$0xff] %v11946_v43  ;;  %15857 = vst [vmem:[#allocation48_spill] sm:$0xff] %v11948_v44 }
  0xff   : > { %1494 = vrot.lane.b32.xlu1 %v1007_v39, %s11285_s27  ;;  %1492 = vrot.lane.b32.xlu0 %v1006_v40, %s11285_s27  ;;  %v1017_v39 = vld [vmem:[#allocation2 + $0x469] sm:$0xff]  ;;  %v1016_v40 = vld [vmem:[#allocation2 + $0x461] sm:$0xff] }
 0x101   : > { %v11952_v51 = vpop.permute.xlu1 %1382  ;;  %v11954_v52 = vpop.permute.xlu0 %1380 }
 0x102   : > { %15858 = vst [vmem:[#allocation49_spill] sm:$0xff] %v11952_v51  ;;  %15859 = vst [vmem:[#allocation50_spill] sm:$0xff] %v11954_v52 }
 0x103   : > { %1498 = vrot.lane.b32.xlu1 %v1009_v47, %s11285_s27  ;;  %1496 = vrot.lane.b32.xlu0 %v1008_v48, %s11285_s27 }
 0x105   : > { %v11958_v63 = vpop.permute.xlu1 %1386  ;;  %v11960_v0 = vpop.permute.xlu0 %1384 }
 0x106   : > { %15860 = vst [vmem:[#allocation51_spill] sm:$0xff] %v11958_v63  ;;  %15861 = vst [vmem:[#allocation52_spill] sm:$0xff] %v11960_v0 }
 0x107   : > { %1502 = vrot.lane.b32.xlu1 %v1011_v57, %s11285_s27  ;;  %1500 = vrot.lane.b32.xlu0 %v1010_v58, %s11285_s27  ;;  %v1019_v57 = vld [vmem:[#allocation2 + $0x479] sm:$0xff]  ;;  %v1018_v58 = vld [vmem:[#allocation2 + $0x471] sm:$0xff] }
 0x109   : > { %v11964_v15 = vpop.permute.xlu1 %1390  ;;  %v11966_v16 = vpop.permute.xlu0 %1388 }
 0x10a   : > { %15862 = vst [vmem:[#allocation53_spill] sm:$0xff] %v11964_v15  ;;  %15863 = vst [vmem:[#allocation54_spill] sm:$0xff] %v11966_v16 }
 0x10b   : > { %1506 = vrot.lane.b32.xlu1 %v1013_v7, %s11285_s27  ;;  %1504 = vrot.lane.b32.xlu0 %v1012_v8, %s11285_s27 }
 0x10d   : > { %v11970_v31 = vpop.permute.xlu1 %1394  ;;  %v11972_v32 = vpop.permute.xlu0 %1392 }
 0x10e   : > { %15864 = vst [vmem:[#allocation55_spill] sm:$0xff] %v11970_v31  ;;  %15865 = vst [vmem:[#allocation56_spill] sm:$0xff] %v11972_v32 }
 0x10f   : > { %1510 = vrot.lane.b32.xlu1 %v1015_v23, %s11285_s27  ;;  %1508 = vrot.lane.b32.xlu0 %v1014_v24, %s11285_s27  ;;  %v1021_v23 = vld [vmem:[#allocation2 + $0x491] sm:$0xff]  ;;  %v1020_v24 = vld [vmem:[#allocation2 + $0x489] sm:$0xff] }
 0x111   : > { %v11976_v47 = vpop.permute.xlu1 %1398  ;;  %v11978_v48 = vpop.permute.xlu0 %1396 }
 0x112   : > { %15866 = vst [vmem:[#allocation57_spill] sm:$0xff] %v11976_v47  ;;  %15867 = vst [vmem:[#allocation58_spill] sm:$0xff] %v11978_v48 }
 0x113   : > { %1514 = vrot.lane.b32.xlu1 %v1017_v39, %s11285_s27  ;;  %1512 = vrot.lane.b32.xlu0 %v1016_v40, %s11285_s27  ;;  %v1023_v39 = vld [vmem:[#allocation2 + $0x4a1] sm:$0xff]  ;;  %v1022_v40 = vld [vmem:[#allocation2 + $0x499] sm:$0xff] }
 0x115   : > { %v11982_v7 = vpop.permute.xlu1 %1402  ;;  %v11984_v8 = vpop.permute.xlu0 %1400 }
 0x116   : > { %15868 = vst [vmem:[#allocation59_spill] sm:$0xff] %v11982_v7  ;;  %15869 = vst [vmem:[#allocation60_spill] sm:$0xff] %v11984_v8 }
 0x117   : > { %1518 = vrot.lane.b32.xlu1 %v1019_v57, %s11285_s27  ;;  %1516 = vrot.lane.b32.xlu0 %v1018_v58, %s11285_s27  ;;  %v1025_v57 = vld [vmem:[#allocation2 + $0x4b9] sm:$0xff]  ;;  %v1024_v58 = vld [vmem:[#allocation2 + $0x4b1] sm:$0xff] }
 0x119   : > { %v11988_v31 = vpop.permute.xlu1 %1406  ;;  %v11990_v47 = vpop.permute.xlu0 %1404 }
 0x11a   : > { %15870 = vst [vmem:[#allocation61_spill] sm:$0xff] %v11988_v31  ;;  %15871 = vst [vmem:[#allocation62_spill] sm:$0xff] %v11990_v47 }
 0x11b   : > { %1522 = vrot.lane.b32.xlu1 %v1021_v23, %s11285_s27  ;;  %1520 = vrot.lane.b32.xlu0 %v1020_v24, %s11285_s27  ;;  %v1027_v23 = vld [vmem:[#allocation2 + $0x4c9] sm:$0xff]  ;;  %v1026_v24 = vld [vmem:[#allocation2 + $0x4c1] sm:$0xff] }
 0x11d   : > { %v11994_v48 = vpop.permute.xlu1 %1410  ;;  %v11996_v7 = vpop.permute.xlu0 %1408 }
 0x11e   : > { %15872 = vst [vmem:[#allocation63_spill] sm:$0xff] %v11994_v48  ;;  %15873 = vst [vmem:[#allocation64_spill] sm:$0xff] %v11996_v7 }
 0x11f   : > { %1526 = vrot.lane.b32.xlu1 %v1023_v39, %s11285_s27  ;;  %1524 = vrot.lane.b32.xlu0 %v1022_v40, %s11285_s27  ;;  %v1029_v39 = vld [vmem:[#allocation2 + $0x4e1] sm:$0xff]  ;;  %v1028_v40 = vld [vmem:[#allocation2 + $0x4d9] sm:$0xff] }
 0x121   : > { %v12000_v8 = vpop.permute.xlu1 %1414  ;;  %v12002_v31 = vpop.permute.xlu0 %1412 }
 0x122   : > { %15874 = vst [vmem:[#allocation65_spill] sm:$0xff] %v12000_v8  ;;  %15875 = vst [vmem:[#allocation66_spill] sm:$0xff] %v12002_v31 }
 0x123   : > { %1530 = vrot.lane.b32.xlu1 %v1025_v57, %s11285_s27  ;;  %1528 = vrot.lane.b32.xlu0 %v1024_v58, %s11285_s27  ;;  %v1031_v57 = vld [vmem:[#allocation2 + $0x4f1] sm:$0xff]  ;;  %v1030_v58 = vld [vmem:[#allocation2 + $0x4e9] sm:$0xff] }
 0x125   : > { %v12006_v47 = vpop.permute.xlu1 %1418  ;;  %v12008_v48 = vpop.permute.xlu0 %1416 }
 0x126   : > { %15876 = vst [vmem:[#allocation67_spill] sm:$0xff] %v12006_v47  ;;  %15877 = vst [vmem:[#allocation68_spill] sm:$0xff] %v12008_v48 }
 0x127   : > { %1534 = vrot.lane.b32.xlu1 %v1027_v23, %s11285_s27  ;;  %1532 = vrot.lane.b32.xlu0 %v1026_v24, %s11285_s27  ;;  %v1033_v23 = vld [vmem:[#allocation2 + $0xa] sm:$0xff]  ;;  %v1032_v24 = vld [vmem:[#allocation2 + $0x2] sm:$0xff] }
 0x129   : > { %v12012_v7 = vpop.permute.xlu1 %1422  ;;  %v12014_v8 = vpop.permute.xlu0 %1420 }
 0x12a   : > { %15878 = vst [vmem:[#allocation69_spill] sm:$0xff] %v12012_v7  ;;  %15879 = vst [vmem:[#allocation70_spill] sm:$0xff] %v12014_v8 }
 0x12b   : > { %1538 = vrot.lane.b32.xlu1 %v1029_v39, %s11285_s27  ;;  %1536 = vrot.lane.b32.xlu0 %v1028_v40, %s11285_s27  ;;  %v1035_v39 = vld [vmem:[#allocation2 + $0x1a] sm:$0xff]  ;;  %v1034_v40 = vld [vmem:[#allocation2 + $0x12] sm:$0xff] }
 0x12d   : > { %v12018_v31 = vpop.permute.xlu1 %1426  ;;  %v12020_v47 = vpop.permute.xlu0 %1424 }
 0x12e   : > { %15880 = vst [vmem:[#allocation71_spill] sm:$0xff] %v12018_v31  ;;  %15881 = vst [vmem:[#allocation72_spill] sm:$0xff] %v12020_v47 }
 0x12f   : > { %1542 = vrot.lane.b32.xlu1 %v1031_v57, %s11285_s27  ;;  %1540 = vrot.lane.b32.xlu0 %v1030_v58, %s11285_s27  ;;  %v1037_v57 = vld [vmem:[#allocation2 + $0x32] sm:$0xff]  ;;  %v1036_v58 = vld [vmem:[#allocation2 + $0x2a] sm:$0xff] }
 0x131   : > { %v12024_v48 = vpop.permute.xlu1 %1430  ;;  %v12026_v7 = vpop.permute.xlu0 %1428 }
 0x132   : > { %15882 = vst [vmem:[#allocation73_spill] sm:$0xff] %v12024_v48  ;;  %15883 = vst [vmem:[#allocation74_spill] sm:$0xff] %v12026_v7 }
 0x133   : > { %1802 = vrot.lane.b32.xlu1 %v1033_v23, %s11286_s28  ;;  %1800 = vrot.lane.b32.xlu0 %v1032_v24, %s11286_s28  ;;  %v1039_v23 = vld [vmem:[#allocation2 + $0x42] sm:$0xff]  ;;  %v1038_v24 = vld [vmem:[#allocation2 + $0x3a] sm:$0xff] }
 0x135   : > { %v12030_v31 = vpop.permute.xlu1 %1434  ;;  %v12032_v47 = vpop.permute.xlu0 %1432 }
 0x136   : > { %15884 = vst [vmem:[#allocation75_spill] sm:$0xff] %v12030_v31  ;;  %15885 = vst [vmem:[#allocation76_spill] sm:$0xff] %v12032_v47 }
 0x137   : > { %1806 = vrot.lane.b32.xlu1 %v1035_v39, %s11286_s28  ;;  %1804 = vrot.lane.b32.xlu0 %v1034_v40, %s11286_s28  ;;  %v1041_v39 = vld [vmem:[#allocation2 + $0x5a] sm:$0xff]  ;;  %v1040_v40 = vld [vmem:[#allocation2 + $0x52] sm:$0xff] }
 0x139   : > { %v12036_v48 = vpop.permute.xlu1 %1438  ;;  %v12038_v7 = vpop.permute.xlu0 %1436 }
 0x13a   : > { %15886 = vst [vmem:[#allocation77_spill] sm:$0xff] %v12036_v48  ;;  %15887 = vst [vmem:[#allocation78_spill] sm:$0xff] %v12038_v7 }
 0x13b   : > { %1810 = vrot.lane.b32.xlu1 %v1037_v57, %s11286_s28  ;;  %1808 = vrot.lane.b32.xlu0 %v1036_v58, %s11286_s28  ;;  %v1043_v57 = vld [vmem:[#allocation2 + $0x6a] sm:$0xff]  ;;  %v1042_v58 = vld [vmem:[#allocation2 + $0x62] sm:$0xff] }
 0x13d   : > { %v12042_v8 = vpop.permute.xlu1 %1442  ;;  %v12044_v31 = vpop.permute.xlu0 %1440 }
 0x13e   : > { %15888 = vst [vmem:[#allocation79_spill] sm:$0xff] %v12042_v8  ;;  %15889 = vst [vmem:[#allocation80_spill] sm:$0xff] %v12044_v31 }
 0x13f   : > { %1814 = vrot.lane.b32.xlu1 %v1039_v23, %s11286_s28  ;;  %1812 = vrot.lane.b32.xlu0 %v1038_v24, %s11286_s28  ;;  %v1045_v23 = vld [vmem:[#allocation2 + $0x82] sm:$0xff]  ;;  %v1044_v24 = vld [vmem:[#allocation2 + $0x7a] sm:$0xff] }
 0x141   : > { %v12048_v47 = vpop.permute.xlu1 %1446  ;;  %v12050_v48 = vpop.permute.xlu0 %1444 }
 0x142   : > { %15890 = vst [vmem:[#allocation81_spill] sm:$0xff] %v12048_v47  ;;  %15891 = vst [vmem:[#allocation82_spill] sm:$0xff] %v12050_v48 }
 0x143   : > { %1818 = vrot.lane.b32.xlu1 %v1041_v39, %s11286_s28  ;;  %1816 = vrot.lane.b32.xlu0 %v1040_v40, %s11286_s28  ;;  %v1047_v39 = vld [vmem:[#allocation2 + $0x92] sm:$0xff]  ;;  %v1046_v40 = vld [vmem:[#allocation2 + $0x8a] sm:$0xff] }
 0x145   : > { %v12054_v7 = vpop.permute.xlu1 %1450  ;;  %v12056_v8 = vpop.permute.xlu0 %1448 }
 0x146   : > { %15892 = vst [vmem:[#allocation83_spill] sm:$0xff] %v12054_v7  ;;  %15893 = vst [vmem:[#allocation84_spill] sm:$0xff] %v12056_v8 }
 0x147   : > { %1822 = vrot.lane.b32.xlu1 %v1043_v57, %s11286_s28  ;;  %1820 = vrot.lane.b32.xlu0 %v1042_v58, %s11286_s28  ;;  %v1049_v57 = vld [vmem:[#allocation2 + $0xaa] sm:$0xff]  ;;  %v1048_v58 = vld [vmem:[#allocation2 + $0xa2] sm:$0xff] }
 0x149   : > { %v12060_v31 = vpop.permute.xlu1 %1454  ;;  %v12062_v47 = vpop.permute.xlu0 %1452 }
 0x14a   : > { %15894 = vst [vmem:[#allocation85_spill] sm:$0xff] %v12060_v31  ;;  %15895 = vst [vmem:[#allocation86_spill] sm:$0xff] %v12062_v47 }
 0x14b   : > { %1826 = vrot.lane.b32.xlu1 %v1045_v23, %s11286_s28  ;;  %1824 = vrot.lane.b32.xlu0 %v1044_v24, %s11286_s28  ;;  %v1051_v23 = vld [vmem:[#allocation2 + $0xba] sm:$0xff]  ;;  %v1050_v24 = vld [vmem:[#allocation2 + $0xb2] sm:$0xff] }
 0x14d   : > { %v12066_v48 = vpop.permute.xlu1 %1458  ;;  %v12068_v7 = vpop.permute.xlu0 %1456 }
 0x14e   : > { %15896 = vst [vmem:[#allocation87_spill] sm:$0xff] %v12066_v48  ;;  %15897 = vst [vmem:[#allocation88_spill] sm:$0xff] %v12068_v7 }
 0x14f   : > { %1830 = vrot.lane.b32.xlu1 %v1047_v39, %s11286_s28  ;;  %1828 = vrot.lane.b32.xlu0 %v1046_v40, %s11286_s28  ;;  %v1053_v39 = vld [vmem:[#allocation2 + $0xd2] sm:$0xff]  ;;  %v1052_v40 = vld [vmem:[#allocation2 + $0xca] sm:$0xff] }
 0x151   : > { %v12072_v8 = vpop.permute.xlu1 %1462  ;;  %v12074_v31 = vpop.permute.xlu0 %1460 }
 0x152   : > { %15898 = vst [vmem:[#allocation89_spill] sm:$0xff] %v12072_v8  ;;  %15899 = vst [vmem:[#allocation90_spill] sm:$0xff] %v12074_v31 }
 0x153   : > { %1834 = vrot.lane.b32.xlu1 %v1049_v57, %s11286_s28  ;;  %1832 = vrot.lane.b32.xlu0 %v1048_v58, %s11286_s28  ;;  %v1055_v57 = vld [vmem:[#allocation2 + $0xe2] sm:$0xff]  ;;  %v1054_v58 = vld [vmem:[#allocation2 + $0xda] sm:$0xff] }
 0x155   : > { %v12078_v47 = vpop.permute.xlu1 %1466  ;;  %v12080_v48 = vpop.permute.xlu0 %1464 }
 0x156   : > { %15900 = vst [vmem:[#allocation91_spill] sm:$0xff] %v12078_v47  ;;  %15901 = vst [vmem:[#allocation92_spill] sm:$0xff] %v12080_v48 }
 0x157   : > { %1838 = vrot.lane.b32.xlu1 %v1051_v23, %s11286_s28  ;;  %1836 = vrot.lane.b32.xlu0 %v1050_v24, %s11286_s28  ;;  %v1057_v23 = vld [vmem:[#allocation2 + $0xfa] sm:$0xff]  ;;  %v1056_v24 = vld [vmem:[#allocation2 + $0xf2] sm:$0xff] }
 0x159   : > { %v12084_v7 = vpop.permute.xlu1 %1470  ;;  %v12086_v8 = vpop.permute.xlu0 %1468 }
 0x15a   : > { %15902 = vst [vmem:[#allocation93_spill] sm:$0xff] %v12084_v7  ;;  %15903 = vst [vmem:[#allocation94_spill] sm:$0xff] %v12086_v8 }
 0x15b   : > { %1842 = vrot.lane.b32.xlu1 %v1053_v39, %s11286_s28  ;;  %1840 = vrot.lane.b32.xlu0 %v1052_v40, %s11286_s28  ;;  %v1059_v39 = vld [vmem:[#allocation2 + $0x10a] sm:$0xff]  ;;  %v1058_v40 = vld [vmem:[#allocation2 + $0x102] sm:$0xff] }
 0x15d   : > { %v12090_v31 = vpop.permute.xlu1 %1474  ;;  %v12092_v47 = vpop.permute.xlu0 %1472 }
 0x15e   : > { %15904 = vst [vmem:[#allocation95_spill] sm:$0xff] %v12090_v31  ;;  %15905 = vst [vmem:[#allocation96_spill] sm:$0xff] %v12092_v47 }
 0x15f   : > { %1846 = vrot.lane.b32.xlu1 %v1055_v57, %s11286_s28  ;;  %1844 = vrot.lane.b32.xlu0 %v1054_v58, %s11286_s28  ;;  %v1061_v57 = vld [vmem:[#allocation2 + $0x122] sm:$0xff]  ;;  %v1060_v58 = vld [vmem:[#allocation2 + $0x11a] sm:$0xff] }
 0x161   : > { %v12096_v48 = vpop.permute.xlu1 %1478  ;;  %v12098_v7 = vpop.permute.xlu0 %1476 }
 0x162   : > { %15906 = vst [vmem:[#allocation97_spill] sm:$0xff] %v12096_v48  ;;  %15907 = vst [vmem:[#allocation98_spill] sm:$0xff] %v12098_v7 }
 0x163   : > { %1850 = vrot.lane.b32.xlu1 %v1057_v23, %s11286_s28  ;;  %1848 = vrot.lane.b32.xlu0 %v1056_v24, %s11286_s28  ;;  %v1063_v23 = vld [vmem:[#allocation2 + $0x132] sm:$0xff]  ;;  %v1062_v24 = vld [vmem:[#allocation2 + $0x12a] sm:$0xff] }
 0x165   : > { %v12102_v8 = vpop.permute.xlu1 %1482  ;;  %v12104_v31 = vpop.permute.xlu0 %1480 }
 0x166   : > { %15908 = vst [vmem:[#allocation99_spill] sm:$0xff] %v12102_v8  ;;  %15909 = vst [vmem:[#allocation100_spill] sm:$0xff] %v12104_v31 }
 0x167   : > { %1854 = vrot.lane.b32.xlu1 %v1059_v39, %s11286_s28  ;;  %1852 = vrot.lane.b32.xlu0 %v1058_v40, %s11286_s28  ;;  %v1065_v39 = vld [vmem:[#allocation2 + $0x14a] sm:$0xff]  ;;  %v1064_v40 = vld [vmem:[#allocation2 + $0x142] sm:$0xff] }
 0x169   : > { %v12108_v47 = vpop.permute.xlu1 %1486  ;;  %v12110_v48 = vpop.permute.xlu0 %1484 }
 0x16a   : > { %15910 = vst [vmem:[#allocation101_spill] sm:$0xff] %v12108_v47  ;;  %15911 = vst [vmem:[#allocation102_spill] sm:$0xff] %v12110_v48 }
 0x16b   : > { %1858 = vrot.lane.b32.xlu1 %v1061_v57, %s11286_s28  ;;  %1856 = vrot.lane.b32.xlu0 %v1060_v58, %s11286_s28  ;;  %v1067_v57 = vld [vmem:[#allocation2 + $0x15a] sm:$0xff]  ;;  %v1066_v58 = vld [vmem:[#allocation2 + $0x152] sm:$0xff] }
 0x16d   : > { %v12114_v7 = vpop.permute.xlu1 %1490  ;;  %v12116_v8 = vpop.permute.xlu0 %1488 }
 0x16e   : > { %15912 = vst [vmem:[#allocation103_spill] sm:$0xff] %v12114_v7  ;;  %15913 = vst [vmem:[#allocation104_spill] sm:$0xff] %v12116_v8 }
 0x16f   : > { %1862 = vrot.lane.b32.xlu1 %v1063_v23, %s11286_s28  ;;  %1860 = vrot.lane.b32.xlu0 %v1062_v24, %s11286_s28  ;;  %v1069_v23 = vld [vmem:[#allocation2 + $0x172] sm:$0xff]  ;;  %v1068_v24 = vld [vmem:[#allocation2 + $0x16a] sm:$0xff] }
 0x171   : > { %v12120_v31 = vpop.permute.xlu1 %1494  ;;  %v12122_v47 = vpop.permute.xlu0 %1492 }
 0x172   : > { %15914 = vst [vmem:[#allocation105_spill] sm:$0xff] %v12120_v31  ;;  %15915 = vst [vmem:[#allocation106_spill] sm:$0xff] %v12122_v47 }
 0x173   : > { %1866 = vrot.lane.b32.xlu1 %v1065_v39, %s11286_s28  ;;  %1864 = vrot.lane.b32.xlu0 %v1064_v40, %s11286_s28  ;;  %v1071_v39 = vld [vmem:[#allocation2 + $0x182] sm:$0xff]  ;;  %v1070_v40 = vld [vmem:[#allocation2 + $0x17a] sm:$0xff] }
 0x175   : > { %v12126_v48 = vpop.permute.xlu1 %1498  ;;  %v12128_v7 = vpop.permute.xlu0 %1496 }
 0x176   : > { %15916 = vst [vmem:[#allocation107_spill] sm:$0xff] %v12126_v48  ;;  %15917 = vst [vmem:[#allocation108_spill] sm:$0xff] %v12128_v7 }
 0x177   : > { %1870 = vrot.lane.b32.xlu1 %v1067_v57, %s11286_s28  ;;  %1868 = vrot.lane.b32.xlu0 %v1066_v58, %s11286_s28  ;;  %v1073_v57 = vld [vmem:[#allocation2 + $0x19a] sm:$0xff]  ;;  %v1072_v58 = vld [vmem:[#allocation2 + $0x192] sm:$0xff] }
 0x179   : > { %v12132_v8 = vpop.permute.xlu1 %1502  ;;  %v12134_v31 = vpop.permute.xlu0 %1500 }
 0x17a   : > { %15918 = vst [vmem:[#allocation109_spill] sm:$0xff] %v12132_v8  ;;  %15919 = vst [vmem:[#allocation110_spill] sm:$0xff] %v12134_v31 }
 0x17b   : > { %1874 = vrot.lane.b32.xlu1 %v1069_v23, %s11286_s28  ;;  %1872 = vrot.lane.b32.xlu0 %v1068_v24, %s11286_s28  ;;  %v1075_v23 = vld [vmem:[#allocation2 + $0x1aa] sm:$0xff]  ;;  %v1074_v24 = vld [vmem:[#allocation2 + $0x1a2] sm:$0xff] }
 0x17d   : > { %v12138_v47 = vpop.permute.xlu1 %1506  ;;  %v12140_v48 = vpop.permute.xlu0 %1504 }
 0x17e   : > { %15920 = vst [vmem:[#allocation111_spill] sm:$0xff] %v12138_v47  ;;  %15921 = vst [vmem:[#allocation112_spill] sm:$0xff] %v12140_v48 }
 0x17f   : > { %1878 = vrot.lane.b32.xlu1 %v1071_v39, %s11286_s28  ;;  %1876 = vrot.lane.b32.xlu0 %v1070_v40, %s11286_s28  ;;  %v1077_v39 = vld [vmem:[#allocation2 + $0x1c2] sm:$0xff]  ;;  %v1076_v40 = vld [vmem:[#allocation2 + $0x1ba] sm:$0xff] }
 0x181   : > { %v12144_v7 = vpop.permute.xlu1 %1510  ;;  %v12146_v8 = vpop.permute.xlu0 %1508 }
 0x182   : > { %15922 = vst [vmem:[#allocation113_spill] sm:$0xff] %v12144_v7  ;;  %15923 = vst [vmem:[#allocation114_spill] sm:$0xff] %v12146_v8 }
 0x183   : > { %1882 = vrot.lane.b32.xlu1 %v1073_v57, %s11286_s28  ;;  %1880 = vrot.lane.b32.xlu0 %v1072_v58, %s11286_s28  ;;  %v1079_v57 = vld [vmem:[#allocation2 + $0x1d2] sm:$0xff]  ;;  %v1078_v58 = vld [vmem:[#allocation2 + $0x1ca] sm:$0xff] }
 0x185   : > { %v12150_v31 = vpop.permute.xlu1 %1514  ;;  %v12152_v47 = vpop.permute.xlu0 %1512 }
 0x186   : > { %15924 = vst [vmem:[#allocation115_spill] sm:$0xff] %v12150_v31  ;;  %15925 = vst [vmem:[#allocation116_spill] sm:$0xff] %v12152_v47 }
 0x187   : > { %1886 = vrot.lane.b32.xlu1 %v1075_v23, %s11286_s28  ;;  %1884 = vrot.lane.b32.xlu0 %v1074_v24, %s11286_s28  ;;  %v1081_v23 = vld [vmem:[#allocation2 + $0x1ea] sm:$0xff]  ;;  %v1080_v24 = vld [vmem:[#allocation2 + $0x1e2] sm:$0xff] }
 0x189   : > { %v12156_v48 = vpop.permute.xlu1 %1518  ;;  %v12158_v7 = vpop.permute.xlu0 %1516 }
 0x18a   : > { %15926 = vst [vmem:[#allocation117_spill] sm:$0xff] %v12156_v48  ;;  %15927 = vst [vmem:[#allocation118_spill] sm:$0xff] %v12158_v7 }
 0x18b   : > { %1890 = vrot.lane.b32.xlu1 %v1077_v39, %s11286_s28  ;;  %1888 = vrot.lane.b32.xlu0 %v1076_v40, %s11286_s28  ;;  %v1083_v39 = vld [vmem:[#allocation2 + $0x1fa] sm:$0xff]  ;;  %v1082_v40 = vld [vmem:[#allocation2 + $0x1f2] sm:$0xff] }
 0x18d   : > { %v12162_v8 = vpop.permute.xlu1 %1522  ;;  %v12164_v31 = vpop.permute.xlu0 %1520 }
 0x18e   : > { %15928 = vst [vmem:[#allocation119_spill] sm:$0xff] %v12162_v8  ;;  %15929 = vst [vmem:[#allocation120_spill] sm:$0xff] %v12164_v31 }
 0x18f   : > { %1894 = vrot.lane.b32.xlu1 %v1079_v57, %s11286_s28  ;;  %1892 = vrot.lane.b32.xlu0 %v1078_v58, %s11286_s28  ;;  %v1085_v57 = vld [vmem:[#allocation2 + $0x212] sm:$0xff]  ;;  %v1084_v58 = vld [vmem:[#allocation2 + $0x20a] sm:$0xff] }
 0x191   : > { %v12168_v47 = vpop.permute.xlu1 %1526  ;;  %v12170_v48 = vpop.permute.xlu0 %1524 }
 0x192   : > { %15930 = vst [vmem:[#allocation121_spill] sm:$0xff] %v12168_v47  ;;  %15931 = vst [vmem:[#allocation122_spill] sm:$0xff] %v12170_v48 }
 0x193   : > { %1898 = vrot.lane.b32.xlu1 %v1081_v23, %s11286_s28  ;;  %1896 = vrot.lane.b32.xlu0 %v1080_v24, %s11286_s28  ;;  %v1087_v23 = vld [vmem:[#allocation2 + $0x222] sm:$0xff]  ;;  %v1086_v24 = vld [vmem:[#allocation2 + $0x21a] sm:$0xff] }
 0x195   : > { %v12174_v7 = vpop.permute.xlu1 %1530  ;;  %v12176_v8 = vpop.permute.xlu0 %1528 }
 0x196   : > { %15932 = vst [vmem:[#allocation123_spill] sm:$0xff] %v12174_v7  ;;  %15933 = vst [vmem:[#allocation124_spill] sm:$0xff] %v12176_v8 }
 0x197   : > { %1902 = vrot.lane.b32.xlu1 %v1083_v39, %s11286_s28  ;;  %1900 = vrot.lane.b32.xlu0 %v1082_v40, %s11286_s28  ;;  %v1089_v39 = vld [vmem:[#allocation2 + $0x23a] sm:$0xff]  ;;  %v1088_v40 = vld [vmem:[#allocation2 + $0x232] sm:$0xff] }
 0x199   : > { %v12180_v31 = vpop.permute.xlu1 %1534  ;;  %v12182_v47 = vpop.permute.xlu0 %1532 }
 0x19a   : > { %15934 = vst [vmem:[#allocation125_spill] sm:$0xff] %v12180_v31  ;;  %15935 = vst [vmem:[#allocation126_spill] sm:$0xff] %v12182_v47 }
 0x19b   : > { %1906 = vrot.lane.b32.xlu1 %v1085_v57, %s11286_s28  ;;  %1904 = vrot.lane.b32.xlu0 %v1084_v58, %s11286_s28  ;;  %v1091_v57 = vld [vmem:[#allocation2 + $0x24a] sm:$0xff]  ;;  %v1090_v58 = vld [vmem:[#allocation2 + $0x242] sm:$0xff] }
 0x19d   : > { %v12186_v48 = vpop.permute.xlu1 %1538  ;;  %v12188_v7 = vpop.permute.xlu0 %1536 }
 0x19e   : > { %15936 = vst [vmem:[#allocation127_spill] sm:$0xff] %v12186_v48  ;;  %15937 = vst [vmem:[#allocation128_spill] sm:$0xff] %v12188_v7 }
 0x19f   : > { %1910 = vrot.lane.b32.xlu1 %v1087_v23, %s11286_s28  ;;  %1908 = vrot.lane.b32.xlu0 %v1086_v24, %s11286_s28  ;;  %v1093_v23 = vld [vmem:[#allocation2 + $0x262] sm:$0xff]  ;;  %v1092_v24 = vld [vmem:[#allocation2 + $0x25a] sm:$0xff] }
 0x1a1   : > { %v12192_v8 = vpop.permute.xlu1 %1542  ;;  %v12194_v31 = vpop.permute.xlu0 %1540 }
 0x1a2   : > { %15938 = vst [vmem:[#allocation129_spill] sm:$0xff] %v12192_v8  ;;  %15939 = vst [vmem:[#allocation130_spill] sm:$0xff] %v12194_v31 }
 0x1a3   : > { %1914 = vrot.lane.b32.xlu1 %v1089_v39, %s11286_s28  ;;  %1912 = vrot.lane.b32.xlu0 %v1088_v40, %s11286_s28  ;;  %v1095_v39 = vld [vmem:[#allocation2 + $0x272] sm:$0xff]  ;;  %v1094_v40 = vld [vmem:[#allocation2 + $0x26a] sm:$0xff] }
 0x1a5   : > { %v12198_v47 = vpop.permute.xlu1 %1802  ;;  %v12200_v48 = vpop.permute.xlu0 %1800 }
 0x1a6   : > { %15940 = vst [vmem:[#allocation131_spill] sm:$0xff] %v12198_v47  ;;  %15941 = vst [vmem:[#allocation132_spill] sm:$0xff] %v12200_v48 }
 0x1a7   : > { %1918 = vrot.lane.b32.xlu1 %v1091_v57, %s11286_s28  ;;  %1916 = vrot.lane.b32.xlu0 %v1090_v58, %s11286_s28  ;;  %v1097_v57 = vld [vmem:[#allocation2 + $0x28a] sm:$0xff]  ;;  %v1096_v58 = vld [vmem:[#allocation2 + $0x282] sm:$0xff] }
 0x1a9   : > { %v12204_v7 = vpop.permute.xlu1 %1806  ;;  %v12206_v8 = vpop.permute.xlu0 %1804 }
 0x1aa   : > { %15942 = vst [vmem:[#allocation133_spill] sm:$0xff] %v12204_v7  ;;  %15943 = vst [vmem:[#allocation134_spill] sm:$0xff] %v12206_v8 }
 0x1ab   : > { %1922 = vrot.lane.b32.xlu1 %v1093_v23, %s11286_s28  ;;  %1920 = vrot.lane.b32.xlu0 %v1092_v24, %s11286_s28  ;;  %v1099_v23 = vld [vmem:[#allocation2 + $0x29a] sm:$0xff]  ;;  %v1098_v24 = vld [vmem:[#allocation2 + $0x292] sm:$0xff] }
 0x1ad   : > { %v12210_v31 = vpop.permute.xlu1 %1810  ;;  %v12212_v32 = vpop.permute.xlu0 %1808 }
 0x1ae   : > { %15944 = vst [vmem:[#allocation135_spill] sm:$0xff] %v12210_v31  ;;  %15945 = vst [vmem:[#allocation136_spill] sm:$0xff] %v12212_v32 }
 0x1af   : > { %1926 = vrot.lane.b32.xlu1 %v1095_v39, %s11286_s28  ;;  %1924 = vrot.lane.b32.xlu0 %v1094_v40, %s11286_s28  ;;  %v1101_v39 = vld [vmem:[#allocation2 + $0x2b2] sm:$0xff]  ;;  %v1100_v40 = vld [vmem:[#allocation2 + $0x2aa] sm:$0xff] }
 0x1b1   : > { %v12216_v15 = vpop.permute.xlu1 %1814  ;;  %v12218_v16 = vpop.permute.xlu0 %1812 }
 0x1b2   : > { %15946 = vst [vmem:[#allocation137_spill] sm:$0xff] %v12216_v15  ;;  %15947 = vst [vmem:[#allocation138_spill] sm:$0xff] %v12218_v16 }
 0x1b3   : > { %1930 = vrot.lane.b32.xlu1 %v1097_v57, %s11286_s28  ;;  %1928 = vrot.lane.b32.xlu0 %v1096_v58, %s11286_s28  ;;  %v1103_v57 = vld [vmem:[#allocation2 + $0x2c2] sm:$0xff]  ;;  %v1102_v58 = vld [vmem:[#allocation2 + $0x2ba] sm:$0xff] }
 0x1b5   : > { %v12222_v63 = vpop.permute.xlu1 %1818  ;;  %v12224_v0 = vpop.permute.xlu0 %1816 }
 0x1b6   : > { %15948 = vst [vmem:[#allocation139_spill] sm:$0xff] %v12222_v63  ;;  %15949 = vst [vmem:[#allocation140_spill] sm:$0xff] %v12224_v0 }
 0x1b7   : > { %1934 = vrot.lane.b32.xlu1 %v1099_v23, %s11286_s28  ;;  %1932 = vrot.lane.b32.xlu0 %v1098_v24, %s11286_s28  ;;  %v1105_v23 = vld [vmem:[#allocation2 + $0x2da] sm:$0xff]  ;;  %v1104_v24 = vld [vmem:[#allocation2 + $0x2d2] sm:$0xff] }
 0x1b9   : > { %v12228_v51 = vpop.permute.xlu1 %1822  ;;  %v12230_v52 = vpop.permute.xlu0 %1820 }
 0x1ba   : > { %15950 = vst [vmem:[#allocation141_spill] sm:$0xff] %v12228_v51  ;;  %15951 = vst [vmem:[#allocation142_spill] sm:$0xff] %v12230_v52 }
 0x1bb   : > { %1938 = vrot.lane.b32.xlu1 %v1101_v39, %s11286_s28  ;;  %1936 = vrot.lane.b32.xlu0 %v1100_v40, %s11286_s28  ;;  %v1107_v39 = vld [vmem:[#allocation2 + $0x2ea] sm:$0xff]  ;;  %v1106_v40 = vld [vmem:[#allocation2 + $0x2e2] sm:$0xff] }
 0x1bd   : > { %v12234_v43 = vpop.permute.xlu1 %1826  ;;  %v12236_v44 = vpop.permute.xlu0 %1824 }
 0x1be   : > { %15952 = vst [vmem:[#allocation143_spill] sm:$0xff] %v12234_v43  ;;  %15953 = vst [vmem:[#allocation144_spill] sm:$0xff] %v12236_v44 }
 0x1bf   : > { %1942 = vrot.lane.b32.xlu1 %v1103_v57, %s11286_s28  ;;  %1940 = vrot.lane.b32.xlu0 %v1102_v58, %s11286_s28  ;;  %v1109_v57 = vld [vmem:[#allocation2 + $0x302] sm:$0xff]  ;;  %v1108_v58 = vld [vmem:[#allocation2 + $0x2fa] sm:$0xff] }
 0x1c1   : > { %v12240_v35 = vpop.permute.xlu1 %1830  ;;  %v12242_v36 = vpop.permute.xlu0 %1828 }
 0x1c2   : > { %15954 = vst [vmem:[#allocation145_spill] sm:$0xff] %v12240_v35  ;;  %15955 = vst [vmem:[#allocation146_spill] sm:$0xff] %v12242_v36 }
 0x1c3   : > { %1946 = vrot.lane.b32.xlu1 %v1105_v23, %s11286_s28  ;;  %1944 = vrot.lane.b32.xlu0 %v1104_v24, %s11286_s28  ;;  %v1111_v23 = vld [vmem:[#allocation2 + $0x312] sm:$0xff]  ;;  %v1110_v24 = vld [vmem:[#allocation2 + $0x30a] sm:$0xff] }
 0x1c5   : > { %v12246_v27 = vpop.permute.xlu1 %1834  ;;  %v12248_v28 = vpop.permute.xlu0 %1832 }
 0x1c6   : > { %15956 = vst [vmem:[#allocation147_spill] sm:$0xff] %v12246_v27  ;;  %15957 = vst [vmem:[#allocation148_spill] sm:$0xff] %v12248_v28 }
 0x1c7   : > { %1950 = vrot.lane.b32.xlu1 %v1107_v39, %s11286_s28  ;;  %1948 = vrot.lane.b32.xlu0 %v1106_v40, %s11286_s28  ;;  %v1113_v39 = vld [vmem:[#allocation2 + $0x32a] sm:$0xff]  ;;  %v1112_v40 = vld [vmem:[#allocation2 + $0x322] sm:$0xff] }
 0x1c9   : > { %v12252_v19 = vpop.permute.xlu1 %1838  ;;  %v12254_v20 = vpop.permute.xlu0 %1836 }
 0x1ca   : > { %15958 = vst [vmem:[#allocation149_spill] sm:$0xff] %v12252_v19  ;;  %15959 = vst [vmem:[#allocation150_spill] sm:$0xff] %v12254_v20 }
 0x1cb   : > { %1954 = vrot.lane.b32.xlu1 %v1109_v57, %s11286_s28  ;;  %1952 = vrot.lane.b32.xlu0 %v1108_v58, %s11286_s28  ;;  %v1115_v57 = vld [vmem:[#allocation2 + $0x33a] sm:$0xff]  ;;  %v1114_v58 = vld [vmem:[#allocation2 + $0x332] sm:$0xff] }
 0x1cd   : > { %v12258_v11 = vpop.permute.xlu1 %1842  ;;  %v12260_v12 = vpop.permute.xlu0 %1840 }
 0x1ce   : > { %15960 = vst [vmem:[#allocation151_spill] sm:$0xff] %v12258_v11  ;;  %15961 = vst [vmem:[#allocation152_spill] sm:$0xff] %v12260_v12 }
 0x1cf   : > { %1958 = vrot.lane.b32.xlu1 %v1111_v23, %s11286_s28  ;;  %1956 = vrot.lane.b32.xlu0 %v1110_v24, %s11286_s28  ;;  %v1117_v23 = vld [vmem:[#allocation2 + $0x352] sm:$0xff]  ;;  %v1116_v24 = vld [vmem:[#allocation2 + $0x34a] sm:$0xff] }
 0x1d1   : > { %v12264_v3 = vpop.permute.xlu1 %1846  ;;  %v12266_v4 = vpop.permute.xlu0 %1844 }
 0x1d2   : > { %15962 = vst [vmem:[#allocation153_spill] sm:$0xff] %v12264_v3  ;;  %15963 = vst [vmem:[#allocation154_spill] sm:$0xff] %v12266_v4 }
 0x1d3   : > { %1962 = vrot.lane.b32.xlu1 %v1113_v39, %s11286_s28  ;;  %1960 = vrot.lane.b32.xlu0 %v1112_v40, %s11286_s28  ;;  %v1119_v39 = vld [vmem:[#allocation2 + $0x362] sm:$0xff]  ;;  %v1118_v40 = vld [vmem:[#allocation2 + $0x35a] sm:$0xff] }
 0x1d5   : > { %v12270_v59 = vpop.permute.xlu1 %1850  ;;  %v12272_v60 = vpop.permute.xlu0 %1848 }
 0x1d6   : > { %15964 = vst [vmem:[#allocation155_spill] sm:$0xff] %v12270_v59  ;;  %15965 = vst [vmem:[#allocation156_spill] sm:$0xff] %v12272_v60  ;;  %v2632_v59 = vld [vmem:[#allocation2 + $0x291] sm:$0xff] }
 0x1d7   : > { %1966 = vrot.lane.b32.xlu1 %v1115_v57, %s11286_s28  ;;  %1964 = vrot.lane.b32.xlu0 %v1114_v58, %s11286_s28  ;;  %v1121_v57 = vld [vmem:[#allocation2 + $0x37a] sm:$0xff]  ;;  %v1120_v58 = vld [vmem:[#allocation2 + $0x372] sm:$0xff] }
 0x1d9   : > { %v12276_v53 = vpop.permute.xlu1 %1854  ;;  %v12278_v54 = vpop.permute.xlu0 %1852 }
 0x1da   : > { %15966 = vst [vmem:[#allocation157_spill] sm:$0xff] %v12276_v53  ;;  %15967 = vst [vmem:[#allocation158_spill] sm:$0xff] %v12278_v54 }
 0x1db   : > { %1970 = vrot.lane.b32.xlu1 %v1117_v23, %s11286_s28  ;;  %1968 = vrot.lane.b32.xlu0 %v1116_v24, %s11286_s28  ;;  %v1123_v23 = vld [vmem:[#allocation2 + $0x38a] sm:$0xff]  ;;  %v1122_v24 = vld [vmem:[#allocation2 + $0x382] sm:$0xff] }
 0x1dd   : > { %v12282_v49 = vpop.permute.xlu1 %1858  ;;  %v12284_v50 = vpop.permute.xlu0 %1856 }
 0x1de   : > { %15968 = vst [vmem:[#allocation159_spill] sm:$0xff] %v12282_v49  ;;  %15969 = vst [vmem:[#allocation160_spill] sm:$0xff] %v12284_v50 }
 0x1df   : > { %1974 = vrot.lane.b32.xlu1 %v1119_v39, %s11286_s28  ;;  %1972 = vrot.lane.b32.xlu0 %v1118_v40, %s11286_s28  ;;  %v1125_v39 = vld [vmem:[#allocation2 + $0x3a2] sm:$0xff]  ;;  %v1124_v40 = vld [vmem:[#allocation2 + $0x39a] sm:$0xff] }
 0x1e1   : > { %v12288_v45 = vpop.permute.xlu1 %1862  ;;  %v12290_v53 = vpop.permute.xlu0 %1860 }
 0x1e2   : > { %15970 = vst [vmem:[#allocation161_spill] sm:$0xff] %v12288_v45  ;;  %15971 = vst [vmem:[#allocation162_spill] sm:$0xff] %v12290_v53 }
 0x1e3   : > { %1978 = vrot.lane.b32.xlu1 %v1121_v57, %s11286_s28  ;;  %1976 = vrot.lane.b32.xlu0 %v1120_v58, %s11286_s28  ;;  %v1127_v57 = vld [vmem:[#allocation2 + $0x3b2] sm:$0xff]  ;;  %v1126_v58 = vld [vmem:[#allocation2 + $0x3aa] sm:$0xff] }
 0x1e5   : > { %v12294_v54 = vpop.permute.xlu1 %1866  ;;  %v12296_v49 = vpop.permute.xlu0 %1864 }
 0x1e6   : > { %15972 = vst [vmem:[#allocation163_spill] sm:$0xff] %v12294_v54  ;;  %15973 = vst [vmem:[#allocation164_spill] sm:$0xff] %v12296_v49 }
 0x1e7   : > { %1982 = vrot.lane.b32.xlu1 %v1123_v23, %s11286_s28  ;;  %1980 = vrot.lane.b32.xlu0 %v1122_v24, %s11286_s28  ;;  %v1129_v23 = vld [vmem:[#allocation2 + $0x3ca] sm:$0xff]  ;;  %v1128_v24 = vld [vmem:[#allocation2 + $0x3c2] sm:$0xff] }
 0x1e9   : > { %v12300_v50 = vpop.permute.xlu1 %1870  ;;  %v12302_v45 = vpop.permute.xlu0 %1868 }
 0x1ea   : > { %15974 = vst [vmem:[#allocation165_spill] sm:$0xff] %v12300_v50  ;;  %15975 = vst [vmem:[#allocation166_spill] sm:$0xff] %v12302_v45 }
 0x1eb   : > { %1986 = vrot.lane.b32.xlu1 %v1125_v39, %s11286_s28  ;;  %1984 = vrot.lane.b32.xlu0 %v1124_v40, %s11286_s28  ;;  %v1131_v39 = vld [vmem:[#allocation2 + $0x3da] sm:$0xff]  ;;  %v1130_v40 = vld [vmem:[#allocation2 + $0x3d2] sm:$0xff] }
 0x1ed   : > { %v12306_v53 = vpop.permute.xlu1 %1874  ;;  %v12308_v54 = vpop.permute.xlu0 %1872 }
 0x1ee   : > { %15976 = vst [vmem:[#allocation167_spill] sm:$0xff] %v12306_v53  ;;  %15977 = vst [vmem:[#allocation168_spill] sm:$0xff] %v12308_v54 }
 0x1ef   : > { %1990 = vrot.lane.b32.xlu1 %v1127_v57, %s11286_s28  ;;  %1988 = vrot.lane.b32.xlu0 %v1126_v58, %s11286_s28  ;;  %v1133_v57 = vld [vmem:[#allocation2 + $0x3f2] sm:$0xff]  ;;  %v1132_v58 = vld [vmem:[#allocation2 + $0x3ea] sm:$0xff] }
 0x1f1   : > { %v12312_v49 = vpop.permute.xlu1 %1878  ;;  %v12314_v50 = vpop.permute.xlu0 %1876 }
 0x1f2   : > { %15978 = vst [vmem:[#allocation169_spill] sm:$0xff] %v12312_v49  ;;  %15979 = vst [vmem:[#allocation170_spill] sm:$0xff] %v12314_v50 }
 0x1f3   : > { %1994 = vrot.lane.b32.xlu1 %v1129_v23, %s11286_s28  ;;  %1992 = vrot.lane.b32.xlu0 %v1128_v24, %s11286_s28  ;;  %v1135_v23 = vld [vmem:[#allocation2 + $0x402] sm:$0xff]  ;;  %v1134_v24 = vld [vmem:[#allocation2 + $0x3fa] sm:$0xff] }
 0x1f5   : > { %v12318_v45 = vpop.permute.xlu1 %1882  ;;  %v12320_v53 = vpop.permute.xlu0 %1880 }
 0x1f6   : > { %15980 = vst [vmem:[#allocation171_spill] sm:$0xff] %v12318_v45  ;;  %15981 = vst [vmem:[#allocation172_spill] sm:$0xff] %v12320_v53 }
 0x1f7   : > { %1998 = vrot.lane.b32.xlu1 %v1131_v39, %s11286_s28  ;;  %1996 = vrot.lane.b32.xlu0 %v1130_v40, %s11286_s28  ;;  %v1137_v39 = vld [vmem:[#allocation2 + $0x41a] sm:$0xff]  ;;  %v1136_v40 = vld [vmem:[#allocation2 + $0x412] sm:$0xff] }
 0x1f9   : > { %v12324_v54 = vpop.permute.xlu1 %1886  ;;  %v12326_v49 = vpop.permute.xlu0 %1884 }
 0x1fa   : > { %15982 = vst [vmem:[#allocation173_spill] sm:$0xff] %v12324_v54  ;;  %15983 = vst [vmem:[#allocation174_spill] sm:$0xff] %v12326_v49 }
 0x1fb   : > { %2002 = vrot.lane.b32.xlu1 %v1133_v57, %s11286_s28  ;;  %2000 = vrot.lane.b32.xlu0 %v1132_v58, %s11286_s28  ;;  %v1139_v57 = vld [vmem:[#allocation2 + $0x42a] sm:$0xff]  ;;  %v1138_v58 = vld [vmem:[#allocation2 + $0x422] sm:$0xff] }
 0x1fd   : > { %v12330_v50 = vpop.permute.xlu1 %1890  ;;  %v12332_v45 = vpop.permute.xlu0 %1888 }
 0x1fe   : > { %15984 = vst [vmem:[#allocation175_spill] sm:$0xff] %v12330_v50  ;;  %15985 = vst [vmem:[#allocation176_spill] sm:$0xff] %v12332_v45 }
 0x1ff   : > { %2006 = vrot.lane.b32.xlu1 %v1135_v23, %s11286_s28  ;;  %2004 = vrot.lane.b32.xlu0 %v1134_v24, %s11286_s28  ;;  %v1141_v23 = vld [vmem:[#allocation2 + $0x442] sm:$0xff]  ;;  %v1140_v24 = vld [vmem:[#allocation2 + $0x43a] sm:$0xff] }
 0x201   : > { %v12336_v53 = vpop.permute.xlu1 %1894  ;;  %v12338_v54 = vpop.permute.xlu0 %1892 }
 0x202   : > { %15986 = vst [vmem:[#allocation177_spill] sm:$0xff] %v12336_v53  ;;  %15987 = vst [vmem:[#allocation178_spill] sm:$0xff] %v12338_v54 }
 0x203   : > { %2010 = vrot.lane.b32.xlu1 %v1137_v39, %s11286_s28  ;;  %2008 = vrot.lane.b32.xlu0 %v1136_v40, %s11286_s28  ;;  %v1143_v39 = vld [vmem:[#allocation2 + $0x452] sm:$0xff]  ;;  %v1142_v40 = vld [vmem:[#allocation2 + $0x44a] sm:$0xff] }
 0x205   : > { %v12342_v49 = vpop.permute.xlu1 %1898  ;;  %v12344_v50 = vpop.permute.xlu0 %1896 }
 0x206   : > { %15988 = vst [vmem:[#allocation179_spill] sm:$0xff] %v12342_v49  ;;  %15989 = vst [vmem:[#allocation180_spill] sm:$0xff] %v12344_v50 }
 0x207   : > { %2014 = vrot.lane.b32.xlu1 %v1139_v57, %s11286_s28  ;;  %2012 = vrot.lane.b32.xlu0 %v1138_v58, %s11286_s28  ;;  %v1145_v57 = vld [vmem:[#allocation2 + $0x46a] sm:$0xff]  ;;  %v1144_v58 = vld [vmem:[#allocation2 + $0x462] sm:$0xff] }
 0x209   : > { %v12348_v45 = vpop.permute.xlu1 %1902  ;;  %v12350_v53 = vpop.permute.xlu0 %1900 }
 0x20a   : > { %15990 = vst [vmem:[#allocation181_spill] sm:$0xff] %v12348_v45  ;;  %15991 = vst [vmem:[#allocation182_spill] sm:$0xff] %v12350_v53 }
 0x20b   : > { %2018 = vrot.lane.b32.xlu1 %v1141_v23, %s11286_s28  ;;  %2016 = vrot.lane.b32.xlu0 %v1140_v24, %s11286_s28  ;;  %v1147_v23 = vld [vmem:[#allocation2 + $0x47a] sm:$0xff]  ;;  %v1146_v24 = vld [vmem:[#allocation2 + $0x472] sm:$0xff] }
 0x20d   : > { %v12354_v54 = vpop.permute.xlu1 %1906  ;;  %v12356_v49 = vpop.permute.xlu0 %1904 }
 0x20e   : > { %15992 = vst [vmem:[#allocation183_spill] sm:$0xff] %v12354_v54  ;;  %15993 = vst [vmem:[#allocation184_spill] sm:$0xff] %v12356_v49 }
 0x20f   : > { %2022 = vrot.lane.b32.xlu1 %v1143_v39, %s11286_s28  ;;  %2020 = vrot.lane.b32.xlu0 %v1142_v40, %s11286_s28  ;;  %v1149_v39 = vld [vmem:[#allocation2 + $0x492] sm:$0xff]  ;;  %v1148_v40 = vld [vmem:[#allocation2 + $0x48a] sm:$0xff] }
 0x211   : > { %v12360_v50 = vpop.permute.xlu1 %1910  ;;  %v12362_v45 = vpop.permute.xlu0 %1908 }
 0x212   : > { %15994 = vst [vmem:[#allocation185_spill] sm:$0xff] %v12360_v50  ;;  %15995 = vst [vmem:[#allocation186_spill] sm:$0xff] %v12362_v45 }
 0x213   : > { %2026 = vrot.lane.b32.xlu1 %v1145_v57, %s11286_s28  ;;  %2024 = vrot.lane.b32.xlu0 %v1144_v58, %s11286_s28  ;;  %v1151_v57 = vld [vmem:[#allocation2 + $0x4a2] sm:$0xff]  ;;  %v1150_v58 = vld [vmem:[#allocation2 + $0x49a] sm:$0xff] }
 0x215   : > { %v12366_v53 = vpop.permute.xlu1 %1914  ;;  %v12368_v54 = vpop.permute.xlu0 %1912 }
 0x216   : > { %15996 = vst [vmem:[#allocation187_spill] sm:$0xff] %v12366_v53  ;;  %15997 = vst [vmem:[#allocation188_spill] sm:$0xff] %v12368_v54 }
 0x217   : > { %2030 = vrot.lane.b32.xlu1 %v1147_v23, %s11286_s28  ;;  %2028 = vrot.lane.b32.xlu0 %v1146_v24, %s11286_s28  ;;  %v1153_v23 = vld [vmem:[#allocation2 + $0x4ba] sm:$0xff]  ;;  %v1152_v24 = vld [vmem:[#allocation2 + $0x4b2] sm:$0xff] }
 0x219   : > { %v12372_v49 = vpop.permute.xlu1 %1918  ;;  %v12374_v50 = vpop.permute.xlu0 %1916 }
 0x21a   : > { %15998 = vst [vmem:[#allocation189_spill] sm:$0xff] %v12372_v49  ;;  %15999 = vst [vmem:[#allocation190_spill] sm:$0xff] %v12374_v50 }
 0x21b   : > { %2034 = vrot.lane.b32.xlu1 %v1149_v39, %s11286_s28  ;;  %2032 = vrot.lane.b32.xlu0 %v1148_v40, %s11286_s28  ;;  %v1155_v39 = vld [vmem:[#allocation2 + $0x4ca] sm:$0xff]  ;;  %v1154_v40 = vld [vmem:[#allocation2 + $0x4c2] sm:$0xff] }
 0x21d   : > { %v12378_v45 = vpop.permute.xlu1 %1922  ;;  %v12380_v53 = vpop.permute.xlu0 %1920 }
 0x21e   : > { %16000 = vst [vmem:[#allocation191_spill] sm:$0xff] %v12378_v45  ;;  %16001 = vst [vmem:[#allocation192_spill] sm:$0xff] %v12380_v53 }
 0x21f   : > { %2038 = vrot.lane.b32.xlu1 %v1151_v57, %s11286_s28  ;;  %2036 = vrot.lane.b32.xlu0 %v1150_v58, %s11286_s28  ;;  %v1157_v57 = vld [vmem:[#allocation2 + $0x4e2] sm:$0xff]  ;;  %v1156_v58 = vld [vmem:[#allocation2 + $0x4da] sm:$0xff] }
 0x221   : > { %v12384_v54 = vpop.permute.xlu1 %1926  ;;  %v12386_v49 = vpop.permute.xlu0 %1924 }
 0x222   : > { %16002 = vst [vmem:[#allocation193_spill] sm:$0xff] %v12384_v54  ;;  %16003 = vst [vmem:[#allocation194_spill] sm:$0xff] %v12386_v49 }
 0x223   : > { %2042 = vrot.lane.b32.xlu1 %v1153_v23, %s11286_s28  ;;  %2040 = vrot.lane.b32.xlu0 %v1152_v24, %s11286_s28  ;;  %v1159_v23 = vld [vmem:[#allocation2 + $0x4f2] sm:$0xff]  ;;  %v1158_v24 = vld [vmem:[#allocation2 + $0x4ea] sm:$0xff] }
 0x225   : > { %v12390_v50 = vpop.permute.xlu1 %1930  ;;  %v12392_v45 = vpop.permute.xlu0 %1928 }
 0x226   : > { %16004 = vst [vmem:[#allocation195_spill] sm:$0xff] %v12390_v50  ;;  %16005 = vst [vmem:[#allocation196_spill] sm:$0xff] %v12392_v45 }
 0x227   : > { %2046 = vrot.lane.b32.xlu1 %v1155_v39, %s11286_s28  ;;  %2044 = vrot.lane.b32.xlu0 %v1154_v40, %s11286_s28  ;;  %v2571_v39 = vld [vmem:[#allocation2 + $0x31] sm:$0xff]  ;;  %v2570_v40 = vld [vmem:[#allocation2 + $0x29] sm:$0xff] }
 0x229   : > { %v12396_v53 = vpop.permute.xlu1 %1934  ;;  %v12398_v54 = vpop.permute.xlu0 %1932 }
 0x22a   : > { %16006 = vst [vmem:[#allocation197_spill] sm:$0xff] %v12396_v53  ;;  %16007 = vst [vmem:[#allocation198_spill] sm:$0xff] %v12398_v54 }
 0x22b   : > { %2050 = vrot.lane.b32.xlu1 %v1157_v57, %s11286_s28  ;;  %2048 = vrot.lane.b32.xlu0 %v1156_v58, %s11286_s28  ;;  %v2573_v57 = vld [vmem:[#allocation2 + $0x41] sm:$0xff]  ;;  %v2572_v58 = vld [vmem:[#allocation2 + $0x39] sm:$0xff] }
 0x22d   : > { %v12402_v49 = vpop.permute.xlu1 %1938  ;;  %v12404_v50 = vpop.permute.xlu0 %1936 }
 0x22e   : > { %16008 = vst [vmem:[#allocation199_spill] sm:$0xff] %v12402_v49  ;;  %16009 = vst [vmem:[#allocation200_spill] sm:$0xff] %v12404_v50 }
 0x22f   : > { %2054 = vrot.lane.b32.xlu1 %v1159_v23, %s11286_s28  ;;  %2052 = vrot.lane.b32.xlu0 %v1158_v24, %s11286_s28  ;;  %v2575_v23 = vld [vmem:[#allocation2 + $0x59] sm:$0xff]  ;;  %v2574_v24 = vld [vmem:[#allocation2 + $0x51] sm:$0xff] }
 0x231   : > { %v12408_v45 = vpop.permute.xlu1 %1942  ;;  %v12410_v53 = vpop.permute.xlu0 %1940 }
 0x232   : > { %16010 = vst [vmem:[#allocation201_spill] sm:$0xff] %v12408_v45  ;;  %16011 = vst [vmem:[#allocation202_spill] sm:$0xff] %v12410_v53 }
 0x233   : > { %2956 = vrot.lane.b32.xlu1 %v2571_v39, %s11285_s27  ;;  %2954 = vrot.lane.b32.xlu0 %v2570_v40, %s11285_s27  ;;  %v2577_v39 = vld [vmem:[#allocation2 + $0x69] sm:$0xff]  ;;  %v2576_v40 = vld [vmem:[#allocation2 + $0x61] sm:$0xff] }
 0x235   : > { %v12414_v54 = vpop.permute.xlu1 %1946  ;;  %v12416_v49 = vpop.permute.xlu0 %1944 }
 0x236   : > { %16012 = vst [vmem:[#allocation203_spill] sm:$0xff] %v12414_v54  ;;  %16013 = vst [vmem:[#allocation204_spill] sm:$0xff] %v12416_v49 }
 0x237   : > { %2960 = vrot.lane.b32.xlu1 %v2573_v57, %s11285_s27  ;;  %2958 = vrot.lane.b32.xlu0 %v2572_v58, %s11285_s27  ;;  %v2579_v57 = vld [vmem:[#allocation2 + $0x81] sm:$0xff]  ;;  %v2578_v58 = vld [vmem:[#allocation2 + $0x79] sm:$0xff] }
 0x239   : > { %v12420_v50 = vpop.permute.xlu1 %1950  ;;  %v12422_v45 = vpop.permute.xlu0 %1948 }
 0x23a   : > { %16014 = vst [vmem:[#allocation205_spill] sm:$0xff] %v12420_v50  ;;  %16015 = vst [vmem:[#allocation206_spill] sm:$0xff] %v12422_v45 }
 0x23b   : > { %2964 = vrot.lane.b32.xlu1 %v2575_v23, %s11285_s27  ;;  %2962 = vrot.lane.b32.xlu0 %v2574_v24, %s11285_s27  ;;  %v2581_v23 = vld [vmem:[#allocation2 + $0x91] sm:$0xff]  ;;  %v2580_v24 = vld [vmem:[#allocation2 + $0x89] sm:$0xff] }
 0x23d   : > { %v12426_v53 = vpop.permute.xlu1 %1954  ;;  %v12428_v54 = vpop.permute.xlu0 %1952 }
 0x23e   : > { %16016 = vst [vmem:[#allocation207_spill] sm:$0xff] %v12426_v53  ;;  %16017 = vst [vmem:[#allocation208_spill] sm:$0xff] %v12428_v54 }
 0x23f   : > { %2968 = vrot.lane.b32.xlu1 %v2577_v39, %s11285_s27  ;;  %2966 = vrot.lane.b32.xlu0 %v2576_v40, %s11285_s27  ;;  %v2583_v39 = vld [vmem:[#allocation2 + $0xa9] sm:$0xff]  ;;  %v2582_v40 = vld [vmem:[#allocation2 + $0xa1] sm:$0xff] }
 0x241   : > { %v12432_v49 = vpop.permute.xlu1 %1958  ;;  %v12434_v50 = vpop.permute.xlu0 %1956 }
 0x242   : > { %16018 = vst [vmem:[#allocation209_spill] sm:$0xff] %v12432_v49  ;;  %16019 = vst [vmem:[#allocation210_spill] sm:$0xff] %v12434_v50 }
 0x243   : > { %2972 = vrot.lane.b32.xlu1 %v2579_v57, %s11285_s27  ;;  %2970 = vrot.lane.b32.xlu0 %v2578_v58, %s11285_s27  ;;  %v2585_v57 = vld [vmem:[#allocation2 + $0xb9] sm:$0xff]  ;;  %v2584_v58 = vld [vmem:[#allocation2 + $0xb1] sm:$0xff] }
 0x245   : > { %v12438_v45 = vpop.permute.xlu1 %1962  ;;  %v12440_v53 = vpop.permute.xlu0 %1960 }
 0x246   : > { %16020 = vst [vmem:[#allocation211_spill] sm:$0xff] %v12438_v45  ;;  %16021 = vst [vmem:[#allocation212_spill] sm:$0xff] %v12440_v53 }
 0x247   : > { %2976 = vrot.lane.b32.xlu1 %v2581_v23, %s11285_s27  ;;  %2974 = vrot.lane.b32.xlu0 %v2580_v24, %s11285_s27  ;;  %v2587_v23 = vld [vmem:[#allocation2 + $0xd1] sm:$0xff]  ;;  %v2586_v24 = vld [vmem:[#allocation2 + $0xc9] sm:$0xff] }
 0x249   : > { %v12444_v54 = vpop.permute.xlu1 %1966  ;;  %v12446_v49 = vpop.permute.xlu0 %1964 }
 0x24a   : > { %16022 = vst [vmem:[#allocation213_spill] sm:$0xff] %v12444_v54  ;;  %16023 = vst [vmem:[#allocation214_spill] sm:$0xff] %v12446_v49 }
 0x24b   : > { %2980 = vrot.lane.b32.xlu1 %v2583_v39, %s11285_s27  ;;  %2978 = vrot.lane.b32.xlu0 %v2582_v40, %s11285_s27  ;;  %v2589_v39 = vld [vmem:[#allocation2 + $0xe1] sm:$0xff]  ;;  %v2588_v40 = vld [vmem:[#allocation2 + $0xd9] sm:$0xff] }
 0x24d   : > { %v12450_v50 = vpop.permute.xlu1 %1970  ;;  %v12452_v45 = vpop.permute.xlu0 %1968 }
 0x24e   : > { %16024 = vst [vmem:[#allocation215_spill] sm:$0xff] %v12450_v50  ;;  %16025 = vst [vmem:[#allocation216_spill] sm:$0xff] %v12452_v45 }
 0x24f   : > { %2984 = vrot.lane.b32.xlu1 %v2585_v57, %s11285_s27  ;;  %2982 = vrot.lane.b32.xlu0 %v2584_v58, %s11285_s27  ;;  %v2591_v57 = vld [vmem:[#allocation2 + $0xf9] sm:$0xff]  ;;  %v2590_v58 = vld [vmem:[#allocation2 + $0xf1] sm:$0xff] }
 0x251   : > { %v12456_v53 = vpop.permute.xlu1 %1974  ;;  %v12458_v54 = vpop.permute.xlu0 %1972 }
 0x252   : > { %16026 = vst [vmem:[#allocation217_spill] sm:$0xff] %v12456_v53  ;;  %16027 = vst [vmem:[#allocation218_spill] sm:$0xff] %v12458_v54 }
 0x253   : > { %2988 = vrot.lane.b32.xlu1 %v2587_v23, %s11285_s27  ;;  %2986 = vrot.lane.b32.xlu0 %v2586_v24, %s11285_s27  ;;  %v2593_v23 = vld [vmem:[#allocation2 + $0x109] sm:$0xff]  ;;  %v2592_v24 = vld [vmem:[#allocation2 + $0x101] sm:$0xff] }
 0x255   : > { %v12462_v49 = vpop.permute.xlu1 %1978  ;;  %v12464_v50 = vpop.permute.xlu0 %1976 }
 0x256   : > { %16028 = vst [vmem:[#allocation219_spill] sm:$0xff] %v12462_v49  ;;  %16029 = vst [vmem:[#allocation220_spill] sm:$0xff] %v12464_v50 }
 0x257   : > { %2992 = vrot.lane.b32.xlu1 %v2589_v39, %s11285_s27  ;;  %2990 = vrot.lane.b32.xlu0 %v2588_v40, %s11285_s27  ;;  %v2595_v39 = vld [vmem:[#allocation2 + $0x121] sm:$0xff]  ;;  %v2594_v40 = vld [vmem:[#allocation2 + $0x119] sm:$0xff] }
 0x259   : > { %v12468_v45 = vpop.permute.xlu1 %1982  ;;  %v12470_v53 = vpop.permute.xlu0 %1980 }
 0x25a   : > { %16030 = vst [vmem:[#allocation221_spill] sm:$0xff] %v12468_v45  ;;  %16031 = vst [vmem:[#allocation222_spill] sm:$0xff] %v12470_v53 }
 0x25b   : > { %2996 = vrot.lane.b32.xlu1 %v2591_v57, %s11285_s27  ;;  %2994 = vrot.lane.b32.xlu0 %v2590_v58, %s11285_s27  ;;  %v2597_v57 = vld [vmem:[#allocation2 + $0x131] sm:$0xff]  ;;  %v2596_v58 = vld [vmem:[#allocation2 + $0x129] sm:$0xff] }
 0x25d   : > { %v12474_v54 = vpop.permute.xlu1 %1986  ;;  %v12476_v49 = vpop.permute.xlu0 %1984 }
 0x25e   : > { %16032 = vst [vmem:[#allocation223_spill] sm:$0xff] %v12474_v54  ;;  %16033 = vst [vmem:[#allocation224_spill] sm:$0xff] %v12476_v49 }
 0x25f   : > { %3000 = vrot.lane.b32.xlu1 %v2593_v23, %s11285_s27  ;;  %2998 = vrot.lane.b32.xlu0 %v2592_v24, %s11285_s27  ;;  %v2599_v23 = vld [vmem:[#allocation2 + $0x149] sm:$0xff]  ;;  %v2598_v24 = vld [vmem:[#allocation2 + $0x141] sm:$0xff] }
 0x261   : > { %v12480_v50 = vpop.permute.xlu1 %1990  ;;  %v12482_v45 = vpop.permute.xlu0 %1988 }
 0x262   : > { %16034 = vst [vmem:[#allocation225_spill] sm:$0xff] %v12480_v50  ;;  %16035 = vst [vmem:[#allocation226_spill] sm:$0xff] %v12482_v45 }
 0x263   : > { %3004 = vrot.lane.b32.xlu1 %v2595_v39, %s11285_s27  ;;  %3002 = vrot.lane.b32.xlu0 %v2594_v40, %s11285_s27  ;;  %v2601_v39 = vld [vmem:[#allocation2 + $0x159] sm:$0xff]  ;;  %v2600_v40 = vld [vmem:[#allocation2 + $0x151] sm:$0xff] }
 0x265   : > { %v12486_v53 = vpop.permute.xlu1 %1994  ;;  %v12488_v54 = vpop.permute.xlu0 %1992 }
 0x266   : > { %16036 = vst [vmem:[#allocation227_spill] sm:$0xff] %v12486_v53  ;;  %16037 = vst [vmem:[#allocation228_spill] sm:$0xff] %v12488_v54 }
 0x267   : > { %3008 = vrot.lane.b32.xlu1 %v2597_v57, %s11285_s27  ;;  %3006 = vrot.lane.b32.xlu0 %v2596_v58, %s11285_s27  ;;  %v2603_v57 = vld [vmem:[#allocation2 + $0x171] sm:$0xff]  ;;  %v2602_v58 = vld [vmem:[#allocation2 + $0x169] sm:$0xff] }
 0x269   : > { %v12492_v49 = vpop.permute.xlu1 %1998  ;;  %v12494_v50 = vpop.permute.xlu0 %1996 }
 0x26a   : > { %16038 = vst [vmem:[#allocation229_spill] sm:$0xff] %v12492_v49  ;;  %16039 = vst [vmem:[#allocation230_spill] sm:$0xff] %v12494_v50 }
 0x26b   : > { %3012 = vrot.lane.b32.xlu1 %v2599_v23, %s11285_s27  ;;  %3010 = vrot.lane.b32.xlu0 %v2598_v24, %s11285_s27  ;;  %v2605_v23 = vld [vmem:[#allocation2 + $0x181] sm:$0xff]  ;;  %v2604_v24 = vld [vmem:[#allocation2 + $0x179] sm:$0xff] }
 0x26d   : > { %v12498_v45 = vpop.permute.xlu1 %2002  ;;  %v12500_v53 = vpop.permute.xlu0 %2000 }
 0x26e   : > { %16040 = vst [vmem:[#allocation231_spill] sm:$0xff] %v12498_v45  ;;  %16041 = vst [vmem:[#allocation232_spill] sm:$0xff] %v12500_v53 }
 0x26f   : > { %3016 = vrot.lane.b32.xlu1 %v2601_v39, %s11285_s27  ;;  %3014 = vrot.lane.b32.xlu0 %v2600_v40, %s11285_s27  ;;  %v2607_v39 = vld [vmem:[#allocation2 + $0x199] sm:$0xff]  ;;  %v2606_v40 = vld [vmem:[#allocation2 + $0x191] sm:$0xff] }
 0x271   : > { %v12504_v54 = vpop.permute.xlu1 %2006  ;;  %v12506_v49 = vpop.permute.xlu0 %2004 }
 0x272   : > { %16042 = vst [vmem:[#allocation233_spill] sm:$0xff] %v12504_v54  ;;  %16043 = vst [vmem:[#allocation234_spill] sm:$0xff] %v12506_v49 }
 0x273   : > { %3020 = vrot.lane.b32.xlu1 %v2603_v57, %s11285_s27  ;;  %3018 = vrot.lane.b32.xlu0 %v2602_v58, %s11285_s27  ;;  %v2609_v57 = vld [vmem:[#allocation2 + $0x1a9] sm:$0xff]  ;;  %v2608_v58 = vld [vmem:[#allocation2 + $0x1a1] sm:$0xff] }
 0x275   : > { %v12510_v50 = vpop.permute.xlu1 %2010  ;;  %v12512_v45 = vpop.permute.xlu0 %2008 }
 0x276   : > { %16044 = vst [vmem:[#allocation235_spill] sm:$0xff] %v12510_v50  ;;  %16045 = vst [vmem:[#allocation236_spill] sm:$0xff] %v12512_v45 }
 0x277   : > { %3024 = vrot.lane.b32.xlu1 %v2605_v23, %s11285_s27  ;;  %3022 = vrot.lane.b32.xlu0 %v2604_v24, %s11285_s27  ;;  %v2611_v23 = vld [vmem:[#allocation2 + $0x1c1] sm:$0xff]  ;;  %v2610_v24 = vld [vmem:[#allocation2 + $0x1b9] sm:$0xff] }
 0x279   : > { %v12516_v53 = vpop.permute.xlu1 %2014  ;;  %v12518_v54 = vpop.permute.xlu0 %2012 }
 0x27a   : > { %16046 = vst [vmem:[#allocation237_spill] sm:$0xff] %v12516_v53  ;;  %16047 = vst [vmem:[#allocation238_spill] sm:$0xff] %v12518_v54 }
 0x27b   : > { %3028 = vrot.lane.b32.xlu1 %v2607_v39, %s11285_s27  ;;  %3026 = vrot.lane.b32.xlu0 %v2606_v40, %s11285_s27  ;;  %v2613_v39 = vld [vmem:[#allocation2 + $0x1d1] sm:$0xff]  ;;  %v2612_v40 = vld [vmem:[#allocation2 + $0x1c9] sm:$0xff] }
 0x27d   : > { %v12522_v49 = vpop.permute.xlu1 %2018  ;;  %v12524_v50 = vpop.permute.xlu0 %2016 }
 0x27e   : > { %16048 = vst [vmem:[#allocation239_spill] sm:$0xff] %v12522_v49  ;;  %16049 = vst [vmem:[#allocation240_spill] sm:$0xff] %v12524_v50 }
 0x27f   : > { %3032 = vrot.lane.b32.xlu1 %v2609_v57, %s11285_s27  ;;  %3030 = vrot.lane.b32.xlu0 %v2608_v58, %s11285_s27  ;;  %v2615_v57 = vld [vmem:[#allocation2 + $0x1e9] sm:$0xff]  ;;  %v2614_v58 = vld [vmem:[#allocation2 + $0x1e1] sm:$0xff] }
 0x281   : > { %v12528_v45 = vpop.permute.xlu1 %2022  ;;  %v12530_v53 = vpop.permute.xlu0 %2020 }
 0x282   : > { %16050 = vst [vmem:[#allocation241_spill] sm:$0xff] %v12528_v45  ;;  %16051 = vst [vmem:[#allocation242_spill] sm:$0xff] %v12530_v53 }
 0x283   : > { %3036 = vrot.lane.b32.xlu1 %v2611_v23, %s11285_s27  ;;  %3034 = vrot.lane.b32.xlu0 %v2610_v24, %s11285_s27  ;;  %v2617_v23 = vld [vmem:[#allocation2 + $0x1f9] sm:$0xff]  ;;  %v2616_v24 = vld [vmem:[#allocation2 + $0x1f1] sm:$0xff] }
 0x285   : > { %v12534_v54 = vpop.permute.xlu1 %2026  ;;  %v12536_v49 = vpop.permute.xlu0 %2024 }
 0x286   : > { %16052 = vst [vmem:[#allocation243_spill] sm:$0xff] %v12534_v54  ;;  %16053 = vst [vmem:[#allocation244_spill] sm:$0xff] %v12536_v49 }
 0x287   : > { %3040 = vrot.lane.b32.xlu1 %v2613_v39, %s11285_s27  ;;  %3038 = vrot.lane.b32.xlu0 %v2612_v40, %s11285_s27  ;;  %v2619_v39 = vld [vmem:[#allocation2 + $0x211] sm:$0xff]  ;;  %v2618_v40 = vld [vmem:[#allocation2 + $0x209] sm:$0xff] }
 0x289   : > { %v12540_v50 = vpop.permute.xlu1 %2030  ;;  %v12542_v45 = vpop.permute.xlu0 %2028 }
 0x28a   : > { %16054 = vst [vmem:[#allocation245_spill] sm:$0xff] %v12540_v50  ;;  %16055 = vst [vmem:[#allocation246_spill] sm:$0xff] %v12542_v45 }
 0x28b   : > { %3044 = vrot.lane.b32.xlu1 %v2615_v57, %s11285_s27  ;;  %3042 = vrot.lane.b32.xlu0 %v2614_v58, %s11285_s27  ;;  %v2621_v57 = vld [vmem:[#allocation2 + $0x221] sm:$0xff]  ;;  %v2620_v58 = vld [vmem:[#allocation2 + $0x219] sm:$0xff] }
 0x28d   : > { %v12546_v53 = vpop.permute.xlu1 %2034  ;;  %v12548_v54 = vpop.permute.xlu0 %2032 }
 0x28e   : > { %16056 = vst [vmem:[#allocation247_spill] sm:$0xff] %v12546_v53  ;;  %16057 = vst [vmem:[#allocation248_spill] sm:$0xff] %v12548_v54 }
 0x28f   : > { %3048 = vrot.lane.b32.xlu1 %v2617_v23, %s11285_s27  ;;  %3046 = vrot.lane.b32.xlu0 %v2616_v24, %s11285_s27  ;;  %v2623_v23 = vld [vmem:[#allocation2 + $0x239] sm:$0xff]  ;;  %v2622_v24 = vld [vmem:[#allocation2 + $0x231] sm:$0xff] }
 0x291   : > { %v12552_v49 = vpop.permute.xlu1 %2038  ;;  %v12554_v50 = vpop.permute.xlu0 %2036 }
 0x292   : > { %16058 = vst [vmem:[#allocation249_spill] sm:$0xff] %v12552_v49  ;;  %16059 = vst [vmem:[#allocation250_spill] sm:$0xff] %v12554_v50 }
 0x293   : > { %3052 = vrot.lane.b32.xlu1 %v2619_v39, %s11285_s27  ;;  %3050 = vrot.lane.b32.xlu0 %v2618_v40, %s11285_s27  ;;  %v2625_v39 = vld [vmem:[#allocation2 + $0x249] sm:$0xff]  ;;  %v2624_v40 = vld [vmem:[#allocation2 + $0x241] sm:$0xff] }
 0x295   : > { %v12558_v45 = vpop.permute.xlu1 %2042  ;;  %v12560_v53 = vpop.permute.xlu0 %2040 }
 0x296   : > { %16060 = vst [vmem:[#allocation251_spill] sm:$0xff] %v12558_v45  ;;  %16061 = vst [vmem:[#allocation252_spill] sm:$0xff] %v12560_v53 }
 0x297   : > { %3056 = vrot.lane.b32.xlu1 %v2621_v57, %s11285_s27  ;;  %3054 = vrot.lane.b32.xlu0 %v2620_v58, %s11285_s27  ;;  %v2627_v57 = vld [vmem:[#allocation2 + $0x261] sm:$0xff]  ;;  %v2626_v58 = vld [vmem:[#allocation2 + $0x259] sm:$0xff] }
 0x299   : > { %v12564_v49 = vpop.permute.xlu1 %2046  ;;  %v12566_v50 = vpop.permute.xlu0 %2044 }
 0x29a   : > { %16062 = vst [vmem:[#allocation253_spill] sm:$0xff] %v12564_v49  ;;  %16063 = vst [vmem:[#allocation254_spill] sm:$0xff] %v12566_v50  ;;  %v614_v50 = vld [vmem:[%s11506_s26 + $0x3e8] sm:$0xff] }
 0x29b   : > { %3060 = vrot.lane.b32.xlu1 %v2623_v23, %s11285_s27  ;;  %3058 = vrot.lane.b32.xlu0 %v2622_v24, %s11285_s27  ;;  %744 = vst.msk [vmem:[#allocation2 + $0x509] sm:$0xff] %vm618_vm0, %v614_v50  ;;  %v613_v24 = vld [vmem:[%s11506_s26 + $0x3e0] sm:$0xff] }
 0x29c   : > { %743 = vst.msk [vmem:[#allocation2 + $0x501] sm:$0xff] %vm618_vm0, %v613_v24  ;;  %v2633_v24 = vld [vmem:[#allocation2 + $0x299] sm:$0xff] }
 0x29d   : > { %v12570_v45 = vpop.permute.xlu1 %2050  ;;  %v12572_v53 = vpop.permute.xlu0 %2048 }
 0x29e   : > { %16064 = vst [vmem:[#allocation255_spill] sm:$0xff] %v12570_v45  ;;  %16065 = vst [vmem:[#allocation256_spill] sm:$0xff] %v12572_v53  ;;  %v2629_v45 = vld [vmem:[#allocation2 + $0x271] sm:$0xff] }
 0x29f   : > { %3064 = vrot.lane.b32.xlu1 %v2625_v39, %s11285_s27  ;;  %3062 = vrot.lane.b32.xlu0 %v2624_v40, %s11285_s27  ;;  %v2628_v39 = vld [vmem:[#allocation2 + $0x269] sm:$0xff] }
 0x2a1   : > { %v12576_v49 = vpop.permute.xlu1 %2054  ;;  %v12578_v23 = vpop.permute.xlu0 %2052 }
 0x2a2   : > { %16066 = vst [vmem:[#allocation257_spill] sm:$0xff] %v12576_v49  ;;  %16067 = vst [vmem:[#allocation258_spill] sm:$0xff] %v12578_v23  ;;  %v616_v49 = vld [vmem:[%s11506_s26 + $0x3f8] sm:$0xff]  ;;  %v2630_v23 = vld [vmem:[#allocation2 + $0x281] sm:$0xff] }
 0x2a3   : > { %3068 = vrot.lane.b32.xlu1 %v2627_v57, %s11285_s27  ;;  %3066 = vrot.lane.b32.xlu0 %v2626_v58, %s11285_s27  ;;  %746 = vst.msk [vmem:[#allocation2 + $0x519] sm:$0xff] %vm618_vm0, %v616_v49  ;;  %v615_v57 = vld [vmem:[%s11506_s26 + $0x3f0] sm:$0xff] }
 0x2a4   : > { %v2631_v58 = vld [vmem:[#allocation2 + $0x289] sm:$0xff]  ;;  %745 = vst.msk [vmem:[#allocation2 + $0x511] sm:$0xff] %vm618_vm0, %v615_v57  ;;  %v2635_v49 = vld [vmem:[#allocation2 + $0x2b1] sm:$0xff] }
 0x2a5   : > { %v12586_v40 = vpop.permute.xlu1 %2956  ;;  %v12588_v53 = vpop.permute.xlu0 %2954  ;;  %v2634_v57 = vld [vmem:[#allocation2 + $0x2a9] sm:$0xff] }
 0x2a7   : > { %3072 = vrot.lane.b32.xlu1 %v2629_v45, %s11285_s27  ;;  %3070 = vrot.lane.b32.xlu0 %v2628_v39, %s11285_s27 }
 0x2a9   : > { %v12596_v50 = vpop.permute.xlu1 %2960  ;;  %v12598_v54 = vpop.permute.xlu0 %2958 }
 0x2ab   : > { %3076 = vrot.lane.b32.xlu1 %v2631_v58, %s11285_s27  ;;  %3074 = vrot.lane.b32.xlu0 %v2630_v23, %s11285_s27  ;;  %v2637_v23 = vld [vmem:[#allocation2 + $0x2c1] sm:$0xff]  ;;  %v2636_v58 = vld [vmem:[#allocation2 + $0x2b9] sm:$0xff] }
 0x2ad   : > { %v12602_v45 = vpop.permute.xlu1 %2964  ;;  %v12604_v39 = vpop.permute.xlu0 %2962 }
 0x2af   : > { %3080 = vrot.lane.b32.xlu1 %v2633_v24, %s11285_s27  ;;  %3078 = vrot.lane.b32.xlu0 %v2632_v59, %s11285_s27  ;;  %v2639_v59 = vld [vmem:[#allocation2 + $0x2d9] sm:$0xff]  ;;  %v2638_v24 = vld [vmem:[#allocation2 + $0x2d1] sm:$0xff] }
 0x2b1   : > { %v12608_v46 = vpop.permute.xlu1 %2968  ;;  %v12610_v41 = vpop.permute.xlu0 %2966 }
 0x2b3   : > { %3084 = vrot.lane.b32.xlu1 %v2635_v49, %s11285_s27  ;;  %3082 = vrot.lane.b32.xlu0 %v2634_v57, %s11285_s27  ;;  %v2641_v49 = vld [vmem:[#allocation2 + $0x2e9] sm:$0xff]  ;;  %v2640_v57 = vld [vmem:[#allocation2 + $0x2e1] sm:$0xff] }
 0x2b5   : > { %v12614_v60 = vpop.permute.xlu1 %2972  ;;  %v12616_v3 = vpop.permute.xlu0 %2970 }
 0x2b7   : > { %3088 = vrot.lane.b32.xlu1 %v2637_v23, %s11285_s27  ;;  %3086 = vrot.lane.b32.xlu0 %v2636_v58, %s11285_s27  ;;  %v2643_v23 = vld [vmem:[#allocation2 + $0x301] sm:$0xff]  ;;  %v2642_v58 = vld [vmem:[#allocation2 + $0x2f9] sm:$0xff] }
 0x2b9   : > { %v12620_v42 = vpop.permute.xlu1 %2976  ;;  %v12622_v37 = vpop.permute.xlu0 %2974 }
 0x2bb   : > { %3092 = vrot.lane.b32.xlu1 %v2639_v59, %s11285_s27  ;;  %3090 = vrot.lane.b32.xlu0 %v2638_v24, %s11285_s27  ;;  %v2645_v59 = vld [vmem:[#allocation2 + $0x311] sm:$0xff]  ;;  %v2644_v24 = vld [vmem:[#allocation2 + $0x309] sm:$0xff] }
 0x2bd   : > { %v12626_v4 = vpop.permute.xlu1 %2980  ;;  %v12628_v11 = vpop.permute.xlu0 %2978 }
 0x2bf   : > { %3096 = vrot.lane.b32.xlu1 %v2641_v49, %s11285_s27  ;;  %3094 = vrot.lane.b32.xlu0 %v2640_v57, %s11285_s27  ;;  %v2647_v49 = vld [vmem:[#allocation2 + $0x329] sm:$0xff]  ;;  %v2646_v57 = vld [vmem:[#allocation2 + $0x321] sm:$0xff] }
 0x2c1   : > { %v12632_v38 = vpop.permute.xlu1 %2984  ;;  %v12634_v33 = vpop.permute.xlu0 %2982 }
 0x2c3   : > { %3100 = vrot.lane.b32.xlu1 %v2643_v23, %s11285_s27  ;;  %3098 = vrot.lane.b32.xlu0 %v2642_v58, %s11285_s27  ;;  %v2649_v23 = vld [vmem:[#allocation2 + $0x339] sm:$0xff]  ;;  %v2648_v58 = vld [vmem:[#allocation2 + $0x331] sm:$0xff] }
 0x2c5   : > { %v12638_v12 = vpop.permute.xlu1 %2988  ;;  %v12640_v19 = vpop.permute.xlu0 %2986 }
 0x2c7   : > { %3104 = vrot.lane.b32.xlu1 %v2645_v59, %s11285_s27  ;;  %3102 = vrot.lane.b32.xlu0 %v2644_v24, %s11285_s27  ;;  %v2651_v59 = vld [vmem:[#allocation2 + $0x351] sm:$0xff]  ;;  %v2650_v24 = vld [vmem:[#allocation2 + $0x349] sm:$0xff] }
 0x2c9   : > { %v12644_v34 = vpop.permute.xlu1 %2992  ;;  %v12646_v29 = vpop.permute.xlu0 %2990 }
 0x2cb   : > { %3108 = vrot.lane.b32.xlu1 %v2647_v49, %s11285_s27  ;;  %3106 = vrot.lane.b32.xlu0 %v2646_v57, %s11285_s27  ;;  %v2653_v49 = vld [vmem:[#allocation2 + $0x361] sm:$0xff]  ;;  %v2652_v57 = vld [vmem:[#allocation2 + $0x359] sm:$0xff] }
 0x2cd   : > { %v12650_v20 = vpop.permute.xlu1 %2996  ;;  %v12652_v27 = vpop.permute.xlu0 %2994 }
 0x2cf   : > { %3112 = vrot.lane.b32.xlu1 %v2649_v23, %s11285_s27  ;;  %3110 = vrot.lane.b32.xlu0 %v2648_v58, %s11285_s27  ;;  %v2655_v23 = vld [vmem:[#allocation2 + $0x379] sm:$0xff]  ;;  %v2654_v58 = vld [vmem:[#allocation2 + $0x371] sm:$0xff] }
 0x2d1   : > { %v12656_v30 = vpop.permute.xlu1 %3000  ;;  %v12658_v25 = vpop.permute.xlu0 %2998 }
 0x2d3   : > { %3116 = vrot.lane.b32.xlu1 %v2651_v59, %s11285_s27  ;;  %3114 = vrot.lane.b32.xlu0 %v2650_v24, %s11285_s27  ;;  %v2657_v59 = vld [vmem:[#allocation2 + $0x389] sm:$0xff]  ;;  %v2656_v24 = vld [vmem:[#allocation2 + $0x381] sm:$0xff] }
 0x2d5   : > { %v12662_v28 = vpop.permute.xlu1 %3004  ;;  %v12664_v35 = vpop.permute.xlu0 %3002 }
 0x2d7   : > { %3120 = vrot.lane.b32.xlu1 %v2653_v49, %s11285_s27  ;;  %3118 = vrot.lane.b32.xlu0 %v2652_v57, %s11285_s27  ;;  %v2659_v49 = vld [vmem:[#allocation2 + $0x3a1] sm:$0xff]  ;;  %v2658_v57 = vld [vmem:[#allocation2 + $0x399] sm:$0xff] }
 0x2d9   : > { %v12668_v26 = vpop.permute.xlu1 %3008  ;;  %v12670_v21 = vpop.permute.xlu0 %3006 }
 0x2db   : > { %3124 = vrot.lane.b32.xlu1 %v2655_v23, %s11285_s27  ;;  %3122 = vrot.lane.b32.xlu0 %v2654_v58, %s11285_s27  ;;  %v2661_v23 = vld [vmem:[#allocation2 + $0x3b1] sm:$0xff]  ;;  %v2660_v58 = vld [vmem:[#allocation2 + $0x3a9] sm:$0xff] }
 0x2dd   : > { %v12674_v36 = vpop.permute.xlu1 %3012  ;;  %v12676_v43 = vpop.permute.xlu0 %3010 }
 0x2df   : > { %3128 = vrot.lane.b32.xlu1 %v2657_v59, %s11285_s27  ;;  %3126 = vrot.lane.b32.xlu0 %v2656_v24, %s11285_s27  ;;  %v2663_v59 = vld [vmem:[#allocation2 + $0x3c9] sm:$0xff]  ;;  %v2662_v24 = vld [vmem:[#allocation2 + $0x3c1] sm:$0xff] }
 0x2e1   : > { %v12680_v22 = vpop.permute.xlu1 %3016  ;;  %v12682_v17 = vpop.permute.xlu0 %3014 }
 0x2e3   : > { %3132 = vrot.lane.b32.xlu1 %v2659_v49, %s11285_s27  ;;  %3130 = vrot.lane.b32.xlu0 %v2658_v57, %s11285_s27  ;;  %v2665_v49 = vld [vmem:[#allocation2 + $0x3d9] sm:$0xff]  ;;  %v2664_v57 = vld [vmem:[#allocation2 + $0x3d1] sm:$0xff] }
 0x2e5   : > { %v12686_v44 = vpop.permute.xlu1 %3020  ;;  %v12688_v51 = vpop.permute.xlu0 %3018 }
 0x2e7   : > { %3136 = vrot.lane.b32.xlu1 %v2661_v23, %s11285_s27  ;;  %3134 = vrot.lane.b32.xlu0 %v2660_v58, %s11285_s27  ;;  %v2667_v23 = vld [vmem:[#allocation2 + $0x3f1] sm:$0xff]  ;;  %v2666_v58 = vld [vmem:[#allocation2 + $0x3e9] sm:$0xff] }
 0x2e9   : > { %v12692_v18 = vpop.permute.xlu1 %3024  ;;  %v12694_v13 = vpop.permute.xlu0 %3022 }
 0x2eb   : > { %3140 = vrot.lane.b32.xlu1 %v2663_v59, %s11285_s27  ;;  %3138 = vrot.lane.b32.xlu0 %v2662_v24, %s11285_s27  ;;  %v2669_v59 = vld [vmem:[#allocation2 + $0x401] sm:$0xff]  ;;  %v2668_v24 = vld [vmem:[#allocation2 + $0x3f9] sm:$0xff] }
 0x2ed   : > { %v12698_v52 = vpop.permute.xlu1 %3028  ;;  %v12700_v63 = vpop.permute.xlu0 %3026 }
 0x2ef   : > { %3144 = vrot.lane.b32.xlu1 %v2665_v49, %s11285_s27  ;;  %3142 = vrot.lane.b32.xlu0 %v2664_v57, %s11285_s27  ;;  %v2671_v49 = vld [vmem:[#allocation2 + $0x419] sm:$0xff]  ;;  %v2670_v57 = vld [vmem:[#allocation2 + $0x411] sm:$0xff] }
 0x2f1   : > { %v12704_v14 = vpop.permute.xlu1 %3032  ;;  %v12706_v9 = vpop.permute.xlu0 %3030 }
 0x2f3   : > { %3148 = vrot.lane.b32.xlu1 %v2667_v23, %s11285_s27  ;;  %3146 = vrot.lane.b32.xlu0 %v2666_v58, %s11285_s27  ;;  %v2673_v23 = vld [vmem:[#allocation2 + $0x429] sm:$0xff]  ;;  %v2672_v58 = vld [vmem:[#allocation2 + $0x421] sm:$0xff] }
 0x2f5   : > { %v12710_v0 = vpop.permute.xlu1 %3036  ;;  %v12712_v15 = vpop.permute.xlu0 %3034 }
 0x2f7   : > { %3152 = vrot.lane.b32.xlu1 %v2669_v59, %s11285_s27  ;;  %3150 = vrot.lane.b32.xlu0 %v2668_v24, %s11285_s27  ;;  %v2675_v59 = vld [vmem:[#allocation2 + $0x441] sm:$0xff]  ;;  %v2674_v24 = vld [vmem:[#allocation2 + $0x439] sm:$0xff] }
 0x2f9   : > { %v12716_v10 = vpop.permute.xlu1 %3040  ;;  %v12718_v5 = vpop.permute.xlu0 %3038 }
 0x2fb   : > { %3156 = vrot.lane.b32.xlu1 %v2671_v49, %s11285_s27  ;;  %3154 = vrot.lane.b32.xlu0 %v2670_v57, %s11285_s27  ;;  %v2677_v49 = vld [vmem:[#allocation2 + $0x451] sm:$0xff]  ;;  %v2676_v57 = vld [vmem:[#allocation2 + $0x449] sm:$0xff] }
 0x2fd   : > { %v12722_v16 = vpop.permute.xlu1 %3044  ;;  %v12724_v31 = vpop.permute.xlu0 %3042 }
 0x2ff   : > { %3160 = vrot.lane.b32.xlu1 %v2673_v23, %s11285_s27  ;;  %3158 = vrot.lane.b32.xlu0 %v2672_v58, %s11285_s27  ;;  %v2679_v23 = vld [vmem:[#allocation2 + $0x469] sm:$0xff]  ;;  %v2678_v58 = vld [vmem:[#allocation2 + $0x461] sm:$0xff] }
 0x301   : > { %v12728_v6 = vpop.permute.xlu1 %3048  ;;  %v12730_v1 = vpop.permute.xlu0 %3046 }
 0x303   : > { %3164 = vrot.lane.b32.xlu1 %v2675_v59, %s11285_s27  ;;  %3162 = vrot.lane.b32.xlu0 %v2674_v24, %s11285_s27  ;;  %v2681_v59 = vld [vmem:[#allocation2 + $0x479] sm:$0xff]  ;;  %v2680_v24 = vld [vmem:[#allocation2 + $0x471] sm:$0xff] }
 0x305   : > { %v12734_v32 = vpop.permute.xlu1 %3052  ;;  %v12736_v7 = vpop.permute.xlu0 %3050 }
 0x307   : > { %3168 = vrot.lane.b32.xlu1 %v2677_v49, %s11285_s27  ;;  %3166 = vrot.lane.b32.xlu0 %v2676_v57, %s11285_s27  ;;  %v2683_v49 = vld [vmem:[#allocation2 + $0x491] sm:$0xff]  ;;  %v2682_v57 = vld [vmem:[#allocation2 + $0x489] sm:$0xff] }
 0x309   : > { %v12740_v2 = vpop.permute.xlu1 %3056  ;;  %v12742_v61 = vpop.permute.xlu0 %3054 }
 0x30a   : > { %16068 = vst [vmem:[#allocation259_spill] sm:$0xff] %v12742_v61 }
 0x30b   : > { %3172 = vrot.lane.b32.xlu1 %v2679_v23, %s11285_s27  ;;  %3170 = vrot.lane.b32.xlu0 %v2678_v58, %s11285_s27  ;;  %v2685_v23 = vld [vmem:[#allocation2 + $0x4a1] sm:$0xff]  ;;  %v2684_v58 = vld [vmem:[#allocation2 + $0x499] sm:$0xff] }
 0x30d   : > { %v12746_v8 = vpop.permute.xlu1 %3060  ;;  %v12748_v47 = vpop.permute.xlu0 %3058 }
 0x30e   : > { %16069 = vst [vmem:[#allocation260_spill] sm:$0xff] %v12746_v8  ;;  %16070 = vst [vmem:[#allocation261_spill] sm:$0xff] %v12748_v47 }
 0x30f   : > { %3176 = vrot.lane.b32.xlu1 %v2681_v59, %s11285_s27  ;;  %3174 = vrot.lane.b32.xlu0 %v2680_v24, %s11285_s27  ;;  %v2687_v59 = vld [vmem:[#allocation2 + $0x4b9] sm:$0xff]  ;;  %v2686_v24 = vld [vmem:[#allocation2 + $0x4b1] sm:$0xff] }
 0x311   : > { %v12752_v55 = vpop.permute.xlu1 %3064  ;;  %v12754_v62 = vpop.permute.xlu0 %3062 }
 0x312   : > { %16071 = vst [vmem:[#allocation262_spill] sm:$0xff] %v12752_v55  ;;  %16072 = vst [vmem:[#allocation263_spill] sm:$0xff] %v12754_v62 }
 0x313   : > { %3180 = vrot.lane.b32.xlu1 %v2683_v49, %s11285_s27  ;;  %3178 = vrot.lane.b32.xlu0 %v2682_v57, %s11285_s27  ;;  %v2689_v49 = vld [vmem:[#allocation2 + $0x4c9] sm:$0xff]  ;;  %v2688_v57 = vld [vmem:[#allocation2 + $0x4c1] sm:$0xff] }
 0x315   : > { %v12758_v48 = vpop.permute.xlu1 %3068  ;;  %v12760_v56 = vpop.permute.xlu0 %3066 }
 0x316   : > { %16073 = vst [vmem:[#allocation264_spill] sm:$0xff] %v12758_v48  ;;  %16074 = vst [vmem:[#allocation265_spill] sm:$0xff] %v12760_v56 }
 0x317   : > { %3184 = vrot.lane.b32.xlu1 %v2685_v23, %s11285_s27  ;;  %3182 = vrot.lane.b32.xlu0 %v2684_v58, %s11285_s27  ;;  %v2691_v23 = vld [vmem:[#allocation2 + $0x4e1] sm:$0xff]  ;;  %v2690_v58 = vld [vmem:[#allocation2 + $0x4d9] sm:$0xff] }
 0x319   : > { %v12764_v47 = vpop.permute.xlu1 %3072  ;;  %v12766_v55 = vpop.permute.xlu0 %3070 }
 0x31a   : > { %16075 = vst [vmem:[#allocation266_spill] sm:$0xff] %v12764_v47  ;;  %16076 = vst [vmem:[#allocation267_spill] sm:$0xff] %v12766_v55 }
 0x31b   : > { %3188 = vrot.lane.b32.xlu1 %v2687_v59, %s11285_s27  ;;  %3186 = vrot.lane.b32.xlu0 %v2686_v24, %s11285_s27  ;;  %v2693_v59 = vld [vmem:[#allocation2 + $0x4f1] sm:$0xff]  ;;  %v2692_v24 = vld [vmem:[#allocation2 + $0x4e9] sm:$0xff] }
 0x31d   : > { %v12770_v62 = vpop.permute.xlu1 %3076  ;;  %v12772_v48 = vpop.permute.xlu0 %3074 }
 0x31e   : > { %16077 = vst [vmem:[#allocation268_spill] sm:$0xff] %v12770_v62  ;;  %16078 = vst [vmem:[#allocation269_spill] sm:$0xff] %v12772_v48 }
 0x31f   : > { %3192 = vrot.lane.b32.xlu1 %v2689_v49, %s11285_s27  ;;  %3190 = vrot.lane.b32.xlu0 %v2688_v57, %s11285_s27  ;;  %v9858_v49 = vld [vmem:[%s15808_s3 + $0x8] sm:$0x3f] }
 0x320   : > { %10643 = vmatprep.subr.msk.mxu0 %vm4493_vm2, %v9858_v49  ;;  %11225 = vmatprep.subr.msk.mxu1 %vm4493_vm2, %v9858_v49  ;;  %v2695_v57 = vld [vmem:[#allocation2 + $0x509] sm:$0xff] }
 0x321   : > { %v12776_v56 = vpop.permute.xlu1 %3080  ;;  %v12778_v47 = vpop.permute.xlu0 %3078  ;;  %10644 = vmatpush3.msk.msra.mxu0 %vm4493_vm2, %v9858_v49  ;;  %11226 = vmatpush3.msk.msra.mxu1 %vm4493_vm2, %v9858_v49  ;;  %v2698_v49 = vld [vmem:[#allocation2 + $0x2a] sm:$0xff] }
 0x322   : > { %16079 = vst [vmem:[#allocation270_spill] sm:$0xff] %v12776_v56  ;;  %16080 = vst [vmem:[#allocation271_spill] sm:$0xff] %v12778_v47  ;;  %v2697_v56 = vld [vmem:[#allocation2 + $0x519] sm:$0xff] }
 0x323   : > { %3196 = vrot.lane.b32.xlu1 %v2691_v23, %s11285_s27  ;;  %3194 = vrot.lane.b32.xlu0 %v2690_v58, %s11285_s27  ;;  %v2694_v23 = vld [vmem:[#allocation2 + $0x501] sm:$0xff] }
 0x325   : > { %v12782_v55 = vpop.permute.xlu1 %3084  ;;  %v12784_v62 = vpop.permute.xlu0 %3082 }
 0x326   : > { %16081 = vst [vmem:[#allocation272_spill] sm:$0xff] %v12782_v55  ;;  %16082 = vst [vmem:[#allocation273_spill] sm:$0xff] %v12784_v62  ;;  %v2696_v62 = vld [vmem:[#allocation2 + $0x511] sm:$0xff] }
 0x327   : > { %3200 = vrot.lane.b32.xlu1 %v2693_v59, %s11285_s27  ;;  %3198 = vrot.lane.b32.xlu0 %v2692_v24, %s11285_s27  ;;  %v2699_v24 = vld [vmem:[#allocation2 + $0x32] sm:$0xff] }
 0x329   : > { %v12795_v58 = vpop.permute.xlu1 %3088  ;;  %v12797_v47 = vpop.permute.xlu0 %3086 }
 0x32a   : > { %16083 = vst [vmem:[#allocation274_spill] sm:$0xff] %v12795_v58  ;;  %16084 = vst [vmem:[#allocation275_spill] sm:$0xff] %v12797_v47 }
 0x32b   : > { %3204 = vrot.lane.b32.xlu1 %v2695_v57, %s11285_s27  ;;  %3202 = vrot.lane.b32.xlu0 %v2694_v23, %s11285_s27  ;;  %v2701_v57 = vld [vmem:[#allocation2 + $0x42] sm:$0xff]  ;;  %v2700_v23 = vld [vmem:[#allocation2 + $0x3a] sm:$0xff] }
 0x32d   : > { %v12801_v55 = vpop.permute.xlu1 %3092  ;;  %v12803_v59 = vpop.permute.xlu0 %3090 }
 0x32e   : > { %16085 = vst [vmem:[#allocation276_spill] sm:$0xff] %v12801_v55  ;;  %16086 = vst [vmem:[#allocation277_spill] sm:$0xff] %v12803_v59 }
 0x32f   : > { %3208 = vrot.lane.b32.xlu1 %v2697_v56, %s11285_s27  ;;  %3206 = vrot.lane.b32.xlu0 %v2696_v62, %s11285_s27  ;;  %v2703_v56 = vld [vmem:[#allocation2 + $0x5a] sm:$0xff]  ;;  %v2702_v62 = vld [vmem:[#allocation2 + $0x52] sm:$0xff] }
 0x331   : > { %v12807_v48 = vpop.permute.xlu1 %3096  ;;  %v12809_v58 = vpop.permute.xlu0 %3094 }
 0x332   : > { %16087 = vst [vmem:[#allocation278_spill] sm:$0xff] %v12807_v48  ;;  %16088 = vst [vmem:[#allocation279_spill] sm:$0xff] %v12809_v58 }
 0x333   : > { %3468 = vrot.lane.b32.xlu1 %v2699_v24, %s11286_s28  ;;  %3466 = vrot.lane.b32.xlu0 %v2698_v49, %s11286_s28  ;;  %v2705_v24 = vld [vmem:[#allocation2 + $0x6a] sm:$0xff]  ;;  %v2704_v49 = vld [vmem:[#allocation2 + $0x62] sm:$0xff] }
 0x335   : > { %v12813_v47 = vpop.permute.xlu1 %3100  ;;  %v12815_v55 = vpop.permute.xlu0 %3098 }
 0x336   : > { %16089 = vst [vmem:[#allocation280_spill] sm:$0xff] %v12813_v47  ;;  %16090 = vst [vmem:[#allocation281_spill] sm:$0xff] %v12815_v55 }
 0x337   : > { %3472 = vrot.lane.b32.xlu1 %v2701_v57, %s11286_s28  ;;  %3470 = vrot.lane.b32.xlu0 %v2700_v23, %s11286_s28  ;;  %v2707_v57 = vld [vmem:[#allocation2 + $0x82] sm:$0xff]  ;;  %v2706_v23 = vld [vmem:[#allocation2 + $0x7a] sm:$0xff] }
 0x339   : > { %v12819_v59 = vpop.permute.xlu1 %3104  ;;  %v12821_v48 = vpop.permute.xlu0 %3102 }
 0x33a   : > { %16091 = vst [vmem:[#allocation282_spill] sm:$0xff] %v12819_v59  ;;  %16092 = vst [vmem:[#allocation283_spill] sm:$0xff] %v12821_v48 }
 0x33b   : > { %3476 = vrot.lane.b32.xlu1 %v2703_v56, %s11286_s28  ;;  %3474 = vrot.lane.b32.xlu0 %v2702_v62, %s11286_s28  ;;  %v2709_v56 = vld [vmem:[#allocation2 + $0x92] sm:$0xff]  ;;  %v2708_v62 = vld [vmem:[#allocation2 + $0x8a] sm:$0xff] }
 0x33d   : > { %v12825_v58 = vpop.permute.xlu1 %3108  ;;  %v12827_v47 = vpop.permute.xlu0 %3106 }
 0x33e   : > { %16093 = vst [vmem:[#allocation284_spill] sm:$0xff] %v12825_v58  ;;  %16094 = vst [vmem:[#allocation285_spill] sm:$0xff] %v12827_v47 }
 0x33f   : > { %3480 = vrot.lane.b32.xlu1 %v2705_v24, %s11286_s28  ;;  %3478 = vrot.lane.b32.xlu0 %v2704_v49, %s11286_s28  ;;  %v2711_v24 = vld [vmem:[#allocation2 + $0xaa] sm:$0xff]  ;;  %v2710_v49 = vld [vmem:[#allocation2 + $0xa2] sm:$0xff] }
 0x341   : > { %v12831_v55 = vpop.permute.xlu1 %3112  ;;  %v12833_v59 = vpop.permute.xlu0 %3110 }
 0x342   : > { %16095 = vst [vmem:[#allocation286_spill] sm:$0xff] %v12831_v55  ;;  %16096 = vst [vmem:[#allocation287_spill] sm:$0xff] %v12833_v59 }
 0x343   : > { %3484 = vrot.lane.b32.xlu1 %v2707_v57, %s11286_s28  ;;  %3482 = vrot.lane.b32.xlu0 %v2706_v23, %s11286_s28  ;;  %v2713_v57 = vld [vmem:[#allocation2 + $0xba] sm:$0xff]  ;;  %v2712_v23 = vld [vmem:[#allocation2 + $0xb2] sm:$0xff] }
 0x345   : > { %v12837_v48 = vpop.permute.xlu1 %3116  ;;  %v12839_v58 = vpop.permute.xlu0 %3114 }
 0x346   : > { %16097 = vst [vmem:[#allocation288_spill] sm:$0xff] %v12837_v48  ;;  %16098 = vst [vmem:[#allocation289_spill] sm:$0xff] %v12839_v58 }
 0x347   : > { %3488 = vrot.lane.b32.xlu1 %v2709_v56, %s11286_s28  ;;  %3486 = vrot.lane.b32.xlu0 %v2708_v62, %s11286_s28  ;;  %v2715_v56 = vld [vmem:[#allocation2 + $0xd2] sm:$0xff]  ;;  %v2714_v62 = vld [vmem:[#allocation2 + $0xca] sm:$0xff] }
 0x349   : > { %v12843_v47 = vpop.permute.xlu1 %3120  ;;  %v12845_v55 = vpop.permute.xlu0 %3118 }
 0x34a   : > { %16099 = vst [vmem:[#allocation290_spill] sm:$0xff] %v12843_v47  ;;  %16100 = vst [vmem:[#allocation291_spill] sm:$0xff] %v12845_v55 }
 0x34b   : > { %3492 = vrot.lane.b32.xlu1 %v2711_v24, %s11286_s28  ;;  %3490 = vrot.lane.b32.xlu0 %v2710_v49, %s11286_s28  ;;  %v2717_v24 = vld [vmem:[#allocation2 + $0xe2] sm:$0xff]  ;;  %v2716_v49 = vld [vmem:[#allocation2 + $0xda] sm:$0xff] }
 0x34d   : > { %v12849_v59 = vpop.permute.xlu1 %3124  ;;  %v12851_v48 = vpop.permute.xlu0 %3122 }
 0x34e   : > { %16101 = vst [vmem:[#allocation292_spill] sm:$0xff] %v12849_v59  ;;  %16102 = vst [vmem:[#allocation293_spill] sm:$0xff] %v12851_v48 }
 0x34f   : > { %3496 = vrot.lane.b32.xlu1 %v2713_v57, %s11286_s28  ;;  %3494 = vrot.lane.b32.xlu0 %v2712_v23, %s11286_s28  ;;  %v2719_v57 = vld [vmem:[#allocation2 + $0xfa] sm:$0xff]  ;;  %v2718_v23 = vld [vmem:[#allocation2 + $0xf2] sm:$0xff] }
 0x351   : > { %v12855_v58 = vpop.permute.xlu1 %3128  ;;  %v12857_v47 = vpop.permute.xlu0 %3126 }
 0x352   : > { %16103 = vst [vmem:[#allocation294_spill] sm:$0xff] %v12855_v58  ;;  %16104 = vst [vmem:[#allocation295_spill] sm:$0xff] %v12857_v47 }
 0x353   : > { %3500 = vrot.lane.b32.xlu1 %v2715_v56, %s11286_s28  ;;  %3498 = vrot.lane.b32.xlu0 %v2714_v62, %s11286_s28  ;;  %v2721_v56 = vld [vmem:[#allocation2 + $0x10a] sm:$0xff]  ;;  %v2720_v62 = vld [vmem:[#allocation2 + $0x102] sm:$0xff] }
 0x355   : > { %v12861_v55 = vpop.permute.xlu1 %3132  ;;  %v12863_v59 = vpop.permute.xlu0 %3130 }
 0x356   : > { %16105 = vst [vmem:[#allocation296_spill] sm:$0xff] %v12861_v55  ;;  %16106 = vst [vmem:[#allocation297_spill] sm:$0xff] %v12863_v59 }
 0x357   : > { %3504 = vrot.lane.b32.xlu1 %v2717_v24, %s11286_s28  ;;  %3502 = vrot.lane.b32.xlu0 %v2716_v49, %s11286_s28  ;;  %v2723_v24 = vld [vmem:[#allocation2 + $0x122] sm:$0xff]  ;;  %v2722_v49 = vld [vmem:[#allocation2 + $0x11a] sm:$0xff] }
 0x359   : > { %v12867_v48 = vpop.permute.xlu1 %3136  ;;  %v12869_v58 = vpop.permute.xlu0 %3134 }
 0x35a   : > { %16107 = vst [vmem:[#allocation298_spill] sm:$0xff] %v12867_v48  ;;  %16108 = vst [vmem:[#allocation299_spill] sm:$0xff] %v12869_v58 }
 0x35b   : > { %3508 = vrot.lane.b32.xlu1 %v2719_v57, %s11286_s28  ;;  %3506 = vrot.lane.b32.xlu0 %v2718_v23, %s11286_s28  ;;  %v2725_v57 = vld [vmem:[#allocation2 + $0x132] sm:$0xff]  ;;  %v2724_v23 = vld [vmem:[#allocation2 + $0x12a] sm:$0xff] }
 0x35d   : > { %v12873_v47 = vpop.permute.xlu1 %3140  ;;  %v12875_v55 = vpop.permute.xlu0 %3138 }
 0x35e   : > { %16109 = vst [vmem:[#allocation300_spill] sm:$0xff] %v12873_v47  ;;  %16110 = vst [vmem:[#allocation301_spill] sm:$0xff] %v12875_v55 }
 0x35f   : > { %3512 = vrot.lane.b32.xlu1 %v2721_v56, %s11286_s28  ;;  %3510 = vrot.lane.b32.xlu0 %v2720_v62, %s11286_s28  ;;  %v2727_v56 = vld [vmem:[#allocation2 + $0x14a] sm:$0xff]  ;;  %v2726_v62 = vld [vmem:[#allocation2 + $0x142] sm:$0xff] }
 0x361   : > { %v12879_v59 = vpop.permute.xlu1 %3144  ;;  %v12881_v48 = vpop.permute.xlu0 %3142 }
 0x362   : > { %16111 = vst [vmem:[#allocation302_spill] sm:$0xff] %v12879_v59  ;;  %16112 = vst [vmem:[#allocation303_spill] sm:$0xff] %v12881_v48 }
 0x363   : > { %3516 = vrot.lane.b32.xlu1 %v2723_v24, %s11286_s28  ;;  %3514 = vrot.lane.b32.xlu0 %v2722_v49, %s11286_s28  ;;  %v2729_v24 = vld [vmem:[#allocation2 + $0x15a] sm:$0xff]  ;;  %v2728_v49 = vld [vmem:[#allocation2 + $0x152] sm:$0xff] }
 0x365   : > { %v12885_v58 = vpop.permute.xlu1 %3148  ;;  %v12887_v47 = vpop.permute.xlu0 %3146 }
 0x366   : > { %16113 = vst [vmem:[#allocation304_spill] sm:$0xff] %v12885_v58  ;;  %16114 = vst [vmem:[#allocation305_spill] sm:$0xff] %v12887_v47 }
 0x367   : > { %3520 = vrot.lane.b32.xlu1 %v2725_v57, %s11286_s28  ;;  %3518 = vrot.lane.b32.xlu0 %v2724_v23, %s11286_s28  ;;  %v2731_v57 = vld [vmem:[#allocation2 + $0x172] sm:$0xff]  ;;  %v2730_v23 = vld [vmem:[#allocation2 + $0x16a] sm:$0xff] }
 0x369   : > { %v12891_v55 = vpop.permute.xlu1 %3152  ;;  %v12893_v59 = vpop.permute.xlu0 %3150 }
 0x36a   : > { %16115 = vst [vmem:[#allocation306_spill] sm:$0xff] %v12891_v55  ;;  %16116 = vst [vmem:[#allocation307_spill] sm:$0xff] %v12893_v59 }
 0x36b   : > { %3524 = vrot.lane.b32.xlu1 %v2727_v56, %s11286_s28  ;;  %3522 = vrot.lane.b32.xlu0 %v2726_v62, %s11286_s28  ;;  %v2733_v56 = vld [vmem:[#allocation2 + $0x182] sm:$0xff]  ;;  %v2732_v62 = vld [vmem:[#allocation2 + $0x17a] sm:$0xff] }
 0x36d   : > { %v12897_v48 = vpop.permute.xlu1 %3156  ;;  %v12899_v58 = vpop.permute.xlu0 %3154 }
 0x36e   : > { %16117 = vst [vmem:[#allocation308_spill] sm:$0xff] %v12897_v48  ;;  %16118 = vst [vmem:[#allocation309_spill] sm:$0xff] %v12899_v58 }
 0x36f   : > { %3528 = vrot.lane.b32.xlu1 %v2729_v24, %s11286_s28  ;;  %3526 = vrot.lane.b32.xlu0 %v2728_v49, %s11286_s28  ;;  %v2735_v24 = vld [vmem:[#allocation2 + $0x19a] sm:$0xff]  ;;  %v2734_v49 = vld [vmem:[#allocation2 + $0x192] sm:$0xff] }
 0x371   : > { %v12903_v47 = vpop.permute.xlu1 %3160  ;;  %v12905_v55 = vpop.permute.xlu0 %3158 }
 0x372   : > { %16119 = vst [vmem:[#allocation310_spill] sm:$0xff] %v12903_v47  ;;  %16120 = vst [vmem:[#allocation311_spill] sm:$0xff] %v12905_v55 }
 0x373   : > { %3532 = vrot.lane.b32.xlu1 %v2731_v57, %s11286_s28  ;;  %3530 = vrot.lane.b32.xlu0 %v2730_v23, %s11286_s28  ;;  %v2737_v57 = vld [vmem:[#allocation2 + $0x1aa] sm:$0xff]  ;;  %v2736_v23 = vld [vmem:[#allocation2 + $0x1a2] sm:$0xff] }
 0x375   : > { %v12909_v59 = vpop.permute.xlu1 %3164  ;;  %v12911_v48 = vpop.permute.xlu0 %3162 }
 0x376   : > { %16121 = vst [vmem:[#allocation312_spill] sm:$0xff] %v12909_v59  ;;  %16122 = vst [vmem:[#allocation313_spill] sm:$0xff] %v12911_v48 }
 0x377   : > { %3536 = vrot.lane.b32.xlu1 %v2733_v56, %s11286_s28  ;;  %3534 = vrot.lane.b32.xlu0 %v2732_v62, %s11286_s28  ;;  %v2739_v56 = vld [vmem:[#allocation2 + $0x1c2] sm:$0xff]  ;;  %v2738_v62 = vld [vmem:[#allocation2 + $0x1ba] sm:$0xff] }
 0x379   : > { %v12915_v58 = vpop.permute.xlu1 %3168  ;;  %v12917_v47 = vpop.permute.xlu0 %3166 }
 0x37a   : > { %16123 = vst [vmem:[#allocation314_spill] sm:$0xff] %v12915_v58  ;;  %16124 = vst [vmem:[#allocation315_spill] sm:$0xff] %v12917_v47 }
 0x37b   : > { %3540 = vrot.lane.b32.xlu1 %v2735_v24, %s11286_s28  ;;  %3538 = vrot.lane.b32.xlu0 %v2734_v49, %s11286_s28  ;;  %v2741_v24 = vld [vmem:[#allocation2 + $0x1d2] sm:$0xff]  ;;  %v2740_v49 = vld [vmem:[#allocation2 + $0x1ca] sm:$0xff] }
 0x37d   : > { %v12921_v55 = vpop.permute.xlu1 %3172  ;;  %v12923_v59 = vpop.permute.xlu0 %3170 }
 0x37e   : > { %16125 = vst [vmem:[#allocation316_spill] sm:$0xff] %v12921_v55  ;;  %16126 = vst [vmem:[#allocation317_spill] sm:$0xff] %v12923_v59 }
 0x37f   : > { %3544 = vrot.lane.b32.xlu1 %v2737_v57, %s11286_s28  ;;  %3542 = vrot.lane.b32.xlu0 %v2736_v23, %s11286_s28  ;;  %v2743_v57 = vld [vmem:[#allocation2 + $0x1ea] sm:$0xff]  ;;  %v2742_v23 = vld [vmem:[#allocation2 + $0x1e2] sm:$0xff] }
 0x381   : > { %v12927_v48 = vpop.permute.xlu1 %3176  ;;  %v12929_v58 = vpop.permute.xlu0 %3174 }
 0x382   : > { %16127 = vst [vmem:[#allocation318_spill] sm:$0xff] %v12927_v48  ;;  %16128 = vst [vmem:[#allocation319_spill] sm:$0xff] %v12929_v58 }
 0x383   : > { %3548 = vrot.lane.b32.xlu1 %v2739_v56, %s11286_s28  ;;  %3546 = vrot.lane.b32.xlu0 %v2738_v62, %s11286_s28  ;;  %v2745_v56 = vld [vmem:[#allocation2 + $0x1fa] sm:$0xff]  ;;  %v2744_v62 = vld [vmem:[#allocation2 + $0x1f2] sm:$0xff] }
 0x385   : > { %v12933_v47 = vpop.permute.xlu1 %3180  ;;  %v12935_v55 = vpop.permute.xlu0 %3178 }
 0x386   : > { %16129 = vst [vmem:[#allocation320_spill] sm:$0xff] %v12933_v47  ;;  %16130 = vst [vmem:[#allocation321_spill] sm:$0xff] %v12935_v55 }
 0x387   : > { %3552 = vrot.lane.b32.xlu1 %v2741_v24, %s11286_s28  ;;  %3550 = vrot.lane.b32.xlu0 %v2740_v49, %s11286_s28  ;;  %v2747_v24 = vld [vmem:[#allocation2 + $0x212] sm:$0xff]  ;;  %v2746_v49 = vld [vmem:[#allocation2 + $0x20a] sm:$0xff] }
 0x389   : > { %v12939_v59 = vpop.permute.xlu1 %3184  ;;  %v12941_v48 = vpop.permute.xlu0 %3182 }
 0x38a   : > { %16131 = vst [vmem:[#allocation322_spill] sm:$0xff] %v12939_v59  ;;  %16132 = vst [vmem:[#allocation323_spill] sm:$0xff] %v12941_v48 }
 0x38b   : > { %3556 = vrot.lane.b32.xlu1 %v2743_v57, %s11286_s28  ;;  %3554 = vrot.lane.b32.xlu0 %v2742_v23, %s11286_s28  ;;  %v2749_v57 = vld [vmem:[#allocation2 + $0x222] sm:$0xff]  ;;  %v2748_v23 = vld [vmem:[#allocation2 + $0x21a] sm:$0xff] }
 0x38d   : > { %v12945_v58 = vpop.permute.xlu1 %3188  ;;  %v12947_v47 = vpop.permute.xlu0 %3186 }
 0x38e   : > { %16133 = vst [vmem:[#allocation324_spill] sm:$0xff] %v12945_v58  ;;  %16134 = vst [vmem:[#allocation325_spill] sm:$0xff] %v12947_v47 }
 0x38f   : > { %3560 = vrot.lane.b32.xlu1 %v2745_v56, %s11286_s28  ;;  %3558 = vrot.lane.b32.xlu0 %v2744_v62, %s11286_s28  ;;  %v2751_v56 = vld [vmem:[#allocation2 + $0x23a] sm:$0xff]  ;;  %v2750_v62 = vld [vmem:[#allocation2 + $0x232] sm:$0xff] }
 0x391   : > { %v12951_v55 = vpop.permute.xlu1 %3192  ;;  %v12953_v59 = vpop.permute.xlu0 %3190 }
 0x392   : > { %16135 = vst [vmem:[#allocation326_spill] sm:$0xff] %v12951_v55  ;;  %16136 = vst [vmem:[#allocation327_spill] sm:$0xff] %v12953_v59 }
 0x393   : > { %3564 = vrot.lane.b32.xlu1 %v2747_v24, %s11286_s28  ;;  %3562 = vrot.lane.b32.xlu0 %v2746_v49, %s11286_s28  ;;  %v2753_v24 = vld [vmem:[#allocation2 + $0x24a] sm:$0xff]  ;;  %v2752_v49 = vld [vmem:[#allocation2 + $0x242] sm:$0xff] }
 0x395   : > { %v12957_v48 = vpop.permute.xlu1 %3196  ;;  %v12959_v58 = vpop.permute.xlu0 %3194 }
 0x396   : > { %16137 = vst [vmem:[#allocation328_spill] sm:$0xff] %v12957_v48  ;;  %16138 = vst [vmem:[#allocation329_spill] sm:$0xff] %v12959_v58 }
 0x397   : > { %3568 = vrot.lane.b32.xlu1 %v2749_v57, %s11286_s28  ;;  %3566 = vrot.lane.b32.xlu0 %v2748_v23, %s11286_s28  ;;  %v2755_v57 = vld [vmem:[#allocation2 + $0x262] sm:$0xff]  ;;  %v2754_v23 = vld [vmem:[#allocation2 + $0x25a] sm:$0xff] }
 0x399   : > { %v12963_v47 = vpop.permute.xlu1 %3200  ;;  %v12965_v55 = vpop.permute.xlu0 %3198 }
 0x39a   : > { %16139 = vst [vmem:[#allocation330_spill] sm:$0xff] %v12963_v47  ;;  %16140 = vst [vmem:[#allocation331_spill] sm:$0xff] %v12965_v55  ;;  %v2443_v55 = vld [vmem:[#allocation2 + $0x30] sm:$0xff] }
 0x39b   : > { %3572 = vrot.lane.b32.xlu1 %v2751_v56, %s11286_s28  ;;  %3570 = vrot.lane.b32.xlu0 %v2750_v62, %s11286_s28  ;;  %v2442_v56 = vld [vmem:[#allocation2 + $0x28] sm:$0xff]  ;;  %v2757_v62 = vld [vmem:[#allocation2 + $0x272] sm:$0xff] }
 0x39d   : > { %v12969_v59 = vpop.permute.xlu1 %3204  ;;  %v12971_v48 = vpop.permute.xlu0 %3202 }
 0x39e   : > { %16141 = vst [vmem:[#allocation332_spill] sm:$0xff] %v12969_v59  ;;  %16142 = vst [vmem:[#allocation333_spill] sm:$0xff] %v12971_v48  ;;  %v2756_v59 = vld [vmem:[#allocation2 + $0x26a] sm:$0xff] }
 0x39f   : > { %3576 = vrot.lane.b32.xlu1 %v2753_v24, %s11286_s28  ;;  %3574 = vrot.lane.b32.xlu0 %v2752_v49, %s11286_s28  ;;  %v3851_v24 = vsel %vm618_vm0, %v2443_v55, %v12586_v40  ;;  %v3850_v49 = vsel %vm618_vm0, %v2442_v56, %v12588_v53  ;;  %v2758_v55 = vld [vmem:[#allocation2 + $0x282] sm:$0xff] }
 0x3a1   : > { %v12975_v58 = vpop.permute.xlu1 %3208  ;;  %v12977_v47 = vpop.permute.xlu0 %3206 }
 0x3a2   : > { %16143 = vst [vmem:[#allocation334_spill] sm:$0xff] %v12975_v58  ;;  %16144 = vst [vmem:[#allocation335_spill] sm:$0xff] %v12977_v47  ;;  %v2445_v58 = vld [vmem:[#allocation2 + $0x40] sm:$0xff]  ;;  %v2444_v47 = vld [vmem:[#allocation2 + $0x38] sm:$0xff] }
 0x3a3   : > { %3580 = vrot.lane.b32.xlu1 %v2755_v57, %s11286_s28  ;;  %3578 = vrot.lane.b32.xlu0 %v2754_v23, %s11286_s28  ;;  %v2759_v23 = vld [vmem:[#allocation2 + $0x28a] sm:$0xff]  ;;  %v3853_v53 = vsel %vm618_vm0, %v2445_v58, %v12596_v50  ;;  %v3852_v40 = vsel %vm618_vm0, %v2444_v47, %v12598_v54  ;;  %v2763_v50 = vld [vmem:[#allocation2 + $0x2b2] sm:$0xff] }
 0x3a4   : > { %v2762_v58 = vld [vmem:[#allocation2 + $0x2aa] sm:$0xff] }
 0x3a5   : > { %v3469_v48 = vpop.permute.xlu1 %3468  ;;  %v3467_v8 = vpop.permute.xlu0 %3466 }
 0x3a6   : > { %v3979_v61 = vsel %vm2312_vm3, %v3851_v24, %v3469_v48  ;;  %v3978_v57 = vsel %vm2312_vm3, %v3850_v49, %v3467_v8  ;;  %v2447_v24 = vld [vmem:[#allocation2 + $0x58] sm:$0xff]  ;;  %v2446_v8 = vld [vmem:[#allocation2 + $0x50] sm:$0xff] }
 0x3a7   : > { %3584 = vrot.lane.b32.xlu1 %v2757_v62, %s11286_s28  ;;  %3582 = vrot.lane.b32.xlu0 %v2756_v59, %s11286_s28  ;;  %v3855_v54 = vsel %vm618_vm0, %v2447_v24, %v12602_v45  ;;  %v2765_v45 = vld [vmem:[#allocation2 + $0x2c2] sm:$0xff] }
 0x3a8   : > { %10645 = vmatprep.mubr.msk.f32.mxu0 %vm4108_vm4, %v3978_v57  ;;  %v2449_v57 = vld [vmem:[#allocation2 + $0x68] sm:$0xff] }
 0x3a9   : > { %10646 = vmatmul.mubr.msk.f32.vlgmr.msra.gmra.mxu0 %vm4108_vm4, %v3979_v61  ;;  %v3473_v56 = vpop.permute.xlu1 %3472  ;;  %v3471_v48 = vpop.permute.xlu0 %3470  ;;  %v3854_v61 = vsel %vm618_vm0, %v2446_v8, %v12604_v39  ;;  %v3857_v39 = vsel %vm618_vm0, %v2449_v57, %v12608_v46  ;;  %v2451_v8 = vld [vmem:[#allocation2 + $0x80] sm:$0xff]  ;;  %v2452_v57 = vld [vmem:[#allocation2 + $0x88] sm:$0xff] }
 0x3aa   : > { %v3981_v62 = vsel %vm2312_vm3, %v3853_v53, %v3473_v56  ;;  %v3980_v59 = vsel %vm2312_vm3, %v3852_v40, %v3471_v48  ;;  %v2448_v53 = vld [vmem:[#allocation2 + $0x60] sm:$0xff] }
 0x3ab   : > { %3588 = vrot.lane.b32.xlu1 %v2759_v23, %s11286_s28  ;;  %3586 = vrot.lane.b32.xlu0 %v2758_v55, %s11286_s28  ;;  %v2764_v40 = vld [vmem:[#allocation2 + $0x2ba] sm:$0xff]  ;;  %v3856_v56 = vsel %vm618_vm0, %v2448_v53, %v12610_v41  ;;  %v3859_v41 = vsel %vm618_vm0, %v2451_v8, %v12614_v60  ;;  %v2769_v60 = vld [vmem:[#allocation2 + $0x2ea] sm:$0xff] }
 0x3ac   : > { %10648 = vmatprep.mubr.msk.f32.mxu0 %vm4108_vm4, %v3980_v59  ;;  %v2767_v46 = vld [vmem:[#allocation2 + $0x2da] sm:$0xff] }
 0x3ad   : > { %10649 = vmatmul.mubr.msk.f32.gmra.mxu0 %vm4108_vm4, %v3981_v62  ;;  %v3477_v47 = vpop.permute.xlu1 %3476  ;;  %v3475_v49 = vpop.permute.xlu0 %3474  ;;  %v2450_v62 = vld [vmem:[#allocation2 + $0x78] sm:$0xff] }
 0x3ae   : > { %v3983_v23 = vsel %vm2312_vm3, %v3855_v54, %v3477_v47  ;;  %v3982_v55 = vsel %vm2312_vm3, %v3854_v61, %v3475_v49  ;;  %v3858_v54 = vsel %vm618_vm0, %v2450_v62, %v12616_v3  ;;  %v2453_v49 = vld [vmem:[#allocation2 + $0x90] sm:$0xff]  ;;  %v2770_v62 = vld [vmem:[#allocation2 + $0x2fa] sm:$0xff] }
 0x3af   : > { %3596 = vrot.lane.b32.xlu1 %v2763_v50, %s11286_s28  ;;  %3594 = vrot.lane.b32.xlu0 %v2762_v58, %s11286_s28  ;;  %v2766_v58 = vld [vmem:[#allocation2 + $0x2d2] sm:$0xff]  ;;  %v3861_v3 = vsel %vm618_vm0, %v2453_v49, %v12620_v42  ;;  %v2771_v42 = vld [vmem:[#allocation2 + $0x302] sm:$0xff] }
 0x3b0   : > { %10651 = vmatprep.mubr.msk.f32.mxu0 %vm4108_vm4, %v3982_v55  ;;  %v2768_v55 = vld [vmem:[#allocation2 + $0x2e2] sm:$0xff] }
 0x3b1   : > { %10652 = vmatmul.mubr.msk.f32.gmra.mxu0 %vm4108_vm4, %v3983_v23  ;;  %v3481_v48 = vpop.permute.xlu1 %3480  ;;  %v3479_v24 = vpop.permute.xlu0 %3478 }
 0x3b2   : > { %v3985_v59 = vsel %vm2312_vm3, %v3857_v39, %v3481_v48  ;;  %v3984_v50 = vsel %vm2312_vm3, %v3856_v56, %v3479_v24  ;;  %v2455_v56 = vld [vmem:[#allocation2 + $0xa8] sm:$0xff]  ;;  %v2454_v48 = vld [vmem:[#allocation2 + $0xa0] sm:$0xff] }
 0x3b3   : > { %3600 = vrot.lane.b32.xlu1 %v2765_v45, %s11286_s28  ;;  %3598 = vrot.lane.b32.xlu0 %v2764_v40, %s11286_s28  ;;  %v3860_v45 = vsel %vm618_vm0, %v2452_v57, %v12622_v37  ;;  %v3863_v37 = vsel %vm618_vm0, %v2455_v56, %v12626_v4  ;;  %v2773_v4 = vld [vmem:[#allocation2 + $0x312] sm:$0xff] }
 0x3b4   : > { %10654 = vmatprep.mubr.msk.f32.mxu0 %vm4108_vm4, %v3984_v50 }
 0x3b5   : > { %10655 = vmatmul.mubr.msk.f32.gmra.mxu0 %vm4108_vm4, %v3985_v59  ;;  %v3485_v61 = vpop.permute.xlu1 %3484  ;;  %v3483_v47 = vpop.permute.xlu0 %3482  ;;  %v3862_v59 = vsel %vm618_vm0, %v2454_v48, %v12628_v11  ;;  %v2461_v48 = vld [vmem:[#allocation2 + $0xe0] sm:$0xff] }
 0x3b6   : > { %v3987_v53 = vsel %vm2312_vm3, %v3859_v41, %v3485_v61  ;;  %v3986_v23 = vsel %vm2312_vm3, %v3858_v54, %v3483_v47  ;;  %v2456_v41 = vld [vmem:[#allocation2 + $0xb0] sm:$0xff] }
 0x3b7   : > { %3604 = vrot.lane.b32.xlu1 %v2767_v46, %s11286_s28  ;;  %3602 = vrot.lane.b32.xlu0 %v2766_v58, %s11286_s28  ;;  %v2457_v58 = vld [vmem:[#allocation2 + $0xb8] sm:$0xff]  ;;  %v2772_v47 = vld [vmem:[#allocation2 + $0x30a] sm:$0xff]  ;;  %v3864_v49 = vsel %vm618_vm0, %v2456_v41, %v12634_v33 }
 0x3b8   : > { %10657 = vmatprep.mubr.msk.f32.mxu0 %vm4108_vm4, %v3986_v23  ;;  %v3865_v11 = vsel %vm618_vm0, %v2457_v58, %v12632_v38  ;;  %v2459_v23 = vld [vmem:[#allocation2 + $0xd0] sm:$0xff] }
 0x3b9   : > { %10658 = vmatmul.mubr.msk.f32.gmra.mxu0 %vm4108_vm4, %v3987_v53  ;;  %v3489_v40 = vpop.permute.xlu1 %3488  ;;  %v3487_v39 = vpop.permute.xlu0 %3486  ;;  %v2775_v38 = vld [vmem:[#allocation2 + $0x32a] sm:$0xff]  ;;  %v3867_v33 = vsel %vm618_vm0, %v2459_v23, %v12638_v12  ;;  %v2777_v12 = vld [vmem:[#allocation2 + $0x33a] sm:$0xff] }
 0x3ba   : > { %v3989_v24 = vsel %vm2312_vm3, %v3861_v3, %v3489_v40  ;;  %v3988_v8 = vsel %vm2312_vm3, %v3860_v45, %v3487_v39  ;;  %v2774_v45 = vld [vmem:[#allocation2 + $0x322] sm:$0xff]  ;;  %v2462_v58 = vld [vmem:[#allocation2 + $0xf0] sm:$0xff] }
 0x3bb   : > { %3608 = vrot.lane.b32.xlu1 %v2769_v60, %s11286_s28  ;;  %3606 = vrot.lane.b32.xlu0 %v2768_v55, %s11286_s28  ;;  %v2458_v60 = vld [vmem:[#allocation2 + $0xc8] sm:$0xff] }
 0x3bc   : > { %10660 = vmatprep.mubr.msk.f32.mxu0 %vm4108_vm4, %v3988_v8  ;;  %v3866_v40 = vsel %vm618_vm0, %v2458_v60, %v12640_v19  ;;  %v3869_v19 = vsel %vm618_vm0, %v2461_v48, %v12644_v34  ;;  %v2779_v34 = vld [vmem:[#allocation2 + $0x352] sm:$0xff]  ;;  %v2780_v60 = vld [vmem:[#allocation2 + $0x35a] sm:$0xff] }
 0x3bd   : > { %10661 = vmatmul.mubr.msk.f32.gmra.mxu0 %vm4108_vm4, %v3989_v24  ;;  %v3493_v50 = vpop.permute.xlu1 %3492  ;;  %v3491_v46 = vpop.permute.xlu0 %3490  ;;  %v2460_v24 = vld [vmem:[#allocation2 + $0xd8] sm:$0xff] }
 0x3be   : > { %v3991_v54 = vsel %vm2312_vm3, %v3863_v37, %v3493_v50  ;;  %v3990_v61 = vsel %vm2312_vm3, %v3862_v59, %v3491_v46  ;;  %v3868_v37 = vsel %vm618_vm0, %v2460_v24, %v12646_v29  ;;  %v2463_v46 = vld [vmem:[#allocation2 + $0xf8] sm:$0xff] }
 0x3bf   : > { %3612 = vrot.lane.b32.xlu1 %v2771_v42, %s11286_s28  ;;  %3610 = vrot.lane.b32.xlu0 %v2770_v62, %s11286_s28  ;;  %v2776_v62 = vld [vmem:[#allocation2 + $0x332] sm:$0xff]  ;;  %v3871_v29 = vsel %vm618_vm0, %v2463_v46, %v12650_v20  ;;  %v2781_v20 = vld [vmem:[#allocation2 + $0x362] sm:$0xff] }
 0x3c0   : > { %10663 = vmatprep.mubr.msk.f32.mxu0 %vm4108_vm4, %v3990_v61  ;;  %v2778_v61 = vld [vmem:[#allocation2 + $0x34a] sm:$0xff] }
 0x3c1   : > { %10664 = vmatmul.mubr.msk.f32.gmra.mxu0 %vm4108_vm4, %v3991_v54  ;;  %v3497_v57 = vpop.permute.xlu1 %3496  ;;  %v3495_v53 = vpop.permute.xlu0 %3494 }
 0x3c2   : > { %v3993_v55 = vsel %vm2312_vm3, %v3865_v11, %v3497_v57  ;;  %v3992_v3 = vsel %vm2312_vm3, %v3864_v49, %v3495_v53  ;;  %v2465_v49 = vld [vmem:[#allocation2 + $0x108] sm:$0xff]  ;;  %v2464_v57 = vld [vmem:[#allocation2 + $0x100] sm:$0xff] }
 0x3c3   : > { %3616 = vrot.lane.b32.xlu1 %v2773_v4, %s11286_s28  ;;  %3614 = vrot.lane.b32.xlu0 %v2772_v47, %s11286_s28  ;;  %v3870_v4 = vsel %vm618_vm0, %v2462_v58, %v12652_v27  ;;  %v3873_v27 = vsel %vm618_vm0, %v2465_v49, %v12656_v30  ;;  %v2783_v30 = vld [vmem:[#allocation2 + $0x37a] sm:$0xff]  ;;  %v2471_v58 = vld [vmem:[#allocation2 + $0x148] sm:$0xff]  ;;  %v2472_v49 = vld [vmem:[#allocation2 + $0x150] sm:$0xff] }
 0x3c4   : > { %10666 = vmatprep.mubr.msk.f32.mxu0 %vm4108_vm4, %v3992_v3 }
 0x3c5   : > { %10667 = vmatmul.mubr.msk.f32.gmra.mxu0 %vm4108_vm4, %v3993_v55  ;;  %v3501_v39 = vpop.permute.xlu1 %3500  ;;  %v3499_v56 = vpop.permute.xlu0 %3498  ;;  %v3872_v55 = vsel %vm618_vm0, %v2464_v57, %v12658_v25 }
 0x3c6   : > { %v3995_v8 = vsel %vm2312_vm3, %v3867_v33, %v3501_v39  ;;  %v3994_v42 = vsel %vm2312_vm3, %v3866_v40, %v3499_v56  ;;  %v2466_v33 = vld [vmem:[#allocation2 + $0x118] sm:$0xff] }
 0x3c7   : > { %3620 = vrot.lane.b32.xlu1 %v2775_v38, %s11286_s28  ;;  %3618 = vrot.lane.b32.xlu0 %v2774_v45, %s11286_s28  ;;  %v2467_v45 = vld [vmem:[#allocation2 + $0x120] sm:$0xff]  ;;  %v2782_v56 = vld [vmem:[#allocation2 + $0x372] sm:$0xff]  ;;  %v3874_v48 = vsel %vm618_vm0, %v2466_v33, %v12664_v35 }
 0x3c8   : > { %10669 = vmatprep.mubr.msk.f32.mxu0 %vm4108_vm4, %v3994_v42  ;;  %v3875_v25 = vsel %vm618_vm0, %v2467_v45, %v12662_v28  ;;  %v2469_v42 = vld [vmem:[#allocation2 + $0x130] sm:$0xff]  ;;  %v2790_v33 = vld [vmem:[#allocation2 + $0x3c2] sm:$0xff] }
 0x3c9   : > { %10670 = vmatmul.mubr.msk.f32.gmra.mxu0 %vm4108_vm4, %v3995_v8  ;;  %v3505_v59 = vpop.permute.xlu1 %3504  ;;  %v3503_v50 = vpop.permute.xlu0 %3502  ;;  %v2785_v28 = vld [vmem:[#allocation2 + $0x38a] sm:$0xff]  ;;  %v3877_v35 = vsel %vm618_vm0, %v2469_v42, %v12668_v26  ;;  %v2787_v26 = vld [vmem:[#allocation2 + $0x3a2] sm:$0xff] }
 0x3ca   : > { %v3997_v41 = vsel %vm2312_vm3, %v3869_v19, %v3505_v59  ;;  %v3996_v54 = vsel %vm2312_vm3, %v3868_v37, %v3503_v50  ;;  %v2784_v37 = vld [vmem:[#allocation2 + $0x382] sm:$0xff] }
 0x3cb   : > { %3624 = vrot.lane.b32.xlu1 %v2777_v12, %s11286_s28  ;;  %3622 = vrot.lane.b32.xlu0 %v2776_v62, %s11286_s28  ;;  %v2468_v12 = vld [vmem:[#allocation2 + $0x128] sm:$0xff] }
 0x3cc   : > { %10672 = vmatprep.mubr.msk.f32.mxu0 %vm4108_vm4, %v3996_v54  ;;  %v3876_v59 = vsel %vm618_vm0, %v2468_v12, %v12670_v21  ;;  %v3879_v21 = vsel %vm618_vm0, %v2471_v58, %v12674_v36  ;;  %v2789_v36 = vld [vmem:[#allocation2 + $0x3b2] sm:$0xff] }
 0x3cd   : > { %10673 = vmatmul.mubr.msk.f32.gmra.mxu0 %vm4108_vm4, %v3997_v41  ;;  %v3509_v47 = vpop.permute.xlu1 %3508  ;;  %v3507_v11 = vpop.permute.xlu0 %3506  ;;  %v2470_v41 = vld [vmem:[#allocation2 + $0x140] sm:$0xff] }
 0x3ce   : > { %v3999_v53 = vsel %vm2312_vm3, %v3871_v29, %v3509_v47  ;;  %v3998_v23 = vsel %vm2312_vm3, %v3870_v4, %v3507_v11  ;;  %v3878_v29 = vsel %vm618_vm0, %v2470_v41, %v12676_v43  ;;  %v2473_v11 = vld [vmem:[#allocation2 + $0x158] sm:$0xff]  ;;  %v2481_v41 = vld [vmem:[#allocation2 + $0x1a8] sm:$0xff] }
 0x3cf   : > { %3628 = vrot.lane.b32.xlu1 %v2779_v34, %s11286_s28  ;;  %3626 = vrot.lane.b32.xlu0 %v2778_v61, %s11286_s28  ;;  %v2786_v61 = vld [vmem:[#allocation2 + $0x39a] sm:$0xff]  ;;  %v3881_v43 = vsel %vm618_vm0, %v2473_v11, %v12680_v22  ;;  %v2791_v22 = vld [vmem:[#allocation2 + $0x3ca] sm:$0xff] }
 0x3d0   : > { %10675 = vmatprep.mubr.msk.f32.mxu0 %vm4108_vm4, %v3998_v23  ;;  %v2788_v23 = vld [vmem:[#allocation2 + $0x3aa] sm:$0xff]  ;;  %v2482_v11 = vld [vmem:[#allocation2 + $0x1b8] sm:$0xff] }
 0x3d1   : > { %10676 = vmatmul.mubr.msk.f32.gmra.mxu0 %vm4108_vm4, %v3999_v53  ;;  %v3513_v3 = vpop.permute.xlu1 %3512  ;;  %v3511_v38 = vpop.permute.xlu0 %3510 }
 0x3d2   : > { %v4001_v40 = vsel %vm2312_vm3, %v3873_v27, %v3513_v3  ;;  %v4000_v39 = vsel %vm2312_vm3, %v3872_v55, %v3511_v38  ;;  %v2475_v55 = vld [vmem:[#allocation2 + $0x170] sm:$0xff]  ;;  %v2474_v3 = vld [vmem:[#allocation2 + $0x168] sm:$0xff] }
 0x3d3   : > { %3632 = vrot.lane.b32.xlu1 %v2781_v20, %s11286_s28  ;;  %3630 = vrot.lane.b32.xlu0 %v2780_v60, %s11286_s28  ;;  %v3880_v20 = vsel %vm618_vm0, %v2472_v49, %v12682_v17  ;;  %v3883_v17 = vsel %vm618_vm0, %v2475_v55, %v12686_v44  ;;  %v2793_v44 = vld [vmem:[#allocation2 + $0x3da] sm:$0xff] }
 0x3d4   : > { %10678 = vmatprep.mubr.msk.f32.mxu0 %vm4108_vm4, %v4000_v39 }
 0x3d5   : > { %10679 = vmatmul.mubr.msk.f32.gmra.mxu0 %vm4108_vm4, %v4001_v40  ;;  %v3517_v24 = vpop.permute.xlu1 %3516  ;;  %v3515_v8 = vpop.permute.xlu0 %3514  ;;  %v3882_v40 = vsel %vm618_vm0, %v2474_v3, %v12688_v51  ;;  %v2800_v3 = vld [vmem:[#allocation2 + $0x422] sm:$0xff] }
 0x3d6   : > { %v4003_v62 = vsel %vm2312_vm3, %v3875_v25, %v3517_v24  ;;  %v4002_v19 = vsel %vm2312_vm3, %v3874_v48, %v3515_v8  ;;  %v2476_v25 = vld [vmem:[#allocation2 + $0x178] sm:$0xff] }
 0x3d7   : > { %3636 = vrot.lane.b32.xlu1 %v2783_v30, %s11286_s28  ;;  %3634 = vrot.lane.b32.xlu0 %v2782_v56, %s11286_s28  ;;  %v2477_v56 = vld [vmem:[#allocation2 + $0x180] sm:$0xff]  ;;  %v2792_v8 = vld [vmem:[#allocation2 + $0x3d2] sm:$0xff]  ;;  %v3884_v42 = vsel %vm618_vm0, %v2476_v25, %v12694_v13 }
 0x3d8   : > { %10681 = vmatprep.mubr.msk.f32.mxu0 %vm4108_vm4, %v4002_v19  ;;  %v3885_v51 = vsel %vm618_vm0, %v2477_v56, %v12692_v18  ;;  %v2479_v19 = vld [vmem:[#allocation2 + $0x198] sm:$0xff] }
 0x3d9   : > { %10682 = vmatmul.mubr.msk.f32.gmra.mxu0 %vm4108_vm4, %v4003_v62  ;;  %v3521_v50 = vpop.permute.xlu1 %3520  ;;  %v3519_v46 = vpop.permute.xlu0 %3518  ;;  %v2795_v18 = vld [vmem:[#allocation2 + $0x3f2] sm:$0xff]  ;;  %v3887_v13 = vsel %vm618_vm0, %v2479_v19, %v12698_v52  ;;  %v2797_v52 = vld [vmem:[#allocation2 + $0x402] sm:$0xff] }
 0x3da   : > { %v4005_v54 = vsel %vm2312_vm3, %v3877_v35, %v3521_v50  ;;  %v4004_v34 = vsel %vm2312_vm3, %v3876_v59, %v3519_v46  ;;  %v2794_v59 = vld [vmem:[#allocation2 + $0x3ea] sm:$0xff] }
 0x3db   : > { %3640 = vrot.lane.b32.xlu1 %v2785_v28, %s11286_s28  ;;  %3638 = vrot.lane.b32.xlu0 %v2784_v37, %s11286_s28  ;;  %v2478_v28 = vld [vmem:[#allocation2 + $0x190] sm:$0xff] }
 0x3dc   : > { %10684 = vmatprep.mubr.msk.f32.mxu0 %vm4108_vm4, %v4004_v34  ;;  %v3886_v50 = vsel %vm618_vm0, %v2478_v28, %v12700_v63  ;;  %v3889_v63 = vsel %vm618_vm0, %v2481_v41, %v12704_v14  ;;  %v2799_v14 = vld [vmem:[#allocation2 + $0x41a] sm:$0xff]  ;;  %v2491_v28 = vld [vmem:[#allocation2 + $0x210] sm:$0xff] }
 0x3dd   : > { %10685 = vmatmul.mubr.msk.f32.gmra.mxu0 %vm4108_vm4, %v4005_v54  ;;  %v3525_v4 = vpop.permute.xlu1 %3524  ;;  %v3523_v47 = vpop.permute.xlu0 %3522  ;;  %v2480_v54 = vld [vmem:[#allocation2 + $0x1a0] sm:$0xff]  ;;  %v2492_v41 = vld [vmem:[#allocation2 + $0x218] sm:$0xff] }
 0x3de   : > { %v4007_v57 = vsel %vm2312_vm3, %v3879_v21, %v3525_v4  ;;  %v4006_v53 = vsel %vm2312_vm3, %v3878_v29, %v3523_v47  ;;  %v3888_v21 = vsel %vm618_vm0, %v2480_v54, %v12706_v9  ;;  %v2483_v47 = vld [vmem:[#allocation2 + $0x1c0] sm:$0xff] }
 0x3df   : > { %3644 = vrot.lane.b32.xlu1 %v2787_v26, %s11286_s28  ;;  %3642 = vrot.lane.b32.xlu0 %v2786_v61, %s11286_s28  ;;  %v2796_v61 = vld [vmem:[#allocation2 + $0x3fa] sm:$0xff]  ;;  %v3891_v9 = vsel %vm618_vm0, %v2483_v47, %v12710_v0  ;;  %v2801_v0 = vld [vmem:[#allocation2 + $0x42a] sm:$0xff] }
 0x3e0   : > { %10687 = vmatprep.mubr.msk.f32.mxu0 %vm4108_vm4, %v4006_v53  ;;  %v2798_v53 = vld [vmem:[#allocation2 + $0x412] sm:$0xff] }
 0x3e1   : > { %10688 = vmatmul.mubr.msk.f32.gmra.mxu0 %vm4108_vm4, %v4007_v57  ;;  %v3529_v60 = vpop.permute.xlu1 %3528  ;;  %v3527_v27 = vpop.permute.xlu0 %3526 }
 0x3e2   : > { %v4009_v38 = vsel %vm2312_vm3, %v3881_v43, %v3529_v60  ;;  %v4008_v45 = vsel %vm2312_vm3, %v3880_v20, %v3527_v27  ;;  %v2485_v20 = vld [vmem:[#allocation2 + $0x1d0] sm:$0xff]  ;;  %v2484_v60 = vld [vmem:[#allocation2 + $0x1c8] sm:$0xff] }
 0x3e3   : > { %3648 = vrot.lane.b32.xlu1 %v2789_v36, %s11286_s28  ;;  %3646 = vrot.lane.b32.xlu0 %v2788_v23, %s11286_s28  ;;  %v3890_v36 = vsel %vm618_vm0, %v2482_v11, %v12712_v15  ;;  %v3893_v15 = vsel %vm618_vm0, %v2485_v20, %v12716_v10  ;;  %v2803_v10 = vld [vmem:[#allocation2 + $0x442] sm:$0xff] }
 0x3e4   : > { %10690 = vmatprep.mubr.msk.f32.mxu0 %vm4108_vm4, %v4008_v45  ;;  %v2496_v20 = vld [vmem:[#allocation2 + $0x240] sm:$0xff] }
 0x3e5   : > { %10691 = vmatmul.mubr.msk.f32.gmra.mxu0 %vm4108_vm4, %v4009_v38  ;;  %v3533_v39 = vpop.permute.xlu1 %3532  ;;  %v3531_v30 = vpop.permute.xlu0 %3530  ;;  %v3892_v38 = vsel %vm618_vm0, %v2484_v60, %v12718_v5 }
 0x3e6   : > { %v4011_v48 = vsel %vm2312_vm3, %v3883_v17, %v3533_v39  ;;  %v4010_v24 = vsel %vm2312_vm3, %v3882_v40, %v3531_v30  ;;  %v2486_v17 = vld [vmem:[#allocation2 + $0x1e0] sm:$0xff] }
 0x3e7   : > { %3652 = vrot.lane.b32.xlu1 %v2791_v22, %s11286_s28  ;;  %3650 = vrot.lane.b32.xlu0 %v2790_v33, %s11286_s28  ;;  %v2487_v33 = vld [vmem:[#allocation2 + $0x1e8] sm:$0xff]  ;;  %v2802_v30 = vld [vmem:[#allocation2 + $0x43a] sm:$0xff]  ;;  %v3894_v56 = vsel %vm618_vm0, %v2486_v17, %v12724_v31 }
 0x3e8   : > { %10693 = vmatprep.mubr.msk.f32.mxu0 %vm4108_vm4, %v4010_v24  ;;  %v3895_v5 = vsel %vm618_vm0, %v2487_v33, %v12722_v16  ;;  %v2489_v24 = vld [vmem:[#allocation2 + $0x1f8] sm:$0xff]  ;;  %v2499_v17 = vld [vmem:[#allocation2 + $0x260] sm:$0xff] }
 0x3e9   : > { %10694 = vmatmul.mubr.msk.f32.gmra.mxu0 %vm4108_vm4, %v4011_v48  ;;  %v3537_v12 = vpop.permute.xlu1 %3536  ;;  %v3535_v62 = vpop.permute.xlu0 %3534  ;;  %v2805_v16 = vld [vmem:[#allocation2 + $0x452] sm:$0xff]  ;;  %v3897_v31 = vsel %vm618_vm0, %v2489_v24, %v12728_v6  ;;  %v2807_v6 = vld [vmem:[#allocation2 + $0x46a] sm:$0xff] }
 0x3ea   : > { %v4013_v37 = vsel %vm2312_vm3, %v3885_v51, %v3537_v12  ;;  %v4012_v35 = vsel %vm2312_vm3, %v3884_v42, %v3535_v62  ;;  %v2804_v42 = vld [vmem:[#allocation2 + $0x44a] sm:$0xff] }
 0x3eb   : > { %3656 = vrot.lane.b32.xlu1 %v2793_v44, %s11286_s28  ;;  %3654 = vrot.lane.b32.xlu0 %v2792_v8, %s11286_s28  ;;  %v2488_v44 = vld [vmem:[#allocation2 + $0x1f0] sm:$0xff] }
 0x3ec   : > { %10696 = vmatprep.mubr.msk.f32.mxu0 %vm4108_vm4, %v4012_v35  ;;  %v3896_v12 = vsel %vm618_vm0, %v2488_v44, %v12730_v1  ;;  %v3899_v1 = vsel %vm618_vm0, %v2491_v28, %v12734_v32  ;;  %v2809_v32 = vld [vmem:[#allocation2 + $0x47a] sm:$0xff] }
 0x3ed   : > { %10697 = vmatmul.mubr.msk.f32.gmra.mxu0 %vm4108_vm4, %v4013_v37  ;;  %v3541_v46 = vpop.permute.xlu1 %3540  ;;  %v3539_v58 = vpop.permute.xlu0 %3538  ;;  %v2490_v37 = vld [vmem:[#allocation2 + $0x208] sm:$0xff] }
 0x3ee   : > { %v4015_v34 = vsel %vm2312_vm3, %v3887_v13, %v3541_v46  ;;  %v4014_v26 = vsel %vm2312_vm3, %v3886_v50, %v3539_v58  ;;  %v3898_v13 = vsel %vm618_vm0, %v2490_v37, %v12736_v7  ;;  %v2493_v58 = vld [vmem:[#allocation2 + $0x220] sm:$0xff]  ;;  %v16153_v37 = vld [vmem:[#allocation267_spill] sm:$0xff] }
 0x3ef   : > { %3660 = vrot.lane.b32.xlu1 %v2795_v18, %s11286_s28  ;;  %3658 = vrot.lane.b32.xlu0 %v2794_v59, %s11286_s28  ;;  %v2806_v59 = vld [vmem:[#allocation2 + $0x462] sm:$0xff]  ;;  %v3901_v7 = vsel %vm618_vm0, %v2493_v58, %v12740_v2  ;;  %v2811_v2 = vld [vmem:[#allocation2 + $0x492] sm:$0xff]  ;;  %v2818_v58 = vld [vmem:[#allocation2 + $0x4da] sm:$0xff] }
 0x3f0   : > { %10699 = vmatprep.mubr.msk.f32.mxu0 %vm4108_vm4, %v4014_v26  ;;  %v2808_v26 = vld [vmem:[#allocation2 + $0x472] sm:$0xff] }
 0x3f1   : > { %10700 = vmatmul.mubr.msk.f32.gmra.mxu0 %vm4108_vm4, %v4015_v34  ;;  %v3545_v29 = vpop.permute.xlu1 %3544  ;;  %v3543_v4 = vpop.permute.xlu0 %3542 }
 0x3f2   : > { %v4017_v49 = vsel %vm2312_vm3, %v3889_v63, %v3545_v29  ;;  %v4016_v57 = vsel %vm2312_vm3, %v3888_v21, %v3543_v4  ;;  %v2495_v29 = vld [vmem:[#allocation2 + $0x238] sm:$0xff]  ;;  %v2494_v4 = vld [vmem:[#allocation2 + $0x230] sm:$0xff] }
 0x3f3   : > { %3664 = vrot.lane.b32.xlu1 %v2797_v52, %s11286_s28  ;;  %3662 = vrot.lane.b32.xlu0 %v2796_v61, %s11286_s28  ;;  %v16145_v52 = vld [vmem:[#allocation259_spill] sm:$0xff] }
 0x3f4   : > { %10702 = vmatprep.mubr.msk.f32.mxu0 %vm4108_vm4, %v4016_v57  ;;  %v3900_v61 = vsel %vm618_vm0, %v2492_v41, %v16145_v52  ;;  %v16146_v57 = vld [vmem:[#allocation260_spill] sm:$0xff]  ;;  %v2507_v52 = vld [vmem:[#allocation2 + $0x2b0] sm:$0xff] }
 0x3f5   : > { %10703 = vmatmul.mubr.msk.f32.gmra.mxu0 %vm4108_vm4, %v4017_v49  ;;  %v3549_v23 = vpop.permute.xlu1 %3548  ;;  %v3547_v43 = vpop.permute.xlu0 %3546  ;;  %v2810_v49 = vld [vmem:[#allocation2 + $0x48a] sm:$0xff]  ;;  %v16154_v41 = vld [vmem:[#allocation268_spill] sm:$0xff] }
 0x3f6   : > { %v4019_v27 = vsel %vm2312_vm3, %v3891_v9, %v3549_v23  ;;  %v4018_v55 = vsel %vm2312_vm3, %v3890_v36, %v3547_v43  ;;  %v2497_v43 = vld [vmem:[#allocation2 + $0x248] sm:$0xff] }
 0x3f7   : > { %3668 = vrot.lane.b32.xlu1 %v2799_v14, %s11286_s28  ;;  %3666 = vrot.lane.b32.xlu0 %v2798_v53, %s11286_s28  ;;  %v3903_v14 = vsel %vm618_vm0, %v2495_v29, %v16146_v57  ;;  %v16147_v53 = vld [vmem:[#allocation261_spill] sm:$0xff]  ;;  %v2821_v29 = vld [vmem:[#allocation2 + $0x4f2] sm:$0xff] }
 0x3f8   : > { %10705 = vmatprep.mubr.msk.f32.mxu0 %vm4108_vm4, %v4018_v55  ;;  %v3902_v9 = vsel %vm618_vm0, %v2494_v4, %v16147_v53  ;;  %v2813_v55 = vld [vmem:[#allocation2 + $0x4a2] sm:$0xff]  ;;  %v2820_v4 = vld [vmem:[#allocation2 + $0x4ea] sm:$0xff] }
 0x3f9   : > { %10706 = vmatmul.mubr.msk.f32.gmra.mxu0 %vm4108_vm4, %v4019_v27  ;;  %v3553_v45 = vpop.permute.xlu1 %3552  ;;  %v3551_v22 = vpop.permute.xlu0 %3550  ;;  %v2509_v53 = vld [vmem:[#allocation2 + $0x2c0] sm:$0xff] }
 0x3fa   : > { %v4021_v40 = vsel %vm2312_vm3, %v3893_v15, %v3553_v45  ;;  %v4020_v39 = vsel %vm2312_vm3, %v3892_v38, %v3551_v22  ;;  %v16149_v38 = vld [vmem:[#allocation263_spill] sm:$0xff] }
 0x3fb   : > { %3672 = vrot.lane.b32.xlu1 %v2801_v0, %s11286_s28  ;;  %3670 = vrot.lane.b32.xlu0 %v2800_v3, %s11286_s28  ;;  %v2812_v0 = vld [vmem:[#allocation2 + $0x49a] sm:$0xff]  ;;  %v16148_v3 = vld [vmem:[#allocation262_spill] sm:$0xff]  ;;  %v3904_v45 = vsel %vm618_vm0, %v2496_v20, %v16149_v38 }
 0x3fc   : > { %10708 = vmatprep.mubr.msk.f32.mxu0 %vm4108_vm4, %v4020_v39  ;;  %v3905_v15 = vsel %vm618_vm0, %v2497_v43, %v16148_v3  ;;  %v2441_v43 = vld [vmem:[%s15808_s3] sm:$0x3f]  ;;  %v2823_v20 = vld [vmem:[#allocation2 + $0x50a] sm:$0xff] }
 0x3fd   : > { %10709 = vmatmul.mubr.msk.f32.gmra.mxu0 %vm4108_vm4, %v4021_v40  ;;  %v3557_v25 = vpop.permute.xlu1 %3556  ;;  %v3555_v48 = vpop.permute.xlu0 %3554  ;;  %v2498_v40 = vld [vmem:[#allocation2 + $0x258] sm:$0xff]  ;;  %10837 = vmatprep.subr.msk.mxu1 %vm4493_vm2, %v2441_v43 }
 0x3fe   : > { %v4023_v8 = vsel %vm2312_vm3, %v3895_v5, %v3557_v25  ;;  %v4022_v51 = vsel %vm2312_vm3, %v3894_v56, %v3555_v48  ;;  %v2814_v5 = vld [vmem:[#allocation2 + $0x4b2] sm:$0xff]  ;;  %v16151_v48 = vld [vmem:[#allocation265_spill] sm:$0xff] }
 0x3ff   : > { %3676 = vrot.lane.b32.xlu1 %v2803_v10, %s11286_s28  ;;  %3674 = vrot.lane.b32.xlu0 %v2802_v30, %s11286_s28  ;;  %v2815_v30 = vld [vmem:[#allocation2 + $0x4ba] sm:$0xff]  ;;  %v3906_v24 = vsel %vm618_vm0, %v2498_v40, %v16151_v48 }
 0x400   : > { %10711 = vmatprep.mubr.msk.f32.mxu0 %vm4108_vm4, %v4022_v51  ;;  %v16150_v56 = vld [vmem:[#allocation264_spill] sm:$0xff]  ;;  %v2501_v51 = vld [vmem:[#allocation2 + $0x270] sm:$0xff] }
 0x401   : > { %10712 = vmatmul.mubr.msk.f32.gmra.mxu0 %vm4108_vm4, %v4023_v8  ;;  %v3561_v62 = vpop.permute.xlu1 %3560  ;;  %v3559_v19 = vpop.permute.xlu0 %3558  ;;  %v3907_v25 = vsel %vm618_vm0, %v2499_v17, %v16150_v56  ;;  %v2825_v40 = vld [vmem:[#allocation2 + $0x51a] sm:$0xff] }
 0x402   : > { %v4025_v35 = vsel %vm2312_vm3, %v3897_v31, %v3561_v62  ;;  %v4024_v18 = vsel %vm2312_vm3, %v3896_v12, %v3559_v19  ;;  %v2817_v12 = vld [vmem:[#allocation2 + $0x4ca] sm:$0xff]  ;;  %v2816_v62 = vld [vmem:[#allocation2 + $0x4c2] sm:$0xff] }
 0x403   : > { %3680 = vrot.lane.b32.xlu1 %v2805_v16, %s11286_s28  ;;  %3678 = vrot.lane.b32.xlu0 %v2804_v42, %s11286_s28  ;;  %v2500_v16 = vld [vmem:[#allocation2 + $0x268] sm:$0xff] }
 0x404   : > { %10714 = vmatprep.mubr.msk.f32.mxu0 %vm4108_vm4, %v4024_v18  ;;  %v16152_v19 = vld [vmem:[#allocation266_spill] sm:$0xff] }
 0x405   : > { %10715 = vmatmul.mubr.msk.f32.gmra.mxu0 %vm4108_vm4, %v4025_v35  ;;  %v3565_v50 = vpop.permute.xlu1 %3564  ;;  %v3563_v46 = vpop.permute.xlu0 %3562  ;;  %v3909_v28 = vsel %vm618_vm0, %v2501_v51, %v16152_v19  ;;  %v3908_v35 = vsel %vm618_vm0, %v2500_v16, %v16153_v37  ;;  %v10117_v16 = vld [vmem:[%s15808_s3 + $0x10] sm:$0x3f] }
 0x406   : > { %v4027_v54 = vsel %vm2312_vm3, %v3899_v1, %v3565_v50  ;;  %v4026_v34 = vsel %vm2312_vm3, %v3898_v13, %v3563_v46  ;;  %v2502_v1 = vld [vmem:[#allocation2 + $0x280] sm:$0xff]  ;;  %11031 = vmatprep.subr.msk.mxu0 %vm4493_vm2, %v10117_v16  ;;  %v16163_v19 = vld [vmem:[#allocation279_spill] sm:$0xff] }
 0x407   : > { %3684 = vrot.lane.b32.xlu1 %v2807_v6, %s11286_s28  ;;  %3682 = vrot.lane.b32.xlu0 %v2806_v59, %s11286_s28  ;;  %v2503_v59 = vld [vmem:[#allocation2 + $0x288] sm:$0xff] }
 0x408   : > { %10717 = vmatprep.mubr.msk.f32.mxu0 %vm4108_vm4, %v4026_v34  ;;  %v2819_v46 = vld [vmem:[#allocation2 + $0x4e2] sm:$0xff]  ;;  %11032 = vmatpush3.msk.msra.mxu0 %vm4493_vm2, %v10117_v16 }
 0x409   : > { %10718 = vmatmul.mubr.msk.f32.gmra.mxu0 %vm4108_vm4, %v4027_v54  ;;  %v3569_v63 = vpop.permute.xlu1 %3568  ;;  %v3567_v21 = vpop.permute.xlu0 %3566  ;;  %v3911_v54 = vsel %vm618_vm0, %v2503_v59, %v16154_v41  ;;  %v16155_v34 = vld [vmem:[#allocation269_spill] sm:$0xff] }
 0x40a   : > { %v4029_v47 = vsel %vm2312_vm3, %v3901_v7, %v3569_v63  ;;  %v4028_v11 = vsel %vm2312_vm3, %v3900_v61, %v3567_v21  ;;  %v2506_v61 = vld [vmem:[#allocation2 + $0x2a8] sm:$0xff]  ;;  %v16165_v41 = vld [vmem:[#allocation281_spill] sm:$0xff] }
 0x40b   : > { %3688 = vrot.lane.b32.xlu1 %v2809_v32, %s11286_s28  ;;  %3686 = vrot.lane.b32.xlu0 %v2808_v26, %s11286_s28  ;;  %v3910_v32 = vsel %vm618_vm0, %v2502_v1, %v16155_v34 }
 0x40c   : > { %10720 = vmatprep.mubr.msk.f32.mxu0 %vm4108_vm4, %v4028_v11 }
 0x40d   : > { %10721 = vmatmul.mubr.msk.f32.gmra.mxu0 %vm4108_vm4, %v4029_v47  ;;  %v3573_v36 = vpop.permute.xlu1 %3572  ;;  %v3571_v23 = vpop.permute.xlu0 %3570  ;;  %v16156_v47 = vld [vmem:[#allocation272_spill] sm:$0xff] }
 0x40e   : > { %v4031_v60 = vsel %vm2312_vm3, %v3903_v14, %v3573_v36  ;;  %v4030_v27 = vsel %vm2312_vm3, %v3902_v9, %v3571_v23  ;;  %v3915_v11 = vsel %vm618_vm0, %v2507_v52, %v16156_v47  ;;  %v2508_v9 = vld [vmem:[#allocation2 + $0x2b8] sm:$0xff]  ;;  %v16167_v47 = vld [vmem:[#allocation283_spill] sm:$0xff] }
 0x40f   : > { %3692 = vrot.lane.b32.xlu1 %v2811_v2, %s11286_s28  ;;  %3690 = vrot.lane.b32.xlu0 %v2810_v49, %s11286_s28  ;;  %v16157_v2 = vld [vmem:[#allocation273_spill] sm:$0xff] }
 0x410   : > { %10723 = vmatprep.mubr.msk.f32.mxu0 %vm4108_vm4, %v4030_v27  ;;  %v3914_v49 = vsel %vm618_vm0, %v2506_v61, %v16157_v2  ;;  %v16158_v27 = vld [vmem:[#allocation274_spill] sm:$0xff] }
 0x411   : > { %10724 = vmatmul.mubr.msk.f32.gmra.mxu0 %vm4108_vm4, %v4031_v60  ;;  %v3577_v22 = vpop.permute.xlu1 %3576  ;;  %v3575_v33 = vpop.permute.xlu0 %3574  ;;  %v2822_v60 = vld [vmem:[#allocation2 + $0x502] sm:$0xff] }
 0x412   : > { %v4033_v39 = vsel %vm2312_vm3, %v3905_v15, %v3577_v22  ;;  %v4032_v10 = vsel %vm2312_vm3, %v3904_v45, %v3575_v33  ;;  %v2511_v45 = vld [vmem:[#allocation2 + $0x2d8] sm:$0xff]  ;;  %v2510_v22 = vld [vmem:[#allocation2 + $0x2d0] sm:$0xff] }
 0x413   : > { %3696 = vrot.lane.b32.xlu1 %v2813_v55, %s11286_s28  ;;  %3694 = vrot.lane.b32.xlu0 %v2812_v0, %s11286_s28  ;;  %v3917_v55 = vsel %vm618_vm0, %v2509_v53, %v16158_v27  ;;  %v16159_v0 = vld [vmem:[#allocation275_spill] sm:$0xff] }
 0x414   : > { %10726 = vmatprep.mubr.msk.f32.mxu0 %vm4108_vm4, %v4032_v10  ;;  %v3916_v3 = vsel %vm618_vm0, %v2508_v9, %v16159_v0  ;;  %v16160_v10 = vld [vmem:[#allocation276_spill] sm:$0xff] }
 0x415   : > { %10727 = vmatmul.mubr.msk.f32.gmra.mxu0 %vm4108_vm4, %v4033_v39  ;;  %v3581_v44 = vpop.permute.xlu1 %3580  ;;  %v3579_v8 = vpop.permute.xlu0 %3578  ;;  %v2824_v39 = vld [vmem:[#allocation2 + $0x512] sm:$0xff] }
 0x416   : > { %v4035_v42 = vsel %vm2312_vm3, %v3907_v25, %v3581_v44  ;;  %v4034_v31 = vsel %vm2312_vm3, %v3906_v24, %v3579_v8  ;;  %v2513_v24 = vld [vmem:[#allocation2 + $0x2e8] sm:$0xff]  ;;  %v2512_v44 = vld [vmem:[#allocation2 + $0x2e0] sm:$0xff] }
 0x417   : > { %3700 = vrot.lane.b32.xlu1 %v2815_v30, %s11286_s28  ;;  %3698 = vrot.lane.b32.xlu0 %v2814_v5, %s11286_s28  ;;  %v3919_v30 = vsel %vm618_vm0, %v2511_v45, %v16160_v10  ;;  %v16161_v5 = vld [vmem:[#allocation277_spill] sm:$0xff] }
 0x418   : > { %10729 = vmatprep.mubr.msk.f32.mxu0 %vm4108_vm4, %v4034_v31  ;;  %v3918_v56 = vsel %vm618_vm0, %v2510_v22, %v16161_v5  ;;  %v2760_v31 = vld [vmem:[#allocation2 + $0x292] sm:$0xff]  ;;  %v6554_v22 = vld [vmem:[#allocation2 + $0x6a] sm:$0xff] }
 0x419   : > { %10730 = vmatmul.mubr.msk.f32.gmra.mxu0 %vm4108_vm4, %v4035_v42  ;;  %v3585_v18 = vpop.permute.xlu1 %3584  ;;  %v3583_v6 = vpop.permute.xlu0 %3582  ;;  %v2761_v42 = vld [vmem:[#allocation2 + $0x29a] sm:$0xff] }
 0x41a   : > { %v4037_v13 = vsel %vm2312_vm3, %v3909_v28, %v3585_v18  ;;  %v4036_v50 = vsel %vm2312_vm3, %v3908_v35, %v3583_v6  ;;  %v3920_v28 = vsel %vm618_vm0, %v2512_v44, %v16163_v19  ;;  %v2515_v18 = vld [vmem:[#allocation2 + $0x300] sm:$0xff]  ;;  %v2514_v6 = vld [vmem:[#allocation2 + $0x2f8] sm:$0xff] }
 0x41b   : > { %3704 = vrot.lane.b32.xlu1 %v2817_v12, %s11286_s28  ;;  %3702 = vrot.lane.b32.xlu0 %v2816_v62, %s11286_s28  ;;  %v16162_v12 = vld [vmem:[#allocation278_spill] sm:$0xff]  ;;  %v2525_v19 = vld [vmem:[#allocation2 + $0x360] sm:$0xff] }
 0x41c   : > { %10732 = vmatprep.mubr.msk.f32.mxu0 %vm4108_vm4, %v4036_v50  ;;  %v3921_v62 = vsel %vm618_vm0, %v2513_v24, %v16162_v12  ;;  %v6423_v50 = vld [vmem:[#allocation2 + $0x51] sm:$0xff]  ;;  %v6428_v44 = vld [vmem:[#allocation2 + $0x81] sm:$0xff] }
 0x41d   : > { %10733 = vmatmul.mubr.msk.f32.gmra.mxu0 %vm4108_vm4, %v4037_v13  ;;  %v3589_v26 = vpop.permute.xlu1 %3588  ;;  %v3587_v7 = vpop.permute.xlu0 %3586  ;;  %v6424_v13 = vld [vmem:[#allocation2 + $0x59] sm:$0xff] }
 0x41e   : > { %v4039_v63 = vsel %vm2312_vm3, %v3911_v54, %v3589_v26  ;;  %v4038_v21 = vsel %vm2312_vm3, %v3910_v32, %v3587_v7  ;;  %v3922_v54 = vsel %vm618_vm0, %v2514_v6, %v16165_v41  ;;  %v2517_v26 = vld [vmem:[#allocation2 + $0x310] sm:$0xff]  ;;  %v2516_v7 = vld [vmem:[#allocation2 + $0x308] sm:$0xff]  ;;  %v6555_v6 = vld [vmem:[#allocation2 + $0x7a] sm:$0xff] }
 0x41f   : > { %3708 = vrot.lane.b32.xlu1 %v2819_v46, %s11286_s28  ;;  %3706 = vrot.lane.b32.xlu0 %v2818_v58, %s11286_s28  ;;  %v16164_v46 = vld [vmem:[#allocation280_spill] sm:$0xff] }
 0x420   : > { %10735 = vmatprep.mubr.msk.f32.mxu0 %vm4108_vm4, %v4038_v21  ;;  %v3923_v58 = vsel %vm618_vm0, %v2515_v18, %v16164_v46  ;;  %v6551_v21 = vld [vmem:[#allocation2 + $0x52] sm:$0xff]  ;;  %v6556_v18 = vld [vmem:[#allocation2 + $0x82] sm:$0xff] }
 0x421   : > { %10736 = vmatmul.mubr.msk.f32.gmra.mxu0 %vm4108_vm4, %v4039_v63  ;;  %v3597_v57 = vpop.permute.xlu1 %3596  ;;  %v3595_v14 = vpop.permute.xlu0 %3594  ;;  %v6552_v63 = vld [vmem:[#allocation2 + $0x5a] sm:$0xff] }
 0x422   : > { %v4043_v36 = vsel %vm2312_vm3, %v3915_v11, %v3597_v57  ;;  %v4042_v23 = vsel %vm2312_vm3, %v3914_v49, %v3595_v14  ;;  %v3924_v11 = vsel %vm618_vm0, %v2516_v7, %v16167_v47  ;;  %v2519_v57 = vld [vmem:[#allocation2 + $0x328] sm:$0xff]  ;;  %v2518_v14 = vld [vmem:[#allocation2 + $0x320] sm:$0xff]  ;;  %v2527_v41 = vld [vmem:[#allocation2 + $0x378] sm:$0xff] }
 0x423   : > { %3712 = vrot.lane.b32.xlu1 %v2821_v29, %s11286_s28  ;;  %3710 = vrot.lane.b32.xlu0 %v2820_v4, %s11286_s28  ;;  %v16166_v29 = vld [vmem:[#allocation282_spill] sm:$0xff] }
 0x424   : > { %10741 = vmatprep.mubr.msk.f32.mxu1 %vm4108_vm4, %v4042_v23  ;;  %v3925_v4 = vsel %vm618_vm0, %v2517_v26, %v16166_v29  ;;  %v6425_v23 = vld [vmem:[#allocation2 + $0x61] sm:$0xff]  ;;  %v6430_v26 = vld [vmem:[#allocation2 + $0x91] sm:$0xff]  ;;  %v6429_v7 = vld [vmem:[#allocation2 + $0x89] sm:$0xff] }
 0x425   : > { %10742 = vmatmul.mubr.msk.f32.vlgmr.msra.gmra.mxu1 %vm4108_vm4, %v4043_v36  ;;  %v3601_v15 = vpop.permute.xlu1 %3600  ;;  %v3599_v38 = vpop.permute.xlu0 %3598  ;;  %v6426_v36 = vld [vmem:[#allocation2 + $0x69] sm:$0xff] }
 0x426   : > { %v4045_v33 = vsel %vm2312_vm3, %v3917_v55, %v3601_v15  ;;  %v4044_v17 = vsel %vm2312_vm3, %v3916_v3, %v3599_v38  ;;  %10838 = vmatpush3.msk.msra.mxu1 %vm4493_vm2, %v2441_v43  ;;  %v16168_v43 = vld [vmem:[#allocation284_spill] sm:$0xff]  ;;  %v2520_v15 = vld [vmem:[#allocation2 + $0x330] sm:$0xff]  ;;  %v2529_v47 = vld [vmem:[#allocation2 + $0x388] sm:$0xff] }
 0x427   : > { %3716 = vrot.lane.b32.xlu1 %v2823_v20, %s11286_s28  ;;  %3714 = vrot.lane.b32.xlu0 %v2822_v60, %s11286_s28  ;;  %v3927_v20 = vsel %vm618_vm0, %v2519_v57, %v16168_v43  ;;  %v16169_v60 = vld [vmem:[#allocation285_spill] sm:$0xff]  ;;  %v2521_v3 = vld [vmem:[#allocation2 + $0x338] sm:$0xff] }
 0x428   : > { %10744 = vmatprep.mubr.msk.f32.mxu1 %vm4108_vm4, %v4044_v17  ;;  %v3926_v27 = vsel %vm618_vm0, %v2518_v14, %v16169_v60  ;;  %v16170_v17 = vld [vmem:[#allocation286_spill] sm:$0xff]  ;;  %v6558_v57 = vld [vmem:[#allocation2 + $0x92] sm:$0xff]  ;;  %v2531_v60 = vld [vmem:[#allocation2 + $0x3a0] sm:$0xff] }
 0x429   : > { %10745 = vmatmul.mubr.msk.f32.gmra.mxu1 %vm4108_vm4, %v4045_v33  ;;  %v3605_v25 = vpop.permute.xlu1 %3604  ;;  %v3603_v48 = vpop.permute.xlu0 %3602  ;;  %v6553_v33 = vld [vmem:[#allocation2 + $0x62] sm:$0xff]  ;;  %v6557_v14 = vld [vmem:[#allocation2 + $0x8a] sm:$0xff] }
 0x42a   : > { %v4047_v8 = vsel %vm2312_vm3, %v3919_v30, %v3605_v25  ;;  %v4046_v51 = vsel %vm2312_vm3, %v3918_v56, %v3603_v48  ;;  %v2523_v56 = vld [vmem:[#allocation2 + $0x350] sm:$0xff]  ;;  %v2522_v25 = vld [vmem:[#allocation2 + $0x348] sm:$0xff] }
 0x42b   : > { %3720 = vrot.lane.b32.xlu1 %v2825_v40, %s11286_s28  ;;  %3718 = vrot.lane.b32.xlu0 %v2824_v39, %s11286_s28  ;;  %v3929_v40 = vsel %vm618_vm0, %v2521_v3, %v16170_v17  ;;  %v16171_v39 = vld [vmem:[#allocation287_spill] sm:$0xff] }
 0x42c   : > { %10747 = vmatprep.mubr.msk.f32.mxu1 %vm4108_vm4, %v4046_v51  ;;  %v3928_v10 = vsel %vm618_vm0, %v2520_v15, %v16171_v39  ;;  %v16172_v51 = vld [vmem:[#allocation288_spill] sm:$0xff]  ;;  %v6432_v3 = vld [vmem:[#allocation2 + $0xa9] sm:$0xff]  ;;  %v6431_v15 = vld [vmem:[#allocation2 + $0xa1] sm:$0xff] }
 0x42d   : > { %10748 = vmatmul.mubr.msk.f32.gmra.mxu1 %vm4108_vm4, %v4047_v8  ;;  %v3609_v37 = vpop.permute.xlu1 %3608  ;;  %v3607_v35 = vpop.permute.xlu0 %3606  ;;  %v6427_v8 = vld [vmem:[#allocation2 + $0x79] sm:$0xff]  ;;  %v3931_v16 = vsel %vm618_vm0, %v2523_v56, %v16172_v51  ;;  %v2533_v39 = vld [vmem:[#allocation2 + $0x3b0] sm:$0xff] }
 0x42e   : > { %v4049_v59 = vsel %vm2312_vm3, %v3921_v62, %v3609_v37  ;;  %v4048_v1 = vsel %vm2312_vm3, %v3920_v28, %v3607_v35  ;;  %v2524_v28 = vld [vmem:[#allocation2 + $0x358] sm:$0xff]  ;;  %v6560_v56 = vld [vmem:[#allocation2 + $0xaa] sm:$0xff] }
 0x42f   : > { %3592 = vrot.lane.b32.xlu1 %v2761_v42, %s11286_s28  ;;  %3590 = vrot.lane.b32.xlu0 %v2760_v31, %s11286_s28  ;;  %v16173_v42 = vld [vmem:[#allocation289_spill] sm:$0xff] }
 0x430   : > { %10750 = vmatprep.mubr.msk.f32.mxu1 %vm4108_vm4, %v4048_v1  ;;  %v3930_v31 = vsel %vm618_vm0, %v2522_v25, %v16173_v42  ;;  %v6559_v25 = vld [vmem:[#allocation2 + $0xa2] sm:$0xff] }
 0x431   : > { %10751 = vmatmul.mubr.msk.f32.gmra.mxu1 %vm4108_vm4, %v4049_v59  ;;  %v3613_v34 = vpop.permute.xlu1 %3612  ;;  %v3611_v32 = vpop.permute.xlu0 %3610  ;;  %v16174_v59 = vld [vmem:[#allocation290_spill] sm:$0xff] }
 0x432   : > { %v4051_v52 = vsel %vm2312_vm3, %v3923_v58, %v3613_v34  ;;  %v4050_v61 = vsel %vm2312_vm3, %v3922_v54, %v3611_v32  ;;  %v3933_v1 = vsel %vm618_vm0, %v2525_v19, %v16174_v59  ;;  %v2526_v54 = vld [vmem:[#allocation2 + $0x370] sm:$0xff]  ;;  %v2535_v42 = vld [vmem:[#allocation2 + $0x3c8] sm:$0xff]  ;;  %v6434_v19 = vld [vmem:[#allocation2 + $0xb9] sm:$0xff] }
 0x433   : > { %6809 = vrot.lane.b32.xlu1 %v6424_v13, %s11285_s27  ;;  %6807 = vrot.lane.b32.xlu0 %v6423_v50, %s11285_s27  ;;  %v16175_v13 = vld [vmem:[#allocation291_spill] sm:$0xff] }
 0x434   : > { %10753 = vmatprep.mubr.msk.f32.mxu1 %vm4108_vm4, %v4050_v61  ;;  %v3932_v50 = vsel %vm618_vm0, %v2524_v28, %v16175_v13  ;;  %v6433_v28 = vld [vmem:[#allocation2 + $0xb1] sm:$0xff] }
 0x435   : > { %10754 = vmatmul.mubr.msk.f32.gmra.mxu1 %vm4108_vm4, %v4051_v52  ;;  %v3617_v2 = vpop.permute.xlu1 %3616  ;;  %v3615_v49 = vpop.permute.xlu0 %3614  ;;  %v16176_v52 = vld [vmem:[#allocation292_spill] sm:$0xff] }
 0x436   : > { %v4053_v53 = vsel %vm2312_vm3, %v3925_v4, %v3617_v2  ;;  %v4052_v9 = vsel %vm2312_vm3, %v3924_v11, %v3615_v49  ;;  %v3935_v61 = vsel %vm618_vm0, %v2527_v41, %v16176_v52  ;;  %v2528_v11 = vld [vmem:[#allocation2 + $0x380] sm:$0xff]  ;;  %v2537_v13 = vld [vmem:[#allocation2 + $0x3d8] sm:$0xff] }
 0x437   : > { %7321 = vrot.lane.b32.xlu1 %v6552_v63, %s11286_s28  ;;  %7319 = vrot.lane.b32.xlu0 %v6551_v21, %s11286_s28  ;;  %v16177_v63 = vld [vmem:[#allocation293_spill] sm:$0xff] }
 0x438   : > { %10756 = vmatprep.mubr.msk.f32.mxu1 %vm4108_vm4, %v4052_v9  ;;  %v3934_v21 = vsel %vm618_vm0, %v2526_v54, %v16177_v63  ;;  %v6562_v41 = vld [vmem:[#allocation2 + $0xba] sm:$0xff]  ;;  %v6561_v54 = vld [vmem:[#allocation2 + $0xb2] sm:$0xff] }
 0x439   : > { %10757 = vmatmul.mubr.msk.f32.gmra.mxu1 %vm4108_vm4, %v4053_v53  ;;  %v3621_v55 = vpop.permute.xlu1 %3620  ;;  %v3619_v0 = vpop.permute.xlu0 %3618  ;;  %v16178_v53 = vld [vmem:[#allocation294_spill] sm:$0xff]  ;;  %v2539_v63 = vld [vmem:[#allocation2 + $0x3f0] sm:$0xff] }
 0x43a   : > { %v4055_v38 = vsel %vm2312_vm3, %v3927_v20, %v3621_v55  ;;  %v4054_v45 = vsel %vm2312_vm3, %v3926_v27, %v3619_v0  ;;  %v3937_v9 = vsel %vm618_vm0, %v2529_v47, %v16178_v53  ;;  %v2530_v27 = vld [vmem:[#allocation2 + $0x398] sm:$0xff] }
 0x43b   : > { %6813 = vrot.lane.b32.xlu1 %v6426_v36, %s11285_s27  ;;  %6811 = vrot.lane.b32.xlu0 %v6425_v23, %s11285_s27  ;;  %v16179_v36 = vld [vmem:[#allocation295_spill] sm:$0xff] }
 0x43c   : > { %10759 = vmatprep.mubr.msk.f32.mxu1 %vm4108_vm4, %v4054_v45  ;;  %v3936_v23 = vsel %vm618_vm0, %v2528_v11, %v16179_v36  ;;  %v6436_v47 = vld [vmem:[#allocation2 + $0xd1] sm:$0xff]  ;;  %v6435_v11 = vld [vmem:[#allocation2 + $0xc9] sm:$0xff]  ;;  %v2541_v36 = vld [vmem:[#allocation2 + $0x400] sm:$0xff] }
 0x43d   : > { %10760 = vmatmul.mubr.msk.f32.gmra.mxu1 %vm4108_vm4, %v4055_v38  ;;  %v3625_v30 = vpop.permute.xlu1 %3624  ;;  %v3623_v5 = vpop.permute.xlu0 %3622  ;;  %v16180_v38 = vld [vmem:[#allocation296_spill] sm:$0xff] }
 0x43e   : > { %v4057_v48 = vsel %vm2312_vm3, %v3929_v40, %v3625_v30  ;;  %v4056_v24 = vsel %vm2312_vm3, %v3928_v10, %v3623_v5  ;;  %v3939_v45 = vsel %vm618_vm0, %v2531_v60, %v16180_v38  ;;  %v2532_v10 = vld [vmem:[#allocation2 + $0x3a8] sm:$0xff]  ;;  %v6564_v60 = vld [vmem:[#allocation2 + $0xd2] sm:$0xff] }
 0x43f   : > { %7325 = vrot.lane.b32.xlu1 %v6554_v22, %s11286_s28  ;;  %7323 = vrot.lane.b32.xlu0 %v6553_v33, %s11286_s28  ;;  %v16181_v22 = vld [vmem:[#allocation297_spill] sm:$0xff] }
 0x440   : > { %10762 = vmatprep.mubr.msk.f32.mxu1 %vm4108_vm4, %v4056_v24  ;;  %v3938_v33 = vsel %vm618_vm0, %v2530_v27, %v16181_v22  ;;  %v6563_v27 = vld [vmem:[#allocation2 + $0xca] sm:$0xff]  ;;  %v2543_v22 = vld [vmem:[#allocation2 + $0x418] sm:$0xff] }
 0x441   : > { %10763 = vmatmul.mubr.msk.f32.gmra.mxu1 %vm4108_vm4, %v4057_v48  ;;  %v3629_v12 = vpop.permute.xlu1 %3628  ;;  %v3627_v62 = vpop.permute.xlu0 %3626  ;;  %v16182_v48 = vld [vmem:[#allocation298_spill] sm:$0xff] }
 0x442   : > { %v4059_v37 = vsel %vm2312_vm3, %v3931_v16, %v3629_v12  ;;  %v4058_v35 = vsel %vm2312_vm3, %v3930_v31, %v3627_v62  ;;  %v3941_v24 = vsel %vm618_vm0, %v2533_v39, %v16182_v48  ;;  %v2534_v31 = vld [vmem:[#allocation2 + $0x3c0] sm:$0xff] }
 0x443   : > { %6817 = vrot.lane.b32.xlu1 %v6428_v44, %s11285_s27  ;;  %6815 = vrot.lane.b32.xlu0 %v6427_v8, %s11285_s27  ;;  %v16183_v44 = vld [vmem:[#allocation299_spill] sm:$0xff]  ;;  %v6438_v39 = vld [vmem:[#allocation2 + $0xe1] sm:$0xff] }
 0x444   : > { %10765 = vmatprep.mubr.msk.f32.mxu1 %vm4108_vm4, %v4058_v35  ;;  %v3940_v8 = vsel %vm618_vm0, %v2532_v10, %v16183_v44  ;;  %v6437_v10 = vld [vmem:[#allocation2 + $0xd9] sm:$0xff] }
 0x445   : > { %10766 = vmatmul.mubr.msk.f32.gmra.mxu1 %vm4108_vm4, %v4059_v37  ;;  %v3633_v46 = vpop.permute.xlu1 %3632  ;;  %v3631_v58 = vpop.permute.xlu0 %3630  ;;  %v16184_v37 = vld [vmem:[#allocation300_spill] sm:$0xff] }
 0x446   : > { %v4061_v34 = vsel %vm2312_vm3, %v3933_v1, %v3633_v46  ;;  %v4060_v32 = vsel %vm2312_vm3, %v3932_v50, %v3631_v58  ;;  %v3943_v35 = vsel %vm618_vm0, %v2535_v42, %v16184_v37  ;;  %v2536_v50 = vld [vmem:[#allocation2 + $0x3d0] sm:$0xff]  ;;  %v6566_v42 = vld [vmem:[#allocation2 + $0xe2] sm:$0xff] }
 0x447   : > { %7329 = vrot.lane.b32.xlu1 %v6556_v18, %s11286_s28  ;;  %7327 = vrot.lane.b32.xlu0 %v6555_v6, %s11286_s28  ;;  %v16185_v18 = vld [vmem:[#allocation301_spill] sm:$0xff] }
 0x448   : > { %10768 = vmatprep.mubr.msk.f32.mxu1 %vm4108_vm4, %v4060_v32  ;;  %v3942_v6 = vsel %vm618_vm0, %v2534_v31, %v16185_v18  ;;  %v6565_v31 = vld [vmem:[#allocation2 + $0xda] sm:$0xff] }
 0x449   : > { %10769 = vmatmul.mubr.msk.f32.gmra.mxu1 %vm4108_vm4, %v4061_v34  ;;  %v3637_v29 = vpop.permute.xlu1 %3636  ;;  %v3635_v4 = vpop.permute.xlu0 %3634  ;;  %v16186_v34 = vld [vmem:[#allocation302_spill] sm:$0xff] }
 0x44a   : > { %v4063_v2 = vsel %vm2312_vm3, %v3935_v61, %v3637_v29  ;;  %v4062_v49 = vsel %vm2312_vm3, %v3934_v21, %v3635_v4  ;;  %v3945_v32 = vsel %vm618_vm0, %v2537_v13, %v16186_v34  ;;  %v2538_v21 = vld [vmem:[#allocation2 + $0x3e8] sm:$0xff]  ;;  %v16197_v34 = vld [vmem:[#allocation313_spill] sm:$0xff] }
 0x44b   : > { %6821 = vrot.lane.b32.xlu1 %v6430_v26, %s11285_s27  ;;  %6819 = vrot.lane.b32.xlu0 %v6429_v7, %s11285_s27  ;;  %v16187_v26 = vld [vmem:[#allocation303_spill] sm:$0xff] }
 0x44c   : > { %10771 = vmatprep.mubr.msk.f32.mxu1 %vm4108_vm4, %v4062_v49  ;;  %v3944_v7 = vsel %vm618_vm0, %v2536_v50, %v16187_v26  ;;  %v6440_v50 = vld [vmem:[#allocation2 + $0xf9] sm:$0xff]  ;;  %v2549_v26 = vld [vmem:[#allocation2 + $0x450] sm:$0xff] }
 0x44d   : > { %10772 = vmatmul.mubr.msk.f32.gmra.mxu1 %vm4108_vm4, %v4063_v2  ;;  %v3641_v43 = vpop.permute.xlu1 %3640  ;;  %v3639_v20 = vpop.permute.xlu0 %3638  ;;  %v16188_v2 = vld [vmem:[#allocation304_spill] sm:$0xff] }
 0x44e   : > { %v4065_v55 = vsel %vm2312_vm3, %v3937_v9, %v3641_v43  ;;  %v4064_v0 = vsel %vm2312_vm3, %v3936_v23, %v3639_v20  ;;  %v3947_v49 = vsel %vm618_vm0, %v2539_v63, %v16188_v2  ;;  %v2540_v23 = vld [vmem:[#allocation2 + $0x3f8] sm:$0xff] }
 0x44f   : > { %7333 = vrot.lane.b32.xlu1 %v6558_v57, %s11286_s28  ;;  %7331 = vrot.lane.b32.xlu0 %v6557_v14, %s11286_s28  ;;  %v16189_v57 = vld [vmem:[#allocation305_spill] sm:$0xff] }
 0x450   : > { %10774 = vmatprep.mubr.msk.f32.mxu1 %vm4108_vm4, %v4064_v0  ;;  %v3946_v14 = vsel %vm618_vm0, %v2538_v21, %v16189_v57 }
 0x451   : > { %10775 = vmatmul.mubr.msk.f32.gmra.mxu1 %vm4108_vm4, %v4065_v55  ;;  %v3645_v17 = vpop.permute.xlu1 %3644  ;;  %v3643_v40 = vpop.permute.xlu0 %3642  ;;  %v16190_v55 = vld [vmem:[#allocation306_spill] sm:$0xff] }
 0x452   : > { %v4067_v30 = vsel %vm2312_vm3, %v3939_v45, %v3645_v17  ;;  %v4066_v5 = vsel %vm2312_vm3, %v3938_v33, %v3643_v40  ;;  %v3949_v0 = vsel %vm618_vm0, %v2541_v36, %v16190_v55  ;;  %v2542_v40 = vld [vmem:[#allocation2 + $0x410] sm:$0xff]  ;;  %v2550_v36 = vld [vmem:[#allocation2 + $0x460] sm:$0xff] }
 0x453   : > { %6825 = vrot.lane.b32.xlu1 %v6432_v3, %s11285_s27  ;;  %6823 = vrot.lane.b32.xlu0 %v6431_v15, %s11285_s27  ;;  %v16191_v3 = vld [vmem:[#allocation307_spill] sm:$0xff] }
 0x454   : > { %10777 = vmatprep.mubr.msk.f32.mxu1 %vm4108_vm4, %v4066_v5  ;;  %v3948_v15 = vsel %vm618_vm0, %v2540_v23, %v16191_v3  ;;  %v16201_v3 = vld [vmem:[#allocation317_spill] sm:$0xff] }
 0x455   : > { %10778 = vmatmul.mubr.msk.f32.gmra.mxu1 %vm4108_vm4, %v4067_v30  ;;  %v3649_v51 = vpop.permute.xlu1 %3648  ;;  %v3647_v16 = vpop.permute.xlu0 %3646  ;;  %v16192_v30 = vld [vmem:[#allocation308_spill] sm:$0xff] }
 0x456   : > { %v4069_v12 = vsel %vm2312_vm3, %v3941_v24, %v3649_v51  ;;  %v4068_v62 = vsel %vm2312_vm3, %v3940_v8, %v3647_v16  ;;  %v3951_v5 = vsel %vm618_vm0, %v2543_v22, %v16192_v30  ;;  %v2545_v24 = vld [vmem:[#allocation2 + $0x428] sm:$0xff]  ;;  %v2544_v51 = vld [vmem:[#allocation2 + $0x420] sm:$0xff] }
 0x457   : > { %7337 = vrot.lane.b32.xlu1 %v6560_v56, %s11286_s28  ;;  %7335 = vrot.lane.b32.xlu0 %v6559_v25, %s11286_s28  ;;  %v16193_v25 = vld [vmem:[#allocation309_spill] sm:$0xff]  ;;  %v16202_v30 = vld [vmem:[#allocation318_spill] sm:$0xff] }
 0x458   : > { %10780 = vmatprep.mubr.msk.f32.mxu1 %vm4108_vm4, %v4068_v62  ;;  %v3950_v48 = vsel %vm618_vm0, %v2542_v40, %v16193_v25  ;;  %v16203_v25 = vld [vmem:[#allocation319_spill] sm:$0xff] }
 0x459   : > { %10781 = vmatmul.mubr.msk.f32.gmra.mxu1 %vm4108_vm4, %v4069_v12  ;;  %v3653_v59 = vpop.permute.xlu1 %3652  ;;  %v3651_v1 = vpop.permute.xlu0 %3650  ;;  %v16194_v12 = vld [vmem:[#allocation310_spill] sm:$0xff] }
 0x45a   : > { %v4071_v46 = vsel %vm2312_vm3, %v3943_v35, %v3653_v59  ;;  %v4070_v58 = vsel %vm2312_vm3, %v3942_v6, %v3651_v1  ;;  %v3953_v62 = vsel %vm618_vm0, %v2545_v24, %v16194_v12  ;;  %v2547_v35 = vld [vmem:[#allocation2 + $0x440] sm:$0xff]  ;;  %v2546_v59 = vld [vmem:[#allocation2 + $0x438] sm:$0xff]  ;;  %v2555_v24 = vld [vmem:[#allocation2 + $0x490] sm:$0xff] }
 0x45b   : > { %6829 = vrot.lane.b32.xlu1 %v6434_v19, %s11285_s27  ;;  %6827 = vrot.lane.b32.xlu0 %v6433_v28, %s11285_s27  ;;  %v16195_v28 = vld [vmem:[#allocation311_spill] sm:$0xff]  ;;  %v6443_v12 = vld [vmem:[#allocation2 + $0x119] sm:$0xff] }
 0x45c   : > { %10783 = vmatprep.mubr.msk.f32.mxu1 %vm4108_vm4, %v4070_v58  ;;  %v3952_v37 = vsel %vm618_vm0, %v2544_v51, %v16195_v28  ;;  %v16196_v58 = vld [vmem:[#allocation312_spill] sm:$0xff]  ;;  %v2554_v51 = vld [vmem:[#allocation2 + $0x488] sm:$0xff] }
 0x45d   : > { %10784 = vmatmul.mubr.msk.f32.gmra.mxu1 %vm4108_vm4, %v4071_v46  ;;  %v3657_v52 = vpop.permute.xlu1 %3656  ;;  %v3655_v61 = vpop.permute.xlu0 %3654  ;;  %v6439_v46 = vld [vmem:[#allocation2 + $0xf1] sm:$0xff] }
 0x45e   : > { %v4073_v29 = vsel %vm2312_vm3, %v3945_v32, %v3657_v52  ;;  %v4072_v4 = vsel %vm2312_vm3, %v3944_v7, %v3655_v61  ;;  %v3954_v32 = vsel %vm618_vm0, %v2546_v59, %v16197_v34  ;;  %v2548_v61 = vld [vmem:[#allocation2 + $0x448] sm:$0xff] }
 0x45f   : > { %7341 = vrot.lane.b32.xlu1 %v6562_v41, %s11286_s28  ;;  %7339 = vrot.lane.b32.xlu0 %v6561_v54, %s11286_s28  ;;  %v3955_v41 = vsel %vm618_vm0, %v2547_v35, %v16196_v58  ;;  %v6572_v58 = vld [vmem:[#allocation2 + $0x122] sm:$0xff] }
 0x460   : > { %10786 = vmatprep.mubr.msk.f32.mxu1 %vm4108_vm4, %v4072_v4  ;;  %v6567_v4 = vld [vmem:[#allocation2 + $0xf2] sm:$0xff] }
 0x461   : > { %10787 = vmatmul.mubr.msk.f32.gmra.mxu1 %vm4108_vm4, %v4073_v29  ;;  %v3661_v53 = vpop.permute.xlu1 %3660  ;;  %v3659_v9 = vpop.permute.xlu0 %3658  ;;  %v6568_v29 = vld [vmem:[#allocation2 + $0xfa] sm:$0xff] }
 0x462   : > { %v4075_v43 = vsel %vm2312_vm3, %v3947_v49, %v3661_v53  ;;  %v4074_v20 = vsel %vm2312_vm3, %v3946_v14, %v3659_v9  ;;  %v16199_v49 = vld [vmem:[#allocation315_spill] sm:$0xff]  ;;  %v2551_v14 = vld [vmem:[#allocation2 + $0x468] sm:$0xff] }
 0x463   : > { %6833 = vrot.lane.b32.xlu1 %v6436_v47, %s11285_s27  ;;  %6831 = vrot.lane.b32.xlu0 %v6435_v11, %s11285_s27  ;;  %v16198_v47 = vld [vmem:[#allocation314_spill] sm:$0xff]  ;;  %v3956_v57 = vsel %vm618_vm0, %v2548_v61, %v16199_v49  ;;  %v16208_v49 = vld [vmem:[#allocation324_spill] sm:$0xff] }
 0x464   : > { %10789 = vmatprep.mubr.msk.f32.mxu1 %vm4108_vm4, %v4074_v20  ;;  %v3957_v11 = vsel %vm618_vm0, %v2549_v26, %v16198_v47  ;;  %v6442_v20 = vld [vmem:[#allocation2 + $0x109] sm:$0xff] }
 0x465   : > { %10790 = vmatmul.mubr.msk.f32.gmra.mxu1 %vm4108_vm4, %v4075_v43  ;;  %v3665_v38 = vpop.permute.xlu1 %3664  ;;  %v3663_v45 = vpop.permute.xlu0 %3662  ;;  %v16207_v26 = vld [vmem:[#allocation323_spill] sm:$0xff] }
 0x466   : > { %v4077_v33 = vsel %vm2312_vm3, %v3949_v0, %v3665_v38  ;;  %v4076_v17 = vsel %vm2312_vm3, %v3948_v15, %v3663_v45  ;;  %v3958_v15 = vsel %vm618_vm0, %v2550_v36, %v16201_v3  ;;  %v2553_v38 = vld [vmem:[#allocation2 + $0x478] sm:$0xff]  ;;  %v2561_v36 = vld [vmem:[#allocation2 + $0x4c8] sm:$0xff] }
 0x467   : > { %7345 = vrot.lane.b32.xlu1 %v6564_v60, %s11286_s28  ;;  %7343 = vrot.lane.b32.xlu0 %v6563_v27, %s11286_s28  ;;  %v6441_v60 = vld [vmem:[#allocation2 + $0x101] sm:$0xff]  ;;  %v16200_v27 = vld [vmem:[#allocation316_spill] sm:$0xff]  ;;  %v6573_v3 = vld [vmem:[#allocation2 + $0x12a] sm:$0xff] }
 0x468   : > { %10792 = vmatprep.mubr.msk.f32.mxu1 %vm4108_vm4, %v4076_v17  ;;  %v3959_v55 = vsel %vm618_vm0, %v2551_v14, %v16200_v27 }
 0x469   : > { %10793 = vmatmul.mubr.msk.f32.gmra.mxu1 %vm4108_vm4, %v4077_v33  ;;  %v3669_v56 = vpop.permute.xlu1 %3668  ;;  %v3667_v8 = vpop.permute.xlu0 %3666  ;;  %v2552_v33 = vld [vmem:[#allocation2 + $0x470] sm:$0xff] }
 0x46a   : > { %v4079_v44 = vsel %vm2312_vm3, %v3951_v5, %v3669_v56  ;;  %v4078_v16 = vsel %vm2312_vm3, %v3950_v48, %v3667_v8  ;;  %v13499_v13 = vpop.f32.mrf.mxu0  ;;  %v3961_v5 = vsel %vm618_vm0, %v2553_v38, %v16202_v30  ;;  %v3960_v48 = vsel %vm618_vm0, %v2552_v33, %v16203_v25  ;;  %v2562_v30 = vld [vmem:[#allocation2 + $0x4d8] sm:$0xff]  ;;  %v6448_v25 = vld [vmem:[#allocation2 + $0x149] sm:$0xff] }
 0x46b   : > { %6837 = vrot.lane.b32.xlu1 %v6438_v39, %s11285_s27  ;;  %6835 = vrot.lane.b32.xlu0 %v6437_v10, %s11285_s27  ;;  %v6570_v39 = vld [vmem:[#allocation2 + $0x10a] sm:$0xff]  ;;  %v6569_v10 = vld [vmem:[#allocation2 + $0x102] sm:$0xff] }
 0x46c   : > { %10795 = vmatprep.mubr.msk.f32.mxu1 %vm4108_vm4, %v4078_v16  ;;  %v13511_v21 = vpop.f32.mrf.mxu0 }
 0x46d   : > { %10796 = vmatmul.mubr.msk.f32.gmra.mxu1 %vm4108_vm4, %v4079_v44  ;;  %v3673_v19 = vpop.permute.xlu1 %3672  ;;  %v3671_v6 = vpop.permute.xlu0 %3670 }
 0x46e   : > { %v4081_v18 = vsel %vm2312_vm3, %v3953_v62, %v3673_v19  ;;  %v4080_v1 = vsel %vm2312_vm3, %v3952_v37, %v3671_v6  ;;  %v13523_v43 = vpop.f32.mrf.mxu0  ;;  %v16204_v62 = vld [vmem:[#allocation320_spill] sm:$0xff]  ;;  %v16205_v37 = vld [vmem:[#allocation321_spill] sm:$0xff] }
 0x46f   : > { %7349 = vrot.lane.b32.xlu1 %v6566_v42, %s11286_s28  ;;  %7347 = vrot.lane.b32.xlu0 %v6565_v31, %s11286_s28  ;;  %v6444_v31 = vld [vmem:[#allocation2 + $0x121] sm:$0xff]  ;;  %v3963_v19 = vsel %vm618_vm0, %v2555_v24, %v16204_v62  ;;  %v3962_v35 = vsel %vm618_vm0, %v2554_v51, %v16205_v37  ;;  %v16212_v24 = vld [vmem:[#allocation328_spill] sm:$0xff] }
 0x470   : > { %10798 = vmatprep.mubr.msk.f32.mxu1 %vm4108_vm4, %v4080_v1  ;;  %v13535_v40 = vpop.f32.mrf.mxu0  ;;  %v2556_v1 = vld [vmem:[#allocation2 + $0x498] sm:$0xff]  ;;  %v16213_v51 = vld [vmem:[#allocation329_spill] sm:$0xff] }
 0x471   : > { %10799 = vmatmul.mubr.msk.f32.gmra.mxu1 %vm4108_vm4, %v4081_v18  ;;  %v3677_v54 = vpop.permute.xlu1 %3676  ;;  %v3675_v52 = vpop.permute.xlu0 %3674  ;;  %v2557_v18 = vld [vmem:[#allocation2 + $0x4a0] sm:$0xff] }
 0x472   : > { %v4083_v7 = vsel %vm2312_vm3, %v3955_v41, %v3677_v54  ;;  %v4082_v63 = vsel %vm2312_vm3, %v3954_v32, %v3675_v52  ;;  %v13547_v42 = vpop.f32.mrf.mxu0  ;;  %v6571_v41 = vld [vmem:[#allocation2 + $0x11a] sm:$0xff]  ;;  %v16206_v54 = vld [vmem:[#allocation322_spill] sm:$0xff] }
 0x473   : > { %6841 = vrot.lane.b32.xlu1 %v6440_v50, %s11285_s27  ;;  %6839 = vrot.lane.b32.xlu0 %v6439_v46, %s11285_s27  ;;  %v3965_v34 = vsel %vm618_vm0, %v2557_v18, %v16206_v54  ;;  %v2559_v52 = vld [vmem:[#allocation2 + $0x4b8] sm:$0xff]  ;;  %v6575_v18 = vld [vmem:[#allocation2 + $0x142] sm:$0xff] }
 0x474   : > { %10801 = vmatprep.mubr.msk.f32.mxu1 %vm4108_vm4, %v4082_v63  ;;  %v13559_v46 = vpop.f32.mrf.mxu0 }
 0x475   : > { %10802 = vmatmul.mubr.msk.f32.gmra.mxu1 %vm4108_vm4, %v4083_v7  ;;  %v3681_v2 = vpop.permute.xlu1 %3680  ;;  %v3679_v9 = vpop.permute.xlu0 %3678  ;;  %v3964_v7 = vsel %vm618_vm0, %v2556_v1, %v16207_v26 }
 0x476   : > { %v4085_v53 = vsel %vm2312_vm3, %v3957_v11, %v3681_v2  ;;  %v4084_v23 = vsel %vm2312_vm3, %v3956_v57, %v3679_v9  ;;  %v13571_v47 = vpop.f32.mrf.mxu0  ;;  %v6446_v11 = vld [vmem:[#allocation2 + $0x131] sm:$0xff]  ;;  %v6445_v2 = vld [vmem:[#allocation2 + $0x129] sm:$0xff]  ;;  %v3967_v57 = vsel %vm618_vm0, %v2559_v52, %v16208_v49  ;;  %v6450_v52 = vld [vmem:[#allocation2 + $0x159] sm:$0xff] }
 0x477   : > { %7353 = vrot.lane.b32.xlu1 %v6568_v29, %s11286_s28  ;;  %7351 = vrot.lane.b32.xlu0 %v6567_v4, %s11286_s28  ;;  %v2558_v29 = vld [vmem:[#allocation2 + $0x4b0] sm:$0xff]  ;;  %v2569_v49 = vld [vmem:[#allocation2 + $0x518] sm:$0xff] }
 0x478   : > { %10804 = vmatprep.mubr.msk.f32.mxu1 %vm4108_vm4, %v4084_v23 }
 0x479   : > { %10805 = vmatmul.mubr.msk.f32.gmra.mxu1 %vm4108_vm4, %v4085_v53  ;;  %v3685_v0 = vpop.permute.xlu1 %3684  ;;  %v3683_v22 = vpop.permute.xlu0 %3682  ;;  %v16209_v53 = vld [vmem:[#allocation325_spill] sm:$0xff] }
 0x47a   : > { %v4087_v45 = vsel %vm2312_vm3, %v3959_v55, %v3685_v0  ;;  %v4086_v17 = vsel %vm2312_vm3, %v3958_v15, %v3683_v22  ;;  %v3966_v9 = vsel %vm618_vm0, %v2558_v29, %v16209_v53  ;;  %v13583_v55 = vpop.f32.mrf.mxu0  ;;  %v6574_v0 = vld [vmem:[#allocation2 + $0x132] sm:$0xff]  ;;  %v16210_v15 = vld [vmem:[#allocation326_spill] sm:$0xff] }
 0x47b   : > { %6845 = vrot.lane.b32.xlu1 %v6442_v20, %s11285_s27  ;;  %6843 = vrot.lane.b32.xlu0 %v6441_v60, %s11285_s27  ;;  %v2560_v60 = vld [vmem:[#allocation2 + $0x4c0] sm:$0xff]  ;;  %v3969_v38 = vsel %vm618_vm0, %v2561_v36, %v16210_v15  ;;  %v16211_v22 = vld [vmem:[#allocation327_spill] sm:$0xff]  ;;  %v2505_v15 = vld [vmem:[#allocation2 + $0x298] sm:$0xff] }
 0x47c   : > { %10807 = vmatprep.mubr.msk.f32.mxu1 %vm4108_vm4, %v4086_v17  ;;  %v3968_v33 = vsel %vm618_vm0, %v2560_v60, %v16211_v22  ;;  %v2563_v17 = vld [vmem:[#allocation2 + $0x4e0] sm:$0xff]  ;;  %v2568_v53 = vld [vmem:[#allocation2 + $0x510] sm:$0xff] }
 0x47d   : > { %10808 = vmatmul.mubr.msk.f32.gmra.mxu1 %vm4108_vm4, %v4087_v45  ;;  %v3689_v56 = vpop.permute.xlu1 %3688  ;;  %v3687_v8 = vpop.permute.xlu0 %3686  ;;  %v776_v60 = vld [vmem:[#allocation2] sm:$0xff] }
 0x47e   : > { %v4089_v44 = vsel %vm2312_vm3, %v3961_v5, %v3689_v56  ;;  %v4088_v16 = vsel %vm2312_vm3, %v3960_v48, %v3687_v8  ;;  %v13595_v56 = vpop.f32.mrf.mxu0  ;;  %v6447_v48 = vld [vmem:[#allocation2 + $0x141] sm:$0xff] }
 0x47f   : > { %7357 = vrot.lane.b32.xlu1 %v6570_v39, %s11286_s28  ;;  %7355 = vrot.lane.b32.xlu0 %v6569_v10, %s11286_s28 }
 0x480   : > { %10810 = vmatprep.mubr.msk.f32.mxu1 %vm4108_vm4, %v4088_v16  ;;  %v3970_v16 = vsel %vm618_vm0, %v2562_v30, %v16213_v51  ;;  %v13607_v37 = vpop.f32.mrf.mxu0 }
 0x481   : > { %10811 = vmatmul.mubr.msk.f32.gmra.mxu1 %vm4108_vm4, %v4089_v44  ;;  %v3693_v28 = vpop.permute.xlu1 %3692  ;;  %v3691_v59 = vpop.permute.xlu0 %3690  ;;  %v3971_v44 = vsel %vm618_vm0, %v2563_v17, %v16212_v24  ;;  %v2504_v17 = vld [vmem:[#allocation2 + $0x290] sm:$0xff] }
 0x482   : > { %v4091_v6 = vsel %vm2312_vm3, %v3963_v19, %v3693_v28  ;;  %v4090_v50 = vsel %vm2312_vm3, %v3962_v35, %v3691_v59  ;;  %v2564_v19 = vld [vmem:[#allocation2 + $0x4e8] sm:$0xff] }
 0x483   : > { %6849 = vrot.lane.b32.xlu1 %v6444_v31, %s11285_s27  ;;  %6847 = vrot.lane.b32.xlu0 %v6443_v12, %s11285_s27  ;;  %v2565_v31 = vld [vmem:[#allocation2 + $0x4f0] sm:$0xff] }
 0x484   : > { %10813 = vmatprep.mubr.msk.f32.mxu1 %vm4108_vm4, %v4090_v50  ;;  %v6576_v35 = vld [vmem:[#allocation2 + $0x14a] sm:$0xff] }
 0x485   : > { %10814 = vmatmul.mubr.msk.f32.gmra.mxu1 %vm4108_vm4, %v4091_v6  ;;  %v3697_v32 = vpop.permute.xlu1 %3696  ;;  %v3695_v63 = vpop.permute.xlu0 %3694  ;;  %v16214_v6 = vld [vmem:[#allocation330_spill] sm:$0xff]  ;;  %v16215_v50 = vld [vmem:[#allocation331_spill] sm:$0xff] }
 0x486   : > { %v4093_v61 = vsel %vm2312_vm3, %v3965_v34, %v3697_v32  ;;  %v4092_v4 = vsel %vm2312_vm3, %v3964_v7, %v3695_v63  ;;  %v3973_v59 = vsel %vm618_vm0, %v2565_v31, %v16214_v6  ;;  %v2566_v32 = vld [vmem:[#allocation2 + $0x500] sm:$0xff]  ;;  %v13619_v7 = vpop.f32.mrf.mxu0  ;;  %v16216_v63 = vld [vmem:[#allocation332_spill] sm:$0xff]  ;;  %v6451_v24 = vld [vmem:[#allocation2 + $0x169] sm:$0xff] }
 0x487   : > { %7361 = vrot.lane.b32.xlu1 %v6572_v58, %s11286_s28  ;;  %7359 = vrot.lane.b32.xlu0 %v6571_v41, %s11286_s28  ;;  %v3972_v58 = vsel %vm618_vm0, %v2564_v19, %v16215_v50  ;;  %v2567_v41 = vld [vmem:[#allocation2 + $0x508] sm:$0xff] }
 0x488   : > { %10816 = vmatprep.mubr.msk.f32.mxu1 %vm4108_vm4, %v4092_v4  ;;  %v3975_v29 = vsel %vm618_vm0, %v2567_v41, %v16216_v63  ;;  %v13631_v36 = vpop.f32.mrf.mxu0  ;;  %v16226_v41 = vld [vmem:[#allocation131_spill] sm:$0xff] }
 0x489   : > { %10817 = vmatmul.mubr.msk.f32.gmra.mxu1 %vm4108_vm4, %v4093_v61  ;;  %v3701_v14 = vpop.permute.xlu1 %3700  ;;  %v3699_v20 = vpop.permute.xlu0 %3698  ;;  %v6449_v61 = vld [vmem:[#allocation2 + $0x151] sm:$0xff] }
 0x48a   : > { %v4095_v23 = vsel %vm2312_vm3, %v3967_v57, %v3701_v14  ;;  %v4094_v27 = vsel %vm2312_vm3, %v3966_v9, %v3699_v20  ;;  %v6577_v20 = vld [vmem:[#allocation2 + $0x152] sm:$0xff] }
 0x48b   : > { %6853 = vrot.lane.b32.xlu1 %v6446_v11, %s11285_s27  ;;  %6851 = vrot.lane.b32.xlu0 %v6445_v2, %s11285_s27  ;;  %v16217_v11 = vld [vmem:[#allocation333_spill] sm:$0xff] }
 0x48c   : > { %10819 = vmatprep.mubr.msk.f32.mxu1 %vm4108_vm4, %v4094_v27  ;;  %v3974_v2 = vsel %vm618_vm0, %v2566_v32, %v16217_v11  ;;  %v16218_v27 = vld [vmem:[#allocation334_spill] sm:$0xff]  ;;  %v6580_v32 = vld [vmem:[#allocation2 + $0x172] sm:$0xff] }
 0x48d   : > { %10820 = vmatmul.mubr.msk.f32.gmra.mxu1 %vm4108_vm4, %v4095_v23  ;;  %v3705_v45 = vpop.permute.xlu1 %3704  ;;  %v3703_v10 = vpop.permute.xlu0 %3702  ;;  %v6578_v23 = vld [vmem:[#allocation2 + $0x15a] sm:$0xff] }
 0x48e   : > { %v4097_v39 = vsel %vm2312_vm3, %v3969_v38, %v3705_v45  ;;  %v4096_v5 = vsel %vm2312_vm3, %v3968_v33, %v3703_v10  ;;  %v16219_v38 = vld [vmem:[#allocation335_spill] sm:$0xff]  ;;  %v16220_v10 = vld [vmem:[#allocation4_spill] sm:$0xff] }
 0x48f   : > { %7365 = vrot.lane.b32.xlu1 %v6574_v0, %s11286_s28  ;;  %7363 = vrot.lane.b32.xlu0 %v6573_v3, %s11286_s28  ;;  %v3977_v0 = vsel %vm618_vm0, %v2569_v49, %v16218_v27  ;;  %v3976_v45 = vsel %vm618_vm0, %v2568_v53, %v16219_v38  ;;  %v2184_v30 = vsel %vm618_vm0, %v776_v60, %v16220_v10  ;;  %v16229_v53 = vld [vmem:[#allocation8_spill] sm:$0xff]  ;;  %v6454_v27 = vld [vmem:[#allocation2 + $0x181] sm:$0xff]  ;;  %v16232_v10 = vld [vmem:[#allocation7_spill] sm:$0xff] }
 0x490   : > { %10822 = vmatprep.mubr.msk.f32.mxu1 %vm4108_vm4, %v4096_v5  ;;  %v777_v5 = vld [vmem:[#allocation2 + $0x8] sm:$0xff] }
 0x491   : > { %10823 = vmatmul.mubr.msk.f32.gmra.mxu1 %vm4108_vm4, %v4097_v39  ;;  %v3709_v8 = vpop.permute.xlu1 %3708  ;;  %v3707_v62 = vpop.permute.xlu0 %3706 }
 0x492   : > { %v4099_v12 = vsel %vm2312_vm3, %v3971_v44, %v3709_v8  ;;  %v4098_v28 = vsel %vm2312_vm3, %v3970_v16, %v3707_v62  ;;  %v778_v44 = vld [vmem:[#allocation2 + $0x10] sm:$0xff]  ;;  %v16221_v8 = vld [vmem:[#allocation132_spill] sm:$0xff]  ;;  %v16222_v16 = vld [vmem:[#allocation270_spill] sm:$0xff] }
 0x493   : > { %6857 = vrot.lane.b32.xlu1 %v6448_v25, %s11285_s27  ;;  %6855 = vrot.lane.b32.xlu0 %v6447_v48, %s11285_s27  ;;  %v13645_v25 = vpop.f32.mrf.mxu0  ;;  %v6452_v48 = vld [vmem:[#allocation2 + $0x171] sm:$0xff]  ;;  %v2313_v51 = vsel %vm2312_vm3, %v2184_v30, %v16221_v8  ;;  %v3913_v31 = vsel %vm618_vm0, %v2505_v15, %v16222_v16 }
 0x494   : > { %10825 = vmatprep.mubr.msk.f32.mxu1 %vm4108_vm4, %v4098_v28  ;;  %v16223_v62 = vld [vmem:[#allocation271_spill] sm:$0xff]  ;;  %v16231_v15 = vld [vmem:[#allocation136_spill] sm:$0xff] }
 0x495   : > { %10826 = vmatmul.mubr.msk.f32.gmra.mxu1 %vm4108_vm4, %v4099_v12  ;;  %v3713_v1 = vpop.permute.xlu1 %3712  ;;  %v3711_v34 = vpop.permute.xlu0 %3710  ;;  %v3912_v19 = vsel %vm618_vm0, %v2504_v17, %v16223_v62  ;;  %v16234_v8 = vld [vmem:[#allocation135_spill] sm:$0xff] }
 0x496   : > { %v4101_v54 = vsel %vm2312_vm3, %v3973_v59, %v3713_v1  ;;  %v4100_v26 = vsel %vm2312_vm3, %v3972_v58, %v3711_v34  ;;  %v16225_v1 = vld [vmem:[#allocation3_spill] sm:$0xff]  ;;  %v779_v58 = vld [vmem:[#allocation2 + $0x18] sm:$0xff]  ;;  %v13666_v34 = vpop.f32.mrf.mxu0 }
 0x497   : > { %7369 = vrot.lane.b32.xlu1 %v6576_v35, %s11286_s28  ;;  %7367 = vrot.lane.b32.xlu0 %v6575_v18, %s11286_s28  ;;  %v16224_v18 = vld [vmem:[#allocation6_spill] sm:$0xff]  ;;  %v2186_v50 = vsel %vm618_vm0, %v778_v44, %v16225_v1  ;;  %v784_v62 = vld [vmem:[#allocation2 + $0x50] sm:$0xff] }
 0x498   : > { %10828 = vmatprep.mubr.msk.f32.mxu1 %vm4108_vm4, %v4100_v26  ;;  %v2185_v6 = vsel %vm618_vm0, %v777_v5, %v16224_v18  ;;  %v6579_v26 = vld [vmem:[#allocation2 + $0x16a] sm:$0xff]  ;;  %v13682_v60 = vpop.f32.mrf.mxu0 }
 0x499   : > { %10829 = vmatmul.mubr.msk.f32.gmra.mxu1 %vm4108_vm4, %v4101_v54  ;;  %v3717_v4 = vpop.permute.xlu1 %3716  ;;  %v3715_v14 = vpop.permute.xlu0 %3714  ;;  %v2314_v54 = vsel %vm2312_vm3, %v2185_v6, %v16226_v41  ;;  %v6298_v18 = vld [vmem:[#allocation2 + $0x68] sm:$0xff]  ;;  %v16237_v41 = vld [vmem:[#allocation12_spill] sm:$0xff] }
 0x49a   : > { %v4103_v57 = vsel %vm2312_vm3, %v3975_v29, %v3717_v4  ;;  %v4102_v9 = vsel %vm2312_vm3, %v3974_v2, %v3715_v14  ;;  %v6296_v4 = vld [vmem:[#allocation2 + $0x58] sm:$0xff]  ;;  %v16228_v2 = vld [vmem:[#allocation5_spill] sm:$0xff]  ;;  %v781_v14 = vld [vmem:[#allocation2 + $0x30] sm:$0xff]  ;;  %v13700_v16 = vpop.f32.mrf.mxu0 }
 0x49b   : > { %6861 = vrot.lane.b32.xlu1 %v6450_v52, %s11285_s27  ;;  %6859 = vrot.lane.b32.xlu0 %v6449_v61, %s11285_s27  ;;  %v780_v52 = vld [vmem:[#allocation2 + $0x28] sm:$0xff]  ;;  %v2187_v49 = vsel %vm618_vm0, %v779_v58, %v16228_v2  ;;  %v2189_v30 = vsel %vm618_vm0, %v781_v14, %v16232_v10  ;;  %v785_v58 = vld [vmem:[#allocation2 + $0x58] sm:$0xff] }
 0x49c   : > { %10831 = vmatprep.mubr.msk.f32.mxu1 %vm4108_vm4, %v4102_v9  ;;  %v16227_v61 = vld [vmem:[#allocation134_spill] sm:$0xff]  ;;  %v2188_v9 = vsel %vm618_vm0, %v780_v52, %v16229_v53  ;;  %v13716_v52 = vpop.f32.mrf.mxu0 }
 0x49d   : > { %10832 = vmatmul.mubr.msk.f32.gmra.mxu1 %vm4108_vm4, %v4103_v57  ;;  %v3721_v3 = vpop.permute.xlu1 %3720  ;;  %v3719_v33 = vpop.permute.xlu0 %3718  ;;  %v2315_v63 = vsel %vm2312_vm3, %v2186_v50, %v16227_v61  ;;  %v6295_v57 = vld [vmem:[#allocation2 + $0x50] sm:$0xff]  ;;  %v2317_v38 = vsel %vm2312_vm3, %v2188_v9, %v16231_v15  ;;  %v6297_v50 = vld [vmem:[#allocation2 + $0x60] sm:$0xff] }
 0x49e   : > { %v4105_v22 = vsel %vm2312_vm3, %v3977_v0, %v3721_v3  ;;  %v4104_v39 = vsel %vm2312_vm3, %v3976_v45, %v3719_v33  ;;  %v6453_v0 = vld [vmem:[#allocation2 + $0x179] sm:$0xff]  ;;  %v16240_v9 = vld [vmem:[#allocation11_spill] sm:$0xff] }
 0x49f   : > { %7373 = vrot.lane.b32.xlu1 %v6578_v23, %s11286_s28  ;;  %7371 = vrot.lane.b32.xlu0 %v6577_v20, %s11286_s28  ;;  %v16230_v23 = vld [vmem:[#allocation133_spill] sm:$0xff]  ;;  %v782_v3 = vld [vmem:[#allocation2 + $0x38] sm:$0xff]  ;;  %v16242_v15 = vld [vmem:[#allocation139_spill] sm:$0xff] }
 0x4a0   : > { %10834 = vmatprep.mubr.msk.f32.mxu1 %vm4108_vm4, %v4104_v39  ;;  %v2316_v20 = vsel %vm2312_vm3, %v2187_v49, %v16230_v23  ;;  %v6456_v61 = vld [vmem:[#allocation2 + $0x199] sm:$0xff]  ;;  %v2193_v23 = vsel %vm618_vm0, %v785_v58, %v16240_v9 }
 0x4a1   : > { %10835 = vmatmul.mubr.msk.f32.gmra.mxu1 %vm4108_vm4, %v4105_v22  ;;  %v3593_v12 = vpop.permute.xlu1 %3592  ;;  %v3591_v35 = vpop.permute.xlu0 %3590  ;;  %v792_v9 = vld [vmem:[#allocation2 + $0xa0] sm:$0xff] }
 0x4a2   : > { %v4041_v28 = vsel %vm2312_vm3, %v3913_v31, %v3593_v12  ;;  %10839 = vmatprep.mubr.msk.f32.mxu1 %vm4108_vm4, %v2313_v51  ;;  %v4040_v59 = vsel %vm2312_vm3, %v3912_v19, %v3591_v35  ;;  %v2318_v51 = vsel %vm2312_vm3, %v2189_v30, %v16234_v8  ;;  %v6582_v31 = vld [vmem:[#allocation2 + $0x182] sm:$0xff]  ;;  %v6581_v12 = vld [vmem:[#allocation2 + $0x17a] sm:$0xff] }
 0x4a3   : > { %6865 = vrot.lane.b32.xlu1 %v6452_v48, %s11285_s27  ;;  %6863 = vrot.lane.b32.xlu0 %v6451_v24, %s11285_s27  ;;  %v783_v48 = vld [vmem:[#allocation2 + $0x40] sm:$0xff]  ;;  %v16233_v24 = vld [vmem:[#allocation10_spill] sm:$0xff]  ;;  %v6299_v8 = vld [vmem:[#allocation2 + $0x78] sm:$0xff] }
 0x4a4   : > { %10738 = vmatprep.mubr.msk.f32.mxu0 %vm4108_vm4, %v4040_v59  ;;  %v2190_v44 = vsel %vm618_vm0, %v782_v3, %v16233_v24  ;;  %v16235_v19 = vld [vmem:[#allocation138_spill] sm:$0xff]  ;;  %v16236_v59 = vld [vmem:[#allocation9_spill] sm:$0xff] }
 0x4a5   : > { %10739 = vmatmul.mubr.msk.f32.gmra.mxu0 %vm4108_vm4, %v4041_v28  ;;  %10840 = vmatmul.mubr.msk.f32.vlgmr.msra.gmra.mxu1 %vm4108_vm4, %v2314_v54  ;;  %v6810_v29 = vpop.permute.xlu1 %6809  ;;  %v6808_v11 = vpop.permute.xlu0 %6807  ;;  %v2319_v28 = vsel %vm2312_vm3, %v2190_v44, %v16235_v19  ;;  %v2191_v1 = vsel %vm618_vm0, %v783_v48, %v16236_v59  ;;  %v2192_v54 = vsel %vm618_vm0, %v784_v62, %v16237_v41  ;;  %v16244_v24 = vld [vmem:[#allocation13_spill] sm:$0xff]  ;;  %v16247_v59 = vld [vmem:[#allocation144_spill] sm:$0xff] }
 0x4a6   : > { %10842 = vmatprep.mubr.msk.f32.mxu1 %vm4108_vm4, %v2315_v63  ;;  %v7704_v45 = vsel %vm618_vm0, %v6296_v4, %v6810_v29  ;;  %v7703_v33 = vsel %vm618_vm0, %v6295_v57, %v6808_v11  ;;  %v6455_v63 = vld [vmem:[#allocation2 + $0x191] sm:$0xff]  ;;  %v786_v29 = vld [vmem:[#allocation2 + $0x60] sm:$0xff] }
 0x4a7   : > { %7377 = vrot.lane.b32.xlu1 %v6580_v32, %s11286_s28  ;;  %7375 = vrot.lane.b32.xlu0 %v6579_v26, %s11286_s28  ;;  %v16238_v32 = vld [vmem:[#allocation137_spill] sm:$0xff]  ;;  %v16239_v4 = vld [vmem:[#allocation140_spill] sm:$0xff] }
 0x4a8   : > { %v2320_v26 = vsel %vm2312_vm3, %v2191_v1, %v16238_v32  ;;  %v2321_v11 = vsel %vm2312_vm3, %v2192_v54, %v16239_v4  ;;  %v16246_v62 = vld [vmem:[#allocation141_spill] sm:$0xff]  ;;  %v16249_v4 = vld [vmem:[#allocation18_spill] sm:$0xff] }
 0x4a9   : > { %10843 = vmatmul.mubr.msk.f32.gmra.mxu1 %vm4108_vm4, %v2316_v20  ;;  %v7322_v22 = vpop.permute.xlu1 %7321  ;;  %v7320_v39 = vpop.permute.xlu0 %7319 }
 0x4aa   : > { %v7832_v17 = vsel %vm2312_vm3, %v7704_v45, %v7322_v22  ;;  %10845 = vmatprep.mubr.msk.f32.mxu1 %vm4108_vm4, %v2317_v38  ;;  %v7831_v5 = vsel %vm2312_vm3, %v7703_v33, %v7320_v39  ;;  %v2322_v38 = vsel %vm2312_vm3, %v2193_v23, %v16242_v15  ;;  %v13734_v45 = vpop.f32.mrf.mxu0  ;;  %v6584_v22 = vld [vmem:[#allocation2 + $0x19a] sm:$0xff]  ;;  %v6583_v33 = vld [vmem:[#allocation2 + $0x192] sm:$0xff]  ;;  %v16243_v39 = vld [vmem:[#allocation142_spill] sm:$0xff] }
 0x4ab   : > { %6869 = vrot.lane.b32.xlu1 %v6454_v27, %s11285_s27  ;;  %6867 = vrot.lane.b32.xlu0 %v6453_v0, %s11285_s27  ;;  %v787_v27 = vld [vmem:[#allocation2 + $0x68] sm:$0xff]  ;;  %v16252_v15 = vld [vmem:[#allocation17_spill] sm:$0xff] }
 0x4ac   : > { %11033 = vmatprep.mubr.msk.f32.mxu0 %vm4108_vm4, %v7831_v5  ;;  %v16241_v0 = vld [vmem:[#allocation14_spill] sm:$0xff]  ;;  %v6300_v5 = vld [vmem:[#allocation2 + $0x80] sm:$0xff]  ;;  %v2195_v44 = vsel %vm618_vm0, %v787_v27, %v16244_v24 }
 0x4ad   : > { %10846 = vmatmul.mubr.msk.f32.gmra.mxu1 %vm4108_vm4, %v2318_v51  ;;  %11034 = vmatmul.mubr.msk.f32.vlgmr.msra.gmra.mxu0 %vm4108_vm4, %v7832_v17  ;;  %v6814_v35 = vpop.permute.xlu1 %6813  ;;  %v6812_v6 = vpop.permute.xlu0 %6811  ;;  %v2194_v3 = vsel %vm618_vm0, %v786_v29, %v16241_v0  ;;  %v788_v17 = vld [vmem:[#allocation2 + $0x78] sm:$0xff]  ;;  %v789_v51 = vld [vmem:[#allocation2 + $0x80] sm:$0xff]  ;;  %v2324_v19 = vsel %vm2312_vm3, %v2195_v44, %v16246_v62  ;;  %v791_v29 = vld [vmem:[#allocation2 + $0x90] sm:$0xff] }
 0x4ae   : > { %10848 = vmatprep.mubr.msk.f32.mxu1 %vm4108_vm4, %v2319_v28  ;;  %v7706_v2 = vsel %vm618_vm0, %v6298_v18, %v6814_v35  ;;  %v7705_v57 = vsel %vm618_vm0, %v6297_v50, %v6812_v6  ;;  %v2323_v10 = vsel %vm2312_vm3, %v2194_v3, %v16243_v39  ;;  %v13750_v28 = vpop.f32.mrf.mxu0  ;;  %v6458_v35 = vld [vmem:[#allocation2 + $0x1a9] sm:$0xff]  ;;  %v6457_v18 = vld [vmem:[#allocation2 + $0x1a1] sm:$0xff]  ;;  %v6459_v24 = vld [vmem:[#allocation2 + $0x1b9] sm:$0xff] }
 0x4af   : > { %7381 = vrot.lane.b32.xlu1 %v6582_v31, %s11286_s28  ;;  %7379 = vrot.lane.b32.xlu0 %v6581_v12, %s11286_s28  ;;  %v16245_v31 = vld [vmem:[#allocation16_spill] sm:$0xff]  ;;  %v790_v6 = vld [vmem:[#allocation2 + $0x88] sm:$0xff]  ;;  %v6302_v0 = vld [vmem:[#allocation2 + $0x90] sm:$0xff] }
 0x4b0   : > { %v2196_v12 = vsel %vm618_vm0, %v788_v17, %v16245_v31  ;;  %v16251_v23 = vld [vmem:[#allocation146_spill] sm:$0xff]  ;;  %v16253_v17 = vld [vmem:[#allocation20_spill] sm:$0xff]  ;;  %v794_v44 = vld [vmem:[#allocation2 + $0xb0] sm:$0xff] }
 0x4b1   : > { %10849 = vmatmul.mubr.msk.f32.gmra.mxu1 %vm4108_vm4, %v2320_v26  ;;  %v7326_v49 = vpop.permute.xlu1 %7325  ;;  %v7324_v53 = vpop.permute.xlu0 %7323  ;;  %v2325_v1 = vsel %vm2312_vm3, %v2196_v12, %v16247_v59  ;;  %v16248_v26 = vld [vmem:[#allocation15_spill] sm:$0xff]  ;;  %v2200_v39 = vsel %vm618_vm0, %v792_v9, %v16253_v17  ;;  %v6303_v9 = vld [vmem:[#allocation2 + $0xa0] sm:$0xff]  ;;  %v16263_v17 = vld [vmem:[#allocation152_spill] sm:$0xff] }
 0x4b2   : > { %v7834_v14 = vsel %vm2312_vm3, %v7706_v2, %v7326_v49  ;;  %10851 = vmatprep.mubr.msk.f32.mxu1 %vm4108_vm4, %v2321_v11  ;;  %v7833_v20 = vsel %vm2312_vm3, %v7705_v57, %v7324_v53  ;;  %v2198_v11 = vsel %vm618_vm0, %v790_v6, %v16249_v4  ;;  %v16250_v2 = vld [vmem:[#allocation143_spill] sm:$0xff]  ;;  %v13768_v57 = vpop.f32.mrf.mxu0  ;;  %v6585_v53 = vld [vmem:[#allocation2 + $0x1a2] sm:$0xff] }
 0x4b3   : > { %6873 = vrot.lane.b32.xlu1 %v6456_v61, %s11285_s27  ;;  %6871 = vrot.lane.b32.xlu0 %v6455_v63, %s11285_s27  ;;  %v2197_v61 = vsel %vm618_vm0, %v789_v51, %v16248_v26  ;;  %v6588_v26 = vld [vmem:[#allocation2 + $0x1c2] sm:$0xff] }
 0x4b4   : > { %11036 = vmatprep.mubr.msk.f32.mxu0 %vm4108_vm4, %v7833_v20  ;;  %v2326_v49 = vsel %vm2312_vm3, %v2197_v61, %v16250_v2  ;;  %v2327_v20 = vsel %vm2312_vm3, %v2198_v11, %v16251_v23  ;;  %v6587_v61 = vld [vmem:[#allocation2 + $0x1ba] sm:$0xff]  ;;  %v6304_v2 = vld [vmem:[#allocation2 + $0xa8] sm:$0xff]  ;;  %v797_v23 = vld [vmem:[#allocation2 + $0xd0] sm:$0xff] }
 0x4b5   : > { %10852 = vmatmul.mubr.msk.f32.gmra.mxu1 %vm4108_vm4, %v2322_v38  ;;  %11037 = vmatmul.mubr.msk.f32.gmra.mxu0 %vm4108_vm4, %v7834_v14  ;;  %v6818_v30 = vpop.permute.xlu1 %6817  ;;  %v6816_v48 = vpop.permute.xlu0 %6815  ;;  %v6586_v14 = vld [vmem:[#allocation2 + $0x1aa] sm:$0xff]  ;;  %v2199_v38 = vsel %vm618_vm0, %v791_v29, %v16252_v15 }
 0x4b6   : > { %10854 = vmatprep.mubr.msk.f32.mxu1 %vm4108_vm4, %v2323_v10  ;;  %v7708_v50 = vsel %vm618_vm0, %v6300_v5, %v6818_v30  ;;  %v7707_v41 = vsel %vm618_vm0, %v6299_v8, %v6816_v48  ;;  %v16254_v10 = vld [vmem:[#allocation145_spill] sm:$0xff]  ;;  %v13784_v5 = vpop.f32.mrf.mxu0  ;;  %v16255_v8 = vld [vmem:[#allocation148_spill] sm:$0xff]  ;;  %v16259_v29 = vld [vmem:[#allocation150_spill] sm:$0xff] }
 0x4b7   : > { %7385 = vrot.lane.b32.xlu1 %v6584_v22, %s11286_s28  ;;  %7383 = vrot.lane.b32.xlu0 %v6583_v33, %s11286_s28  ;;  %v6301_v22 = vld [vmem:[#allocation2 + $0x88] sm:$0xff]  ;;  %v2328_v30 = vsel %vm2312_vm3, %v2199_v38, %v16254_v10  ;;  %v2329_v51 = vsel %vm2312_vm3, %v2200_v39, %v16255_v8  ;;  %v6462_v38 = vld [vmem:[#allocation2 + $0x1d1] sm:$0xff] }
 0x4b8   : > { %v793_v33 = vld [vmem:[#allocation2 + $0xa8] sm:$0xff]  ;;  %v16264_v8 = vld [vmem:[#allocation23_spill] sm:$0xff] }
 0x4b9   : > { %10855 = vmatmul.mubr.msk.f32.gmra.mxu1 %vm4108_vm4, %v2324_v19  ;;  %v7330_v58 = vpop.permute.xlu1 %7329  ;;  %v7328_v32 = vpop.permute.xlu0 %7327  ;;  %v6460_v48 = vld [vmem:[#allocation2 + $0x1c1] sm:$0xff] }
 0x4ba   : > { %v7836_v54 = vsel %vm2312_vm3, %v7708_v50, %v7330_v58  ;;  %10857 = vmatprep.mubr.msk.f32.mxu1 %vm4108_vm4, %v2325_v1  ;;  %v7835_v63 = vsel %vm2312_vm3, %v7707_v41, %v7328_v32  ;;  %v795_v1 = vld [vmem:[#allocation2 + $0xb8] sm:$0xff]  ;;  %v16257_v50 = vld [vmem:[#allocation22_spill] sm:$0xff]  ;;  %v16258_v41 = vld [vmem:[#allocation147_spill] sm:$0xff]  ;;  %v13802_v32 = vpop.f32.mrf.mxu0 }
 0x4bb   : > { %6877 = vrot.lane.b32.xlu1 %v6458_v35, %s11285_s27  ;;  %6875 = vrot.lane.b32.xlu0 %v6457_v18, %s11285_s27  ;;  %v16256_v18 = vld [vmem:[#allocation19_spill] sm:$0xff]  ;;  %v2202_v58 = vsel %vm618_vm0, %v794_v44, %v16257_v50 }
 0x4bc   : > { %11039 = vmatprep.mubr.msk.f32.mxu0 %vm4108_vm4, %v7835_v63  ;;  %v2201_v6 = vsel %vm618_vm0, %v793_v33, %v16256_v18  ;;  %v796_v63 = vld [vmem:[#allocation2 + $0xc8] sm:$0xff]  ;;  %v2331_v4 = vsel %vm2312_vm3, %v2202_v58, %v16259_v29  ;;  %v13818_v15 = vpop.f32.mrf.mxu0  ;;  %v798_v33 = vld [vmem:[#allocation2 + $0xd8] sm:$0xff]  ;;  %v800_v50 = vld [vmem:[#allocation2 + $0xf0] sm:$0xff] }
 0x4bd   : > { %10858 = vmatmul.mubr.msk.f32.gmra.mxu1 %vm4108_vm4, %v2326_v49  ;;  %11040 = vmatmul.mubr.msk.f32.gmra.mxu0 %vm4108_vm4, %v7836_v54  ;;  %v6822_v27 = vpop.permute.xlu1 %6821  ;;  %v6820_v3 = vpop.permute.xlu0 %6819  ;;  %v2330_v54 = vsel %vm2312_vm3, %v2201_v6, %v16258_v41  ;;  %v16267_v58 = vld [vmem:[#allocation154_spill] sm:$0xff] }
 0x4be   : > { %10860 = vmatprep.mubr.msk.f32.mxu1 %vm4108_vm4, %v2327_v20  ;;  %v7710_v31 = vsel %vm618_vm0, %v6302_v0, %v6822_v27  ;;  %v7709_v62 = vsel %vm618_vm0, %v6301_v22, %v6820_v3  ;;  %v16261_v20 = vld [vmem:[#allocation24_spill] sm:$0xff]  ;;  %v16262_v0 = vld [vmem:[#allocation149_spill] sm:$0xff]  ;;  %v6461_v22 = vld [vmem:[#allocation2 + $0x1c9] sm:$0xff]  ;;  %v13836_v6 = vpop.f32.mrf.mxu0 }
 0x4bf   : > { %7389 = vrot.lane.b32.xlu1 %v6586_v14, %s11286_s28  ;;  %7387 = vrot.lane.b32.xlu0 %v6585_v53, %s11286_s28  ;;  %v16260_v14 = vld [vmem:[#allocation21_spill] sm:$0xff]  ;;  %v2204_v27 = vsel %vm618_vm0, %v796_v63, %v16261_v20 }
 0x4c0   : > { %v2203_v53 = vsel %vm618_vm0, %v795_v1, %v16260_v14  ;;  %v2333_v39 = vsel %vm2312_vm3, %v2204_v27, %v16263_v17  ;;  %v6589_v1 = vld [vmem:[#allocation2 + $0x1ca] sm:$0xff]  ;;  %v16268_v63 = vld [vmem:[#allocation25_spill] sm:$0xff] }
 0x4c1   : > { %10861 = vmatmul.mubr.msk.f32.gmra.mxu1 %vm4108_vm4, %v2328_v30  ;;  %v7334_v12 = vpop.permute.xlu1 %7333  ;;  %v7332_v35 = vpop.permute.xlu0 %7331  ;;  %v2332_v3 = vsel %vm2312_vm3, %v2203_v53, %v16262_v0  ;;  %v16270_v14 = vld [vmem:[#allocation153_spill] sm:$0xff]  ;;  %v16271_v0 = vld [vmem:[#allocation156_spill] sm:$0xff] }
 0x4c2   : > { %v7838_v19 = vsel %vm2312_vm3, %v7710_v31, %v7334_v12  ;;  %10863 = vmatprep.mubr.msk.f32.mxu1 %vm4108_vm4, %v2329_v51  ;;  %v7837_v59 = vsel %vm2312_vm3, %v7709_v62, %v7332_v35  ;;  %v2205_v51 = vsel %vm618_vm0, %v797_v23, %v16264_v8  ;;  %v799_v12 = vld [vmem:[#allocation2 + $0xe0] sm:$0xff]  ;;  %v16265_v62 = vld [vmem:[#allocation26_spill] sm:$0xff]  ;;  %v16266_v35 = vld [vmem:[#allocation151_spill] sm:$0xff] }
 0x4c3   : > { %6881 = vrot.lane.b32.xlu1 %v6460_v48, %s11285_s27  ;;  %6879 = vrot.lane.b32.xlu0 %v6459_v24, %s11285_s27  ;;  %v2334_v18 = vsel %vm2312_vm3, %v2205_v51, %v16266_v35  ;;  %v2207_v29 = vsel %vm618_vm0, %v799_v12, %v16268_v63  ;;  %v6464_v23 = vld [vmem:[#allocation2 + $0x1e9] sm:$0xff]  ;;  %v6463_v20 = vld [vmem:[#allocation2 + $0x1e1] sm:$0xff]  ;;  %v804_v35 = vld [vmem:[#allocation2 + $0x118] sm:$0xff] }
 0x4c4   : > { %11042 = vmatprep.mubr.msk.f32.mxu0 %vm4108_vm4, %v7837_v59  ;;  %v6590_v59 = vld [vmem:[#allocation2 + $0x1d2] sm:$0xff]  ;;  %v2336_v53 = vsel %vm2312_vm3, %v2207_v29, %v16270_v14  ;;  %v802_v27 = vld [vmem:[#allocation2 + $0x100] sm:$0xff] }
 0x4c5   : > { %10864 = vmatmul.mubr.msk.f32.gmra.mxu1 %vm4108_vm4, %v2330_v54  ;;  %11043 = vmatmul.mubr.msk.f32.gmra.mxu0 %vm4108_vm4, %v7838_v19  ;;  %v6826_v11 = vpop.permute.xlu1 %6825  ;;  %v6824_v49 = vpop.permute.xlu0 %6823  ;;  %v2206_v19 = vsel %vm618_vm0, %v798_v33, %v16265_v62  ;;  %v16274_v51 = vld [vmem:[#allocation155_spill] sm:$0xff]  ;;  %v16277_v63 = vld [vmem:[#allocation32_spill] sm:$0xff] }
 0x4c6   : > { %10866 = vmatprep.mubr.msk.f32.mxu1 %vm4108_vm4, %v2331_v4  ;;  %v7712_v10 = vsel %vm618_vm0, %v6304_v2, %v6826_v11  ;;  %v7711_v48 = vsel %vm618_vm0, %v6303_v9, %v6824_v49  ;;  %v2335_v41 = vsel %vm2312_vm3, %v2206_v19, %v16267_v58  ;;  %v6305_v4 = vld [vmem:[#allocation2 + $0xb0] sm:$0xff]  ;;  %v801_v11 = vld [vmem:[#allocation2 + $0xf8] sm:$0xff]  ;;  %v13852_v9 = vpop.f32.mrf.mxu0  ;;  %v6591_v19 = vld [vmem:[#allocation2 + $0x1e2] sm:$0xff]  ;;  %v2212_v29 = vsel %vm618_vm0, %v804_v35, %v16277_v63 }
 0x4c7   : > { %7393 = vrot.lane.b32.xlu1 %v6588_v26, %s11286_s28  ;;  %7391 = vrot.lane.b32.xlu0 %v6587_v61, %s11286_s28  ;;  %v6306_v26 = vld [vmem:[#allocation2 + $0xb8] sm:$0xff]  ;;  %v6592_v62 = vld [vmem:[#allocation2 + $0x1ea] sm:$0xff]  ;;  %v16286_v63 = vld [vmem:[#allocation161_spill] sm:$0xff] }
 0x4c8   : > { %v16269_v2 = vld [vmem:[#allocation28_spill] sm:$0xff]  ;;  %v13870_v12 = vpop.f32.mrf.mxu0 }
 0x4c9   : > { %10867 = vmatmul.mubr.msk.f32.gmra.mxu1 %vm4108_vm4, %v2332_v3  ;;  %v7338_v30 = vpop.permute.xlu1 %7337  ;;  %v7336_v44 = vpop.permute.xlu0 %7335  ;;  %v2208_v49 = vsel %vm618_vm0, %v800_v50, %v16269_v2  ;;  %v6308_v50 = vld [vmem:[#allocation2 + $0xd0] sm:$0xff] }
 0x4ca   : > { %v7840_v24 = vsel %vm2312_vm3, %v7712_v10, %v7338_v30  ;;  %10869 = vmatprep.mubr.msk.f32.mxu1 %vm4108_vm4, %v2333_v39  ;;  %v7839_v31 = vsel %vm2312_vm3, %v7711_v48, %v7336_v44  ;;  %v2337_v3 = vsel %vm2312_vm3, %v2208_v49, %v16271_v0  ;;  %v16272_v10 = vld [vmem:[#allocation27_spill] sm:$0xff]  ;;  %v16273_v44 = vld [vmem:[#allocation30_spill] sm:$0xff]  ;;  %v13886_v2 = vpop.f32.mrf.mxu0  ;;  %v6466_v49 = vld [vmem:[#allocation2 + $0x1f9] sm:$0xff] }
 0x4cb   : > { %6885 = vrot.lane.b32.xlu1 %v6462_v38, %s11285_s27  ;;  %6883 = vrot.lane.b32.xlu0 %v6461_v22, %s11285_s27  ;;  %v2209_v30 = vsel %vm618_vm0, %v801_v11, %v16272_v10  ;;  %v2210_v8 = vsel %vm618_vm0, %v802_v27, %v16273_v44  ;;  %v6465_v14 = vld [vmem:[#allocation2 + $0x1f1] sm:$0xff] }
 0x4cc   : > { %11045 = vmatprep.mubr.msk.f32.mxu0 %vm4108_vm4, %v7839_v31  ;;  %v2338_v31 = vsel %vm2312_vm3, %v2209_v30, %v16274_v51  ;;  %v807_v10 = vld [vmem:[#allocation2 + $0x130] sm:$0xff]  ;;  %v16281_v30 = vld [vmem:[#allocation34_spill] sm:$0xff]  ;;  %v6594_v51 = vld [vmem:[#allocation2 + $0x1fa] sm:$0xff] }
 0x4cd   : > { %10870 = vmatmul.mubr.msk.f32.gmra.mxu1 %vm4108_vm4, %v2334_v18  ;;  %11046 = vmatmul.mubr.msk.f32.gmra.mxu0 %vm4108_vm4, %v7840_v24  ;;  %v6830_v54 = vpop.permute.xlu1 %6829  ;;  %v6828_v61 = vpop.permute.xlu0 %6827  ;;  %v803_v24 = vld [vmem:[#allocation2 + $0x108] sm:$0xff] }
 0x4ce   : > { %10872 = vmatprep.mubr.msk.f32.mxu1 %vm4108_vm4, %v2335_v41  ;;  %v7714_v38 = vsel %vm618_vm0, %v6306_v26, %v6830_v54  ;;  %v7713_v33 = vsel %vm618_vm0, %v6305_v4, %v6828_v61  ;;  %v16275_v18 = vld [vmem:[#allocation158_spill] sm:$0xff]  ;;  %v16276_v41 = vld [vmem:[#allocation29_spill] sm:$0xff] }
 0x4cf   : > { %7397 = vrot.lane.b32.xlu1 %v6590_v59, %s11286_s28  ;;  %7395 = vrot.lane.b32.xlu0 %v6589_v1, %s11286_s28  ;;  %v2339_v59 = vsel %vm2312_vm3, %v2210_v8, %v16275_v18  ;;  %v2211_v54 = vsel %vm618_vm0, %v803_v24, %v16276_v41  ;;  %v6307_v26 = vld [vmem:[#allocation2 + $0xc8] sm:$0xff]  ;;  %v805_v61 = vld [vmem:[#allocation2 + $0x120] sm:$0xff]  ;;  %v16282_v24 = vld [vmem:[#allocation159_spill] sm:$0xff]  ;;  %v13904_v8 = vpop.f32.mrf.mxu0 }
 0x4d0   : > { %v16278_v4 = vld [vmem:[#allocation157_spill] sm:$0xff]  ;;  %v6309_v41 = vld [vmem:[#allocation2 + $0xd8] sm:$0xff] }
 0x4d1   : > { %10873 = vmatmul.mubr.msk.f32.gmra.mxu1 %vm4108_vm4, %v2336_v53  ;;  %v7342_v22 = vpop.permute.xlu1 %7341  ;;  %v7340_v39 = vpop.permute.xlu0 %7339  ;;  %v2340_v11 = vsel %vm2312_vm3, %v2211_v54, %v16278_v4  ;;  %v806_v53 = vld [vmem:[#allocation2 + $0x128] sm:$0xff] }
 0x4d2   : > { %v7842_v17 = vsel %vm2312_vm3, %v7714_v38, %v7342_v22  ;;  %10875 = vmatprep.mubr.msk.f32.mxu1 %vm4108_vm4, %v2337_v3  ;;  %v7841_v48 = vsel %vm2312_vm3, %v7713_v33, %v7340_v39  ;;  %v16280_v33 = vld [vmem:[#allocation31_spill] sm:$0xff]  ;;  %v809_v54 = vld [vmem:[#allocation2 + $0x148] sm:$0xff]  ;;  %v13920_v4 = vpop.f32.mrf.mxu0 }
 0x4d3   : > { %6889 = vrot.lane.b32.xlu1 %v6464_v23, %s11285_s27  ;;  %6887 = vrot.lane.b32.xlu0 %v6463_v20, %s11285_s27  ;;  %v16279_v23 = vld [vmem:[#allocation160_spill] sm:$0xff] }
 0x4d4   : > { %11048 = vmatprep.mubr.msk.f32.mxu0 %vm4108_vm4, %v7841_v48  ;;  %v2341_v20 = vsel %vm2312_vm3, %v2212_v29, %v16279_v23  ;;  %v2214_v48 = vsel %vm618_vm0, %v806_v53, %v16281_v30  ;;  %v16287_v53 = vld [vmem:[#allocation164_spill] sm:$0xff] }
 0x4d5   : > { %10876 = vmatmul.mubr.msk.f32.gmra.mxu1 %vm4108_vm4, %v2338_v31  ;;  %11049 = vmatmul.mubr.msk.f32.gmra.mxu0 %vm4108_vm4, %v7842_v17  ;;  %v6834_v1 = vpop.permute.xlu1 %6833  ;;  %v6832_v58 = vpop.permute.xlu0 %6831  ;;  %v2213_v17 = vsel %vm618_vm0, %v805_v61, %v16280_v33  ;;  %v6593_v31 = vld [vmem:[#allocation2 + $0x1f2] sm:$0xff] }
 0x4d6   : > { %10878 = vmatprep.mubr.msk.f32.mxu1 %vm4108_vm4, %v2339_v59  ;;  %v7716_v27 = vsel %vm618_vm0, %v6308_v50, %v6834_v1  ;;  %v7715_v3 = vsel %vm618_vm0, %v6307_v26, %v6832_v58  ;;  %v2342_v44 = vsel %vm2312_vm3, %v2213_v17, %v16282_v24  ;;  %v6310_v59 = vld [vmem:[#allocation2 + $0xe0] sm:$0xff]  ;;  %v16285_v26 = vld [vmem:[#allocation36_spill] sm:$0xff] }
 0x4d7   : > { %7401 = vrot.lane.b32.xlu1 %v6592_v62, %s11286_s28  ;;  %7399 = vrot.lane.b32.xlu0 %v6591_v19, %s11286_s28  ;;  %v808_v62 = vld [vmem:[#allocation2 + $0x140] sm:$0xff]  ;;  %v16283_v19 = vld [vmem:[#allocation162_spill] sm:$0xff] }
 0x4d8   : > { %v2343_v35 = vsel %vm2312_vm3, %v2214_v48, %v16283_v19  ;;  %v16284_v50 = vld [vmem:[#allocation33_spill] sm:$0xff]  ;;  %v2216_v61 = vsel %vm618_vm0, %v808_v62, %v16285_v26  ;;  %v16290_v48 = vld [vmem:[#allocation163_spill] sm:$0xff]  ;;  %v812_v62 = vld [vmem:[#allocation2 + $0x168] sm:$0xff] }
 0x4d9   : > { %10879 = vmatmul.mubr.msk.f32.gmra.mxu1 %vm4108_vm4, %v2340_v11  ;;  %v7346_v0 = vpop.permute.xlu1 %7345  ;;  %v7344_v22 = vpop.permute.xlu0 %7343  ;;  %v2215_v58 = vsel %vm618_vm0, %v807_v10, %v16284_v50  ;;  %v6468_v11 = vld [vmem:[#allocation2 + $0x211] sm:$0xff]  ;;  %v2345_v23 = vsel %vm2312_vm3, %v2216_v61, %v16287_v53  ;;  %v16289_v10 = vld [vmem:[#allocation38_spill] sm:$0xff] }
 0x4da   : > { %v7844_v38 = vsel %vm2312_vm3, %v7716_v27, %v7346_v0  ;;  %10881 = vmatprep.mubr.msk.f32.mxu1 %vm4108_vm4, %v2341_v20  ;;  %v7843_v39 = vsel %vm2312_vm3, %v7715_v3, %v7344_v22  ;;  %v2344_v29 = vsel %vm2312_vm3, %v2215_v58, %v16286_v63  ;;  %v16288_v22 = vld [vmem:[#allocation35_spill] sm:$0xff]  ;;  %v16291_v19 = vld [vmem:[#allocation166_spill] sm:$0xff]  ;;  %v16293_v58 = vld [vmem:[#allocation37_spill] sm:$0xff] }
 0x4db   : > { %6893 = vrot.lane.b32.xlu1 %v6466_v49, %s11285_s27  ;;  %6891 = vrot.lane.b32.xlu0 %v6465_v14, %s11285_s27  ;;  %v6467_v49 = vld [vmem:[#allocation2 + $0x209] sm:$0xff]  ;;  %v2217_v33 = vsel %vm618_vm0, %v809_v54, %v16288_v22  ;;  %v16295_v63 = vld [vmem:[#allocation40_spill] sm:$0xff]  ;;  %v6470_v53 = vld [vmem:[#allocation2 + $0x221] sm:$0xff] }
 0x4dc   : > { %11051 = vmatprep.mubr.msk.f32.mxu0 %vm4108_vm4, %v7843_v39  ;;  %v810_v14 = vld [vmem:[#allocation2 + $0x150] sm:$0xff]  ;;  %v811_v39 = vld [vmem:[#allocation2 + $0x158] sm:$0xff]  ;;  %v2346_v24 = vsel %vm2312_vm3, %v2217_v33, %v16290_v48 }
 0x4dd   : > { %10882 = vmatmul.mubr.msk.f32.gmra.mxu1 %vm4108_vm4, %v2342_v44  ;;  %11052 = vmatmul.mubr.msk.f32.gmra.mxu0 %vm4108_vm4, %v7844_v38  ;;  %v6838_v18 = vpop.permute.xlu1 %6837  ;;  %v6836_v1 = vpop.permute.xlu0 %6835  ;;  %v2218_v30 = vsel %vm618_vm0, %v810_v14, %v16289_v10  ;;  %v6311_v54 = vld [vmem:[#allocation2 + $0xf0] sm:$0xff] }
 0x4de   : > { %10884 = vmatprep.mubr.msk.f32.mxu1 %vm4108_vm4, %v2343_v35  ;;  %v7718_v20 = vsel %vm618_vm0, %v6310_v59, %v6838_v18  ;;  %v7717_v0 = vsel %vm618_vm0, %v6309_v41, %v6836_v1  ;;  %v13938_v44 = vpop.f32.mrf.mxu0  ;;  %v2347_v35 = vsel %vm2312_vm3, %v2218_v30, %v16291_v19  ;;  %v6312_v1 = vld [vmem:[#allocation2 + $0xf8] sm:$0xff]  ;;  %v2219_v41 = vsel %vm618_vm0, %v811_v39, %v16293_v58  ;;  %v813_v61 = vld [vmem:[#allocation2 + $0x170] sm:$0xff] }
 0x4df   : > { %7405 = vrot.lane.b32.xlu1 %v6594_v51, %s11286_s28  ;;  %7403 = vrot.lane.b32.xlu0 %v6593_v31, %s11286_s28  ;;  %v6596_v51 = vld [vmem:[#allocation2 + $0x212] sm:$0xff]  ;;  %v6595_v31 = vld [vmem:[#allocation2 + $0x20a] sm:$0xff] }
 0x4e0   : > { %v13958_v14 = vpop.f32.mrf.mxu0  ;;  %v16299_v10 = vld [vmem:[#allocation39_spill] sm:$0xff] }
 0x4e1   : > { %10885 = vmatmul.mubr.msk.f32.gmra.mxu1 %vm4108_vm4, %v2344_v29  ;;  %v7350_v27 = vpop.permute.xlu1 %7349  ;;  %v7348_v38 = vpop.permute.xlu0 %7347  ;;  %v2220_v29 = vsel %vm618_vm0, %v812_v62, %v16295_v63  ;;  %v2221_v30 = vsel %vm618_vm0, %v813_v61, %v16299_v10  ;;  %v16302_v19 = vld [vmem:[#allocation167_spill] sm:$0xff] }
 0x4e2   : > { %v7846_v3 = vsel %vm2312_vm3, %v7718_v20, %v7350_v27  ;;  %10887 = vmatprep.mubr.msk.f32.mxu1 %vm4108_vm4, %v2345_v23  ;;  %v7845_v17 = vsel %vm2312_vm3, %v7717_v0, %v7348_v38  ;;  %v6469_v23 = vld [vmem:[#allocation2 + $0x219] sm:$0xff]  ;;  %v816_v58 = vld [vmem:[#allocation2 + $0x190] sm:$0xff] }
 0x4e3   : > { %6897 = vrot.lane.b32.xlu1 %v6468_v11, %s11285_s27  ;;  %6895 = vrot.lane.b32.xlu0 %v6467_v49, %s11285_s27  ;;  %v16296_v11 = vld [vmem:[#allocation165_spill] sm:$0xff]  ;;  %v814_v20 = vld [vmem:[#allocation2 + $0x178] sm:$0xff] }
 0x4e4   : > { %11054 = vmatprep.mubr.msk.f32.mxu0 %vm4108_vm4, %v7845_v17  ;;  %v2348_v49 = vsel %vm2312_vm3, %v2219_v41, %v16296_v11  ;;  %v16297_v27 = vld [vmem:[#allocation168_spill] sm:$0xff]  ;;  %v16303_v41 = vld [vmem:[#allocation170_spill] sm:$0xff] }
 0x4e5   : > { %v13943_v18 = vpop.f32.mrf.mxu1  ;;  %10888 = vmatmul.mubr.msk.f32.gmra.mxu1 %vm4108_vm4, %v2346_v24  ;;  %11055 = vmatmul.mubr.msk.f32.gmra.mxu0 %vm4108_vm4, %v7846_v3  ;;  %v6842_v59 = vpop.permute.xlu1 %6841  ;;  %v2349_v0 = vsel %vm2312_vm3, %v2220_v29, %v16297_v27  ;;  %v6314_v29 = vld [vmem:[#allocation2 + $0x108] sm:$0xff]  ;;  %v817_v27 = vld [vmem:[#allocation2 + $0x198] sm:$0xff] }
 0x4e6   : > { %16292 = vst [vmem:[#allocation259_spill] sm:$0xff] %v13943_v18  ;;  %v6840_v50 = vpop.permute.xlu0 %6839  ;;  %10890 = vmatprep.mubr.msk.f32.mxu1 %vm4108_vm4, %v2347_v35  ;;  %v7720_v3 = vsel %vm618_vm0, %v6312_v1, %v6842_v59  ;;  %v2350_v35 = vsel %vm2312_vm3, %v2221_v30, %v16302_v19  ;;  %v13980_v59 = vpop.f32.mrf.mxu0  ;;  %v6598_v1 = vld [vmem:[#allocation2 + $0x222] sm:$0xff]  ;;  %v6471_v10 = vld [vmem:[#allocation2 + $0x231] sm:$0xff] }
 0x4e7   : > { %v13950_v26 = vpop.f32.mrf.mxu1  ;;  %7409 = vrot.lane.b32.xlu1 %v6596_v51, %s11286_s28  ;;  %7407 = vrot.lane.b32.xlu0 %v6595_v31, %s11286_s28  ;;  %v7719_v33 = vsel %vm618_vm0, %v6311_v54, %v6840_v50  ;;  %v815_v51 = vld [vmem:[#allocation2 + $0x180] sm:$0xff]  ;;  %v16301_v31 = vld [vmem:[#allocation42_spill] sm:$0xff] }
 0x4e8   : > { %16294 = vst [vmem:[#allocation260_spill] sm:$0xff] %v13950_v26  ;;  %v2222_v62 = vsel %vm618_vm0, %v814_v20, %v16301_v31  ;;  %v6597_v50 = vld [vmem:[#allocation2 + $0x21a] sm:$0xff] }
 0x4e9   : > { %v13963_v38 = vpop.f32.mrf.mxu1  ;;  %10891 = vmatmul.mubr.msk.f32.gmra.mxu1 %vm4108_vm4, %v2348_v49  ;;  %v7354_v22 = vpop.permute.xlu1 %7353  ;;  %v2351_v54 = vsel %vm2312_vm3, %v2222_v62, %v16303_v41  ;;  %v16305_v49 = vld [vmem:[#allocation41_spill] sm:$0xff] }
 0x4ea   : > { %16298 = vst [vmem:[#allocation261_spill] sm:$0xff] %v13963_v38  ;;  %v7848_v17 = vsel %vm2312_vm3, %v7720_v3, %v7354_v22  ;;  %v7352_v39 = vpop.permute.xlu0 %7351  ;;  %10893 = vmatprep.mubr.msk.f32.mxu1 %vm4108_vm4, %v2349_v0  ;;  %v16307_v0 = vld [vmem:[#allocation44_spill] sm:$0xff]  ;;  %v16308_v22 = vld [vmem:[#allocation169_spill] sm:$0xff] }
 0x4eb   : > { %v7847_v48 = vsel %vm2312_vm3, %v7719_v33, %v7352_v39  ;;  %v13972_v24 = vpop.f32.mrf.mxu1  ;;  %6901 = vrot.lane.b32.xlu1 %v6470_v53, %s11285_s27  ;;  %6899 = vrot.lane.b32.xlu0 %v6469_v23, %s11285_s27  ;;  %v2223_v53 = vsel %vm618_vm0, %v815_v51, %v16305_v49  ;;  %v6313_v23 = vld [vmem:[#allocation2 + $0x100] sm:$0xff]  ;;  %v2224_v3 = vsel %vm618_vm0, %v816_v58, %v16307_v0  ;;  %v16311_v58 = vld [vmem:[#allocation43_spill] sm:$0xff] }
 0x4ec   : > { %16300 = vst [vmem:[#allocation262_spill] sm:$0xff] %v13972_v24  ;;  %11057 = vmatprep.mubr.msk.f32.mxu0 %vm4108_vm4, %v7847_v48  ;;  %v2352_v33 = vsel %vm2312_vm3, %v2223_v53, %v16308_v22  ;;  %v6472_v39 = vld [vmem:[#allocation2 + $0x239] sm:$0xff]  ;;  %v2225_v41 = vsel %vm618_vm0, %v817_v27, %v16311_v58  ;;  %v16314_v53 = vld [vmem:[#allocation171_spill] sm:$0xff] }
 0x4ed   : > { %v13985_v61 = vpop.f32.mrf.mxu1  ;;  %10894 = vmatmul.mubr.msk.f32.gmra.mxu1 %vm4108_vm4, %v2350_v35  ;;  %11058 = vmatmul.mubr.msk.f32.gmra.mxu0 %vm4108_vm4, %v7848_v17  ;;  %v6846_v63 = vpop.permute.xlu1 %6845  ;;  %v818_v30 = vld [vmem:[#allocation2 + $0x1a0] sm:$0xff]  ;;  %v16309_v48 = vld [vmem:[#allocation172_spill] sm:$0xff] }
 0x4ee   : > { %16304 = vst [vmem:[#allocation263_spill] sm:$0xff] %v13985_v61  ;;  %v6844_v11 = vpop.permute.xlu0 %6843  ;;  %10896 = vmatprep.mubr.msk.f32.mxu1 %vm4108_vm4, %v2351_v54  ;;  %v14000_v17 = vpop.f32.mrf.mxu0  ;;  %v2353_v51 = vsel %vm2312_vm3, %v2224_v3, %v16309_v48  ;;  %v7722_v31 = vsel %vm618_vm0, %v6314_v29, %v6846_v63  ;;  %v819_v63 = vld [vmem:[#allocation2 + $0x1a8] sm:$0xff]  ;;  %v6600_v27 = vld [vmem:[#allocation2 + $0x23a] sm:$0xff]  ;;  %v6599_v3 = vld [vmem:[#allocation2 + $0x232] sm:$0xff] }
 0x4ef   : > { %v13992_v20 = vpop.f32.mrf.mxu1  ;;  %7413 = vrot.lane.b32.xlu1 %v6598_v1, %s11286_s28  ;;  %7411 = vrot.lane.b32.xlu0 %v6597_v50, %s11286_s28  ;;  %v7721_v35 = vsel %vm618_vm0, %v6313_v23, %v6844_v11  ;;  %v16313_v29 = vld [vmem:[#allocation46_spill] sm:$0xff]  ;;  %v2354_v23 = vsel %vm2312_vm3, %v2225_v41, %v16314_v53  ;;  %v820_v22 = vld [vmem:[#allocation2 + $0x1b8] sm:$0xff]  ;;  %v821_v58 = vld [vmem:[#allocation2 + $0x1c0] sm:$0xff] }
 0x4f0   : > { %16306 = vst [vmem:[#allocation264_spill] sm:$0xff] %v13992_v20  ;;  %v2226_v11 = vsel %vm618_vm0, %v818_v30, %v16313_v29  ;;  %v14022_v0 = vpop.f32.mrf.mxu0  ;;  %v6316_v30 = vld [vmem:[#allocation2 + $0x120] sm:$0xff]  ;;  %v16319_v41 = vld [vmem:[#allocation48_spill] sm:$0xff]  ;;  %v6474_v53 = vld [vmem:[#allocation2 + $0x249] sm:$0xff] }
 0x4f1   : > { %v14005_v62 = vpop.f32.mrf.mxu1  ;;  %10897 = vmatmul.mubr.msk.f32.gmra.mxu1 %vm4108_vm4, %v2352_v33  ;;  %v7358_v19 = vpop.permute.xlu1 %7357  ;;  %v16315_v33 = vld [vmem:[#allocation174_spill] sm:$0xff] }
 0x4f2   : > { %16310 = vst [vmem:[#allocation265_spill] sm:$0xff] %v14005_v62  ;;  %v7850_v1 = vsel %vm2312_vm3, %v7722_v31, %v7358_v19  ;;  %v7356_v50 = vpop.permute.xlu0 %7355  ;;  %10899 = vmatprep.mubr.msk.f32.mxu1 %vm4108_vm4, %v2353_v51  ;;  %v2355_v48 = vsel %vm2312_vm3, %v2226_v11, %v16315_v33  ;;  %v16317_v31 = vld [vmem:[#allocation45_spill] sm:$0xff]  ;;  %v14042_v11 = vpop.f32.mrf.mxu0  ;;  %v822_v33 = vld [vmem:[#allocation2 + $0x1c8] sm:$0xff] }
 0x4f3   : > { %v7849_v54 = vsel %vm2312_vm3, %v7721_v35, %v7356_v50  ;;  %v14014_v49 = vpop.f32.mrf.mxu1  ;;  %6905 = vrot.lane.b32.xlu1 %v6472_v39, %s11285_s27  ;;  %6903 = vrot.lane.b32.xlu0 %v6471_v10, %s11285_s27  ;;  %v2227_v19 = vsel %vm618_vm0, %v819_v63, %v16317_v31  ;;  %v6315_v35 = vld [vmem:[#allocation2 + $0x118] sm:$0xff] }
 0x4f4   : > { %16312 = vst [vmem:[#allocation266_spill] sm:$0xff] %v14014_v49  ;;  %11060 = vmatprep.mubr.msk.f32.mxu0 %vm4108_vm4, %v7849_v54  ;;  %v2228_v54 = vsel %vm618_vm0, %v820_v22, %v16319_v41  ;;  %v16321_v63 = vld [vmem:[#allocation176_spill] sm:$0xff] }
 0x4f5   : > { %v14027_v39 = vpop.f32.mrf.mxu1  ;;  %10900 = vmatmul.mubr.msk.f32.gmra.mxu1 %vm4108_vm4, %v2354_v23  ;;  %11061 = vmatmul.mubr.msk.f32.gmra.mxu0 %vm4108_vm4, %v7850_v1  ;;  %v6850_v10 = vpop.permute.xlu1 %6849  ;;  %v16320_v1 = vld [vmem:[#allocation173_spill] sm:$0xff] }
 0x4f6   : > { %16316 = vst [vmem:[#allocation267_spill] sm:$0xff] %v14027_v39  ;;  %v6848_v51 = vpop.permute.xlu0 %6847  ;;  %10902 = vmatprep.mubr.msk.f32.mxu1 %vm4108_vm4, %v2355_v48  ;;  %v2356_v29 = vsel %vm2312_vm3, %v2227_v19, %v16320_v1  ;;  %v6473_v23 = vld [vmem:[#allocation2 + $0x241] sm:$0xff]  ;;  %v2357_v48 = vsel %vm2312_vm3, %v2228_v54, %v16321_v63  ;;  %v7724_v31 = vsel %vm618_vm0, %v6316_v30, %v6850_v10  ;;  %v16323_v1 = vld [vmem:[#allocation47_spill] sm:$0xff]  ;;  %v14064_v63 = vpop.f32.mrf.mxu0 }
 0x4f7   : > { %v14034_v50 = vpop.f32.mrf.mxu1  ;;  %7417 = vrot.lane.b32.xlu1 %v6600_v27, %s11286_s28  ;;  %7415 = vrot.lane.b32.xlu0 %v6599_v3, %s11286_s28  ;;  %v7723_v22 = vsel %vm618_vm0, %v6315_v35, %v6848_v51  ;;  %v823_v10 = vld [vmem:[#allocation2 + $0x1d0] sm:$0xff]  ;;  %v16325_v30 = vld [vmem:[#allocation50_spill] sm:$0xff] }
 0x4f8   : > { %16318 = vst [vmem:[#allocation268_spill] sm:$0xff] %v14034_v50  ;;  %v2229_v50 = vsel %vm618_vm0, %v821_v58, %v16323_v1  ;;  %v2230_v51 = vsel %vm618_vm0, %v822_v33, %v16325_v30  ;;  %v16326_v35 = vld [vmem:[#allocation175_spill] sm:$0xff]  ;;  %v6317_v1 = vld [vmem:[#allocation2 + $0x128] sm:$0xff] }
 0x4f9   : > { %v14047_v27 = vpop.f32.mrf.mxu1  ;;  %10903 = vmatmul.mubr.msk.f32.gmra.mxu1 %vm4108_vm4, %v2356_v29  ;;  %v7362_v3 = vpop.permute.xlu1 %7361  ;;  %v2358_v29 = vsel %vm2312_vm3, %v2229_v50, %v16326_v35  ;;  %v6602_v58 = vld [vmem:[#allocation2 + $0x24a] sm:$0xff]  ;;  %v16329_v50 = vld [vmem:[#allocation49_spill] sm:$0xff]  ;;  %v16331_v35 = vld [vmem:[#allocation52_spill] sm:$0xff] }
 0x4fa   : > { %16322 = vst [vmem:[#allocation269_spill] sm:$0xff] %v14047_v27  ;;  %v7852_v41 = vsel %vm2312_vm3, %v7724_v31, %v7362_v3  ;;  %v7360_v19 = vpop.permute.xlu0 %7359  ;;  %10905 = vmatprep.mubr.msk.f32.mxu1 %vm4108_vm4, %v2357_v48  ;;  %v6601_v48 = vld [vmem:[#allocation2 + $0x242] sm:$0xff]  ;;  %v6318_v33 = vld [vmem:[#allocation2 + $0x130] sm:$0xff] }
 0x4fb   : > { %v7851_v39 = vsel %vm2312_vm3, %v7723_v22, %v7360_v19  ;;  %v14056_v54 = vpop.f32.mrf.mxu1  ;;  %6909 = vrot.lane.b32.xlu1 %v6474_v53, %s11285_s27  ;;  %6907 = vrot.lane.b32.xlu0 %v6473_v23, %s11285_s27  ;;  %v824_v31 = vld [vmem:[#allocation2 + $0x1e0] sm:$0xff]  ;;  %v16327_v3 = vld [vmem:[#allocation178_spill] sm:$0xff]  ;;  %v826_v27 = vld [vmem:[#allocation2 + $0x1f0] sm:$0xff] }
 0x4fc   : > { %16324 = vst [vmem:[#allocation272_spill] sm:$0xff] %v14056_v54  ;;  %11063 = vmatprep.mubr.msk.f32.mxu0 %vm4108_vm4, %v7851_v39  ;;  %v2359_v22 = vsel %vm2312_vm3, %v2230_v51, %v16327_v3  ;;  %v2231_v39 = vsel %vm618_vm0, %v823_v10, %v16329_v50  ;;  %v825_v51 = vld [vmem:[#allocation2 + $0x1e8] sm:$0xff]  ;;  %v6475_v54 = vld [vmem:[#allocation2 + $0x259] sm:$0xff] }
 0x4fd   : > { %v14069_v53 = vpop.f32.mrf.mxu1  ;;  %10906 = vmatmul.mubr.msk.f32.gmra.mxu1 %vm4108_vm4, %v2358_v29  ;;  %11064 = vmatmul.mubr.msk.f32.gmra.mxu0 %vm4108_vm4, %v7852_v41  ;;  %v6854_v23 = vpop.permute.xlu1 %6853  ;;  %v2232_v29 = vsel %vm618_vm0, %v824_v31, %v16331_v35  ;;  %v16332_v41 = vld [vmem:[#allocation177_spill] sm:$0xff]  ;;  %v16333_v10 = vld [vmem:[#allocation180_spill] sm:$0xff] }
 0x4fe   : > { %16328 = vst [vmem:[#allocation273_spill] sm:$0xff] %v14069_v53  ;;  %v6852_v19 = vpop.permute.xlu0 %6851  ;;  %10908 = vmatprep.mubr.msk.f32.mxu1 %vm4108_vm4, %v2359_v22  ;;  %v2360_v3 = vsel %vm2312_vm3, %v2231_v39, %v16332_v41  ;;  %v14084_v53 = vpop.f32.mrf.mxu0  ;;  %v6476_v22 = vld [vmem:[#allocation2 + $0x261] sm:$0xff]  ;;  %v2361_v50 = vsel %vm2312_vm3, %v2232_v29, %v16333_v10  ;;  %v16335_v41 = vld [vmem:[#allocation51_spill] sm:$0xff] }
 0x4ff   : > { %v14076_v30 = vpop.f32.mrf.mxu1  ;;  %7421 = vrot.lane.b32.xlu1 %v6602_v58, %s11286_s28  ;;  %7419 = vrot.lane.b32.xlu0 %v6601_v48, %s11286_s28  ;;  %v7725_v31 = vsel %vm618_vm0, %v6317_v1, %v6852_v19  ;;  %v2233_v49 = vsel %vm618_vm0, %v825_v51, %v16335_v41  ;;  %v16338_v1 = vld [vmem:[#allocation179_spill] sm:$0xff]  ;;  %v6604_v51 = vld [vmem:[#allocation2 + $0x262] sm:$0xff]  ;;  %v6603_v10 = vld [vmem:[#allocation2 + $0x25a] sm:$0xff] }
 0x500   : > { %16330 = vst [vmem:[#allocation274_spill] sm:$0xff] %v14076_v30  ;;  %v7726_v30 = vsel %vm618_vm0, %v6318_v33, %v6854_v23  ;;  %v827_v23 = vld [vmem:[#allocation2 + $0x1f8] sm:$0xff]  ;;  %v16337_v33 = vld [vmem:[#allocation54_spill] sm:$0xff]  ;;  %v6319_v41 = vld [vmem:[#allocation2 + $0x140] sm:$0xff] }
 0x501   : > { %v14089_v58 = vpop.f32.mrf.mxu1  ;;  %10909 = vmatmul.mubr.msk.f32.gmra.mxu1 %vm4108_vm4, %v2360_v3  ;;  %v7366_v48 = vpop.permute.xlu1 %7365  ;;  %v2234_v19 = vsel %vm618_vm0, %v826_v27, %v16337_v33 }
 0x502   : > { %16334 = vst [vmem:[#allocation275_spill] sm:$0xff] %v14089_v58  ;;  %v7854_v35 = vsel %vm2312_vm3, %v7726_v30, %v7366_v48  ;;  %v7364_v39 = vpop.permute.xlu0 %7363  ;;  %10911 = vmatprep.mubr.msk.f32.mxu1 %vm4108_vm4, %v2361_v50  ;;  %v2362_v30 = vsel %vm2312_vm3, %v2233_v49, %v16338_v1  ;;  %v14106_v3 = vpop.f32.mrf.mxu0  ;;  %v828_v50 = vld [vmem:[#allocation2 + $0x208] sm:$0xff]  ;;  %v16341_v49 = vld [vmem:[#allocation53_spill] sm:$0xff]  ;;  %v16343_v1 = vld [vmem:[#allocation56_spill] sm:$0xff] }
 0x503   : > { %v7853_v62 = vsel %vm2312_vm3, %v7725_v31, %v7364_v39  ;;  %v14098_v29 = vpop.f32.mrf.mxu1  ;;  %6913 = vrot.lane.b32.xlu1 %v6476_v22, %s11285_s27  ;;  %6911 = vrot.lane.b32.xlu0 %v6475_v54, %s11285_s27  ;;  %v16339_v48 = vld [vmem:[#allocation182_spill] sm:$0xff]  ;;  %v830_v58 = vld [vmem:[#allocation2 + $0x218] sm:$0xff] }
 0x504   : > { %16336 = vst [vmem:[#allocation276_spill] sm:$0xff] %v14098_v29  ;;  %11066 = vmatprep.mubr.msk.f32.mxu0 %vm4108_vm4, %v7853_v62  ;;  %v2363_v31 = vsel %vm2312_vm3, %v2234_v19, %v16339_v48  ;;  %v6320_v54 = vld [vmem:[#allocation2 + $0x148] sm:$0xff]  ;;  %v2235_v62 = vsel %vm618_vm0, %v827_v23, %v16341_v49  ;;  %v829_v19 = vld [vmem:[#allocation2 + $0x210] sm:$0xff]  ;;  %v16345_v23 = vld [vmem:[#allocation184_spill] sm:$0xff] }
 0x505   : > { %v14111_v22 = vpop.f32.mrf.mxu1  ;;  %10912 = vmatmul.mubr.msk.f32.gmra.mxu1 %vm4108_vm4, %v2362_v30  ;;  %11067 = vmatmul.mubr.msk.f32.gmra.mxu0 %vm4108_vm4, %v7854_v35  ;;  %v6858_v27 = vpop.permute.xlu1 %6857  ;;  %v2236_v30 = vsel %vm618_vm0, %v828_v50, %v16343_v1  ;;  %v16344_v35 = vld [vmem:[#allocation181_spill] sm:$0xff]  ;;  %v6477_v29 = vld [vmem:[#allocation2 + $0x269] sm:$0xff] }
 0x506   : > { %16340 = vst [vmem:[#allocation277_spill] sm:$0xff] %v14111_v22  ;;  %v6856_v39 = vpop.permute.xlu0 %6855  ;;  %10914 = vmatprep.mubr.msk.f32.mxu1 %vm4108_vm4, %v2363_v31  ;;  %v2364_v48 = vsel %vm2312_vm3, %v2235_v62, %v16344_v35  ;;  %v14126_v22 = vpop.f32.mrf.mxu0  ;;  %v6478_v31 = vld [vmem:[#allocation2 + $0x271] sm:$0xff]  ;;  %v2365_v49 = vsel %vm2312_vm3, %v2236_v30, %v16345_v23 }
 0x507   : > { %v14118_v33 = vpop.f32.mrf.mxu1  ;;  %7425 = vrot.lane.b32.xlu1 %v6604_v51, %s11286_s28  ;;  %7423 = vrot.lane.b32.xlu0 %v6603_v10, %s11286_s28  ;;  %v7727_v50 = vsel %vm618_vm0, %v6319_v41, %v6856_v39  ;;  %v16347_v35 = vld [vmem:[#allocation55_spill] sm:$0xff] }
 0x508   : > { %16342 = vst [vmem:[#allocation278_spill] sm:$0xff] %v14118_v33  ;;  %v7728_v33 = vsel %vm618_vm0, %v6320_v54, %v6858_v27  ;;  %v2237_v20 = vsel %vm618_vm0, %v829_v19, %v16347_v35  ;;  %v831_v27 = vld [vmem:[#allocation2 + $0x220] sm:$0xff]  ;;  %v16349_v54 = vld [vmem:[#allocation58_spill] sm:$0xff]  ;;  %v16350_v41 = vld [vmem:[#allocation183_spill] sm:$0xff] }
 0x509   : > { %v14131_v51 = vpop.f32.mrf.mxu1  ;;  %10915 = vmatmul.mubr.msk.f32.gmra.mxu1 %vm4108_vm4, %v2364_v48  ;;  %v7370_v10 = vpop.permute.xlu1 %7369  ;;  %v2238_v39 = vsel %vm618_vm0, %v830_v58, %v16349_v54  ;;  %v6606_v19 = vld [vmem:[#allocation2 + $0x272] sm:$0xff]  ;;  %v6605_v23 = vld [vmem:[#allocation2 + $0x26a] sm:$0xff] }
 0x50a   : > { %16346 = vst [vmem:[#allocation279_spill] sm:$0xff] %v14131_v51  ;;  %v7856_v1 = vsel %vm2312_vm3, %v7728_v33, %v7370_v10  ;;  %v7368_v62 = vpop.permute.xlu0 %7367  ;;  %10917 = vmatprep.mubr.msk.f32.mxu1 %vm4108_vm4, %v2365_v49  ;;  %v2366_v33 = vsel %vm2312_vm3, %v2237_v20, %v16350_v41  ;;  %v14148_v48 = vpop.f32.mrf.mxu0  ;;  %v832_v49 = vld [vmem:[#allocation2 + $0x230] sm:$0xff]  ;;  %v16352_v10 = vld [vmem:[#allocation186_spill] sm:$0xff]  ;;  %v16354_v20 = vld [vmem:[#allocation57_spill] sm:$0xff] }
 0x50b   : > { %v7855_v61 = vsel %vm2312_vm3, %v7727_v50, %v7368_v62  ;;  %v14140_v30 = vpop.f32.mrf.mxu1  ;;  %6917 = vrot.lane.b32.xlu1 %v6478_v31, %s11285_s27  ;;  %6915 = vrot.lane.b32.xlu0 %v6477_v29, %s11285_s27  ;;  %16351 = vst [vmem:[#allocation281_spill] sm:$0xff] %v14148_v48  ;;  %v2367_v50 = vsel %vm2312_vm3, %v2238_v39, %v16352_v10  ;;  %v6322_v29 = vld [vmem:[#allocation2 + $0x158] sm:$0xff]  ;;  %v6321_v35 = vld [vmem:[#allocation2 + $0x150] sm:$0xff]  ;;  %v834_v51 = vld [vmem:[#allocation2 + $0x240] sm:$0xff] }
 0x50c   : > { %16348 = vst [vmem:[#allocation280_spill] sm:$0xff] %v14140_v30  ;;  %11069 = vmatprep.mubr.msk.f32.mxu0 %vm4108_vm4, %v7855_v61  ;;  %v2239_v61 = vsel %vm618_vm0, %v831_v27, %v16354_v20  ;;  %v833_v39 = vld [vmem:[#allocation2 + $0x238] sm:$0xff]  ;;  %v6479_v30 = vld [vmem:[#allocation2 + $0x281] sm:$0xff] }
 0x50d   : > { %v14153_v31 = vpop.f32.mrf.mxu1  ;;  %10918 = vmatmul.mubr.msk.f32.gmra.mxu1 %vm4108_vm4, %v2366_v33  ;;  %11070 = vmatmul.mubr.msk.f32.gmra.mxu0 %vm4108_vm4, %v7856_v1  ;;  %v6862_v58 = vpop.permute.xlu1 %6861  ;;  %v16356_v41 = vld [vmem:[#allocation60_spill] sm:$0xff]  ;;  %v16357_v1 = vld [vmem:[#allocation185_spill] sm:$0xff] }
 0x50e   : > { %16353 = vst [vmem:[#allocation282_spill] sm:$0xff] %v14153_v31  ;;  %v6860_v62 = vpop.permute.xlu0 %6859  ;;  %10920 = vmatprep.mubr.msk.f32.mxu1 %vm4108_vm4, %v2367_v50  ;;  %v2240_v33 = vsel %vm618_vm0, %v832_v49, %v16356_v41  ;;  %v2368_v10 = vsel %vm2312_vm3, %v2239_v61, %v16357_v1  ;;  %v14168_v31 = vpop.f32.mrf.mxu0  ;;  %v6480_v50 = vld [vmem:[#allocation2 + $0x289] sm:$0xff]  ;;  %v16359_v27 = vld [vmem:[#allocation188_spill] sm:$0xff] }
 0x50f   : > { %v14160_v54 = vpop.f32.mrf.mxu1  ;;  %7429 = vrot.lane.b32.xlu1 %v6606_v19, %s11286_s28  ;;  %7427 = vrot.lane.b32.xlu0 %v6605_v23, %s11286_s28  ;;  %16358 = vst [vmem:[#allocation284_spill] sm:$0xff] %v14168_v31  ;;  %v2369_v20 = vsel %vm2312_vm3, %v2240_v33, %v16359_v27  ;;  %v7729_v49 = vsel %vm618_vm0, %v6321_v35, %v6860_v62  ;;  %v16361_v1 = vld [vmem:[#allocation59_spill] sm:$0xff]  ;;  %v6607_v27 = vld [vmem:[#allocation2 + $0x282] sm:$0xff]  ;;  %v16521_v48 = vld [vmem:[#allocation236_spill] sm:$0xff] }
 0x510   : > { %16355 = vst [vmem:[#allocation283_spill] sm:$0xff] %v14160_v54  ;;  %v7730_v54 = vsel %vm618_vm0, %v6322_v29, %v6862_v58  ;;  %v2241_v24 = vsel %vm618_vm0, %v833_v39, %v16361_v1  ;;  %v835_v58 = vld [vmem:[#allocation2 + $0x248] sm:$0xff]  ;;  %v16364_v35 = vld [vmem:[#allocation187_spill] sm:$0xff] }
 0x511   : > { %v14173_v19 = vpop.f32.mrf.mxu1  ;;  %10921 = vmatmul.mubr.msk.f32.gmra.mxu1 %vm4108_vm4, %v2368_v10  ;;  %v7374_v23 = vpop.permute.xlu1 %7373  ;;  %v16363_v29 = vld [vmem:[#allocation62_spill] sm:$0xff] }
 0x512   : > { %16360 = vst [vmem:[#allocation285_spill] sm:$0xff] %v14173_v19  ;;  %v7858_v41 = vsel %vm2312_vm3, %v7730_v54, %v7374_v23  ;;  %v7372_v61 = vpop.permute.xlu0 %7371  ;;  %10923 = vmatprep.mubr.msk.f32.mxu1 %vm4108_vm4, %v2369_v20  ;;  %v2242_v62 = vsel %vm618_vm0, %v834_v51, %v16363_v29  ;;  %v2370_v54 = vsel %vm2312_vm3, %v2241_v24, %v16364_v35  ;;  %v14190_v10 = vpop.f32.mrf.mxu0  ;;  %v6608_v39 = vld [vmem:[#allocation2 + $0x28a] sm:$0xff]  ;;  %v836_v20 = vld [vmem:[#allocation2 + $0x258] sm:$0xff]  ;;  %v16368_v24 = vld [vmem:[#allocation61_spill] sm:$0xff] }
 0x513   : > { %v7857_v38 = vsel %vm2312_vm3, %v7729_v49, %v7372_v61  ;;  %v14182_v33 = vpop.f32.mrf.mxu1  ;;  %6921 = vrot.lane.b32.xlu1 %v6480_v50, %s11285_s27  ;;  %6919 = vrot.lane.b32.xlu0 %v6479_v30, %s11285_s27  ;;  %16365 = vst [vmem:[#allocation287_spill] sm:$0xff] %v14190_v10  ;;  %v16366_v23 = vld [vmem:[#allocation190_spill] sm:$0xff]  ;;  %v6324_v30 = vld [vmem:[#allocation2 + $0x170] sm:$0xff]  ;;  %v16370_v35 = vld [vmem:[#allocation64_spill] sm:$0xff] }
 0x514   : > { %16362 = vst [vmem:[#allocation286_spill] sm:$0xff] %v14182_v33  ;;  %11072 = vmatprep.mubr.msk.f32.mxu0 %vm4108_vm4, %v7857_v38  ;;  %v2371_v49 = vsel %vm2312_vm3, %v2242_v62, %v16366_v23  ;;  %v2243_v38 = vsel %vm618_vm0, %v835_v58, %v16368_v24  ;;  %v6323_v1 = vld [vmem:[#allocation2 + $0x168] sm:$0xff]  ;;  %v837_v62 = vld [vmem:[#allocation2 + $0x260] sm:$0xff]  ;;  %v6481_v33 = vld [vmem:[#allocation2 + $0x291] sm:$0xff] }
 0x515   : > { %v14195_v50 = vpop.f32.mrf.mxu1  ;;  %10924 = vmatmul.mubr.msk.f32.gmra.mxu1 %vm4108_vm4, %v2370_v54  ;;  %11073 = vmatmul.mubr.msk.f32.gmra.mxu0 %vm4108_vm4, %v7858_v41  ;;  %v6866_v51 = vpop.permute.xlu1 %6865  ;;  %v2244_v54 = vsel %vm618_vm0, %v836_v20, %v16370_v35  ;;  %v16371_v41 = vld [vmem:[#allocation189_spill] sm:$0xff]  ;;  %v838_v19 = vld [vmem:[#allocation2 + $0x268] sm:$0xff]  ;;  %v16373_v58 = vld [vmem:[#allocation192_spill] sm:$0xff] }
 0x516   : > { %16367 = vst [vmem:[#allocation288_spill] sm:$0xff] %v14195_v50  ;;  %v6864_v61 = vpop.permute.xlu0 %6863  ;;  %10926 = vmatprep.mubr.msk.f32.mxu1 %vm4108_vm4, %v2371_v49  ;;  %v2372_v23 = vsel %vm2312_vm3, %v2243_v38, %v16371_v41  ;;  %v14210_v50 = vpop.f32.mrf.mxu0  ;;  %v6482_v49 = vld [vmem:[#allocation2 + $0x299] sm:$0xff]  ;;  %v2373_v24 = vsel %vm2312_vm3, %v2244_v54, %v16373_v58  ;;  %v16375_v41 = vld [vmem:[#allocation63_spill] sm:$0xff] }
 0x517   : > { %v14202_v29 = vpop.f32.mrf.mxu1  ;;  %7433 = vrot.lane.b32.xlu1 %v6608_v39, %s11286_s28  ;;  %7431 = vrot.lane.b32.xlu0 %v6607_v27, %s11286_s28  ;;  %16372 = vst [vmem:[#allocation290_spill] sm:$0xff] %v14210_v50  ;;  %v7731_v20 = vsel %vm618_vm0, %v6323_v1, %v6864_v61  ;;  %v2245_v26 = vsel %vm618_vm0, %v837_v62, %v16375_v41  ;;  %v16378_v1 = vld [vmem:[#allocation191_spill] sm:$0xff]  ;;  %v6610_v62 = vld [vmem:[#allocation2 + $0x29a] sm:$0xff] }
 0x518   : > { %16369 = vst [vmem:[#allocation289_spill] sm:$0xff] %v14202_v29  ;;  %v7732_v29 = vsel %vm618_vm0, %v6324_v30, %v6866_v51  ;;  %v839_v51 = vld [vmem:[#allocation2 + $0x270] sm:$0xff]  ;;  %v16377_v30 = vld [vmem:[#allocation66_spill] sm:$0xff]  ;;  %v6325_v41 = vld [vmem:[#allocation2 + $0x178] sm:$0xff] }
 0x519   : > { %v14215_v39 = vpop.f32.mrf.mxu1  ;;  %10927 = vmatmul.mubr.msk.f32.gmra.mxu1 %vm4108_vm4, %v2372_v23  ;;  %v7378_v27 = vpop.permute.xlu1 %7377  ;;  %v2246_v61 = vsel %vm618_vm0, %v838_v19, %v16377_v30  ;;  %v6609_v58 = vld [vmem:[#allocation2 + $0x292] sm:$0xff] }
 0x51a   : > { %16374 = vst [vmem:[#allocation291_spill] sm:$0xff] %v14215_v39  ;;  %v7860_v35 = vsel %vm2312_vm3, %v7732_v29, %v7378_v27  ;;  %v7376_v38 = vpop.permute.xlu0 %7375  ;;  %10929 = vmatprep.mubr.msk.f32.mxu1 %vm4108_vm4, %v2373_v24  ;;  %v2374_v29 = vsel %vm2312_vm3, %v2245_v26, %v16378_v1  ;;  %v14232_v23 = vpop.f32.mrf.mxu0  ;;  %v840_v24 = vld [vmem:[#allocation2 + $0x280] sm:$0xff]  ;;  %v16380_v27 = vld [vmem:[#allocation194_spill] sm:$0xff]  ;;  %v16384_v1 = vld [vmem:[#allocation68_spill] sm:$0xff] }
 0x51b   : > { %v7859_v18 = vsel %vm2312_vm3, %v7731_v20, %v7376_v38  ;;  %v14224_v54 = vpop.f32.mrf.mxu1  ;;  %6925 = vrot.lane.b32.xlu1 %v6482_v49, %s11285_s27  ;;  %6923 = vrot.lane.b32.xlu0 %v6481_v33, %s11285_s27  ;;  %16379 = vst [vmem:[#allocation293_spill] sm:$0xff] %v14232_v23  ;;  %v2375_v20 = vsel %vm2312_vm3, %v2246_v61, %v16380_v27  ;;  %v6326_v33 = vld [vmem:[#allocation2 + $0x180] sm:$0xff]  ;;  %v841_v61 = vld [vmem:[#allocation2 + $0x288] sm:$0xff]  ;;  %v842_v39 = vld [vmem:[#allocation2 + $0x290] sm:$0xff] }
 0x51c   : > { %16376 = vst [vmem:[#allocation292_spill] sm:$0xff] %v14224_v54  ;;  %11075 = vmatprep.mubr.msk.f32.mxu0 %vm4108_vm4, %v7859_v18  ;;  %v16382_v26 = vld [vmem:[#allocation65_spill] sm:$0xff]  ;;  %v6483_v54 = vld [vmem:[#allocation2 + $0x2a9] sm:$0xff] }
 0x51d   : > { %v14237_v49 = vpop.f32.mrf.mxu1  ;;  %10930 = vmatmul.mubr.msk.f32.gmra.mxu1 %vm4108_vm4, %v2374_v29  ;;  %11076 = vmatmul.mubr.msk.f32.gmra.mxu0 %vm4108_vm4, %v7860_v35  ;;  %v6870_v19 = vpop.permute.xlu1 %6869  ;;  %v2247_v18 = vsel %vm618_vm0, %v839_v51, %v16382_v26  ;;  %v2248_v29 = vsel %vm618_vm0, %v840_v24, %v16384_v1  ;;  %v16385_v35 = vld [vmem:[#allocation193_spill] sm:$0xff]  ;;  %v16387_v51 = vld [vmem:[#allocation196_spill] sm:$0xff]  ;;  %v16520_v10 = vld [vmem:[#allocation107_spill] sm:$0xff] }
 0x51e   : > { %16381 = vst [vmem:[#allocation294_spill] sm:$0xff] %v14237_v49  ;;  %v6868_v38 = vpop.permute.xlu0 %6867  ;;  %10932 = vmatprep.mubr.msk.f32.mxu1 %vm4108_vm4, %v2375_v20  ;;  %v2376_v27 = vsel %vm2312_vm3, %v2247_v18, %v16385_v35  ;;  %v14252_v49 = vpop.f32.mrf.mxu0  ;;  %v6484_v20 = vld [vmem:[#allocation2 + $0x2b1] sm:$0xff]  ;;  %v2377_v26 = vsel %vm2312_vm3, %v2248_v29, %v16387_v51 }
 0x51f   : > { %v14244_v30 = vpop.f32.mrf.mxu1  ;;  %7437 = vrot.lane.b32.xlu1 %v6610_v62, %s11286_s28  ;;  %7435 = vrot.lane.b32.xlu0 %v6609_v58, %s11286_s28  ;;  %16386 = vst [vmem:[#allocation296_spill] sm:$0xff] %v14252_v49  ;;  %v7733_v24 = vsel %vm618_vm0, %v6325_v41, %v6868_v38  ;;  %v16389_v35 = vld [vmem:[#allocation67_spill] sm:$0xff] }
 0x520   : > { %16383 = vst [vmem:[#allocation295_spill] sm:$0xff] %v14244_v30  ;;  %v7734_v30 = vsel %vm618_vm0, %v6326_v33, %v6870_v19  ;;  %v2249_v49 = vsel %vm618_vm0, %v841_v61, %v16389_v35  ;;  %v843_v19 = vld [vmem:[#allocation2 + $0x298] sm:$0xff]  ;;  %v16391_v33 = vld [vmem:[#allocation70_spill] sm:$0xff]  ;;  %v16392_v41 = vld [vmem:[#allocation195_spill] sm:$0xff] }
 0x521   : > { %v14257_v62 = vpop.f32.mrf.mxu1  ;;  %10933 = vmatmul.mubr.msk.f32.gmra.mxu1 %vm4108_vm4, %v2376_v27  ;;  %v7382_v58 = vpop.permute.xlu1 %7381  ;;  %v2250_v38 = vsel %vm618_vm0, %v842_v39, %v16391_v33  ;;  %v6612_v61 = vld [vmem:[#allocation2 + $0x2b2] sm:$0xff]  ;;  %v6611_v51 = vld [vmem:[#allocation2 + $0x2aa] sm:$0xff] }
 0x522   : > { %16388 = vst [vmem:[#allocation297_spill] sm:$0xff] %v14257_v62  ;;  %v7862_v1 = vsel %vm2312_vm3, %v7734_v30, %v7382_v58  ;;  %v7380_v18 = vpop.permute.xlu0 %7379  ;;  %10935 = vmatprep.mubr.msk.f32.mxu1 %vm4108_vm4, %v2377_v26  ;;  %v2378_v30 = vsel %vm2312_vm3, %v2249_v49, %v16392_v41  ;;  %v14274_v27 = vpop.f32.mrf.mxu0  ;;  %v844_v26 = vld [vmem:[#allocation2 + $0x2a8] sm:$0xff]  ;;  %v16396_v49 = vld [vmem:[#allocation69_spill] sm:$0xff]  ;;  %v6327_v35 = vld [vmem:[#allocation2 + $0x190] sm:$0xff] }
 0x523   : > { %v7861_v23 = vsel %vm2312_vm3, %v7733_v24, %v7380_v18  ;;  %v14266_v29 = vpop.f32.mrf.mxu1  ;;  %6929 = vrot.lane.b32.xlu1 %v6484_v20, %s11285_s27  ;;  %6927 = vrot.lane.b32.xlu0 %v6483_v54, %s11285_s27  ;;  %16393 = vst [vmem:[#allocation299_spill] sm:$0xff] %v14274_v27  ;;  %v16394_v58 = vld [vmem:[#allocation198_spill] sm:$0xff]  ;;  %v6328_v54 = vld [vmem:[#allocation2 + $0x198] sm:$0xff] }
 0x524   : > { %16390 = vst [vmem:[#allocation298_spill] sm:$0xff] %v14266_v29  ;;  %11078 = vmatprep.mubr.msk.f32.mxu0 %vm4108_vm4, %v7861_v23  ;;  %v2379_v24 = vsel %vm2312_vm3, %v2250_v38, %v16394_v58  ;;  %v2251_v23 = vsel %vm618_vm0, %v843_v19, %v16396_v49  ;;  %v845_v38 = vld [vmem:[#allocation2 + $0x2b0] sm:$0xff]  ;;  %v16398_v41 = vld [vmem:[#allocation72_spill] sm:$0xff] }
 0x525   : > { %v14279_v20 = vpop.f32.mrf.mxu1  ;;  %10936 = vmatmul.mubr.msk.f32.gmra.mxu1 %vm4108_vm4, %v2378_v30  ;;  %11079 = vmatmul.mubr.msk.f32.gmra.mxu0 %vm4108_vm4, %v7862_v1  ;;  %v6874_v39 = vpop.permute.xlu1 %6873  ;;  %v2252_v30 = vsel %vm618_vm0, %v844_v26, %v16398_v41  ;;  %v16399_v1 = vld [vmem:[#allocation197_spill] sm:$0xff]  ;;  %v846_v62 = vld [vmem:[#allocation2 + $0x2b8] sm:$0xff] }
 0x526   : > { %16395 = vst [vmem:[#allocation300_spill] sm:$0xff] %v14279_v20  ;;  %v6872_v18 = vpop.permute.xlu0 %6871  ;;  %10938 = vmatprep.mubr.msk.f32.mxu1 %vm4108_vm4, %v2379_v24  ;;  %v2380_v58 = vsel %vm2312_vm3, %v2251_v23, %v16399_v1  ;;  %v14294_v20 = vpop.f32.mrf.mxu0  ;;  %v6486_v24 = vld [vmem:[#allocation2 + $0x2c1] sm:$0xff]  ;;  %v6485_v29 = vld [vmem:[#allocation2 + $0x2b9] sm:$0xff]  ;;  %v16403_v1 = vld [vmem:[#allocation71_spill] sm:$0xff] }
 0x527   : > { %v14286_v33 = vpop.f32.mrf.mxu1  ;;  %7441 = vrot.lane.b32.xlu1 %v6612_v61, %s11286_s28  ;;  %7439 = vrot.lane.b32.xlu0 %v6611_v51, %s11286_s28  ;;  %16400 = vst [vmem:[#allocation302_spill] sm:$0xff] %v14294_v20  ;;  %v16401_v19 = vld [vmem:[#allocation200_spill] sm:$0xff]  ;;  %v7735_v26 = vsel %vm618_vm0, %v6327_v35, %v6872_v18  ;;  %v2253_v20 = vsel %vm618_vm0, %v845_v38, %v16403_v1  ;;  %v16406_v35 = vld [vmem:[#allocation199_spill] sm:$0xff]  ;;  %v6614_v38 = vld [vmem:[#allocation2 + $0x2c2] sm:$0xff] }
 0x528   : > { %16397 = vst [vmem:[#allocation301_spill] sm:$0xff] %v14286_v33  ;;  %v2381_v49 = vsel %vm2312_vm3, %v2252_v30, %v16401_v19  ;;  %v7736_v33 = vsel %vm618_vm0, %v6328_v54, %v6874_v39  ;;  %v847_v39 = vld [vmem:[#allocation2 + $0x2c0] sm:$0xff]  ;;  %v16405_v54 = vld [vmem:[#allocation74_spill] sm:$0xff] }
 0x529   : > { %v14299_v61 = vpop.f32.mrf.mxu1  ;;  %10939 = vmatmul.mubr.msk.f32.gmra.mxu1 %vm4108_vm4, %v2380_v58  ;;  %v7386_v51 = vpop.permute.xlu1 %7385  ;;  %v2254_v18 = vsel %vm618_vm0, %v846_v62, %v16405_v54  ;;  %v6613_v19 = vld [vmem:[#allocation2 + $0x2ba] sm:$0xff] }
 0x52a   : > { %16402 = vst [vmem:[#allocation303_spill] sm:$0xff] %v14299_v61  ;;  %v7864_v41 = vsel %vm2312_vm3, %v7736_v33, %v7386_v51  ;;  %v7384_v23 = vpop.permute.xlu0 %7383  ;;  %10941 = vmatprep.mubr.msk.f32.mxu1 %vm4108_vm4, %v2381_v49  ;;  %v2382_v33 = vsel %vm2312_vm3, %v2253_v20, %v16406_v35  ;;  %v14316_v58 = vpop.f32.mrf.mxu0  ;;  %v848_v49 = vld [vmem:[#allocation2 + $0x2d0] sm:$0xff]  ;;  %v16408_v51 = vld [vmem:[#allocation202_spill] sm:$0xff]  ;;  %v16410_v20 = vld [vmem:[#allocation73_spill] sm:$0xff] }
 0x52b   : > { %v7863_v27 = vsel %vm2312_vm3, %v7735_v26, %v7384_v23  ;;  %v14308_v30 = vpop.f32.mrf.mxu1  ;;  %6933 = vrot.lane.b32.xlu1 %v6486_v24, %s11285_s27  ;;  %6931 = vrot.lane.b32.xlu0 %v6485_v29, %s11285_s27  ;;  %16407 = vst [vmem:[#allocation305_spill] sm:$0xff] %v14316_v58  ;;  %v2383_v26 = vsel %vm2312_vm3, %v2254_v18, %v16408_v51  ;;  %v6330_v29 = vld [vmem:[#allocation2 + $0x1a8] sm:$0xff]  ;;  %v6329_v1 = vld [vmem:[#allocation2 + $0x1a0] sm:$0xff]  ;;  %v849_v18 = vld [vmem:[#allocation2 + $0x2d8] sm:$0xff] }
 0x52c   : > { %16404 = vst [vmem:[#allocation304_spill] sm:$0xff] %v14308_v30  ;;  %11081 = vmatprep.mubr.msk.f32.mxu0 %vm4108_vm4, %v7863_v27  ;;  %v2255_v27 = vsel %vm618_vm0, %v847_v39, %v16410_v20  ;;  %v16412_v35 = vld [vmem:[#allocation76_spill] sm:$0xff]  ;;  %v850_v61 = vld [vmem:[#allocation2 + $0x2e0] sm:$0xff] }
 0x52d   : > { %v14321_v24 = vpop.f32.mrf.mxu1  ;;  %10942 = vmatmul.mubr.msk.f32.gmra.mxu1 %vm4108_vm4, %v2382_v33  ;;  %11082 = vmatmul.mubr.msk.f32.gmra.mxu0 %vm4108_vm4, %v7864_v41  ;;  %v6878_v62 = vpop.permute.xlu1 %6877  ;;  %v2256_v33 = vsel %vm618_vm0, %v848_v49, %v16412_v35  ;;  %v16413_v41 = vld [vmem:[#allocation201_spill] sm:$0xff]  ;;  %v6487_v30 = vld [vmem:[#allocation2 + $0x2d1] sm:$0xff] }
 0x52e   : > { %16409 = vst [vmem:[#allocation306_spill] sm:$0xff] %v14321_v24  ;;  %v6876_v23 = vpop.permute.xlu0 %6875  ;;  %10944 = vmatprep.mubr.msk.f32.mxu1 %vm4108_vm4, %v2383_v26  ;;  %v2384_v51 = vsel %vm2312_vm3, %v2255_v27, %v16413_v41  ;;  %v14336_v24 = vpop.f32.mrf.mxu0  ;;  %v6488_v26 = vld [vmem:[#allocation2 + $0x2d9] sm:$0xff]  ;;  %v16417_v41 = vld [vmem:[#allocation75_spill] sm:$0xff] }
 0x52f   : > { %v14328_v54 = vpop.f32.mrf.mxu1  ;;  %7445 = vrot.lane.b32.xlu1 %v6614_v38, %s11286_s28  ;;  %7443 = vrot.lane.b32.xlu0 %v6613_v19, %s11286_s28  ;;  %16414 = vst [vmem:[#allocation308_spill] sm:$0xff] %v14336_v24  ;;  %v16415_v39 = vld [vmem:[#allocation204_spill] sm:$0xff]  ;;  %v7737_v49 = vsel %vm618_vm0, %v6329_v1, %v6876_v23  ;;  %v2257_v24 = vsel %vm618_vm0, %v849_v18, %v16417_v41  ;;  %v16420_v1 = vld [vmem:[#allocation203_spill] sm:$0xff] }
 0x530   : > { %16411 = vst [vmem:[#allocation307_spill] sm:$0xff] %v14328_v54  ;;  %v2385_v20 = vsel %vm2312_vm3, %v2256_v33, %v16415_v39  ;;  %v7738_v54 = vsel %vm618_vm0, %v6330_v29, %v6878_v62  ;;  %v851_v62 = vld [vmem:[#allocation2 + $0x2e8] sm:$0xff]  ;;  %v6616_v18 = vld [vmem:[#allocation2 + $0x2da] sm:$0xff]  ;;  %v6615_v39 = vld [vmem:[#allocation2 + $0x2d2] sm:$0xff] }
 0x531   : > { %v14341_v38 = vpop.f32.mrf.mxu1  ;;  %10945 = vmatmul.mubr.msk.f32.gmra.mxu1 %vm4108_vm4, %v2384_v51  ;;  %v7390_v19 = vpop.permute.xlu1 %7389  ;;  %v16419_v29 = vld [vmem:[#allocation78_spill] sm:$0xff]  ;;  %v6331_v41 = vld [vmem:[#allocation2 + $0x1b8] sm:$0xff] }
 0x532   : > { %16416 = vst [vmem:[#allocation309_spill] sm:$0xff] %v14341_v38  ;;  %v7866_v35 = vsel %vm2312_vm3, %v7738_v54, %v7390_v19  ;;  %v7388_v27 = vpop.permute.xlu0 %7387  ;;  %10947 = vmatprep.mubr.msk.f32.mxu1 %vm4108_vm4, %v2385_v20  ;;  %v2258_v23 = vsel %vm618_vm0, %v850_v61, %v16419_v29  ;;  %v2386_v54 = vsel %vm2312_vm3, %v2257_v24, %v16420_v1  ;;  %v14358_v51 = vpop.f32.mrf.mxu0  ;;  %v852_v20 = vld [vmem:[#allocation2 + $0x2f8] sm:$0xff]  ;;  %v16422_v19 = vld [vmem:[#allocation206_spill] sm:$0xff]  ;;  %v16424_v24 = vld [vmem:[#allocation77_spill] sm:$0xff] }
 0x533   : > { %v7865_v58 = vsel %vm2312_vm3, %v7737_v49, %v7388_v27  ;;  %v14350_v33 = vpop.f32.mrf.mxu1  ;;  %6937 = vrot.lane.b32.xlu1 %v6488_v26, %s11285_s27  ;;  %6935 = vrot.lane.b32.xlu0 %v6487_v30, %s11285_s27  ;;  %16421 = vst [vmem:[#allocation311_spill] sm:$0xff] %v14358_v51  ;;  %v2387_v49 = vsel %vm2312_vm3, %v2258_v23, %v16422_v19  ;;  %v6332_v30 = vld [vmem:[#allocation2 + $0x1c0] sm:$0xff]  ;;  %v16426_v1 = vld [vmem:[#allocation80_spill] sm:$0xff]  ;;  %v854_v38 = vld [vmem:[#allocation2 + $0x308] sm:$0xff] }
 0x534   : > { %16418 = vst [vmem:[#allocation310_spill] sm:$0xff] %v14350_v33  ;;  %11084 = vmatprep.mubr.msk.f32.mxu0 %vm4108_vm4, %v7865_v58  ;;  %v2259_v58 = vsel %vm618_vm0, %v851_v62, %v16424_v24  ;;  %v853_v23 = vld [vmem:[#allocation2 + $0x300] sm:$0xff]  ;;  %v16429_v62 = vld [vmem:[#allocation208_spill] sm:$0xff] }
 0x535   : > { %v14363_v26 = vpop.f32.mrf.mxu1  ;;  %10948 = vmatmul.mubr.msk.f32.gmra.mxu1 %vm4108_vm4, %v2386_v54  ;;  %11085 = vmatmul.mubr.msk.f32.gmra.mxu0 %vm4108_vm4, %v7866_v35  ;;  %v6882_v61 = vpop.permute.xlu1 %6881  ;;  %v2260_v54 = vsel %vm618_vm0, %v852_v20, %v16426_v1  ;;  %v16427_v35 = vld [vmem:[#allocation205_spill] sm:$0xff] }
 0x536   : > { %16423 = vst [vmem:[#allocation312_spill] sm:$0xff] %v14363_v26  ;;  %v6880_v27 = vpop.permute.xlu0 %6879  ;;  %10950 = vmatprep.mubr.msk.f32.mxu1 %vm4108_vm4, %v2387_v49  ;;  %v2388_v19 = vsel %vm2312_vm3, %v2259_v58, %v16427_v35  ;;  %v14378_v26 = vpop.f32.mrf.mxu0  ;;  %v6490_v49 = vld [vmem:[#allocation2 + $0x2e9] sm:$0xff]  ;;  %v6489_v33 = vld [vmem:[#allocation2 + $0x2e1] sm:$0xff]  ;;  %v2389_v24 = vsel %vm2312_vm3, %v2260_v54, %v16429_v62 }
 0x537   : > { %v14370_v29 = vpop.f32.mrf.mxu1  ;;  %7449 = vrot.lane.b32.xlu1 %v6616_v18, %s11286_s28  ;;  %7447 = vrot.lane.b32.xlu0 %v6615_v39, %s11286_s28  ;;  %16428 = vst [vmem:[#allocation314_spill] sm:$0xff] %v14378_v26  ;;  %v7739_v20 = vsel %vm618_vm0, %v6331_v41, %v6880_v27  ;;  %v16431_v35 = vld [vmem:[#allocation79_spill] sm:$0xff]  ;;  %v6617_v62 = vld [vmem:[#allocation2 + $0x2e2] sm:$0xff] }
 0x538   : > { %16425 = vst [vmem:[#allocation313_spill] sm:$0xff] %v14370_v29  ;;  %v7740_v29 = vsel %vm618_vm0, %v6332_v30, %v6882_v61  ;;  %v2261_v26 = vsel %vm618_vm0, %v853_v23, %v16431_v35  ;;  %v855_v61 = vld [vmem:[#allocation2 + $0x310] sm:$0xff]  ;;  %v16433_v30 = vld [vmem:[#allocation82_spill] sm:$0xff] }
 0x539   : > { %v14383_v18 = vpop.f32.mrf.mxu1  ;;  %10951 = vmatmul.mubr.msk.f32.gmra.mxu1 %vm4108_vm4, %v2388_v19  ;;  %v7394_v39 = vpop.permute.xlu1 %7393  ;;  %v2262_v27 = vsel %vm618_vm0, %v854_v38, %v16433_v30  ;;  %v16434_v41 = vld [vmem:[#allocation207_spill] sm:$0xff]  ;;  %v6333_v35 = vld [vmem:[#allocation2 + $0x1c8] sm:$0xff] }
 0x53a   : > { %16430 = vst [vmem:[#allocation315_spill] sm:$0xff] %v14383_v18  ;;  %v7868_v1 = vsel %vm2312_vm3, %v7740_v29, %v7394_v39  ;;  %v7392_v58 = vpop.permute.xlu0 %7391  ;;  %10953 = vmatprep.mubr.msk.f32.mxu1 %vm4108_vm4, %v2389_v24  ;;  %v2390_v29 = vsel %vm2312_vm3, %v2261_v26, %v16434_v41  ;;  %v14400_v19 = vpop.f32.mrf.mxu0  ;;  %v6618_v23 = vld [vmem:[#allocation2 + $0x2ea] sm:$0xff]  ;;  %v856_v24 = vld [vmem:[#allocation2 + $0x320] sm:$0xff]  ;;  %v16440_v41 = vld [vmem:[#allocation84_spill] sm:$0xff] }
 0x53b   : > { %v7867_v51 = vsel %vm2312_vm3, %v7739_v20, %v7392_v58  ;;  %v14392_v54 = vpop.f32.mrf.mxu1  ;;  %6941 = vrot.lane.b32.xlu1 %v6490_v49, %s11285_s27  ;;  %6939 = vrot.lane.b32.xlu0 %v6489_v33, %s11285_s27  ;;  %16435 = vst [vmem:[#allocation317_spill] sm:$0xff] %v14400_v19  ;;  %v16436_v39 = vld [vmem:[#allocation210_spill] sm:$0xff]  ;;  %v6334_v33 = vld [vmem:[#allocation2 + $0x1d0] sm:$0xff]  ;;  %v16438_v26 = vld [vmem:[#allocation81_spill] sm:$0xff] }
 0x53c   : > { %16432 = vst [vmem:[#allocation316_spill] sm:$0xff] %v14392_v54  ;;  %11087 = vmatprep.mubr.msk.f32.mxu0 %vm4108_vm4, %v7867_v51  ;;  %v2391_v20 = vsel %vm2312_vm3, %v2262_v27, %v16436_v39  ;;  %v2263_v51 = vsel %vm618_vm0, %v855_v61, %v16438_v26  ;;  %v857_v27 = vld [vmem:[#allocation2 + $0x328] sm:$0xff]  ;;  %v6491_v54 = vld [vmem:[#allocation2 + $0x2f9] sm:$0xff]  ;;  %v858_v18 = vld [vmem:[#allocation2 + $0x330] sm:$0xff] }
 0x53d   : > { %v14405_v49 = vpop.f32.mrf.mxu1  ;;  %10954 = vmatmul.mubr.msk.f32.gmra.mxu1 %vm4108_vm4, %v2390_v29  ;;  %11088 = vmatmul.mubr.msk.f32.gmra.mxu0 %vm4108_vm4, %v7868_v1  ;;  %v6886_v38 = vpop.permute.xlu1 %6885  ;;  %v2264_v29 = vsel %vm618_vm0, %v856_v24, %v16440_v41  ;;  %v16441_v1 = vld [vmem:[#allocation209_spill] sm:$0xff]  ;;  %v16443_v61 = vld [vmem:[#allocation212_spill] sm:$0xff] }
 0x53e   : > { %16437 = vst [vmem:[#allocation318_spill] sm:$0xff] %v14405_v49  ;;  %v6884_v58 = vpop.permute.xlu0 %6883  ;;  %10956 = vmatprep.mubr.msk.f32.mxu1 %vm4108_vm4, %v2391_v20  ;;  %v2392_v39 = vsel %vm2312_vm3, %v2263_v51, %v16441_v1  ;;  %v14420_v49 = vpop.f32.mrf.mxu0  ;;  %v6492_v20 = vld [vmem:[#allocation2 + $0x301] sm:$0xff]  ;;  %v2393_v26 = vsel %vm2312_vm3, %v2264_v29, %v16443_v61  ;;  %v16445_v1 = vld [vmem:[#allocation83_spill] sm:$0xff] }
 0x53f   : > { %v14412_v30 = vpop.f32.mrf.mxu1  ;;  %7453 = vrot.lane.b32.xlu1 %v6618_v23, %s11286_s28  ;;  %7451 = vrot.lane.b32.xlu0 %v6617_v62, %s11286_s28  ;;  %16442 = vst [vmem:[#allocation320_spill] sm:$0xff] %v14420_v49  ;;  %v7741_v24 = vsel %vm618_vm0, %v6333_v35, %v6884_v58  ;;  %v2265_v49 = vsel %vm618_vm0, %v857_v27, %v16445_v1  ;;  %v16448_v35 = vld [vmem:[#allocation211_spill] sm:$0xff]  ;;  %v6620_v27 = vld [vmem:[#allocation2 + $0x302] sm:$0xff]  ;;  %v6619_v61 = vld [vmem:[#allocation2 + $0x2fa] sm:$0xff] }
 0x540   : > { %16439 = vst [vmem:[#allocation319_spill] sm:$0xff] %v14412_v30  ;;  %v7742_v30 = vsel %vm618_vm0, %v6334_v33, %v6886_v38  ;;  %v859_v38 = vld [vmem:[#allocation2 + $0x338] sm:$0xff]  ;;  %v16447_v33 = vld [vmem:[#allocation86_spill] sm:$0xff]  ;;  %v6335_v1 = vld [vmem:[#allocation2 + $0x1e0] sm:$0xff] }
 0x541   : > { %v14425_v23 = vpop.f32.mrf.mxu1  ;;  %10957 = vmatmul.mubr.msk.f32.gmra.mxu1 %vm4108_vm4, %v2392_v39  ;;  %v7398_v62 = vpop.permute.xlu1 %7397  ;;  %v2266_v58 = vsel %vm618_vm0, %v858_v18, %v16447_v33 }
 0x542   : > { %16444 = vst [vmem:[#allocation321_spill] sm:$0xff] %v14425_v23  ;;  %v7870_v41 = vsel %vm2312_vm3, %v7742_v30, %v7398_v62  ;;  %v7396_v51 = vpop.permute.xlu0 %7395  ;;  %10959 = vmatprep.mubr.msk.f32.mxu1 %vm4108_vm4, %v2393_v26  ;;  %v2394_v30 = vsel %vm2312_vm3, %v2265_v49, %v16448_v35  ;;  %v14442_v39 = vpop.f32.mrf.mxu0  ;;  %v860_v26 = vld [vmem:[#allocation2 + $0x348] sm:$0xff]  ;;  %v16452_v49 = vld [vmem:[#allocation85_spill] sm:$0xff]  ;;  %v16454_v35 = vld [vmem:[#allocation88_spill] sm:$0xff] }
 0x543   : > { %v7869_v19 = vsel %vm2312_vm3, %v7741_v24, %v7396_v51  ;;  %v14434_v29 = vpop.f32.mrf.mxu1  ;;  %6945 = vrot.lane.b32.xlu1 %v6492_v20, %s11285_s27  ;;  %6943 = vrot.lane.b32.xlu0 %v6491_v54, %s11285_s27  ;;  %16449 = vst [vmem:[#allocation323_spill] sm:$0xff] %v14442_v39  ;;  %v16450_v62 = vld [vmem:[#allocation214_spill] sm:$0xff]  ;;  %v862_v23 = vld [vmem:[#allocation2 + $0x358] sm:$0xff] }
 0x544   : > { %16446 = vst [vmem:[#allocation322_spill] sm:$0xff] %v14434_v29  ;;  %11090 = vmatprep.mubr.msk.f32.mxu0 %vm4108_vm4, %v7869_v19  ;;  %v2395_v24 = vsel %vm2312_vm3, %v2266_v58, %v16450_v62  ;;  %v6336_v54 = vld [vmem:[#allocation2 + $0x1e8] sm:$0xff]  ;;  %v2267_v19 = vsel %vm618_vm0, %v859_v38, %v16452_v49  ;;  %v861_v58 = vld [vmem:[#allocation2 + $0x350] sm:$0xff]  ;;  %v16457_v38 = vld [vmem:[#allocation216_spill] sm:$0xff] }
 0x545   : > { %v14447_v20 = vpop.f32.mrf.mxu1  ;;  %10960 = vmatmul.mubr.msk.f32.gmra.mxu1 %vm4108_vm4, %v2394_v30  ;;  %11091 = vmatmul.mubr.msk.f32.gmra.mxu0 %vm4108_vm4, %v7870_v41  ;;  %v6890_v18 = vpop.permute.xlu1 %6889  ;;  %v2268_v30 = vsel %vm618_vm0, %v860_v26, %v16454_v35  ;;  %v16455_v41 = vld [vmem:[#allocation213_spill] sm:$0xff]  ;;  %v6493_v29 = vld [vmem:[#allocation2 + $0x309] sm:$0xff] }
 0x546   : > { %16451 = vst [vmem:[#allocation324_spill] sm:$0xff] %v14447_v20  ;;  %v6888_v51 = vpop.permute.xlu0 %6887  ;;  %10962 = vmatprep.mubr.msk.f32.mxu1 %vm4108_vm4, %v2395_v24  ;;  %v2396_v62 = vsel %vm2312_vm3, %v2267_v19, %v16455_v41  ;;  %v14462_v20 = vpop.f32.mrf.mxu0  ;;  %v6494_v24 = vld [vmem:[#allocation2 + $0x311] sm:$0xff]  ;;  %v2397_v49 = vsel %vm2312_vm3, %v2268_v30, %v16457_v38 }
 0x547   : > { %v14454_v33 = vpop.f32.mrf.mxu1  ;;  %7457 = vrot.lane.b32.xlu1 %v6620_v27, %s11286_s28  ;;  %7455 = vrot.lane.b32.xlu0 %v6619_v61, %s11286_s28  ;;  %16456 = vst [vmem:[#allocation326_spill] sm:$0xff] %v14462_v20  ;;  %v7743_v26 = vsel %vm618_vm0, %v6335_v1, %v6888_v51  ;;  %v16459_v41 = vld [vmem:[#allocation87_spill] sm:$0xff] }
 0x548   : > { %16453 = vst [vmem:[#allocation325_spill] sm:$0xff] %v14454_v33  ;;  %v7744_v33 = vsel %vm618_vm0, %v6336_v54, %v6890_v18  ;;  %v2269_v20 = vsel %vm618_vm0, %v861_v58, %v16459_v41  ;;  %v863_v18 = vld [vmem:[#allocation2 + $0x360] sm:$0xff]  ;;  %v16461_v54 = vld [vmem:[#allocation90_spill] sm:$0xff]  ;;  %v16462_v1 = vld [vmem:[#allocation215_spill] sm:$0xff] }
 0x549   : > { %v14467_v27 = vpop.f32.mrf.mxu1  ;;  %10963 = vmatmul.mubr.msk.f32.gmra.mxu1 %vm4108_vm4, %v2396_v62  ;;  %v7402_v61 = vpop.permute.xlu1 %7401  ;;  %v2270_v51 = vsel %vm618_vm0, %v862_v23, %v16461_v54  ;;  %v6622_v58 = vld [vmem:[#allocation2 + $0x312] sm:$0xff]  ;;  %v6621_v38 = vld [vmem:[#allocation2 + $0x30a] sm:$0xff] }
 0x54a   : > { %16458 = vst [vmem:[#allocation327_spill] sm:$0xff] %v14467_v27  ;;  %v7872_v35 = vsel %vm2312_vm3, %v7744_v33, %v7402_v61  ;;  %v7400_v19 = vpop.permute.xlu0 %7399  ;;  %10965 = vmatprep.mubr.msk.f32.mxu1 %vm4108_vm4, %v2397_v49  ;;  %v2398_v33 = vsel %vm2312_vm3, %v2269_v20, %v16462_v1  ;;  %v14484_v62 = vpop.f32.mrf.mxu0  ;;  %v864_v49 = vld [vmem:[#allocation2 + $0x370] sm:$0xff]  ;;  %v16464_v61 = vld [vmem:[#allocation218_spill] sm:$0xff]  ;;  %v16466_v20 = vld [vmem:[#allocation89_spill] sm:$0xff] }
 0x54b   : > { %v7871_v39 = vsel %vm2312_vm3, %v7743_v26, %v7400_v19  ;;  %v14476_v30 = vpop.f32.mrf.mxu1  ;;  %6949 = vrot.lane.b32.xlu1 %v6494_v24, %s11285_s27  ;;  %6947 = vrot.lane.b32.xlu0 %v6493_v29, %s11285_s27  ;;  %16463 = vst [vmem:[#allocation329_spill] sm:$0xff] %v14484_v62  ;;  %v2399_v26 = vsel %vm2312_vm3, %v2270_v51, %v16464_v61  ;;  %v6338_v29 = vld [vmem:[#allocation2 + $0x1f8] sm:$0xff]  ;;  %v6337_v41 = vld [vmem:[#allocation2 + $0x1f0] sm:$0xff]  ;;  %v866_v27 = vld [vmem:[#allocation2 + $0x380] sm:$0xff] }
 0x54c   : > { %16460 = vst [vmem:[#allocation328_spill] sm:$0xff] %v14476_v30  ;;  %11093 = vmatprep.mubr.msk.f32.mxu0 %vm4108_vm4, %v7871_v39  ;;  %v2271_v39 = vsel %vm618_vm0, %v863_v18, %v16466_v20  ;;  %v865_v51 = vld [vmem:[#allocation2 + $0x378] sm:$0xff]  ;;  %v6495_v30 = vld [vmem:[#allocation2 + $0x321] sm:$0xff] }
 0x54d   : > { %v14489_v24 = vpop.f32.mrf.mxu1  ;;  %10966 = vmatmul.mubr.msk.f32.gmra.mxu1 %vm4108_vm4, %v2398_v33  ;;  %11094 = vmatmul.mubr.msk.f32.gmra.mxu0 %vm4108_vm4, %v7872_v35  ;;  %v6894_v23 = vpop.permute.xlu1 %6893  ;;  %v16468_v1 = vld [vmem:[#allocation92_spill] sm:$0xff]  ;;  %v16469_v35 = vld [vmem:[#allocation217_spill] sm:$0xff] }
 0x54e   : > { %16465 = vst [vmem:[#allocation330_spill] sm:$0xff] %v14489_v24  ;;  %v6892_v19 = vpop.permute.xlu0 %6891  ;;  %10968 = vmatprep.mubr.msk.f32.mxu1 %vm4108_vm4, %v2399_v26  ;;  %v2272_v33 = vsel %vm618_vm0, %v864_v49, %v16468_v1  ;;  %v2400_v61 = vsel %vm2312_vm3, %v2271_v39, %v16469_v35  ;;  %v14504_v24 = vpop.f32.mrf.mxu0  ;;  %v6496_v26 = vld [vmem:[#allocation2 + $0x329] sm:$0xff]  ;;  %v16471_v18 = vld [vmem:[#allocation220_spill] sm:$0xff] }
 0x54f   : > { %v14496_v54 = vpop.f32.mrf.mxu1  ;;  %7461 = vrot.lane.b32.xlu1 %v6622_v58, %s11286_s28  ;;  %7459 = vrot.lane.b32.xlu0 %v6621_v38, %s11286_s28  ;;  %16470 = vst [vmem:[#allocation332_spill] sm:$0xff] %v14504_v24  ;;  %v2401_v20 = vsel %vm2312_vm3, %v2272_v33, %v16471_v18  ;;  %v7745_v49 = vsel %vm618_vm0, %v6337_v41, %v6892_v19  ;;  %v16473_v35 = vld [vmem:[#allocation91_spill] sm:$0xff]  ;;  %v6623_v18 = vld [vmem:[#allocation2 + $0x322] sm:$0xff] }
 0x550   : > { %16467 = vst [vmem:[#allocation331_spill] sm:$0xff] %v14496_v54  ;;  %v7746_v54 = vsel %vm618_vm0, %v6338_v29, %v6894_v23  ;;  %v2273_v24 = vsel %vm618_vm0, %v865_v51, %v16473_v35  ;;  %v867_v23 = vld [vmem:[#allocation2 + $0x388] sm:$0xff]  ;;  %v16476_v41 = vld [vmem:[#allocation219_spill] sm:$0xff] }
 0x551   : > { %v14509_v58 = vpop.f32.mrf.mxu1  ;;  %10969 = vmatmul.mubr.msk.f32.gmra.mxu1 %vm4108_vm4, %v2400_v61  ;;  %v7406_v38 = vpop.permute.xlu1 %7405  ;;  %v16475_v29 = vld [vmem:[#allocation94_spill] sm:$0xff] }
 0x552   : > { %16472 = vst [vmem:[#allocation333_spill] sm:$0xff] %v14509_v58  ;;  %v7874_v1 = vsel %vm2312_vm3, %v7746_v54, %v7406_v38  ;;  %v7404_v39 = vpop.permute.xlu0 %7403  ;;  %10971 = vmatprep.mubr.msk.f32.mxu1 %vm4108_vm4, %v2401_v20  ;;  %v2274_v19 = vsel %vm618_vm0, %v866_v27, %v16475_v29  ;;  %v2402_v54 = vsel %vm2312_vm3, %v2273_v24, %v16476_v41  ;;  %v14526_v61 = vpop.f32.mrf.mxu0  ;;  %v6624_v51 = vld [vmem:[#allocation2 + $0x32a] sm:$0xff]  ;;  %v868_v20 = vld [vmem:[#allocation2 + $0x398] sm:$0xff]  ;;  %v16480_v24 = vld [vmem:[#allocation93_spill] sm:$0xff] }
 0x553   : > { %v7873_v62 = vsel %vm2312_vm3, %v7745_v49, %v7404_v39  ;;  %v14518_v33 = vpop.f32.mrf.mxu1  ;;  %6953 = vrot.lane.b32.xlu1 %v6496_v26, %s11285_s27  ;;  %6951 = vrot.lane.b32.xlu0 %v6495_v30, %s11285_s27  ;;  %16477 = vst [vmem:[#allocation335_spill] sm:$0xff] %v14526_v61  ;;  %v16478_v38 = vld [vmem:[#allocation222_spill] sm:$0xff]  ;;  %v6340_v30 = vld [vmem:[#allocation2 + $0x210] sm:$0xff]  ;;  %v16482_v41 = vld [vmem:[#allocation96_spill] sm:$0xff] }
 0x554   : > { %16474 = vst [vmem:[#allocation334_spill] sm:$0xff] %v14518_v33  ;;  %11096 = vmatprep.mubr.msk.f32.mxu0 %vm4108_vm4, %v7873_v62  ;;  %v2403_v49 = vsel %vm2312_vm3, %v2274_v19, %v16478_v38  ;;  %v2275_v62 = vsel %vm618_vm0, %v867_v23, %v16480_v24  ;;  %v6339_v35 = vld [vmem:[#allocation2 + $0x208] sm:$0xff]  ;;  %v869_v19 = vld [vmem:[#allocation2 + $0x3a0] sm:$0xff]  ;;  %v6497_v33 = vld [vmem:[#allocation2 + $0x331] sm:$0xff] }
 0x555   : > { %v14531_v26 = vpop.f32.mrf.mxu1  ;;  %10972 = vmatmul.mubr.msk.f32.gmra.mxu1 %vm4108_vm4, %v2402_v54  ;;  %11097 = vmatmul.mubr.msk.f32.gmra.mxu0 %vm4108_vm4, %v7874_v1  ;;  %v6898_v27 = vpop.permute.xlu1 %6897  ;;  %v2276_v54 = vsel %vm618_vm0, %v868_v20, %v16482_v41  ;;  %v16483_v1 = vld [vmem:[#allocation221_spill] sm:$0xff]  ;;  %v870_v58 = vld [vmem:[#allocation2 + $0x3a8] sm:$0xff]  ;;  %v16485_v23 = vld [vmem:[#allocation224_spill] sm:$0xff] }
 0x556   : > { %16479 = vst [vmem:[#allocation4_spill] sm:$0xff] %v14531_v26  ;;  %v6896_v39 = vpop.permute.xlu0 %6895  ;;  %10974 = vmatprep.mubr.msk.f32.mxu1 %vm4108_vm4, %v2403_v49  ;;  %v2404_v38 = vsel %vm2312_vm3, %v2275_v62, %v16483_v1  ;;  %v14546_v26 = vpop.f32.mrf.mxu0  ;;  %v6498_v49 = vld [vmem:[#allocation2 + $0x339] sm:$0xff]  ;;  %v2405_v24 = vsel %vm2312_vm3, %v2276_v54, %v16485_v23  ;;  %v16487_v1 = vld [vmem:[#allocation95_spill] sm:$0xff] }
 0x557   : > { %v14538_v29 = vpop.f32.mrf.mxu1  ;;  %7465 = vrot.lane.b32.xlu1 %v6624_v51, %s11286_s28  ;;  %7463 = vrot.lane.b32.xlu0 %v6623_v18, %s11286_s28  ;;  %16484 = vst [vmem:[#allocation270_spill] sm:$0xff] %v14546_v26  ;;  %v7747_v20 = vsel %vm618_vm0, %v6339_v35, %v6896_v39  ;;  %v2277_v26 = vsel %vm618_vm0, %v869_v19, %v16487_v1  ;;  %v16490_v35 = vld [vmem:[#allocation223_spill] sm:$0xff]  ;;  %v6626_v19 = vld [vmem:[#allocation2 + $0x33a] sm:$0xff] }
 0x558   : > { %16481 = vst [vmem:[#allocation132_spill] sm:$0xff] %v14538_v29  ;;  %v7748_v29 = vsel %vm618_vm0, %v6340_v30, %v6898_v27  ;;  %v871_v27 = vld [vmem:[#allocation2 + $0x3b0] sm:$0xff]  ;;  %v16489_v30 = vld [vmem:[#allocation98_spill] sm:$0xff]  ;;  %v6341_v1 = vld [vmem:[#allocation2 + $0x218] sm:$0xff] }
 0x559   : > { %v14551_v51 = vpop.f32.mrf.mxu1  ;;  %10975 = vmatmul.mubr.msk.f32.gmra.mxu1 %vm4108_vm4, %v2404_v38  ;;  %v7410_v18 = vpop.permute.xlu1 %7409  ;;  %v2278_v39 = vsel %vm618_vm0, %v870_v58, %v16489_v30  ;;  %v6625_v23 = vld [vmem:[#allocation2 + $0x332] sm:$0xff] }
 0x55a   : > { %16486 = vst [vmem:[#allocation271_spill] sm:$0xff] %v14551_v51  ;;  %v7876_v41 = vsel %vm2312_vm3, %v7748_v29, %v7410_v18  ;;  %v7408_v62 = vpop.permute.xlu0 %7407  ;;  %10977 = vmatprep.mubr.msk.f32.mxu1 %vm4108_vm4, %v2405_v24  ;;  %v2406_v29 = vsel %vm2312_vm3, %v2277_v26, %v16490_v35  ;;  %v14568_v38 = vpop.f32.mrf.mxu0  ;;  %v872_v24 = vld [vmem:[#allocation2 + $0x3c0] sm:$0xff]  ;;  %v16492_v18 = vld [vmem:[#allocation226_spill] sm:$0xff]  ;;  %v16496_v35 = vld [vmem:[#allocation100_spill] sm:$0xff] }
 0x55b   : > { %v7875_v61 = vsel %vm2312_vm3, %v7747_v20, %v7408_v62  ;;  %v14560_v54 = vpop.f32.mrf.mxu1  ;;  %6957 = vrot.lane.b32.xlu1 %v6498_v49, %s11285_s27  ;;  %6955 = vrot.lane.b32.xlu0 %v6497_v33, %s11285_s27  ;;  %16491 = vst [vmem:[#allocation3_spill] sm:$0xff] %v14568_v38  ;;  %v2407_v20 = vsel %vm2312_vm3, %v2278_v39, %v16492_v18  ;;  %v6342_v33 = vld [vmem:[#allocation2 + $0x220] sm:$0xff]  ;;  %v873_v39 = vld [vmem:[#allocation2 + $0x3c8] sm:$0xff]  ;;  %v874_v51 = vld [vmem:[#allocation2 + $0x3d0] sm:$0xff] }
 0x55c   : > { %16488 = vst [vmem:[#allocation6_spill] sm:$0xff] %v14560_v54  ;;  %11099 = vmatprep.mubr.msk.f32.mxu0 %vm4108_vm4, %v7875_v61  ;;  %v16494_v26 = vld [vmem:[#allocation97_spill] sm:$0xff]  ;;  %v6499_v54 = vld [vmem:[#allocation2 + $0x349] sm:$0xff] }
 0x55d   : > { %v14573_v49 = vpop.f32.mrf.mxu1  ;;  %10978 = vmatmul.mubr.msk.f32.gmra.mxu1 %vm4108_vm4, %v2406_v29  ;;  %11100 = vmatmul.mubr.msk.f32.gmra.mxu0 %vm4108_vm4, %v7876_v41  ;;  %v6902_v58 = vpop.permute.xlu1 %6901  ;;  %v2279_v61 = vsel %vm618_vm0, %v871_v27, %v16494_v26  ;;  %v2280_v29 = vsel %vm618_vm0, %v872_v24, %v16496_v35  ;;  %v16497_v41 = vld [vmem:[#allocation225_spill] sm:$0xff]  ;;  %v16499_v27 = vld [vmem:[#allocation228_spill] sm:$0xff] }
 0x55e   : > { %16493 = vst [vmem:[#allocation131_spill] sm:$0xff] %v14573_v49  ;;  %v6900_v62 = vpop.permute.xlu0 %6899  ;;  %10980 = vmatprep.mubr.msk.f32.mxu1 %vm4108_vm4, %v2407_v20  ;;  %v2408_v18 = vsel %vm2312_vm3, %v2279_v61, %v16497_v41  ;;  %v14588_v49 = vpop.f32.mrf.mxu0  ;;  %v6500_v20 = vld [vmem:[#allocation2 + $0x351] sm:$0xff]  ;;  %v2409_v26 = vsel %vm2312_vm3, %v2280_v29, %v16499_v27 }
 0x55f   : > { %v14580_v30 = vpop.f32.mrf.mxu1  ;;  %7469 = vrot.lane.b32.xlu1 %v6626_v19, %s11286_s28  ;;  %7467 = vrot.lane.b32.xlu0 %v6625_v23, %s11286_s28  ;;  %16498 = vst [vmem:[#allocation5_spill] sm:$0xff] %v14588_v49  ;;  %v7749_v24 = vsel %vm618_vm0, %v6341_v1, %v6900_v62  ;;  %v16501_v41 = vld [vmem:[#allocation99_spill] sm:$0xff] }
 0x560   : > { %16495 = vst [vmem:[#allocation134_spill] sm:$0xff] %v14580_v30  ;;  %v7750_v30 = vsel %vm618_vm0, %v6342_v33, %v6902_v58  ;;  %v2281_v49 = vsel %vm618_vm0, %v873_v39, %v16501_v41  ;;  %v875_v58 = vld [vmem:[#allocation2 + $0x3d8] sm:$0xff]  ;;  %v16503_v33 = vld [vmem:[#allocation102_spill] sm:$0xff]  ;;  %v16504_v1 = vld [vmem:[#allocation227_spill] sm:$0xff] }
 0x561   : > { %v14593_v19 = vpop.f32.mrf.mxu1  ;;  %10981 = vmatmul.mubr.msk.f32.gmra.mxu1 %vm4108_vm4, %v2408_v18  ;;  %v7414_v23 = vpop.permute.xlu1 %7413  ;;  %v2282_v62 = vsel %vm618_vm0, %v874_v51, %v16503_v33  ;;  %v6628_v18 = vld [vmem:[#allocation2 + $0x352] sm:$0xff]  ;;  %v6627_v27 = vld [vmem:[#allocation2 + $0x34a] sm:$0xff] }
 0x562   : > { %16500 = vst [vmem:[#allocation8_spill] sm:$0xff] %v14593_v19  ;;  %v7878_v35 = vsel %vm2312_vm3, %v7750_v30, %v7414_v23  ;;  %v7412_v61 = vpop.permute.xlu0 %7411  ;;  %10983 = vmatprep.mubr.msk.f32.mxu1 %vm4108_vm4, %v2409_v26  ;;  %v2410_v30 = vsel %vm2312_vm3, %v2281_v49, %v16504_v1  ;;  %v876_v39 = vld [vmem:[#allocation2 + $0x3e8] sm:$0xff]  ;;  %v16507_v49 = vld [vmem:[#allocation101_spill] sm:$0xff]  ;;  %v6344_v41 = vld [vmem:[#allocation2 + $0x238] sm:$0xff] }
 0x563   : > { %v7877_v38 = vsel %vm2312_vm3, %v7749_v24, %v7412_v61  ;;  %v14602_v29 = vpop.f32.mrf.mxu1  ;;  %6961 = vrot.lane.b32.xlu1 %v6500_v20, %s11285_s27  ;;  %6959 = vrot.lane.b32.xlu0 %v6499_v54, %s11285_s27  ;;  %v16505_v26 = vld [vmem:[#allocation230_spill] sm:$0xff]  ;;  %v14613_v24 = vpop.f32.mrf.mxu0  ;;  %v6343_v33 = vld [vmem:[#allocation2 + $0x230] sm:$0xff]  ;;  %v16509_v1 = vld [vmem:[#allocation104_spill] sm:$0xff] }
 0x564   : > { %16502 = vst [vmem:[#allocation133_spill] sm:$0xff] %v14602_v29  ;;  %11102 = vmatprep.mubr.msk.f32.mxu0 %vm4108_vm4, %v7877_v38  ;;  %v2411_v23 = vsel %vm2312_vm3, %v2282_v62, %v16505_v26  ;;  %16506 = vst [vmem:[#allocation136_spill] sm:$0xff] %v14613_v24  ;;  %v2283_v38 = vsel %vm618_vm0, %v875_v58, %v16507_v49  ;;  %v877_v62 = vld [vmem:[#allocation2 + $0x3f0] sm:$0xff]  ;;  %v6502_v29 = vld [vmem:[#allocation2 + $0x361] sm:$0xff] }
 0x565   : > { %v10841_v20 = vpop.f32.mrf.mxu1  ;;  %10984 = vmatmul.mubr.msk.f32.gmra.mxu1 %vm4108_vm4, %v2410_v30  ;;  %11103 = vmatmul.mubr.msk.f32.gmra.mxu0 %vm4108_vm4, %v7878_v35  ;;  %v6906_v54 = vpop.permute.xlu1 %6905  ;;  %v2284_v30 = vsel %vm618_vm0, %v876_v39, %v16509_v1  ;;  %v16510_v35 = vld [vmem:[#allocation229_spill] sm:$0xff]  ;;  %v878_v19 = vld [vmem:[#allocation2 + $0x3f8] sm:$0xff]  ;;  %v16512_v39 = vld [vmem:[#allocation103_spill] sm:$0xff] }
 0x566   : > { %v6904_v51 = vpop.permute.xlu0 %6903  ;;  %10986 = vmatprep.mubr.msk.f32.mxu1 %vm4108_vm4, %v2411_v23  ;;  %v14620_v61 = vpop.f32.mrf.mxu0  ;;  %v2412_v26 = vsel %vm2312_vm3, %v2283_v38, %v16510_v35  ;;  %v6501_v23 = vld [vmem:[#allocation2 + $0x359] sm:$0xff]  ;;  %v2285_v38 = vsel %vm618_vm0, %v877_v62, %v16512_v39  ;;  %v6630_v62 = vld [vmem:[#allocation2 + $0x362] sm:$0xff] }
 0x567   : > { %16508 = vst [vmem:[#allocation7_spill] sm:$0xff] %v14620_v61  ;;  %7473 = vrot.lane.b32.xlu1 %v6628_v18, %s11286_s28  ;;  %7471 = vrot.lane.b32.xlu0 %v6627_v27, %s11286_s28  ;;  %v16511_v24 = vld [vmem:[#allocation232_spill] sm:$0xff]  ;;  %v5655_v49 = vpop.f32.mrf.mxu1  ;;  %v7752_v18 = vsel %vm618_vm0, %v6344_v41, %v6906_v54  ;;  %v7751_v27 = vsel %vm618_vm0, %v6343_v33, %v6904_v51  ;;  %v879_v54 = vld [vmem:[#allocation2 + $0x400] sm:$0xff]  ;;  %v16514_v41 = vld [vmem:[#allocation106_spill] sm:$0xff] }
 0x568   : > { %v2413_v58 = vsel %vm2312_vm3, %v2284_v30, %v16511_v24  ;;  %v14636_v1 = vpop.f32.mrf.mxu0  ;;  %v2286_v51 = vsel %vm618_vm0, %v878_v19, %v16514_v41  ;;  %v16515_v33 = vld [vmem:[#allocation231_spill] sm:$0xff]  ;;  %v14654_v19 = vld [vmem:[%s15809_s4] ss:$0 sm:$0xff] }
 0x569   : > { %10987 = vmatmul.mubr.msk.f32.gmra.mxu1 %vm4108_vm4, %v2412_v26  ;;  %v7418_v61 = vpop.permute.xlu1 %7417  ;;  %16513 = vst [vmem:[#allocation10_spill] sm:$0xff] %v14636_v1  ;;  %v2414_v30 = vsel %vm2312_vm3, %v2285_v38, %v16515_v33  ;;  %v5661_v26 = vadd.f32 %v10841_v20, %v13499_v13  ;;  %v881_v13 = vld [vmem:[#allocation2 + $0x418] sm:$0xff]  ;;  %v5656_v20 = vadd.f32 %v5655_v49, %v13511_v21  ;;  %v6346_v33 = vld [vmem:[#allocation2 + $0x248] sm:$0xff] }
 0x56a   : > { %v7416_v50 = vpop.permute.xlu0 %7415  ;;  %10989 = vmatprep.mubr.msk.f32.mxu1 %vm4108_vm4, %v2413_v58  ;;  %v7880_v35 = vsel %vm2312_vm3, %v7752_v18, %v7418_v61  ;;  %v6629_v58 = vld [vmem:[#allocation2 + $0x35a] sm:$0xff]  ;;  %v880_v61 = vld [vmem:[#allocation2 + $0x410] sm:$0xff]  ;;  %v16516_v18 = vld [vmem:[#allocation234_spill] sm:$0xff]  ;;  %v2289_v31 = vsel %vm618_vm0, %v881_v13, %v16520_v10 }
 0x56b   : > { %v7879_v24 = vsel %vm2312_vm3, %v7751_v27, %v7416_v50  ;;  %6965 = vrot.lane.b32.xlu1 %v6502_v29, %s11285_s27  ;;  %6963 = vrot.lane.b32.xlu0 %v6501_v23, %s11285_s27  ;;  %v2415_v50 = vsel %vm2312_vm3, %v2286_v51, %v16516_v18  ;;  %v10844_v29 = vpop.f32.mrf.mxu1  ;;  %v14664_v51 = vld [vmem:[%s15810_s5] ss:$0 sm:$0xff]  ;;  %v16518_v21 = vld [vmem:[#allocation108_spill] sm:$0xff] }
 0x56c   : > { %11105 = vmatprep.mubr.msk.f32.mxu0 %vm4108_vm4, %v7879_v24  ;;  %v16517_v24 = vld [vmem:[#allocation105_spill] sm:$0xff]  ;;  %v2288_v49 = vsel %vm618_vm0, %v880_v61, %v16518_v21  ;;  %v6503_v1 = vld [vmem:[#allocation2 + $0x371] sm:$0xff] }
 0x56d   : > { %10990 = vmatmul.mubr.msk.f32.gmra.mxu1 %vm4108_vm4, %v2414_v30  ;;  %v11035_v23 = vpop.f32.mrf.mxu0  ;;  %11106 = vmatmul.mubr.msk.f32.gmra.mxu0 %vm4108_vm4, %v7880_v35  ;;  %v6910_v39 = vpop.permute.xlu1 %6909  ;;  %v2287_v41 = vsel %vm618_vm0, %v879_v54, %v16517_v24  ;;  %v6345_v30 = vld [vmem:[#allocation2 + $0x240] sm:$0xff] }
 0x56e   : > { %v9054_v27 = vadd.f32 %v11035_v23, %v5661_v26  ;;  %v6908_v38 = vpop.permute.xlu0 %6907  ;;  %10992 = vmatprep.mubr.msk.f32.mxu1 %vm4108_vm4, %v2415_v50  ;;  %v882_v35 = vld [vmem:[#allocation2 + $0x420] sm:$0xff]  ;;  %v7754_v21 = vsel %vm618_vm0, %v6346_v33, %v6910_v39  ;;  %v883_v39 = vld [vmem:[#allocation2 + $0x428] sm:$0xff] }
 0x56f   : > { %v8414_v18 = vpop.f32.mrf.mxu0  ;;  %7477 = vrot.lane.b32.xlu1 %v6630_v62, %s11286_s28  ;;  %7475 = vrot.lane.b32.xlu0 %v6629_v58, %s11286_s28  ;;  %v16519_v26 = vld [vmem:[#allocation233_spill] sm:$0xff]  ;;  %v2417_v62 = vsel %vm2312_vm3, %v2288_v49, %v16521_v48  ;;  %v5665_v58 = vpop.f32.mrf.mxu1 }
 0x570   : > { %v2416_v50 = vsel %vm2312_vm3, %v2287_v41, %v16519_v26  ;;  %v9189_v54 = vmul.f32 %v14654_v19, %v9054_v27  ;;  %v9053_v23 = vadd.f32 %v8414_v18, %v5656_v20  ;;  %v6504_v24 = vld [vmem:[#allocation2 + $0x379] sm:$0xff]  ;;  %v7753_v41 = vsel %vm618_vm0, %v6345_v30, %v6908_v38  ;;  %v16522_v26 = vld [vmem:[#allocation110_spill] sm:$0xff]  ;;  %v16523_v38 = vld [vmem:[#allocation235_spill] sm:$0xff] }
 0x571   : > { %10993 = vmatmul.mubr.msk.f32.gmra.mxu1 %vm4108_vm4, %v2416_v50  ;;  %v7422_v20 = vpop.permute.xlu1 %7421  ;;  %v2290_v10 = vsel %vm618_vm0, %v882_v35, %v16522_v26  ;;  %v2418_v33 = vsel %vm2312_vm3, %v2289_v31, %v16523_v38  ;;  %v5671_v30 = vadd.f32 %v10844_v29, %v13523_v43  ;;  %v6632_v50 = vld [vmem:[#allocation2 + $0x37a] sm:$0xff]  ;;  %v5666_v43 = vadd.f32 %v5665_v58, %v13535_v40 }
 0x572   : > { %v9324_v61 = vadd.f32 %v14664_v51, %v9189_v54  ;;  %v9188_v27 = vmul.f32 %v14654_v19, %v9053_v23  ;;  %v7420_v18 = vpop.permute.xlu0 %7419  ;;  %10995 = vmatprep.mubr.msk.f32.mxu1 %vm4108_vm4, %v2417_v62  ;;  %v7882_v48 = vsel %vm2312_vm3, %v7754_v21, %v7422_v20  ;;  %v6631_v54 = vld [vmem:[#allocation2 + $0x372] sm:$0xff]  ;;  %v16524_v62 = vld [vmem:[#allocation238_spill] sm:$0xff]  ;;  %v10847_v21 = vpop.f32.mrf.mxu1  ;;  %v885_v31 = vld [vmem:[#allocation2 + $0x440] sm:$0xff] }
 0x573   : > { %v7881_v13 = vsel %vm2312_vm3, %v7753_v41, %v7420_v18  ;;  %6969 = vrot.lane.b32.xlu1 %v6504_v24, %s11285_s27  ;;  %6967 = vrot.lane.b32.xlu0 %v6503_v1, %s11285_s27  ;;  %v884_v23 = vld [vmem:[#allocation2 + $0x438] sm:$0xff]  ;;  %v2419_v24 = vsel %vm2312_vm3, %v2290_v10, %v16524_v62  ;;  %v16525_v20 = vld [vmem:[#allocation109_spill] sm:$0xff]  ;;  %v16528_v62 = vld [vmem:[#allocation111_spill] sm:$0xff] }
 0x574   : > { %v9452_v49 = vmax.f32 %v9324_v61, 0.0  ;;  %v9323_v35 = vadd.f32 %v14664_v51, %v9188_v27  ;;  %11108 = vmatprep.mubr.msk.f32.mxu0 %vm4108_vm4, %v7881_v13  ;;  %v2291_v18 = vsel %vm618_vm0, %v883_v39, %v16525_v20  ;;  %v6348_v26 = vld [vmem:[#allocation2 + $0x260] sm:$0xff]  ;;  %v6347_v10 = vld [vmem:[#allocation2 + $0x258] sm:$0xff]  ;;  %v6506_v39 = vld [vmem:[#allocation2 + $0x389] sm:$0xff] }
 0x575   : > { %10996 = vmatmul.mubr.msk.f32.gmra.mxu1 %vm4108_vm4, %v2418_v33  ;;  %v11038_v1 = vpop.f32.mrf.mxu0  ;;  %11109 = vmatmul.mubr.msk.f32.gmra.mxu0 %vm4108_vm4, %v7882_v48  ;;  %v6914_v41 = vpop.permute.xlu1 %6913  ;;  %v16526_v40 = vld [vmem:[#allocation112_spill] sm:$0xff]  ;;  %v886_v48 = vld [vmem:[#allocation2 + $0x448] sm:$0xff]  ;;  %v16527_v38 = vld [vmem:[#allocation237_spill] sm:$0xff] }
 0x576   : > { %9580 = vst.msk [vmem:[%s14690_s17 + $0x8] sm:$0xff] %vm618_vm0, %v9452_v49  ;;  %v9451_v29 = vmax.f32 %v9323_v35, 0.0  ;;  %v9056_v61 = vadd.f32 %v11038_v1, %v5671_v30  ;;  %v6912_v27 = vpop.permute.xlu0 %6911  ;;  %10998 = vmatprep.mubr.msk.f32.mxu1 %vm4108_vm4, %v2419_v24  ;;  %v2292_v58 = vsel %vm618_vm0, %v884_v23, %v16526_v40  ;;  %v2420_v33 = vsel %vm2312_vm3, %v2291_v18, %v16527_v38  ;;  %v6505_v35 = vld [vmem:[#allocation2 + $0x381] sm:$0xff]  ;;  %v5675_v1 = vpop.f32.mrf.mxu1 }
 0x577   : > { %v8424_v13 = vpop.f32.mrf.mxu0  ;;  %7481 = vrot.lane.b32.xlu1 %v6632_v50, %s11286_s28  ;;  %7479 = vrot.lane.b32.xlu0 %v6631_v54, %s11286_s28  ;;  %v2293_v24 = vsel %vm618_vm0, %v885_v31, %v16528_v62  ;;  %v16529_v50 = vld [vmem:[#allocation240_spill] sm:$0xff]  ;;  %v7756_v20 = vsel %vm618_vm0, %v6348_v26, %v6914_v41  ;;  %v887_v41 = vld [vmem:[#allocation2 + $0x450] sm:$0xff]  ;;  %v16532_v62 = vld [vmem:[#allocation242_spill] sm:$0xff] }
 0x578   : > { %9579 = vst.msk [vmem:[%s14690_s17] sm:$0xff] %vm618_vm0, %v9451_v29  ;;  %v9191_v30 = vmul.f32 %v14654_v19, %v9056_v61  ;;  %v9055_v49 = vadd.f32 %v8424_v13, %v5666_v43  ;;  %v2421_v54 = vsel %vm2312_vm3, %v2292_v58, %v16529_v50  ;;  %v7755_v29 = vsel %vm618_vm0, %v6347_v10, %v6912_v27  ;;  %v16530_v13 = vld [vmem:[#allocation114_spill] sm:$0xff]  ;;  %v16531_v26 = vld [vmem:[#allocation239_spill] sm:$0xff]  ;;  %v10850_v50 = vpop.f32.mrf.mxu1 }
 0x579   : > { %10999 = vmatmul.mubr.msk.f32.gmra.mxu1 %vm4108_vm4, %v2420_v33  ;;  %v7426_v43 = vpop.permute.xlu1 %7425  ;;  %v2294_v31 = vsel %vm618_vm0, %v886_v48, %v16530_v13  ;;  %v2422_v27 = vsel %vm2312_vm3, %v2293_v24, %v16531_v26  ;;  %v5681_v10 = vadd.f32 %v10847_v21, %v13547_v42  ;;  %v6634_v48 = vld [vmem:[#allocation2 + $0x38a] sm:$0xff]  ;;  %v5676_v42 = vadd.f32 %v5675_v1, %v13559_v46  ;;  %v16534_v46 = vld [vmem:[#allocation116_spill] sm:$0xff] }
 0x57a   : > { %v9326_v23 = vadd.f32 %v14664_v51, %v9191_v30  ;;  %v9190_v61 = vmul.f32 %v14654_v19, %v9055_v49  ;;  %v7424_v18 = vpop.permute.xlu0 %7423  ;;  %11001 = vmatprep.mubr.msk.f32.mxu1 %vm4108_vm4, %v2421_v54  ;;  %v7884_v40 = vsel %vm2312_vm3, %v7756_v20, %v7426_v43  ;;  %v6633_v30 = vld [vmem:[#allocation2 + $0x382] sm:$0xff]  ;;  %v6350_v43 = vld [vmem:[#allocation2 + $0x270] sm:$0xff] }
 0x57b   : > { %v7883_v58 = vsel %vm2312_vm3, %v7755_v29, %v7424_v18  ;;  %6973 = vrot.lane.b32.xlu1 %v6506_v39, %s11285_s27  ;;  %6971 = vrot.lane.b32.xlu0 %v6505_v35, %s11285_s27  ;;  %v888_v49 = vld [vmem:[#allocation2 + $0x460] sm:$0xff]  ;;  %v2423_v39 = vsel %vm2312_vm3, %v2294_v31, %v16532_v62  ;;  %v889_v24 = vld [vmem:[#allocation2 + $0x468] sm:$0xff]  ;;  %v890_v31 = vld [vmem:[#allocation2 + $0x470] sm:$0xff]  ;;  %v5685_v62 = vpop.f32.mrf.mxu1 }
 0x57c   : > { %v9454_v38 = vmax.f32 %v9326_v23, 0.0  ;;  %v9325_v33 = vadd.f32 %v14664_v51, %v9190_v61  ;;  %11111 = vmatprep.mubr.msk.f32.mxu0 %vm4108_vm4, %v7883_v58  ;;  %v16533_v29 = vld [vmem:[#allocation113_spill] sm:$0xff]  ;;  %v6349_v18 = vld [vmem:[#allocation2 + $0x268] sm:$0xff]  ;;  %v2296_v1 = vsel %vm618_vm0, %v888_v49, %v16534_v46 }
 0x57d   : > { %11002 = vmatmul.mubr.msk.f32.gmra.mxu1 %vm4108_vm4, %v2422_v27  ;;  %v11041_v35 = vpop.f32.mrf.mxu0  ;;  %11112 = vmatmul.mubr.msk.f32.gmra.mxu0 %vm4108_vm4, %v7884_v40  ;;  %v6918_v23 = vpop.permute.xlu1 %6917  ;;  %v2295_v61 = vsel %vm618_vm0, %v887_v41, %v16533_v29  ;;  %v16535_v40 = vld [vmem:[#allocation241_spill] sm:$0xff]  ;;  %v16538_v29 = vld [vmem:[#allocation118_spill] sm:$0xff] }
 0x57e   : > { %9582 = vst.msk [vmem:[%s14690_s17 + $0x18] sm:$0xff] %vm618_vm0, %v9454_v38  ;;  %v9453_v21 = vmax.f32 %v9325_v33, 0.0  ;;  %v9058_v54 = vadd.f32 %v11041_v35, %v5681_v10  ;;  %v6916_v20 = vpop.permute.xlu0 %6915  ;;  %11004 = vmatprep.mubr.msk.f32.mxu1 %vm4108_vm4, %v2423_v39  ;;  %v2424_v58 = vsel %vm2312_vm3, %v2295_v61, %v16535_v40  ;;  %v6508_v41 = vld [vmem:[#allocation2 + $0x3a1] sm:$0xff]  ;;  %v6507_v10 = vld [vmem:[#allocation2 + $0x399] sm:$0xff]  ;;  %v16536_v38 = vld [vmem:[#allocation115_spill] sm:$0xff]  ;;  %v7758_v39 = vsel %vm618_vm0, %v6350_v43, %v6918_v23 }
 0x57f   : > { %v8434_v13 = vpop.f32.mrf.mxu0  ;;  %7485 = vrot.lane.b32.xlu1 %v6634_v48, %s11286_s28  ;;  %7483 = vrot.lane.b32.xlu0 %v6633_v30, %s11286_s28  ;;  %v2297_v33 = vsel %vm618_vm0, %v889_v24, %v16536_v38  ;;  %v16537_v48 = vld [vmem:[#allocation244_spill] sm:$0xff]  ;;  %v7757_v35 = vsel %vm618_vm0, %v6349_v18, %v6916_v20  ;;  %v2298_v24 = vsel %vm618_vm0, %v890_v31, %v16538_v29  ;;  %v16539_v43 = vld [vmem:[#allocation243_spill] sm:$0xff]  ;;  %v6636_v31 = vld [vmem:[#allocation2 + $0x3a2] sm:$0xff] }
 0x580   : > { %9581 = vst.msk [vmem:[%s14690_s17 + $0x10] sm:$0xff] %vm618_vm0, %v9453_v21  ;;  %v9193_v26 = vmul.f32 %v14654_v19, %v9058_v54  ;;  %v9057_v27 = vadd.f32 %v8434_v13, %v5676_v42  ;;  %v2425_v30 = vsel %vm2312_vm3, %v2296_v1, %v16537_v48  ;;  %v891_v23 = vld [vmem:[#allocation2 + $0x478] sm:$0xff]  ;;  %v2426_v20 = vsel %vm2312_vm3, %v2297_v33, %v16539_v43  ;;  %v893_v38 = vld [vmem:[#allocation2 + $0x490] sm:$0xff]  ;;  %v16543_v29 = vld [vmem:[#allocation245_spill] sm:$0xff] }
 0x581   : > { %11005 = vmatmul.mubr.msk.f32.gmra.mxu1 %vm4108_vm4, %v2424_v58  ;;  %v7430_v42 = vpop.permute.xlu1 %7429  ;;  %v5691_v18 = vadd.f32 %v10850_v50, %v13571_v47  ;;  %v6635_v40 = vld [vmem:[#allocation2 + $0x39a] sm:$0xff]  ;;  %v892_v58 = vld [vmem:[#allocation2 + $0x488] sm:$0xff]  ;;  %v5686_v47 = vadd.f32 %v5685_v62, %v13583_v55 }
 0x582   : > { %v9328_v49 = vadd.f32 %v14664_v51, %v9193_v26  ;;  %v9192_v21 = vmul.f32 %v14654_v19, %v9057_v27  ;;  %v7428_v54 = vpop.permute.xlu0 %7427  ;;  %11007 = vmatprep.mubr.msk.f32.mxu1 %vm4108_vm4, %v2425_v30  ;;  %v7886_v61 = vsel %vm2312_vm3, %v7758_v39, %v7430_v42  ;;  %v16540_v26 = vld [vmem:[#allocation246_spill] sm:$0xff]  ;;  %v16542_v55 = vld [vmem:[#allocation120_spill] sm:$0xff] }
 0x583   : > { %v7885_v13 = vsel %vm2312_vm3, %v7757_v35, %v7428_v54  ;;  %6977 = vrot.lane.b32.xlu1 %v6508_v41, %s11285_s27  ;;  %6975 = vrot.lane.b32.xlu0 %v6507_v10, %s11285_s27  ;;  %v2427_v27 = vsel %vm2312_vm3, %v2298_v24, %v16540_v26  ;;  %v10853_v41 = vpop.f32.mrf.mxu1  ;;  %v6352_v35 = vld [vmem:[#allocation2 + $0x288] sm:$0xff]  ;;  %v2300_v62 = vsel %vm618_vm0, %v892_v58, %v16542_v55  ;;  %v894_v54 = vld [vmem:[#allocation2 + $0x498] sm:$0xff] }
 0x584   : > { %v9456_v46 = vmax.f32 %v9328_v49, 0.0  ;;  %v9327_v1 = vadd.f32 %v14664_v51, %v9192_v21  ;;  %11114 = vmatprep.mubr.msk.f32.mxu0 %vm4108_vm4, %v7885_v13  ;;  %v16541_v49 = vld [vmem:[#allocation117_spill] sm:$0xff]  ;;  %v6509_v43 = vld [vmem:[#allocation2 + $0x3a9] sm:$0xff]  ;;  %v6638_v55 = vld [vmem:[#allocation2 + $0x3b2] sm:$0xff] }
 0x585   : > { %11008 = vmatmul.mubr.msk.f32.gmra.mxu1 %vm4108_vm4, %v2426_v20  ;;  %v11044_v10 = vpop.f32.mrf.mxu0  ;;  %11115 = vmatmul.mubr.msk.f32.gmra.mxu0 %vm4108_vm4, %v7886_v61  ;;  %v6922_v48 = vpop.permute.xlu1 %6921  ;;  %v2299_v39 = vsel %vm618_vm0, %v891_v23, %v16541_v49  ;;  %v6351_v21 = vld [vmem:[#allocation2 + $0x280] sm:$0xff]  ;;  %v6510_v23 = vld [vmem:[#allocation2 + $0x3b1] sm:$0xff] }
 0x586   : > { %9584 = vst.msk [vmem:[%s14690_s17 + $0x28] sm:$0xff] %vm618_vm0, %v9456_v46  ;;  %v9455_v50 = vmax.f32 %v9327_v1, 0.0  ;;  %v9060_v33 = vadd.f32 %v11044_v10, %v5691_v18  ;;  %v6920_v30 = vpop.permute.xlu0 %6919  ;;  %11010 = vmatprep.mubr.msk.f32.mxu1 %vm4108_vm4, %v2427_v27  ;;  %v2428_v24 = vsel %vm2312_vm3, %v2299_v39, %v16543_v29  ;;  %v16544_v20 = vld [vmem:[#allocation119_spill] sm:$0xff]  ;;  %v16545_v46 = vld [vmem:[#allocation248_spill] sm:$0xff]  ;;  %v7760_v58 = vsel %vm618_vm0, %v6352_v35, %v6922_v48  ;;  %v895_v48 = vld [vmem:[#allocation2 + $0x4a0] sm:$0xff] }
 0x587   : > { %v8444_v42 = vpop.f32.mrf.mxu0  ;;  %7489 = vrot.lane.b32.xlu1 %v6636_v31, %s11286_s28  ;;  %7487 = vrot.lane.b32.xlu0 %v6635_v40, %s11286_s28  ;;  %v2301_v18 = vsel %vm618_vm0, %v893_v38, %v16544_v20  ;;  %v2429_v1 = vsel %vm2312_vm3, %v2300_v62, %v16545_v46  ;;  %v5695_v31 = vpop.f32.mrf.mxu1  ;;  %v7759_v26 = vsel %vm618_vm0, %v6351_v21, %v6920_v30  ;;  %v16547_v39 = vld [vmem:[#allocation247_spill] sm:$0xff]  ;;  %v16548_v29 = vld [vmem:[#allocation250_spill] sm:$0xff]  ;;  %v16549_v46 = vld [vmem:[#allocation121_spill] sm:$0xff] }
 0x588   : > { %9583 = vst.msk [vmem:[%s14690_s17 + $0x20] sm:$0xff] %vm618_vm0, %v9455_v50  ;;  %v9195_v61 = vmul.f32 %v14654_v19, %v9060_v33  ;;  %v9059_v13 = vadd.f32 %v8444_v42, %v5686_v47  ;;  %v16546_v50 = vld [vmem:[#allocation122_spill] sm:$0xff]  ;;  %v2430_v30 = vsel %vm2312_vm3, %v2301_v18, %v16547_v39  ;;  %v5701_v35 = vadd.f32 %v10853_v41, %v13595_v56 }
 0x589   : > { %11011 = vmatmul.mubr.msk.f32.gmra.mxu1 %vm4108_vm4, %v2428_v24  ;;  %v7434_v10 = vpop.permute.xlu1 %7433  ;;  %v2302_v38 = vsel %vm618_vm0, %v894_v54, %v16546_v50  ;;  %v6637_v62 = vld [vmem:[#allocation2 + $0x3aa] sm:$0xff]  ;;  %v5696_v56 = vadd.f32 %v5695_v31, %v13607_v37  ;;  %v16550_v37 = vld [vmem:[#allocation124_spill] sm:$0xff] }
 0x58a   : > { %v9330_v40 = vadd.f32 %v14664_v51, %v9195_v61  ;;  %v9194_v27 = vmul.f32 %v14654_v19, %v9059_v13  ;;  %v7432_v47 = vpop.permute.xlu0 %7431  ;;  %11013 = vmatprep.mubr.msk.f32.mxu1 %vm4108_vm4, %v2429_v1  ;;  %v7888_v33 = vsel %vm2312_vm3, %v7760_v58, %v7434_v10  ;;  %v896_v54 = vld [vmem:[#allocation2 + $0x4b0] sm:$0xff]  ;;  %v2431_v24 = vsel %vm2312_vm3, %v2302_v38, %v16548_v29  ;;  %v10856_v61 = vpop.f32.mrf.mxu1  ;;  %v16551_v10 = vld [vmem:[#allocation249_spill] sm:$0xff] }
 0x58b   : > { %v7887_v49 = vsel %vm2312_vm3, %v7759_v26, %v7432_v47  ;;  %6981 = vrot.lane.b32.xlu1 %v6510_v23, %s11285_s27  ;;  %6979 = vrot.lane.b32.xlu0 %v6509_v43, %s11285_s27  ;;  %v897_v23 = vld [vmem:[#allocation2 + $0x4b8] sm:$0xff]  ;;  %v2303_v1 = vsel %vm618_vm0, %v895_v48, %v16549_v46  ;;  %v6353_v58 = vld [vmem:[#allocation2 + $0x290] sm:$0xff]  ;;  %v2304_v31 = vsel %vm618_vm0, %v896_v54, %v16550_v37 }
 0x58c   : > { %v9458_v21 = vmax.f32 %v9330_v40, 0.0  ;;  %v9329_v42 = vadd.f32 %v14664_v51, %v9194_v27  ;;  %11117 = vmatprep.mubr.msk.f32.mxu0 %vm4108_vm4, %v7887_v49  ;;  %v6354_v40 = vld [vmem:[#allocation2 + $0x298] sm:$0xff]  ;;  %v898_v27 = vld [vmem:[#allocation2 + $0x4c0] sm:$0xff]  ;;  %v2432_v47 = vsel %vm2312_vm3, %v2303_v1, %v16551_v10  ;;  %v16552_v48 = vld [vmem:[#allocation123_spill] sm:$0xff]  ;;  %v5711_v46 = vadd.f32 %v10856_v61, %v13619_v7 }
 0x58d   : > { %11014 = vmatmul.mubr.msk.f32.gmra.mxu1 %vm4108_vm4, %v2430_v30  ;;  %v11047_v13 = vpop.f32.mrf.mxu0  ;;  %11118 = vmatmul.mubr.msk.f32.gmra.mxu0 %vm4108_vm4, %v7888_v33  ;;  %v6926_v20 = vpop.permute.xlu1 %6925  ;;  %v6512_v33 = vld [vmem:[#allocation2 + $0x3c9] sm:$0xff]  ;;  %v6511_v49 = vld [vmem:[#allocation2 + $0x3c1] sm:$0xff]  ;;  %v2305_v39 = vsel %vm618_vm0, %v897_v23, %v16552_v48  ;;  %v16553_v30 = vld [vmem:[#allocation252_spill] sm:$0xff] }
 0x58e   : > { %9586 = vst.msk [vmem:[%s14690_s17 + $0x38] sm:$0xff] %vm618_vm0, %v9458_v21  ;;  %v9457_v41 = vmax.f32 %v9329_v42, 0.0  ;;  %v9062_v43 = vadd.f32 %v11047_v13, %v5701_v35  ;;  %v6924_v18 = vpop.permute.xlu0 %6923  ;;  %11016 = vmatprep.mubr.msk.f32.mxu1 %vm4108_vm4, %v2431_v24  ;;  %v2433_v35 = vsel %vm2312_vm3, %v2304_v31, %v16553_v30  ;;  %v5705_v21 = vpop.f32.mrf.mxu1  ;;  %v16554_v13 = vld [vmem:[#allocation126_spill] sm:$0xff]  ;;  %v900_v37 = vld [vmem:[#allocation2 + $0x4d8] sm:$0xff]  ;;  %v16557_v48 = vld [vmem:[#allocation125_spill] sm:$0xff] }
 0x58f   : > { %v8454_v26 = vpop.f32.mrf.mxu0  ;;  %7493 = vrot.lane.b32.xlu1 %v6638_v55, %s11286_s28  ;;  %7491 = vrot.lane.b32.xlu0 %v6637_v62, %s11286_s28  ;;  %v7762_v55 = vsel %vm618_vm0, %v6354_v40, %v6926_v20  ;;  %v7761_v62 = vsel %vm618_vm0, %v6353_v58, %v6924_v18  ;;  %v2306_v23 = vsel %vm618_vm0, %v898_v27, %v16554_v13  ;;  %v16555_v20 = vld [vmem:[#allocation251_spill] sm:$0xff]  ;;  %v16556_v31 = vld [vmem:[#allocation254_spill] sm:$0xff]  ;;  %v6514_v13 = vld [vmem:[#allocation2 + $0x3d9] sm:$0xff] }
 0x590   : > { %9585 = vst.msk [vmem:[%s14690_s17 + $0x30] sm:$0xff] %vm618_vm0, %v9457_v41  ;;  %v9197_v50 = vmul.f32 %v14654_v19, %v9062_v43  ;;  %v9061_v38 = vadd.f32 %v8454_v26, %v5696_v56  ;;  %v899_v43 = vld [vmem:[#allocation2 + $0x4c8] sm:$0xff]  ;;  %v2434_v18 = vsel %vm2312_vm3, %v2305_v39, %v16555_v20  ;;  %v2435_v27 = vsel %vm2312_vm3, %v2306_v23, %v16556_v31  ;;  %v10859_v10 = vpop.f32.mrf.mxu1  ;;  %v6356_v30 = vld [vmem:[#allocation2 + $0x2b0] sm:$0xff] }
 0x591   : > { %11017 = vmatmul.mubr.msk.f32.gmra.mxu1 %vm4108_vm4, %v2432_v47  ;;  %v7438_v29 = vpop.permute.xlu1 %7437  ;;  %v6640_v58 = vld [vmem:[#allocation2 + $0x3ca] sm:$0xff]  ;;  %v6639_v26 = vld [vmem:[#allocation2 + $0x3c2] sm:$0xff]  ;;  %v5706_v7 = vadd.f32 %v5705_v21, %v13631_v36  ;;  %v2307_v39 = vsel %vm618_vm0, %v899_v43, %v16557_v48  ;;  %v16558_v36 = vld [vmem:[#allocation128_spill] sm:$0xff] }
 0x592   : > { %v9332_v42 = vadd.f32 %v14664_v51, %v9197_v50  ;;  %v9196_v54 = vmul.f32 %v14654_v19, %v9061_v38  ;;  %v7436_v24 = vpop.permute.xlu0 %7435  ;;  %11019 = vmatprep.mubr.msk.f32.mxu1 %vm4108_vm4, %v2433_v35  ;;  %v7890_v56 = vsel %vm2312_vm3, %v7762_v55, %v7438_v29  ;;  %v901_v50 = vld [vmem:[#allocation2 + $0x4e0] sm:$0xff]  ;;  %v6355_v35 = vld [vmem:[#allocation2 + $0x2a8] sm:$0xff]  ;;  %v2308_v21 = vsel %vm618_vm0, %v900_v37, %v16558_v36  ;;  %v6513_v23 = vld [vmem:[#allocation2 + $0x3d1] sm:$0xff] }
 0x593   : > { %v7889_v41 = vsel %vm2312_vm3, %v7761_v62, %v7436_v24  ;;  %6985 = vrot.lane.b32.xlu1 %v6512_v33, %s11285_s27  ;;  %6983 = vrot.lane.b32.xlu0 %v6511_v49, %s11285_s27  ;;  %v902_v55 = vld [vmem:[#allocation2 + $0x4e8] sm:$0xff]  ;;  %v16559_v62 = vld [vmem:[#allocation253_spill] sm:$0xff]  ;;  %v16561_v43 = vld [vmem:[#allocation256_spill] sm:$0xff] }
 0x594   : > { %v9460_v1 = vmax.f32 %v9332_v42, 0.0  ;;  %v9331_v40 = vadd.f32 %v14664_v51, %v9196_v54  ;;  %11120 = vmatprep.mubr.msk.f32.mxu0 %vm4108_vm4, %v7889_v41  ;;  %v2436_v54 = vsel %vm2312_vm3, %v2307_v39, %v16559_v62  ;;  %v2437_v20 = vsel %vm2312_vm3, %v2308_v21, %v16561_v43  ;;  %v16562_v31 = vld [vmem:[#allocation130_spill] sm:$0xff]  ;;  %v6642_v39 = vld [vmem:[#allocation2 + $0x3da] sm:$0xff] }
 0x595   : > { %11020 = vmatmul.mubr.msk.f32.gmra.mxu1 %vm4108_vm4, %v2434_v18  ;;  %v11050_v47 = vpop.f32.mrf.mxu0  ;;  %11121 = vmatmul.mubr.msk.f32.gmra.mxu0 %vm4108_vm4, %v7890_v56  ;;  %v6930_v33 = vpop.permute.xlu1 %6929  ;;  %v16560_v56 = vld [vmem:[#allocation127_spill] sm:$0xff] }
 0x596   : > { %9588 = vst.msk [vmem:[%s14690_s17 + $0x48] sm:$0xff] %vm618_vm0, %v9460_v1  ;;  %v9459_v61 = vmax.f32 %v9331_v40, 0.0  ;;  %v9064_v38 = vadd.f32 %v11050_v47, %v5711_v46  ;;  %v6928_v49 = vpop.permute.xlu0 %6927  ;;  %11022 = vmatprep.mubr.msk.f32.mxu1 %vm4108_vm4, %v2435_v27  ;;  %v2309_v41 = vsel %vm618_vm0, %v901_v50, %v16560_v56  ;;  %v5715_v18 = vpop.f32.mrf.mxu1  ;;  %v7764_v1 = vsel %vm618_vm0, %v6356_v30, %v6930_v33  ;;  %v6641_v30 = vld [vmem:[#allocation2 + $0x3d2] sm:$0xff] }
 0x597   : > { %v8464_v42 = vpop.f32.mrf.mxu0  ;;  %7497 = vrot.lane.b32.xlu1 %v6640_v58, %s11286_s28  ;;  %7495 = vrot.lane.b32.xlu0 %v6639_v26, %s11286_s28  ;;  %v7763_v40 = vsel %vm618_vm0, %v6355_v35, %v6928_v49  ;;  %v2310_v27 = vsel %vm618_vm0, %v902_v55, %v16562_v31  ;;  %v5721_v33 = vadd.f32 %v10859_v10, %v13645_v25  ;;  %v16564_v35 = vld [vmem:[#allocation258_spill] sm:$0xff] }
 0x598   : > { %9587 = vst.msk [vmem:[%s14690_s17 + $0x40] sm:$0xff] %vm618_vm0, %v9459_v61  ;;  %v9199_v29 = vmul.f32 %v14654_v19, %v9064_v38  ;;  %v9063_v24 = vadd.f32 %v8464_v42, %v5706_v7  ;;  %v903_v7 = vld [vmem:[#allocation2 + $0x4f0] sm:$0xff]  ;;  %v2439_v42 = vsel %vm2312_vm3, %v2310_v27, %v16564_v35  ;;  %v10862_v36 = vpop.f32.mrf.mxu1  ;;  %v5716_v55 = vadd.f32 %v5715_v18, %v13666_v34 }
 0x599   : > { %11023 = vmatmul.mubr.msk.f32.gmra.mxu1 %vm4108_vm4, %v2436_v54  ;;  %v7442_v26 = vpop.permute.xlu1 %7441  ;;  %v16563_v61 = vld [vmem:[#allocation255_spill] sm:$0xff] }
 0x59a   : > { %v9334_v46 = vadd.f32 %v14664_v51, %v9199_v29  ;;  %v9198_v58 = vmul.f32 %v14654_v19, %v9063_v24  ;;  %v7440_v37 = vpop.permute.xlu0 %7439  ;;  %11025 = vmatprep.mubr.msk.f32.mxu1 %vm4108_vm4, %v2437_v20  ;;  %v7892_v47 = vsel %vm2312_vm3, %v7764_v1, %v7442_v26  ;;  %v2438_v38 = vsel %vm2312_vm3, %v2309_v41, %v16563_v61  ;;  %v16565_v29 = vld [vmem:[#allocation129_spill] sm:$0xff]  ;;  %v6516_v18 = vld [vmem:[#allocation2 + $0x3f1] sm:$0xff]  ;;  %v5725_v1 = vpop.f32.mrf.mxu1 }
 0x59b   : > { %v7891_v50 = vsel %vm2312_vm3, %v7763_v40, %v7440_v37  ;;  %6989 = vrot.lane.b32.xlu1 %v6514_v13, %s11285_s27  ;;  %6987 = vrot.lane.b32.xlu0 %v6513_v23, %s11285_s27  ;;  %v2311_v24 = vsel %vm618_vm0, %v903_v7, %v16565_v29  ;;  %v6358_v13 = vld [vmem:[#allocation2 + $0x2c0] sm:$0xff]  ;;  %v6357_v23 = vld [vmem:[#allocation2 + $0x2b8] sm:$0xff]  ;;  %v5731_v7 = vadd.f32 %v10862_v36, %v13682_v60 }
 0x59c   : > { %v9462_v49 = vmax.f32 %v9334_v46, 0.0  ;;  %v9333_v48 = vadd.f32 %v14664_v51, %v9198_v58  ;;  %11123 = vmatprep.mubr.msk.f32.mxu0 %vm4108_vm4, %v7891_v50  ;;  %v16566_v41 = vld [vmem:[#allocation257_spill] sm:$0xff]  ;;  %v6515_v46 = vld [vmem:[#allocation2 + $0x3e9] sm:$0xff]  ;;  %v10865_v60 = vpop.f32.mrf.mxu1  ;;  %v6360_v36 = vld [vmem:[#allocation2 + $0x2d8] sm:$0xff] }
 0x59d   : > { %11026 = vmatmul.mubr.msk.f32.gmra.mxu1 %vm4108_vm4, %v2438_v38  ;;  %v11053_v21 = vpop.f32.mrf.mxu0  ;;  %11124 = vmatmul.mubr.msk.f32.gmra.mxu0 %vm4108_vm4, %v7892_v47  ;;  %v6934_v62 = vpop.permute.xlu1 %6933  ;;  %v2440_v34 = vsel %vm2312_vm3, %v2311_v24, %v16566_v41 }
 0x59e   : > { %9590 = vst.msk [vmem:[%s14690_s17 + $0x58] sm:$0xff] %vm618_vm0, %v9462_v49  ;;  %v9461_v25 = vmax.f32 %v9333_v48, 0.0  ;;  %v9066_v10 = vadd.f32 %v11053_v21, %v5721_v33  ;;  %v6932_v54 = vpop.permute.xlu0 %6931  ;;  %11028 = vmatprep.mubr.msk.f32.mxu1 %vm4108_vm4, %v2439_v42  ;;  %v7766_v58 = vsel %vm618_vm0, %v6358_v13, %v6934_v62  ;;  %v6644_v33 = vld [vmem:[#allocation2 + $0x3f2] sm:$0xff]  ;;  %v6643_v49 = vld [vmem:[#allocation2 + $0x3ea] sm:$0xff] }
 0x59f   : > { %v8474_v56 = vpop.f32.mrf.mxu0  ;;  %7501 = vrot.lane.b32.xlu1 %v6642_v39, %s11286_s28  ;;  %7499 = vrot.lane.b32.xlu0 %v6641_v30, %s11286_s28  ;;  %v7765_v26 = vsel %vm618_vm0, %v6357_v23, %v6932_v54  ;;  %v5726_v39 = vadd.f32 %v5725_v1, %v13700_v16  ;;  %v6518_v16 = vld [vmem:[#allocation2 + $0x401] sm:$0xff]  ;;  %v6517_v54 = vld [vmem:[#allocation2 + $0x3f9] sm:$0xff] }
 0x5a0   : > { %9589 = vst.msk [vmem:[%s14690_s17 + $0x50] sm:$0xff] %vm618_vm0, %v9461_v25  ;;  %v9201_v43 = vmul.f32 %v14654_v19, %v9066_v10  ;;  %v9065_v20 = vadd.f32 %v8474_v56, %v5716_v55  ;;  %v6359_v55 = vld [vmem:[#allocation2 + $0x2d0] sm:$0xff] }
 0x5a1   : > { %11029 = vmatmul.mubr.msk.f32.gmra.mxu1 %vm4108_vm4, %v2440_v34  ;;  %v7446_v31 = vpop.permute.xlu1 %7445  ;;  %v5735_v34 = vpop.f32.mrf.mxu1 }
 0x5a2   : > { %v9336_v40 = vadd.f32 %v14664_v51, %v9201_v43  ;;  %v9200_v37 = vmul.f32 %v14654_v19, %v9065_v20  ;;  %v7444_v27 = vpop.permute.xlu0 %7443  ;;  %v7894_v47 = vsel %vm2312_vm3, %v7766_v58, %v7446_v31  ;;  %v6645_v58 = vld [vmem:[#allocation2 + $0x3fa] sm:$0xff] }
 0x5a3   : > { %v7893_v50 = vsel %vm2312_vm3, %v7765_v26, %v7444_v27  ;;  %6993 = vrot.lane.b32.xlu1 %v6516_v18, %s11285_s27  ;;  %6991 = vrot.lane.b32.xlu0 %v6515_v46, %s11285_s27  ;;  %v5741_v18 = vadd.f32 %v10865_v60, %v13716_v52  ;;  %v10868_v52 = vpop.f32.mrf.mxu1 }
 0x5a4   : > { %v9464_v61 = vmax.f32 %v9336_v40, 0.0  ;;  %v9335_v38 = vadd.f32 %v14664_v51, %v9200_v37  ;;  %11126 = vmatprep.mubr.msk.f32.mxu0 %vm4108_vm4, %v7893_v50  ;;  %v6646_v40 = vld [vmem:[#allocation2 + $0x402] sm:$0xff]  ;;  %v5736_v37 = vadd.f32 %v5735_v34, %v13734_v45  ;;  %v6520_v45 = vld [vmem:[#allocation2 + $0x419] sm:$0xff] }
 0x5a5   : > { %v11056_v48 = vpop.f32.mrf.mxu0  ;;  %11127 = vmatmul.mubr.msk.f32.gmra.mxu0 %vm4108_vm4, %v7894_v47  ;;  %v6938_v42 = vpop.permute.xlu1 %6937 }
 0x5a6   : > { %9592 = vst.msk [vmem:[%s14690_s17 + $0x68] sm:$0xff] %vm618_vm0, %v9464_v61  ;;  %v9463_v30 = vmax.f32 %v9335_v38, 0.0  ;;  %v9068_v35 = vadd.f32 %v11056_v48, %v5731_v7  ;;  %v6936_v21 = vpop.permute.xlu0 %6935  ;;  %v7768_v24 = vsel %vm618_vm0, %v6360_v36, %v6938_v42  ;;  %v6362_v7 = vld [vmem:[#allocation2 + $0x2e8] sm:$0xff]  ;;  %v6361_v61 = vld [vmem:[#allocation2 + $0x2e0] sm:$0xff]  ;;  %v6519_v48 = vld [vmem:[#allocation2 + $0x411] sm:$0xff]  ;;  %v5745_v36 = vpop.f32.mrf.mxu1 }
 0x5a7   : > { %v8484_v25 = vpop.f32.mrf.mxu0  ;;  %7505 = vrot.lane.b32.xlu1 %v6644_v33, %s11286_s28  ;;  %7503 = vrot.lane.b32.xlu0 %v6643_v49, %s11286_s28  ;;  %v7767_v13 = vsel %vm618_vm0, %v6359_v55, %v6936_v21 }
 0x5a8   : > { %9591 = vst.msk [vmem:[%s14690_s17 + $0x60] sm:$0xff] %vm618_vm0, %v9463_v30  ;;  %v9203_v10 = vmul.f32 %v14654_v19, %v9068_v35  ;;  %v9067_v62 = vadd.f32 %v8484_v25, %v5726_v39 }
 0x5a9   : > { %v7450_v56 = vpop.permute.xlu1 %7449 }
 0x5aa   : > { %v9338_v29 = vadd.f32 %v14664_v51, %v9203_v10  ;;  %v9202_v23 = vmul.f32 %v14654_v19, %v9067_v62  ;;  %v7448_v41 = vpop.permute.xlu0 %7447  ;;  %v7896_v43 = vsel %vm2312_vm3, %v7768_v24, %v7450_v56  ;;  %v5751_v10 = vadd.f32 %v10868_v52, %v13750_v28  ;;  %v10871_v28 = vpop.f32.mrf.mxu1 }
 0x5ab   : > { %v7895_v20 = vsel %vm2312_vm3, %v7767_v13, %v7448_v41  ;;  %6997 = vrot.lane.b32.xlu1 %v6518_v16, %s11285_s27  ;;  %6995 = vrot.lane.b32.xlu0 %v6517_v54, %s11285_s27  ;;  %v6648_v54 = vld [vmem:[#allocation2 + $0x41a] sm:$0xff]  ;;  %v5746_v13 = vadd.f32 %v5745_v36, %v13768_v57  ;;  %v6522_v57 = vld [vmem:[#allocation2 + $0x429] sm:$0xff] }
 0x5ac   : > { %v9466_v46 = vmax.f32 %v9338_v29, 0.0  ;;  %v9337_v1 = vadd.f32 %v14664_v51, %v9202_v23  ;;  %11129 = vmatprep.mubr.msk.f32.mxu0 %vm4108_vm4, %v7895_v20  ;;  %v6647_v29 = vld [vmem:[#allocation2 + $0x412] sm:$0xff]  ;;  %v6365_v36 = vld [vmem:[#allocation2 + $0x308] sm:$0xff] }
 0x5ad   : > { %v11059_v26 = vpop.f32.mrf.mxu0  ;;  %11130 = vmatmul.mubr.msk.f32.gmra.mxu0 %vm4108_vm4, %v7896_v43  ;;  %v6942_v47 = vpop.permute.xlu1 %6941  ;;  %v6364_v43 = vld [vmem:[#allocation2 + $0x300] sm:$0xff]  ;;  %v6363_v20 = vld [vmem:[#allocation2 + $0x2f8] sm:$0xff] }
 0x5ae   : > { %9594 = vst.msk [vmem:[%s14690_s17 + $0x78] sm:$0xff] %vm618_vm0, %v9466_v46  ;;  %v9465_v31 = vmax.f32 %v9337_v1, 0.0  ;;  %v9070_v27 = vadd.f32 %v11059_v26, %v5741_v18  ;;  %v6940_v50 = vpop.permute.xlu0 %6939  ;;  %v7770_v30 = vsel %vm618_vm0, %v6362_v7, %v6942_v47 }
 0x5af   : > { %v8494_v38 = vpop.f32.mrf.mxu0  ;;  %7509 = vrot.lane.b32.xlu1 %v6646_v40, %s11286_s28  ;;  %7507 = vrot.lane.b32.xlu0 %v6645_v58, %s11286_s28  ;;  %v7769_v35 = vsel %vm618_vm0, %v6361_v61, %v6940_v50  ;;  %v6521_v40 = vld [vmem:[#allocation2 + $0x421] sm:$0xff]  ;;  %v5755_v50 = vpop.f32.mrf.mxu1  ;;  %v5761_v61 = vadd.f32 %v10871_v28, %v13784_v5 }
 0x5b0   : > { %9593 = vst.msk [vmem:[%s14690_s17 + $0x70] sm:$0xff] %vm618_vm0, %v9465_v31  ;;  %v9205_v33 = vmul.f32 %v14654_v19, %v9070_v27  ;;  %v9069_v49 = vadd.f32 %v8494_v38, %v5736_v37 }
 0x5b1   : > { %v7454_v21 = vpop.permute.xlu1 %7453  ;;  %v10874_v5 = vpop.f32.mrf.mxu1 }
 0x5b2   : > { %v9340_v39 = vadd.f32 %v14664_v51, %v9205_v33  ;;  %v9204_v42 = vmul.f32 %v14654_v19, %v9069_v49  ;;  %v7452_v60 = vpop.permute.xlu0 %7451  ;;  %v7898_v55 = vsel %vm2312_vm3, %v7770_v30, %v7454_v21  ;;  %v6650_v49 = vld [vmem:[#allocation2 + $0x42a] sm:$0xff]  ;;  %v5771_v28 = vadd.f32 %v10874_v5, %v13818_v15 }
 0x5b3   : > { %v7897_v25 = vsel %vm2312_vm3, %v7769_v35, %v7452_v60  ;;  %7001 = vrot.lane.b32.xlu1 %v6520_v45, %s11285_s27  ;;  %6999 = vrot.lane.b32.xlu0 %v6519_v48, %s11285_s27  ;;  %v6649_v45 = vld [vmem:[#allocation2 + $0x422] sm:$0xff]  ;;  %v6366_v60 = vld [vmem:[#allocation2 + $0x310] sm:$0xff] }
 0x5b4   : > { %v9468_v62 = vmax.f32 %v9340_v39, 0.0  ;;  %v9339_v16 = vadd.f32 %v14664_v51, %v9204_v42  ;;  %11132 = vmatprep.mubr.msk.f32.mxu0 %vm4108_vm4, %v7897_v25  ;;  %v5756_v39 = vadd.f32 %v5755_v50, %v13802_v32  ;;  %v6524_v32 = vld [vmem:[#allocation2 + $0x441] sm:$0xff] }
 0x5b5   : > { %v11062_v24 = vpop.f32.mrf.mxu0  ;;  %11133 = vmatmul.mubr.msk.f32.gmra.mxu0 %vm4108_vm4, %v7898_v55  ;;  %v6946_v41 = vpop.permute.xlu1 %6945 }
 0x5b6   : > { %9596 = vst.msk [vmem:[%s14690_s17 + $0x88] sm:$0xff] %vm618_vm0, %v9468_v62  ;;  %v9467_v23 = vmax.f32 %v9339_v16, 0.0  ;;  %v9072_v56 = vadd.f32 %v11062_v24, %v5751_v10  ;;  %v6944_v34 = vpop.permute.xlu0 %6943  ;;  %v7772_v26 = vsel %vm618_vm0, %v6364_v43, %v6946_v41  ;;  %v6523_v62 = vld [vmem:[#allocation2 + $0x439] sm:$0xff] }
 0x5b7   : > { %v8504_v18 = vpop.f32.mrf.mxu0  ;;  %7513 = vrot.lane.b32.xlu1 %v6648_v54, %s11286_s28  ;;  %7511 = vrot.lane.b32.xlu0 %v6647_v29, %s11286_s28  ;;  %v7771_v37 = vsel %vm618_vm0, %v6363_v20, %v6944_v34 }
 0x5b8   : > { %9595 = vst.msk [vmem:[%s14690_s17 + $0x80] sm:$0xff] %vm618_vm0, %v9467_v23  ;;  %v9207_v46 = vmul.f32 %v14654_v19, %v9072_v56  ;;  %v9071_v1 = vadd.f32 %v8504_v18, %v5746_v13  ;;  %v5765_v56 = vpop.f32.mrf.mxu1  ;;  %v6652_v18 = vld [vmem:[#allocation2 + $0x442] sm:$0xff] }
 0x5b9   : > { %v7458_v27 = vpop.permute.xlu1 %7457 }
 0x5ba   : > { %v9342_v58 = vadd.f32 %v14664_v51, %v9207_v46  ;;  %v9206_v31 = vmul.f32 %v14654_v19, %v9071_v1  ;;  %v7456_v47 = vpop.permute.xlu0 %7455  ;;  %v7900_v52 = vsel %vm2312_vm3, %v7772_v26, %v7458_v27  ;;  %v6651_v46 = vld [vmem:[#allocation2 + $0x43a] sm:$0xff]  ;;  %v10877_v15 = vpop.f32.mrf.mxu1 }
 0x5bb   : > { %v7899_v7 = vsel %vm2312_vm3, %v7771_v37, %v7456_v47  ;;  %7005 = vrot.lane.b32.xlu1 %v6522_v57, %s11285_s27  ;;  %7003 = vrot.lane.b32.xlu0 %v6521_v40, %s11285_s27  ;;  %v5766_v57 = vadd.f32 %v5765_v56, %v13836_v6  ;;  %v6367_v27 = vld [vmem:[#allocation2 + $0x320] sm:$0xff]  ;;  %v6526_v6 = vld [vmem:[#allocation2 + $0x451] sm:$0xff] }
 0x5bc   : > { %v9470_v38 = vmax.f32 %v9342_v58, 0.0  ;;  %v9341_v33 = vadd.f32 %v14664_v51, %v9206_v31  ;;  %11135 = vmatprep.mubr.msk.f32.mxu0 %vm4108_vm4, %v7899_v7  ;;  %v6368_v31 = vld [vmem:[#allocation2 + $0x328] sm:$0xff] }
 0x5bd   : > { %v11065_v48 = vpop.f32.mrf.mxu0  ;;  %11136 = vmatmul.mubr.msk.f32.gmra.mxu0 %vm4108_vm4, %v7900_v52  ;;  %v6950_v42 = vpop.permute.xlu1 %6949  ;;  %v6525_v7 = vld [vmem:[#allocation2 + $0x449] sm:$0xff]  ;;  %v6527_v56 = vld [vmem:[#allocation2 + $0x461] sm:$0xff] }
 0x5be   : > { %9598 = vst.msk [vmem:[%s14690_s17 + $0x98] sm:$0xff] %vm618_vm0, %v9470_v38  ;;  %v9469_v30 = vmax.f32 %v9341_v33, 0.0  ;;  %v9074_v35 = vadd.f32 %v11065_v48, %v5761_v61  ;;  %v6948_v21 = vpop.permute.xlu0 %6947  ;;  %v7774_v54 = vsel %vm618_vm0, %v6366_v60, %v6950_v42  ;;  %v6654_v60 = vld [vmem:[#allocation2 + $0x452] sm:$0xff] }
 0x5bf   : > { %v8514_v55 = vpop.f32.mrf.mxu0  ;;  %7517 = vrot.lane.b32.xlu1 %v6650_v49, %s11286_s28  ;;  %7515 = vrot.lane.b32.xlu0 %v6649_v45, %s11286_s28  ;;  %v7773_v29 = vsel %vm618_vm0, %v6365_v36, %v6948_v21  ;;  %v15025_v49 = vld [vmem:[%s15809_s4] ss:$0 sm:$0xff]  ;;  %v6653_v36 = vld [vmem:[#allocation2 + $0x44a] sm:$0xff] }
 0x5c0   : > { %9597 = vst.msk [vmem:[%s14690_s17 + $0x90] sm:$0xff] %vm618_vm0, %v9469_v30  ;;  %v9209_v25 = vmul.f32 %v14654_v19, %v9074_v35  ;;  %v9073_v10 = vadd.f32 %v8514_v55, %v5756_v39  ;;  %v15036_v21 = vld [vmem:[%s15810_s5] ss:$0 sm:$0xff] }
 0x5c1   : > { %v7462_v13 = vpop.permute.xlu1 %7461 }
 0x5c2   : > { %v9344_v16 = vadd.f32 %v14664_v51, %v9209_v25  ;;  %v9208_v24 = vmul.f32 %v14654_v19, %v9073_v10  ;;  %v7460_v23 = vpop.permute.xlu0 %7459  ;;  %v7902_v41 = vsel %vm2312_vm3, %v7774_v54, %v7462_v13  ;;  %v6370_v54 = vld [vmem:[#allocation2 + $0x338] sm:$0xff] }
 0x5c3   : > { %v7901_v34 = vsel %vm2312_vm3, %v7773_v29, %v7460_v23  ;;  %7009 = vrot.lane.b32.xlu1 %v6524_v32, %s11285_s27  ;;  %7007 = vrot.lane.b32.xlu0 %v6523_v62, %s11285_s27  ;;  %v6369_v29 = vld [vmem:[#allocation2 + $0x330] sm:$0xff] }
 0x5c4   : > { %v9472_v43 = vmax.f32 %v9344_v16, 0.0  ;;  %v9343_v20 = vadd.f32 %v14664_v51, %v9208_v24  ;;  %11138 = vmatprep.mubr.msk.f32.mxu0 %vm4108_vm4, %v7901_v34 }
 0x5c5   : > { %v11068_v1 = vpop.f32.mrf.mxu0  ;;  %11139 = vmatmul.mubr.msk.f32.gmra.mxu0 %vm4108_vm4, %v7902_v41  ;;  %v6954_v26 = vpop.permute.xlu1 %6953 }
 0x5c6   : > { %9600 = vst.msk [vmem:[%s14690_s17 + $0xa8] sm:$0xff] %vm618_vm0, %v9472_v43  ;;  %v9471_v40 = vmax.f32 %v9343_v20, 0.0  ;;  %v9076_v58 = vadd.f32 %v11068_v1, %v5771_v28  ;;  %v6952_v37 = vpop.permute.xlu0 %6951  ;;  %v7776_v38 = vsel %vm618_vm0, %v6368_v31, %v6954_v26 }
 0x5c7   : > { %v8524_v47 = vpop.f32.mrf.mxu0  ;;  %7521 = vrot.lane.b32.xlu1 %v6652_v18, %s11286_s28  ;;  %7519 = vrot.lane.b32.xlu0 %v6651_v46, %s11286_s28  ;;  %v7775_v33 = vsel %vm618_vm0, %v6367_v27, %v6952_v37  ;;  %v6656_v37 = vld [vmem:[#allocation2 + $0x46a] sm:$0xff] }
 0x5c8   : > { %9599 = vst.msk [vmem:[%s14690_s17 + $0xa0] sm:$0xff] %vm618_vm0, %v9471_v40  ;;  %v9211_v50 = vmul.f32 %v14654_v19, %v9076_v58  ;;  %v9075_v52 = vadd.f32 %v8524_v47, %v5766_v57  ;;  %v5775_v19 = vpop.f32.mrf.mxu1 }
 0x5c9   : > { %v7466_v48 = vpop.permute.xlu1 %7465  ;;  %v5776_v25 = vadd.f32 %v5775_v19, %v13870_v12  ;;  %v6528_v12 = vld [vmem:[#allocation2 + $0x469] sm:$0xff] }
 0x5ca   : > { %v9346_v61 = vadd.f32 %v14664_v51, %v9211_v50  ;;  %v9210_v45 = vmul.f32 %v15025_v49, %v9075_v52  ;;  %v7464_v39 = vpop.permute.xlu0 %7463  ;;  %v7904_v30 = vsel %vm2312_vm3, %v7776_v38, %v7466_v48  ;;  %v5781_v51 = vadd.f32 %v10877_v15, %v13852_v9  ;;  %v10880_v16 = vpop.f32.mrf.mxu1  ;;  %v6655_v15 = vld [vmem:[#allocation2 + $0x462] sm:$0xff]  ;;  %v6529_v48 = vld [vmem:[#allocation2 + $0x471] sm:$0xff] }
 0x5cb   : > { %v7903_v35 = vsel %vm2312_vm3, %v7775_v33, %v7464_v39  ;;  %7013 = vrot.lane.b32.xlu1 %v6526_v6, %s11285_s27  ;;  %7011 = vrot.lane.b32.xlu0 %v6525_v7, %s11285_s27  ;;  %v5791_v40 = vadd.f32 %v10880_v16, %v13886_v2  ;;  %v6372_v7 = vld [vmem:[#allocation2 + $0x350] sm:$0xff] }
 0x5cc   : > { %v9474_v42 = vmax.f32 %v9346_v61, 0.0  ;;  %v9345_v5 = vadd.f32 %v15036_v21, %v9210_v45  ;;  %11141 = vmatprep.mubr.msk.f32.mxu0 %vm4108_vm4, %v7903_v35  ;;  %v5785_v46 = vpop.f32.mrf.mxu1  ;;  %v6371_v61 = vld [vmem:[#allocation2 + $0x348] sm:$0xff] }
 0x5cd   : > { %v11071_v55 = vpop.f32.mrf.mxu0  ;;  %11142 = vmatmul.mubr.msk.f32.gmra.mxu0 %vm4108_vm4, %v7904_v30  ;;  %v6958_v32 = vpop.permute.xlu1 %6957  ;;  %v5786_v27 = vadd.f32 %v5785_v46, %v13904_v8  ;;  %v6530_v8 = vld [vmem:[#allocation2 + $0x479] sm:$0xff] }
 0x5ce   : > { %9602 = vst.msk [vmem:[%s14690_s17 + $0xb8] sm:$0xff] %vm618_vm0, %v9474_v42  ;;  %v9473_v9 = vmax.f32 %v9345_v5, 0.0  ;;  %v9078_v10 = vadd.f32 %v11071_v55, %v5781_v51  ;;  %v6956_v62 = vpop.permute.xlu0 %6955  ;;  %v7778_v34 = vsel %vm618_vm0, %v6370_v54, %v6958_v32  ;;  %v10883_v2 = vpop.f32.mrf.mxu1  ;;  %v6657_v32 = vld [vmem:[#allocation2 + $0x472] sm:$0xff] }
 0x5cf   : > { %v8534_v24 = vpop.f32.mrf.mxu0  ;;  %7525 = vrot.lane.b32.xlu1 %v6654_v60, %s11286_s28  ;;  %7523 = vrot.lane.b32.xlu0 %v6653_v36, %s11286_s28  ;;  %v7777_v28 = vsel %vm618_vm0, %v6369_v29, %v6956_v62  ;;  %v5801_v55 = vadd.f32 %v10883_v2, %v13920_v4 }
 0x5d0   : > { %9601 = vst.msk [vmem:[%s14690_s17 + $0xb0] sm:$0xff] %vm618_vm0, %v9473_v9  ;;  %v9213_v13 = vmul.f32 %v15025_v49, %v9078_v10  ;;  %v9077_v23 = vadd.f32 %v8534_v24, %v5776_v25  ;;  %v5795_v5 = vpop.f32.mrf.mxu1  ;;  %v6658_v10 = vld [vmem:[#allocation2 + $0x47a] sm:$0xff] }
 0x5d1   : > { %v7470_v20 = vpop.permute.xlu1 %7469  ;;  %v5796_v16 = vadd.f32 %v5795_v5, %v13938_v44  ;;  %v6532_v44 = vld [vmem:[#allocation2 + $0x491] sm:$0xff] }
 0x5d2   : > { %v9348_v41 = vadd.f32 %v15036_v21, %v9213_v13  ;;  %v9212_v43 = vmul.f32 %v15025_v49, %v9077_v23  ;;  %v7468_v18 = vpop.permute.xlu0 %7467  ;;  %v7906_v1 = vsel %vm2312_vm3, %v7778_v34, %v7470_v20  ;;  %v10886_v4 = vpop.f32.mrf.mxu1  ;;  %v6374_v23 = vld [vmem:[#allocation2 + $0x360] sm:$0xff] }
 0x5d3   : > { %v7905_v57 = vsel %vm2312_vm3, %v7777_v28, %v7468_v18  ;;  %7017 = vrot.lane.b32.xlu1 %v6528_v12, %s11285_s27  ;;  %7015 = vrot.lane.b32.xlu0 %v6527_v56, %s11285_s27  ;;  %v6373_v12 = vld [vmem:[#allocation2 + $0x358] sm:$0xff]  ;;  %v6531_v28 = vld [vmem:[#allocation2 + $0x489] sm:$0xff] }
 0x5d4   : > { %v9476_v58 = vmax.f32 %v9348_v41, 0.0  ;;  %v9347_v26 = vadd.f32 %v15036_v21, %v9212_v43  ;;  %11144 = vmatprep.mubr.msk.f32.mxu0 %vm4108_vm4, %v7905_v57 }
 0x5d5   : > { %v11074_v31 = vpop.f32.mrf.mxu0  ;;  %11145 = vmatmul.mubr.msk.f32.gmra.mxu0 %vm4108_vm4, %v7906_v1  ;;  %v6962_v52 = vpop.permute.xlu1 %6961 }
 0x5d6   : > { %9604 = vst.msk [vmem:[%s14690_s17 + $0xc8] sm:$0xff] %vm618_vm0, %v9476_v58  ;;  %v9475_v47 = vmax.f32 %v9347_v26, 0.0  ;;  %v9080_v50 = vadd.f32 %v11074_v31, %v5791_v40  ;;  %v6960_v6 = vpop.permute.xlu0 %6959  ;;  %v7780_v19 = vsel %vm618_vm0, %v6372_v7, %v6962_v52  ;;  %v5805_v40 = vpop.f32.mrf.mxu1 }
 0x5d7   : > { %v8544_v38 = vpop.f32.mrf.mxu0  ;;  %7529 = vrot.lane.b32.xlu1 %v6656_v37, %s11286_s28  ;;  %7527 = vrot.lane.b32.xlu0 %v6655_v15, %s11286_s28  ;;  %v7779_v30 = vsel %vm618_vm0, %v6371_v61, %v6960_v6  ;;  %v5811_v37 = vadd.f32 %v10886_v4, %v13958_v14  ;;  %v5806_v52 = vadd.f32 %v5805_v40, %v13980_v59  ;;  %v6534_v59 = vld [vmem:[#allocation2 + $0x4a1] sm:$0xff] }
 0x5d8   : > { %9603 = vst.msk [vmem:[%s14690_s17 + $0xc0] sm:$0xff] %vm618_vm0, %v9475_v47  ;;  %v9215_v33 = vmul.f32 %v15025_v49, %v9080_v50  ;;  %v9079_v45 = vadd.f32 %v8544_v38, %v5786_v27  ;;  %v6660_v27 = vld [vmem:[#allocation2 + $0x492] sm:$0xff]  ;;  %v6659_v47 = vld [vmem:[#allocation2 + $0x48a] sm:$0xff]  ;;  %v10889_v14 = vpop.f32.mrf.mxu1 }
 0x5d9   : > { %v7474_v51 = vpop.permute.xlu1 %7473  ;;  %v6376_v38 = vld [vmem:[#allocation2 + $0x378] sm:$0xff] }
 0x5da   : > { %v9350_v39 = vadd.f32 %v15036_v21, %v9215_v33  ;;  %v9214_v35 = vmul.f32 %v15025_v49, %v9079_v45  ;;  %v7472_v42 = vpop.permute.xlu0 %7471  ;;  %v7908_v60 = vsel %vm2312_vm3, %v7780_v19, %v7474_v51  ;;  %v6375_v33 = vld [vmem:[#allocation2 + $0x370] sm:$0xff] }
 0x5db   : > { %v7907_v36 = vsel %vm2312_vm3, %v7779_v30, %v7472_v42  ;;  %7021 = vrot.lane.b32.xlu1 %v6530_v8, %s11285_s27  ;;  %7019 = vrot.lane.b32.xlu0 %v6529_v48, %s11285_s27 }
 0x5dc   : > { %v9478_v25 = vmax.f32 %v9350_v39, 0.0  ;;  %v9349_v9 = vadd.f32 %v15036_v21, %v9214_v35  ;;  %11147 = vmatprep.mubr.msk.f32.mxu0 %vm4108_vm4, %v7907_v36  ;;  %v6533_v39 = vld [vmem:[#allocation2 + $0x499] sm:$0xff] }
 0x5dd   : > { %v11077_v62 = vpop.f32.mrf.mxu0  ;;  %11148 = vmatmul.mubr.msk.f32.gmra.mxu0 %vm4108_vm4, %v7908_v60  ;;  %v6966_v24 = vpop.permute.xlu1 %6965 }
 0x5de   : > { %9606 = vst.msk [vmem:[%s14690_s17 + $0xd8] sm:$0xff] %vm618_vm0, %v9478_v25  ;;  %v9477_v54 = vmax.f32 %v9349_v9, 0.0  ;;  %v9082_v29 = vadd.f32 %v11077_v62, %v5801_v55  ;;  %v6964_v13 = vpop.permute.xlu0 %6963  ;;  %v7782_v20 = vsel %vm618_vm0, %v6374_v23, %v6966_v24  ;;  %v5815_v60 = vpop.f32.mrf.mxu1  ;;  %v5821_v25 = vadd.f32 %v10889_v14, %v14000_v17  ;;  %v6661_v62 = vld [vmem:[#allocation2 + $0x49a] sm:$0xff]  ;;  %v6378_v23 = vld [vmem:[#allocation2 + $0x388] sm:$0xff] }
 0x5df   : > { %v8554_v56 = vpop.f32.mrf.mxu0  ;;  %7533 = vrot.lane.b32.xlu1 %v6658_v10, %s11286_s28  ;;  %7531 = vrot.lane.b32.xlu0 %v6657_v32, %s11286_s28  ;;  %v7781_v18 = vsel %vm618_vm0, %v6373_v12, %v6964_v13  ;;  %v6662_v32 = vld [vmem:[#allocation2 + $0x4a2] sm:$0xff]  ;;  %v6379_v14 = vld [vmem:[#allocation2 + $0x398] sm:$0xff] }
 0x5e0   : > { %9605 = vst.msk [vmem:[%s14690_s17 + $0xd0] sm:$0xff] %vm618_vm0, %v9477_v54  ;;  %v9217_v41 = vmul.f32 %v15025_v49, %v9082_v29  ;;  %v9081_v34 = vadd.f32 %v8554_v56, %v5796_v16  ;;  %v5816_v54 = vadd.f32 %v5815_v60, %v14022_v0  ;;  %v10892_v17 = vpop.f32.mrf.mxu1  ;;  %v6377_v12 = vld [vmem:[#allocation2 + $0x380] sm:$0xff] }
 0x5e1   : > { %v7478_v1 = vpop.permute.xlu1 %7477  ;;  %v6536_v0 = vld [vmem:[#allocation2 + $0x4b9] sm:$0xff] }
 0x5e2   : > { %v9352_v43 = vadd.f32 %v15036_v21, %v9217_v41  ;;  %v9216_v46 = vmul.f32 %v15025_v49, %v9081_v34  ;;  %v7476_v57 = vpop.permute.xlu0 %7475  ;;  %v7910_v58 = vsel %vm2312_vm3, %v7782_v20, %v7478_v1 }
 0x5e3   : > { %v7909_v26 = vsel %vm2312_vm3, %v7781_v18, %v7476_v57  ;;  %7025 = vrot.lane.b32.xlu1 %v6532_v44, %s11285_s27  ;;  %7023 = vrot.lane.b32.xlu0 %v6531_v28, %s11285_s27  ;;  %v6535_v44 = vld [vmem:[#allocation2 + $0x4b1] sm:$0xff]  ;;  %v5825_v57 = vpop.f32.mrf.mxu1 }
 0x5e4   : > { %v9480_v15 = vmax.f32 %v9352_v43, 0.0  ;;  %v9351_v31 = vadd.f32 %v15036_v21, %v9216_v46  ;;  %11150 = vmatprep.mubr.msk.f32.mxu0 %vm4108_vm4, %v7909_v26  ;;  %v5831_v26 = vadd.f32 %v10892_v17, %v14042_v11 }
 0x5e5   : > { %v11080_v50 = vpop.f32.mrf.mxu0  ;;  %11151 = vmatmul.mubr.msk.f32.gmra.mxu0 %vm4108_vm4, %v7910_v58  ;;  %v6970_v7 = vpop.permute.xlu1 %6969 }
 0x5e6   : > { %9608 = vst.msk [vmem:[%s14690_s17 + $0xe8] sm:$0xff] %vm618_vm0, %v9480_v15  ;;  %v9479_v6 = vmax.f32 %v9351_v31, 0.0  ;;  %v9084_v2 = vadd.f32 %v11080_v50, %v5811_v37  ;;  %v6968_v61 = vpop.permute.xlu0 %6967  ;;  %v7784_v30 = vsel %vm618_vm0, %v6376_v38, %v6970_v7  ;;  %v6664_v31 = vld [vmem:[#allocation2 + $0x4ba] sm:$0xff]  ;;  %v5826_v50 = vadd.f32 %v5825_v57, %v14064_v63  ;;  %v10895_v11 = vpop.f32.mrf.mxu1  ;;  %v6538_v63 = vld [vmem:[#allocation2 + $0x4c9] sm:$0xff] }
 0x5e7   : > { %v8564_v45 = vpop.f32.mrf.mxu0  ;;  %7537 = vrot.lane.b32.xlu1 %v6660_v27, %s11286_s28  ;;  %7535 = vrot.lane.b32.xlu0 %v6659_v47, %s11286_s28  ;;  %v7783_v35 = vsel %vm618_vm0, %v6375_v33, %v6968_v61  ;;  %v6663_v27 = vld [vmem:[#allocation2 + $0x4b2] sm:$0xff]  ;;  %v6380_v61 = vld [vmem:[#allocation2 + $0x3a0] sm:$0xff]  ;;  %v5841_v60 = vadd.f32 %v10895_v11, %v14084_v53 }
 0x5e8   : > { %9607 = vst.msk [vmem:[%s14690_s17 + $0xe0] sm:$0xff] %vm618_vm0, %v9479_v6  ;;  %v9219_v8 = vmul.f32 %v15025_v49, %v9084_v2  ;;  %v9083_v48 = vadd.f32 %v8564_v45, %v5806_v52 }
 0x5e9   : > { %v7482_v42 = vpop.permute.xlu1 %7481 }
 0x5ea   : > { %v9354_v19 = vadd.f32 %v15036_v21, %v9219_v8  ;;  %v9218_v51 = vmul.f32 %v15025_v49, %v9083_v48  ;;  %v7480_v5 = vpop.permute.xlu0 %7479  ;;  %v7912_v36 = vsel %vm2312_vm3, %v7784_v30, %v7482_v42  ;;  %v6537_v8 = vld [vmem:[#allocation2 + $0x4c1] sm:$0xff] }
 0x5eb   : > { %v7911_v55 = vsel %vm2312_vm3, %v7783_v35, %v7480_v5  ;;  %7029 = vrot.lane.b32.xlu1 %v6534_v59, %s11285_s27  ;;  %7027 = vrot.lane.b32.xlu0 %v6533_v39, %s11285_s27 }
 0x5ec   : > { %v9482_v9 = vmax.f32 %v9354_v19, 0.0  ;;  %v9353_v10 = vadd.f32 %v15036_v21, %v9218_v51  ;;  %11153 = vmatprep.mubr.msk.f32.mxu0 %vm4108_vm4, %v7911_v55  ;;  %v5835_v51 = vpop.f32.mrf.mxu1 }
 0x5ed   : > { %v11083_v16 = vpop.f32.mrf.mxu0  ;;  %11154 = vmatmul.mubr.msk.f32.gmra.mxu0 %vm4108_vm4, %v7912_v36  ;;  %v6974_v13 = vpop.permute.xlu1 %6973 }
 0x5ee   : > { %9610 = vst.msk [vmem:[%s14690_s17 + $0xf8] sm:$0xff] %vm618_vm0, %v9482_v9  ;;  %v9481_v29 = vmax.f32 %v9353_v10, 0.0  ;;  %v9086_v24 = vadd.f32 %v11083_v16, %v5821_v25  ;;  %v6972_v4 = vpop.permute.xlu0 %6971  ;;  %v7786_v43 = vsel %vm618_vm0, %v6378_v23, %v6974_v13  ;;  %v6666_v25 = vld [vmem:[#allocation2 + $0x4ca] sm:$0xff]  ;;  %v6665_v9 = vld [vmem:[#allocation2 + $0x4c2] sm:$0xff]  ;;  %v10898_v53 = vpop.f32.mrf.mxu1 }
 0x5ef   : > { %v8574_v56 = vpop.f32.mrf.mxu0  ;;  %7541 = vrot.lane.b32.xlu1 %v6662_v32, %s11286_s28  ;;  %7539 = vrot.lane.b32.xlu0 %v6661_v62, %s11286_s28  ;;  %v7785_v20 = vsel %vm618_vm0, %v6377_v12, %v6972_v4  ;;  %v5836_v32 = vadd.f32 %v5835_v51, %v14106_v3  ;;  %v6381_v13 = vld [vmem:[#allocation2 + $0x3a8] sm:$0xff]  ;;  %v6539_v12 = vld [vmem:[#allocation2 + $0x4d9] sm:$0xff] }
 0x5f0   : > { %9609 = vst.msk [vmem:[%s14690_s17 + $0xf0] sm:$0xff] %vm618_vm0, %v9481_v29  ;;  %v9221_v41 = vmul.f32 %v15025_v49, %v9086_v24  ;;  %v9085_v34 = vadd.f32 %v8574_v56, %v5816_v54  ;;  %v6382_v24 = vld [vmem:[#allocation2 + $0x3b0] sm:$0xff]  ;;  %v6540_v3 = vld [vmem:[#allocation2 + $0x4e1] sm:$0xff] }
 0x5f1   : > { %v7486_v46 = vpop.permute.xlu1 %7485 }
 0x5f2   : > { %v9356_v28 = vadd.f32 %v15036_v21, %v9221_v41  ;;  %v9220_v18 = vmul.f32 %v15025_v49, %v9085_v34  ;;  %v7484_v1 = vpop.permute.xlu0 %7483  ;;  %v7914_v40 = vsel %vm2312_vm3, %v7786_v43, %v7486_v46  ;;  %v5845_v43 = vpop.f32.mrf.mxu1  ;;  %v5851_v46 = vadd.f32 %v10898_v53, %v14126_v22 }
 0x5f3   : > { %v7913_v58 = vsel %vm2312_vm3, %v7785_v20, %v7484_v1  ;;  %7033 = vrot.lane.b32.xlu1 %v6536_v0, %s11285_s27  ;;  %7031 = vrot.lane.b32.xlu0 %v6535_v44, %s11285_s27 }
 0x5f4   : > { %v9484_v37 = vmax.f32 %v9356_v28, 0.0  ;;  %v9355_v15 = vadd.f32 %v15036_v21, %v9220_v18  ;;  %11156 = vmatprep.mubr.msk.f32.mxu0 %vm4108_vm4, %v7913_v58  ;;  %v6667_v58 = vld [vmem:[#allocation2 + $0x4da] sm:$0xff]  ;;  %v10901_v22 = vpop.f32.mrf.mxu1 }
 0x5f5   : > { %v11086_v47 = vpop.f32.mrf.mxu0  ;;  %11157 = vmatmul.mubr.msk.f32.gmra.mxu0 %vm4108_vm4, %v7914_v40  ;;  %v6978_v2 = vpop.permute.xlu1 %6977  ;;  %v6668_v40 = vld [vmem:[#allocation2 + $0x4e2] sm:$0xff] }
 0x5f6   : > { %9612 = vst.msk [vmem:[%s14690_s17 + $0x108] sm:$0xff] %vm618_vm0, %v9484_v37  ;;  %v9483_v52 = vmax.f32 %v9355_v15, 0.0  ;;  %v9088_v6 = vadd.f32 %v11086_v47, %v5831_v26  ;;  %v6976_v7 = vpop.permute.xlu0 %6975  ;;  %v7788_v59 = vsel %vm618_vm0, %v6380_v61, %v6978_v2  ;;  %v16567_v37 = vld [vmem:[#allocation281_spill] sm:$0xff]  ;;  %v6542_v61 = vld [vmem:[#allocation2 + $0x4f1] sm:$0xff] }
 0x5f7   : > { %v8584_v38 = vpop.f32.mrf.mxu0  ;;  %7545 = vrot.lane.b32.xlu1 %v6664_v31, %s11286_s28  ;;  %7543 = vrot.lane.b32.xlu0 %v6663_v27, %s11286_s28  ;;  %v7787_v39 = vsel %vm618_vm0, %v6379_v14, %v6976_v7  ;;  %v5846_v15 = vadd.f32 %v5845_v43, %v16567_v37  ;;  %v6541_v14 = vld [vmem:[#allocation2 + $0x4e9] sm:$0xff] }
 0x5f8   : > { %9611 = vst.msk [vmem:[%s14690_s17 + $0x100] sm:$0xff] %vm618_vm0, %v9483_v52  ;;  %v9223_v33 = vmul.f32 %v15025_v49, %v9088_v6  ;;  %v9087_v45 = vadd.f32 %v8584_v38, %v5826_v50  ;;  %v6384_v52 = vld [vmem:[#allocation2 + $0x3c8] sm:$0xff]  ;;  %v6383_v6 = vld [vmem:[#allocation2 + $0x3c0] sm:$0xff] }
 0x5f9   : > { %v7490_v30 = vpop.permute.xlu1 %7489  ;;  %v16570_v43 = vld [vmem:[#allocation290_spill] sm:$0xff] }
 0x5fa   : > { %v9358_v48 = vadd.f32 %v15036_v21, %v9223_v33  ;;  %v9222_v19 = vmul.f32 %v15025_v49, %v9087_v45  ;;  %v7488_v35 = vpop.permute.xlu0 %7487  ;;  %v7916_v42 = vsel %vm2312_vm3, %v7788_v59, %v7490_v30  ;;  %v5855_v59 = vpop.f32.mrf.mxu1  ;;  %v16568_v30 = vld [vmem:[#allocation284_spill] sm:$0xff] }
 0x5fb   : > { %v7915_v5 = vsel %vm2312_vm3, %v7787_v39, %v7488_v35  ;;  %7037 = vrot.lane.b32.xlu1 %v6538_v63, %s11285_s27  ;;  %7035 = vrot.lane.b32.xlu0 %v6537_v8, %s11285_s27  ;;  %v5861_v35 = vadd.f32 %v10901_v22, %v16568_v30  ;;  %v6387_v22 = vld [vmem:[#allocation2 + $0x3e8] sm:$0xff] }
 0x5fc   : > { %v9486_v36 = vmax.f32 %v9358_v48, 0.0  ;;  %v9357_v55 = vadd.f32 %v15036_v21, %v9222_v19  ;;  %11159 = vmatprep.mubr.msk.f32.mxu0 %vm4108_vm4, %v7915_v5  ;;  %v6670_v5 = vld [vmem:[#allocation2 + $0x4f2] sm:$0xff] }
 0x5fd   : > { %v11089_v10 = vpop.f32.mrf.mxu0  ;;  %11160 = vmatmul.mubr.msk.f32.gmra.mxu0 %vm4108_vm4, %v7916_v42  ;;  %v6982_v54 = vpop.permute.xlu1 %6981 }
 0x5fe   : > { %9614 = vst.msk [vmem:[%s14690_s17 + $0x118] sm:$0xff] %vm618_vm0, %v9486_v36  ;;  %v9485_v62 = vmax.f32 %v9357_v55, 0.0  ;;  %v9090_v16 = vadd.f32 %v11089_v10, %v5841_v60  ;;  %v6980_v29 = vpop.permute.xlu0 %6979  ;;  %v7790_v41 = vsel %vm618_vm0, %v6382_v24, %v6982_v54  ;;  %v6669_v60 = vld [vmem:[#allocation2 + $0x4ea] sm:$0xff]  ;;  %v6386_v54 = vld [vmem:[#allocation2 + $0x3d8] sm:$0xff] }
 0x5ff   : > { %v8594_v4 = vpop.f32.mrf.mxu0  ;;  %7549 = vrot.lane.b32.xlu1 %v6666_v25, %s11286_s28  ;;  %7547 = vrot.lane.b32.xlu0 %v6665_v9, %s11286_s28  ;;  %v7789_v34 = vsel %vm618_vm0, %v6381_v13, %v6980_v29  ;;  %v16569_v55 = vld [vmem:[#allocation287_spill] sm:$0xff] }
 0x600   : > { %9613 = vst.msk [vmem:[%s14690_s17 + $0x110] sm:$0xff] %vm618_vm0, %v9485_v62  ;;  %v9225_v17 = vmul.f32 %v15025_v49, %v9090_v16  ;;  %v9089_v23 = vadd.f32 %v8594_v4, %v5836_v32  ;;  %v5856_v25 = vadd.f32 %v5855_v59, %v16569_v55  ;;  %v10904_v16 = vpop.f32.mrf.mxu1  ;;  %v6385_v29 = vld [vmem:[#allocation2 + $0x3d0] sm:$0xff] }
 0x601   : > { %v7494_v44 = vpop.permute.xlu1 %7493  ;;  %v6544_v4 = vld [vmem:[#allocation2 + $0x509] sm:$0xff] }
 0x602   : > { %v9360_v56 = vadd.f32 %v15036_v21, %v9225_v17  ;;  %v9224_v0 = vmul.f32 %v15025_v49, %v9089_v23  ;;  %v7492_v28 = vpop.permute.xlu0 %7491  ;;  %v7918_v20 = vsel %vm2312_vm3, %v7790_v41, %v7494_v44  ;;  %v6543_v17 = vld [vmem:[#allocation2 + $0x501] sm:$0xff] }
 0x603   : > { %v7917_v18 = vsel %vm2312_vm3, %v7789_v34, %v7492_v28  ;;  %7041 = vrot.lane.b32.xlu1 %v6540_v3, %s11285_s27  ;;  %7039 = vrot.lane.b32.xlu0 %v6539_v12, %s11285_s27 }
 0x604   : > { %v9488_v1 = vmax.f32 %v9360_v56, 0.0  ;;  %v9359_v57 = vadd.f32 %v15036_v21, %v9224_v0  ;;  %11162 = vmatprep.mubr.msk.f32.mxu0 %vm4108_vm4, %v7917_v18  ;;  %v5865_v0 = vpop.f32.mrf.mxu1 }
 0x605   : > { %v11092_v26 = vpop.f32.mrf.mxu0  ;;  %11163 = vmatmul.mubr.msk.f32.gmra.mxu0 %vm4108_vm4, %v7918_v20  ;;  %v6986_v47 = vpop.permute.xlu1 %6985  ;;  %v5871_v20 = vadd.f32 %v10904_v16, %v16570_v43  ;;  %v6389_v16 = vld [vmem:[#allocation2 + $0x3f8] sm:$0xff] }
 0x606   : > { %9616 = vst.msk [vmem:[%s14690_s17 + $0x128] sm:$0xff] %vm618_vm0, %v9488_v1  ;;  %v9487_v31 = vmax.f32 %v9359_v57, 0.0  ;;  %v9092_v27 = vadd.f32 %v11092_v26, %v5851_v46  ;;  %v6984_v50 = vpop.permute.xlu0 %6983  ;;  %v7792_v33 = vsel %vm618_vm0, %v6384_v52, %v6986_v47  ;;  %v6672_v1 = vld [vmem:[#allocation2 + $0x50a] sm:$0xff]  ;;  %v6671_v57 = vld [vmem:[#allocation2 + $0x502] sm:$0xff]  ;;  %v10907_v47 = vpop.f32.mrf.mxu1 }
 0x607   : > { %v8604_v2 = vpop.f32.mrf.mxu0  ;;  %7553 = vrot.lane.b32.xlu1 %v6668_v40, %s11286_s28  ;;  %7551 = vrot.lane.b32.xlu0 %v6667_v58, %s11286_s28  ;;  %v7791_v45 = vsel %vm618_vm0, %v6383_v6, %v6984_v50  ;;  %v16571_v58 = vld [vmem:[#allocation293_spill] sm:$0xff]  ;;  %v6388_v50 = vld [vmem:[#allocation2 + $0x3f0] sm:$0xff] }
 0x608   : > { %9615 = vst.msk [vmem:[%s14690_s17 + $0x120] sm:$0xff] %vm618_vm0, %v9487_v31  ;;  %v9227_v7 = vmul.f32 %v15025_v49, %v9092_v27  ;;  %v9091_v11 = vadd.f32 %v8604_v2, %v5846_v15  ;;  %v5866_v26 = vadd.f32 %v5865_v0, %v16571_v58 }
 0x609   : > { %v7498_v8 = vpop.permute.xlu1 %7497 }
 0x60a   : > { %v9362_v38 = vadd.f32 %v15036_v21, %v9227_v7  ;;  %v9226_v63 = vmul.f32 %v15025_v49, %v9091_v11  ;;  %v7496_v48 = vpop.permute.xlu0 %7495  ;;  %v7920_v39 = vsel %vm2312_vm3, %v7792_v33, %v7498_v8  ;;  %v6546_v7 = vld [vmem:[#allocation2 + $0x519] sm:$0xff]  ;;  %v6545_v11 = vld [vmem:[#allocation2 + $0x511] sm:$0xff]  ;;  %v5875_v8 = vpop.f32.mrf.mxu1 }
 0x60b   : > { %v7919_v19 = vsel %vm2312_vm3, %v7791_v45, %v7496_v48  ;;  %7045 = vrot.lane.b32.xlu1 %v6542_v61, %s11285_s27  ;;  %7043 = vrot.lane.b32.xlu0 %v6541_v14, %s11285_s27 }
 0x60c   : > { %v9490_v51 = vmax.f32 %v9362_v38, 0.0  ;;  %v9361_v42 = vadd.f32 %v15036_v21, %v9226_v63  ;;  %11165 = vmatprep.mubr.msk.f32.mxu0 %vm4108_vm4, %v7919_v19 }
 0x60d   : > { %v11095_v36 = vpop.f32.mrf.mxu0  ;;  %11166 = vmatmul.mubr.msk.f32.gmra.mxu0 %vm4108_vm4, %v7920_v39  ;;  %v6990_v32 = vpop.permute.xlu1 %6989  ;;  %v16572_v39 = vld [vmem:[#allocation296_spill] sm:$0xff] }
 0x60e   : > { %9618 = vst.msk [vmem:[%s14690_s17 + $0x138] sm:$0xff] %vm618_vm0, %v9490_v51  ;;  %v9489_v9 = vmax.f32 %v9361_v42, 0.0  ;;  %v9094_v10 = vadd.f32 %v11095_v36, %v5861_v35  ;;  %v6988_v62 = vpop.permute.xlu0 %6987  ;;  %v7794_v3 = vsel %vm618_vm0, %v6386_v54, %v6990_v32  ;;  %v5881_v19 = vadd.f32 %v10907_v47, %v16572_v39  ;;  %v6674_v51 = vld [vmem:[#allocation2 + $0x51a] sm:$0xff]  ;;  %v6673_v42 = vld [vmem:[#allocation2 + $0x512] sm:$0xff]  ;;  %v10910_v32 = vpop.f32.mrf.mxu1 }
 0x60f   : > { %v8614_v53 = vpop.f32.mrf.mxu0  ;;  %7557 = vrot.lane.b32.xlu1 %v6670_v5, %s11286_s28  ;;  %7555 = vrot.lane.b32.xlu0 %v6669_v60, %s11286_s28  ;;  %v7793_v12 = vsel %vm618_vm0, %v6385_v29, %v6988_v62  ;;  %v16573_v60 = vld [vmem:[#allocation299_spill] sm:$0xff]  ;;  %v6390_v62 = vld [vmem:[#allocation2 + $0x400] sm:$0xff] }
 0x610   : > { %9617 = vst.msk [vmem:[%s14690_s17 + $0x130] sm:$0xff] %vm618_vm0, %v9489_v9  ;;  %v9229_v24 = vmul.f32 %v15025_v49, %v9094_v10  ;;  %v9093_v13 = vadd.f32 %v8614_v53, %v5856_v25  ;;  %v5876_v36 = vadd.f32 %v5875_v8, %v16573_v60  ;;  %v6391_v47 = vld [vmem:[#allocation2 + $0x410] sm:$0xff] }
 0x611   : > { %v7502_v41 = vpop.permute.xlu1 %7501 }
 0x612   : > { %v9364_v23 = vadd.f32 %v15036_v21, %v9229_v24  ;;  %v9228_v56 = vmul.f32 %v15025_v49, %v9093_v13  ;;  %v7500_v34 = vpop.permute.xlu0 %7499  ;;  %v7922_v44 = vsel %vm2312_vm3, %v7794_v3, %v7502_v41  ;;  %v6548_v24 = vld [vmem:[#allocation2 + $0x531] sm:$0xff]  ;;  %v6547_v13 = vld [vmem:[#allocation2 + $0x529] sm:$0xff]  ;;  %v5885_v41 = vpop.f32.mrf.mxu1 }
 0x613   : > { %v7921_v28 = vsel %vm2312_vm3, %v7793_v12, %v7500_v34  ;;  %7049 = vrot.lane.b32.xlu1 %v6544_v4, %s11285_s27  ;;  %7047 = vrot.lane.b32.xlu0 %v6543_v17, %s11285_s27 }
 0x614   : > { %v9492_v18 = vmax.f32 %v9364_v23, 0.0  ;;  %v9363_v46 = vadd.f32 %v15036_v21, %v9228_v56  ;;  %11168 = vmatprep.mubr.msk.f32.mxu0 %vm4108_vm4, %v7921_v28 }
 0x615   : > { %v11098_v40 = vpop.f32.mrf.mxu0  ;;  %11169 = vmatmul.mubr.msk.f32.gmra.mxu0 %vm4108_vm4, %v7922_v44  ;;  %v6994_v31 = vpop.permute.xlu1 %6993  ;;  %v16574_v44 = vld [vmem:[#allocation302_spill] sm:$0xff] }
 0x616   : > { %9620 = vst.msk [vmem:[%s14690_s17 + $0x148] sm:$0xff] %vm618_vm0, %v9492_v18  ;;  %v9491_v37 = vmax.f32 %v9363_v46, 0.0  ;;  %v9096_v15 = vadd.f32 %v11098_v40, %v5871_v20  ;;  %v6992_v27 = vpop.permute.xlu0 %6991  ;;  %v7796_v14 = vsel %vm618_vm0, %v6388_v50, %v6994_v31  ;;  %v5891_v28 = vadd.f32 %v10910_v32, %v16574_v44  ;;  %v6676_v18 = vld [vmem:[#allocation2 + $0x532] sm:$0xff]  ;;  %v6675_v46 = vld [vmem:[#allocation2 + $0x52a] sm:$0xff]  ;;  %v10913_v31 = vpop.f32.mrf.mxu1  ;;  %v6393_v32 = vld [vmem:[#allocation2 + $0x420] sm:$0xff] }
 0x617   : > { %v8624_v52 = vpop.f32.mrf.mxu0  ;;  %7561 = vrot.lane.b32.xlu1 %v6672_v1, %s11286_s28  ;;  %7559 = vrot.lane.b32.xlu0 %v6671_v57, %s11286_s28  ;;  %v7795_v38 = vsel %vm618_vm0, %v6387_v22, %v6992_v27  ;;  %v16575_v57 = vld [vmem:[#allocation305_spill] sm:$0xff]  ;;  %v6392_v27 = vld [vmem:[#allocation2 + $0x418] sm:$0xff] }
 0x618   : > { %9619 = vst.msk [vmem:[%s14690_s17 + $0x140] sm:$0xff] %vm618_vm0, %v9491_v37  ;;  %v9231_v6 = vmul.f32 %v15025_v49, %v9096_v15  ;;  %v9095_v2 = vadd.f32 %v8624_v52, %v5866_v26  ;;  %v5886_v40 = vadd.f32 %v5885_v41, %v16575_v57 }
 0x619   : > { %v7506_v45 = vpop.permute.xlu1 %7505 }
 0x61a   : > { %v9366_v61 = vadd.f32 %v15036_v21, %v9231_v6  ;;  %v9230_v33 = vmul.f32 %v15025_v49, %v9095_v2  ;;  %v7504_v63 = vpop.permute.xlu0 %7503  ;;  %v7924_v48 = vsel %vm2312_vm3, %v7796_v14, %v7506_v45  ;;  %v6550_v6 = vld [vmem:[#allocation2 + $0x541] sm:$0xff]  ;;  %v6549_v2 = vld [vmem:[#allocation2 + $0x539] sm:$0xff]  ;;  %v5895_v45 = vpop.f32.mrf.mxu1 }
 0x61b   : > { %v7923_v59 = vsel %vm2312_vm3, %v7795_v38, %v7504_v63  ;;  %7053 = vrot.lane.b32.xlu1 %v6546_v7, %s11285_s27  ;;  %7051 = vrot.lane.b32.xlu0 %v6545_v11, %s11285_s27 }
 0x61c   : > { %v9494_v30 = vmax.f32 %v9366_v61, 0.0  ;;  %v9365_v35 = vadd.f32 %v15036_v21, %v9230_v33  ;;  %11171 = vmatprep.mubr.msk.f32.mxu0 %vm4108_vm4, %v7923_v59 }
 0x61d   : > { %v11101_v5 = vpop.f32.mrf.mxu0  ;;  %11172 = vmatmul.mubr.msk.f32.gmra.mxu0 %vm4108_vm4, %v7924_v48  ;;  %v6998_v9 = vpop.permute.xlu1 %6997  ;;  %v16576_v48 = vld [vmem:[#allocation308_spill] sm:$0xff] }
 0x61e   : > { %9622 = vst.msk [vmem:[%s14690_s17 + $0x158] sm:$0xff] %vm618_vm0, %v9494_v30  ;;  %v9493_v55 = vmax.f32 %v9365_v35, 0.0  ;;  %v9098_v25 = vadd.f32 %v11101_v5, %v5881_v19  ;;  %v6996_v10 = vpop.permute.xlu0 %6995  ;;  %v7798_v17 = vsel %vm618_vm0, %v6390_v62, %v6998_v9  ;;  %v5901_v59 = vadd.f32 %v10913_v31, %v16576_v48  ;;  %v6678_v30 = vld [vmem:[#allocation2 + $0x542] sm:$0xff]  ;;  %v6677_v35 = vld [vmem:[#allocation2 + $0x53a] sm:$0xff]  ;;  %v10916_v9 = vpop.f32.mrf.mxu1 }
 0x61f   : > { %v8634_v54 = vpop.f32.mrf.mxu0  ;;  %7565 = vrot.lane.b32.xlu1 %v6674_v51, %s11286_s28  ;;  %7563 = vrot.lane.b32.xlu0 %v6673_v42, %s11286_s28  ;;  %v7797_v23 = vsel %vm618_vm0, %v6389_v16, %v6996_v10  ;;  %v16577_v42 = vld [vmem:[#allocation311_spill] sm:$0xff]  ;;  %v6394_v10 = vld [vmem:[#allocation2 + $0x428] sm:$0xff] }
 0x620   : > { %9621 = vst.msk [vmem:[%s14690_s17 + $0x150] sm:$0xff] %vm618_vm0, %v9493_v55  ;;  %v9233_v29 = vmul.f32 %v15025_v49, %v9098_v25  ;;  %v9097_v53 = vadd.f32 %v8634_v54, %v5876_v36  ;;  %v5896_v5 = vadd.f32 %v5895_v45, %v16577_v42  ;;  %v16581_v45 = vld [vmem:[#allocation323_spill] sm:$0xff] }
 0x621   : > { %v7510_v12 = vpop.permute.xlu1 %7509 }
 0x622   : > { %v9368_v4 = vadd.f32 %v15036_v21, %v9233_v29  ;;  %v9232_v3 = vmul.f32 %v15025_v49, %v9097_v53  ;;  %v7508_v56 = vpop.permute.xlu0 %7507  ;;  %v7926_v34 = vsel %vm2312_vm3, %v7798_v17, %v7510_v12 }
 0x623   : > { %v7925_v0 = vsel %vm2312_vm3, %v7797_v23, %v7508_v56  ;;  %7057 = vrot.lane.b32.xlu1 %v6548_v24, %s11285_s27  ;;  %7055 = vrot.lane.b32.xlu0 %v6547_v13, %s11285_s27  ;;  %v5905_v23 = vpop.f32.mrf.mxu1  ;;  %v16578_v56 = vld [vmem:[#allocation314_spill] sm:$0xff] }
 0x624   : > { %v9496_v43 = vmax.f32 %v9368_v4, 0.0  ;;  %v9367_v20 = vadd.f32 %v15036_v21, %v9232_v3  ;;  %11174 = vmatprep.mubr.msk.f32.mxu0 %vm4108_vm4, %v7925_v0  ;;  %v5911_v41 = vadd.f32 %v10916_v9, %v16578_v56 }
 0x625   : > { %v11104_v1 = vpop.f32.mrf.mxu0  ;;  %11175 = vmatmul.mubr.msk.f32.gmra.mxu0 %vm4108_vm4, %v7926_v34  ;;  %v7002_v37 = vpop.permute.xlu1 %7001 }
 0x626   : > { %9624 = vst.msk [vmem:[%s14690_s17 + $0x168] sm:$0xff] %vm618_vm0, %v9496_v43  ;;  %v9495_v58 = vmax.f32 %v9367_v20, 0.0  ;;  %v9100_v26 = vadd.f32 %v11104_v1, %v5891_v28  ;;  %v7000_v15 = vpop.permute.xlu0 %6999  ;;  %v7800_v11 = vsel %vm618_vm0, %v6392_v27, %v7002_v37  ;;  %v16579_v28 = vld [vmem:[#allocation317_spill] sm:$0xff]  ;;  %v10919_v57 = vpop.f32.mrf.mxu1 }
 0x627   : > { %v8644_v50 = vpop.f32.mrf.mxu0  ;;  %7569 = vrot.lane.b32.xlu1 %v6676_v18, %s11286_s28  ;;  %7567 = vrot.lane.b32.xlu0 %v6675_v46, %s11286_s28  ;;  %v7799_v61 = vsel %vm618_vm0, %v6391_v47, %v7000_v15  ;;  %v5906_v43 = vadd.f32 %v5905_v23, %v16579_v28 }
 0x628   : > { %9623 = vst.msk [vmem:[%s14690_s17 + $0x160] sm:$0xff] %vm618_vm0, %v9495_v58  ;;  %v9235_v22 = vmul.f32 %v15025_v49, %v9100_v26  ;;  %v9099_v52 = vadd.f32 %v8644_v50, %v5886_v40  ;;  %v6396_v40 = vld [vmem:[#allocation2 + $0x440] sm:$0xff]  ;;  %v6395_v58 = vld [vmem:[#allocation2 + $0x438] sm:$0xff] }
 0x629   : > { %v7514_v38 = vpop.permute.xlu1 %7513 }
 0x62a   : > { %v9370_v7 = vadd.f32 %v15036_v21, %v9235_v22  ;;  %v9234_v14 = vmul.f32 %v15025_v49, %v9099_v52  ;;  %v7512_v33 = vpop.permute.xlu0 %7511  ;;  %v7928_v63 = vsel %vm2312_vm3, %v7800_v11, %v7514_v38  ;;  %v16580_v11 = vld [vmem:[#allocation320_spill] sm:$0xff] }
 0x62b   : > { %v7927_v8 = vsel %vm2312_vm3, %v7799_v61, %v7512_v33  ;;  %7061 = vrot.lane.b32.xlu1 %v6550_v6, %s11285_s27  ;;  %7059 = vrot.lane.b32.xlu0 %v6549_v2, %s11285_s27  ;;  %v5915_v6 = vpop.f32.mrf.mxu1  ;;  %v5921_v61 = vadd.f32 %v10919_v57, %v16580_v11 }
 0x62c   : > { %v9498_v39 = vmax.f32 %v9370_v7, 0.0  ;;  %v9369_v19 = vadd.f32 %v15036_v21, %v9234_v14  ;;  %11177 = vmatprep.mubr.msk.f32.mxu0 %vm4108_vm4, %v7927_v8 }
 0x62d   : > { %v11107_v51 = vpop.f32.mrf.mxu0  ;;  %11178 = vmatmul.mubr.msk.f32.gmra.mxu0 %vm4108_vm4, %v7928_v63  ;;  %v7006_v55 = vpop.permute.xlu1 %7005 }
 0x62e   : > { %9626 = vst.msk [vmem:[%s14690_s17 + $0x178] sm:$0xff] %vm618_vm0, %v9498_v39  ;;  %v9497_v60 = vmax.f32 %v9369_v19, 0.0  ;;  %v9102_v36 = vadd.f32 %v11107_v51, %v5901_v59  ;;  %v7004_v25 = vpop.permute.xlu0 %7003  ;;  %v7802_v53 = vsel %vm618_vm0, %v6394_v10, %v7006_v55  ;;  %v10922_v39 = vpop.f32.mrf.mxu1  ;;  %v6398_v19 = vld [vmem:[#allocation2 + $0x450] sm:$0xff]  ;;  %v15323_v51 = vld [vmem:[%s15809_s4] ss:$0 sm:$0xff] }
 0x62f   : > { %v8654_v62 = vpop.f32.mrf.mxu0  ;;  %7573 = vrot.lane.b32.xlu1 %v6678_v30, %s11286_s28  ;;  %7571 = vrot.lane.b32.xlu0 %v6677_v35, %s11286_s28  ;;  %v7801_v24 = vsel %vm618_vm0, %v6393_v32, %v7004_v25  ;;  %v6397_v30 = vld [vmem:[#allocation2 + $0x448] sm:$0xff] }
 0x630   : > { %9625 = vst.msk [vmem:[%s14690_s17 + $0x170] sm:$0xff] %vm618_vm0, %v9497_v60  ;;  %v9237_v16 = vmul.f32 %v15025_v49, %v9102_v36  ;;  %v9101_v54 = vadd.f32 %v8654_v62, %v5896_v5  ;;  %v5925_v32 = vpop.f32.mrf.mxu1 }
 0x631   : > { %v7518_v4 = vpop.permute.xlu1 %7517 }
 0x632   : > { %v9372_v29 = vadd.f32 %v15036_v21, %v9237_v16  ;;  %v9236_v13 = vmul.f32 %v15025_v49, %v9101_v54  ;;  %v7516_v17 = vpop.permute.xlu0 %7515  ;;  %v7930_v3 = vsel %vm2312_vm3, %v7802_v53, %v7518_v4  ;;  %v16582_v54 = vld [vmem:[#allocation326_spill] sm:$0xff]  ;;  %v16583_v4 = vld [vmem:[#allocation329_spill] sm:$0xff] }
 0x633   : > { %v7929_v12 = vsel %vm2312_vm3, %v7801_v24, %v7516_v17  ;;  %v5926_v17 = vadd.f32 %v5925_v32, %v16583_v4 }
 0x634   : > { %v9500_v34 = vmax.f32 %v9372_v29, 0.0  ;;  %v9371_v0 = vadd.f32 %v15036_v21, %v9236_v13  ;;  %11180 = vmatprep.mubr.msk.f32.mxu0 %vm4108_vm4, %v7929_v12  ;;  %v5931_v29 = vadd.f32 %v10922_v39, %v16582_v54 }
 0x635   : > { %v11110_v44 = vpop.f32.mrf.mxu0  ;;  %11181 = vmatmul.mubr.msk.f32.gmra.mxu0 %vm4108_vm4, %v7930_v3  ;;  %v7010_v46 = vpop.permute.xlu1 %7009 }
 0x636   : > { %9628 = vst.msk [vmem:[%s14690_s17 + $0x188] sm:$0xff] %vm618_vm0, %v9500_v34  ;;  %v9499_v20 = vmax.f32 %v9371_v0, 0.0  ;;  %v9104_v18 = vadd.f32 %v11110_v44, %v5911_v41  ;;  %v7008_v1 = vpop.permute.xlu0 %7007  ;;  %v7804_v27 = vsel %vm618_vm0, %v6396_v40, %v7010_v46  ;;  %v10925_v41 = vpop.f32.mrf.mxu1  ;;  %v6400_v34 = vld [vmem:[#allocation2 + $0x468] sm:$0xff]  ;;  %v6399_v0 = vld [vmem:[#allocation2 + $0x460] sm:$0xff] }
 0x637   : > { %v8664_v26 = vpop.f32.mrf.mxu0  ;;  %v7803_v47 = vsel %vm618_vm0, %v6395_v58, %v7008_v1 }
 0x638   : > { %9627 = vst.msk [vmem:[%s14690_s17 + $0x180] sm:$0xff] %vm618_vm0, %v9499_v20  ;;  %v9239_v37 = vmul.f32 %v15025_v49, %v9104_v18  ;;  %v9103_v15 = vadd.f32 %v8664_v26, %v5906_v43  ;;  %v5935_v58 = vpop.f32.mrf.mxu1 }
 0x639   : > { %v7522_v22 = vpop.permute.xlu1 %7521 }
 0x63a   : > { %v9374_v31 = vadd.f32 %v15036_v21, %v9239_v37  ;;  %v9238_v50 = vmul.f32 %v15025_v49, %v9103_v15  ;;  %v7520_v52 = vpop.permute.xlu0 %7519  ;;  %v7932_v2 = vsel %vm2312_vm3, %v7804_v27, %v7522_v22  ;;  %v5916_v49 = vadd.f32 %v5915_v6, %v16581_v45  ;;  %v16584_v15 = vld [vmem:[#allocation332_spill] sm:$0xff]  ;;  %v16585_v22 = vld [vmem:[#allocation335_spill] sm:$0xff] }
 0x63b   : > { %v7931_v7 = vsel %vm2312_vm3, %v7803_v47, %v7520_v52  ;;  %v5936_v52 = vadd.f32 %v5935_v58, %v16585_v22 }
 0x63c   : > { %v9502_v14 = vmax.f32 %v9374_v31, 0.0  ;;  %v9373_v38 = vadd.f32 %v15036_v21, %v9238_v50  ;;  %11183 = vmatprep.mubr.msk.f32.mxu0 %vm4108_vm4, %v7931_v7  ;;  %v5941_v31 = vadd.f32 %v10925_v41, %v16584_v15 }
 0x63d   : > { %v11113_v33 = vpop.f32.mrf.mxu0  ;;  %11184 = vmatmul.mubr.msk.f32.gmra.mxu0 %vm4108_vm4, %v7932_v2  ;;  %v7014_v48 = vpop.permute.xlu1 %7013 }
 0x63e   : > { %9630 = vst.msk [vmem:[%s14690_s17 + $0x198] sm:$0xff] %vm618_vm0, %v9502_v14  ;;  %v9501_v63 = vmax.f32 %v9373_v38, 0.0  ;;  %v9106_v8 = vadd.f32 %v11113_v33, %v5921_v61  ;;  %v7012_v59 = vpop.permute.xlu0 %7011  ;;  %v7806_v36 = vsel %vm618_vm0, %v6398_v19, %v7014_v48  ;;  %v10928_v61 = vpop.f32.mrf.mxu1  ;;  %v6402_v14 = vld [vmem:[#allocation2 + $0x478] sm:$0xff]  ;;  %v6401_v38 = vld [vmem:[#allocation2 + $0x470] sm:$0xff] }
 0x63f   : > { %v8674_v35 = vpop.f32.mrf.mxu0  ;;  %v7805_v55 = vsel %vm618_vm0, %v6397_v30, %v7012_v59 }
 0x640   : > { %9629 = vst.msk [vmem:[%s14690_s17 + $0x190] sm:$0xff] %vm618_vm0, %v9501_v63  ;;  %v9241_v42 = vmul.f32 %v15323_v51, %v9106_v8  ;;  %v9105_v5 = vadd.f32 %v8674_v35, %v5916_v49  ;;  %v5945_v30 = vpop.f32.mrf.mxu1 }
 0x641   : > { %v7526_v9 = vpop.permute.xlu1 %7525 }
 0x642   : > { %v9376_v60 = vadd.f32 %v15036_v21, %v9241_v42  ;;  %v9240_v25 = vmul.f32 %v15323_v51, %v9105_v5  ;;  %v7524_v10 = vpop.permute.xlu0 %7523  ;;  %v7934_v62 = vsel %vm2312_vm3, %v7806_v36, %v7526_v9  ;;  %v15336_v21 = vld [vmem:[%s15810_s5] ss:$0 sm:$0xff]  ;;  %v16586_v5 = vld [vmem:[#allocation270_spill] sm:$0xff]  ;;  %v16587_v9 = vld [vmem:[#allocation3_spill] sm:$0xff] }
 0x643   : > { %v7933_v16 = vsel %vm2312_vm3, %v7805_v55, %v7524_v10  ;;  %v5946_v10 = vadd.f32 %v5945_v30, %v16587_v9 }
 0x644   : > { %v9504_v53 = vmax.f32 %v9376_v60, 0.0  ;;  %v9375_v24 = vadd.f32 %v15336_v21, %v9240_v25  ;;  %11186 = vmatprep.mubr.msk.f32.mxu0 %vm4108_vm4, %v7933_v16  ;;  %v5951_v60 = vadd.f32 %v10928_v61, %v16586_v5 }
 0x645   : > { %v11116_v13 = vpop.f32.mrf.mxu0  ;;  %11187 = vmatmul.mubr.msk.f32.gmra.mxu0 %vm4108_vm4, %v7934_v62  ;;  %v7018_v12 = vpop.permute.xlu1 %7017 }
 0x646   : > { %9632 = vst.msk [vmem:[%s14690_s17 + $0x1a8] sm:$0xff] %vm618_vm0, %v9504_v53  ;;  %v9503_v23 = vmax.f32 %v9375_v24, 0.0  ;;  %v9108_v3 = vadd.f32 %v11116_v13, %v5931_v29  ;;  %v7016_v56 = vpop.permute.xlu0 %7015  ;;  %v7808_v18 = vsel %vm618_vm0, %v6400_v34, %v7018_v12  ;;  %v10931_v29 = vpop.f32.mrf.mxu1  ;;  %v6404_v53 = vld [vmem:[#allocation2 + $0x490] sm:$0xff]  ;;  %v6403_v24 = vld [vmem:[#allocation2 + $0x488] sm:$0xff] }
 0x647   : > { %v8684_v44 = vpop.f32.mrf.mxu0  ;;  %v7807_v46 = vsel %vm618_vm0, %v6399_v0, %v7016_v56 }
 0x648   : > { %9631 = vst.msk [vmem:[%s14690_s17 + $0x1a0] sm:$0xff] %vm618_vm0, %v9503_v23  ;;  %v9243_v28 = vmul.f32 %v15323_v51, %v9108_v3  ;;  %v9107_v43 = vadd.f32 %v8684_v44, %v5926_v17  ;;  %v5955_v0 = vpop.f32.mrf.mxu1 }
 0x649   : > { %v7530_v57 = vpop.permute.xlu1 %7529 }
 0x64a   : > { %v9378_v20 = vadd.f32 %v15336_v21, %v9243_v28  ;;  %v9242_v1 = vmul.f32 %v15323_v51, %v9107_v43  ;;  %v7528_v40 = vpop.permute.xlu0 %7527  ;;  %v7936_v26 = vsel %vm2312_vm3, %v7808_v18, %v7530_v57  ;;  %v16588_v43 = vld [vmem:[#allocation5_spill] sm:$0xff]  ;;  %v16589_v57 = vld [vmem:[#allocation136_spill] sm:$0xff] }
 0x64b   : > { %v7935_v37 = vsel %vm2312_vm3, %v7807_v46, %v7528_v40  ;;  %v5956_v40 = vadd.f32 %v5955_v0, %v16589_v57 }
 0x64c   : > { %v9506_v27 = vmax.f32 %v9378_v20, 0.0  ;;  %v9377_v47 = vadd.f32 %v15336_v21, %v9242_v1  ;;  %11189 = vmatprep.mubr.msk.f32.mxu0 %vm4108_vm4, %v7935_v37  ;;  %v5961_v20 = vadd.f32 %v10931_v29, %v16588_v43 }
 0x64d   : > { %v11119_v50 = vpop.f32.mrf.mxu0  ;;  %11190 = vmatmul.mubr.msk.f32.gmra.mxu0 %vm4108_vm4, %v7936_v26  ;;  %v7022_v7 = vpop.permute.xlu1 %7021 }
 0x64e   : > { %9634 = vst.msk [vmem:[%s14690_s17 + $0x1b8] sm:$0xff] %vm618_vm0, %v9506_v27  ;;  %v9505_v6 = vmax.f32 %v9377_v47, 0.0  ;;  %v9110_v2 = vadd.f32 %v11119_v50, %v5941_v31  ;;  %v7020_v11 = vpop.permute.xlu0 %7019  ;;  %v7810_v8 = vsel %vm618_vm0, %v6402_v14, %v7022_v7  ;;  %v10934_v31 = vpop.f32.mrf.mxu1  ;;  %v6406_v27 = vld [vmem:[#allocation2 + $0x4a0] sm:$0xff]  ;;  %v6405_v47 = vld [vmem:[#allocation2 + $0x498] sm:$0xff] }
 0x64f   : > { %v8694_v33 = vpop.f32.mrf.mxu0  ;;  %v7809_v48 = vsel %vm618_vm0, %v6401_v38, %v7020_v11 }
 0x650   : > { %9633 = vst.msk [vmem:[%s14690_s17 + $0x1b0] sm:$0xff] %vm618_vm0, %v9505_v6  ;;  %v9245_v45 = vmul.f32 %v15323_v51, %v9110_v2  ;;  %v9109_v49 = vadd.f32 %v8694_v33, %v5936_v52  ;;  %v5965_v38 = vpop.f32.mrf.mxu1 }
 0x651   : > { %v7534_v39 = vpop.permute.xlu1 %7533 }
 0x652   : > { %v9380_v63 = vadd.f32 %v15336_v21, %v9245_v45  ;;  %v9244_v59 = vmul.f32 %v15323_v51, %v9109_v49  ;;  %v7532_v19 = vpop.permute.xlu0 %7531  ;;  %v7938_v35 = vsel %vm2312_vm3, %v7810_v8, %v7534_v39  ;;  %v16590_v49 = vld [vmem:[#allocation7_spill] sm:$0xff]  ;;  %v16591_v39 = vld [vmem:[#allocation10_spill] sm:$0xff] }
 0x653   : > { %v7937_v42 = vsel %vm2312_vm3, %v7809_v48, %v7532_v19  ;;  %v5966_v19 = vadd.f32 %v5965_v38, %v16591_v39 }
 0x654   : > { %v9508_v36 = vmax.f32 %v9380_v63, 0.0  ;;  %v9379_v55 = vadd.f32 %v15336_v21, %v9244_v59  ;;  %11192 = vmatprep.mubr.msk.f32.mxu0 %vm4108_vm4, %v7937_v42  ;;  %v5971_v63 = vadd.f32 %v10934_v31, %v16590_v49 }
 0x655   : > { %v11122_v25 = vpop.f32.mrf.mxu0  ;;  %11193 = vmatmul.mubr.msk.f32.gmra.mxu0 %vm4108_vm4, %v7938_v35  ;;  %v7026_v16 = vpop.permute.xlu1 %7025 }
 0x656   : > { %9636 = vst.msk [vmem:[%s14690_s17 + $0x1c8] sm:$0xff] %vm618_vm0, %v9508_v36  ;;  %v9507_v32 = vmax.f32 %v9379_v55, 0.0  ;;  %v9112_v62 = vadd.f32 %v11122_v25, %v5951_v60  ;;  %v7024_v54 = vpop.permute.xlu0 %7023  ;;  %v7812_v3 = vsel %vm618_vm0, %v6404_v53, %v7026_v16  ;;  %v10937_v60 = vpop.f32.mrf.mxu1  ;;  %v6408_v36 = vld [vmem:[#allocation2 + $0x4b8] sm:$0xff]  ;;  %v6407_v55 = vld [vmem:[#allocation2 + $0x4b0] sm:$0xff] }
 0x657   : > { %v8704_v13 = vpop.f32.mrf.mxu0  ;;  %v7811_v12 = vsel %vm618_vm0, %v6403_v24, %v7024_v54 }
 0x658   : > { %9635 = vst.msk [vmem:[%s14690_s17 + $0x1c0] sm:$0xff] %vm618_vm0, %v9507_v32  ;;  %v9247_v4 = vmul.f32 %v15323_v51, %v9112_v62  ;;  %v9111_v17 = vadd.f32 %v8704_v13, %v5946_v10  ;;  %v5975_v24 = vpop.f32.mrf.mxu1 }
 0x659   : > { %v7538_v41 = vpop.permute.xlu1 %7537 }
 0x65a   : > { %v9382_v23 = vadd.f32 %v15336_v21, %v9247_v4  ;;  %v9246_v56 = vmul.f32 %v15323_v51, %v9111_v17  ;;  %v7536_v34 = vpop.permute.xlu0 %7535  ;;  %v7940_v44 = vsel %vm2312_vm3, %v7812_v3, %v7538_v41  ;;  %v16592_v17 = vld [vmem:[#allocation259_spill] sm:$0xff]  ;;  %v16593_v41 = vld [vmem:[#allocation260_spill] sm:$0xff] }
 0x65b   : > { %v7939_v28 = vsel %vm2312_vm3, %v7811_v12, %v7536_v34  ;;  %v5976_v34 = vadd.f32 %v5975_v24, %v16593_v41 }
 0x65c   : > { %v9510_v18 = vmax.f32 %v9382_v23, 0.0  ;;  %v9381_v46 = vadd.f32 %v15336_v21, %v9246_v56  ;;  %11195 = vmatprep.mubr.msk.f32.mxu0 %vm4108_vm4, %v7939_v28  ;;  %v5981_v23 = vadd.f32 %v10937_v60, %v16592_v17 }
 0x65d   : > { %v11125_v1 = vpop.f32.mrf.mxu0  ;;  %11196 = vmatmul.mubr.msk.f32.gmra.mxu0 %vm4108_vm4, %v7940_v44  ;;  %v7030_v37 = vpop.permute.xlu1 %7029 }
 0x65e   : > { %9638 = vst.msk [vmem:[%s14690_s17 + $0x1d8] sm:$0xff] %vm618_vm0, %v9510_v18  ;;  %v9509_v58 = vmax.f32 %v9381_v46, 0.0  ;;  %v9114_v26 = vadd.f32 %v11125_v1, %v5961_v20  ;;  %v7028_v15 = vpop.permute.xlu0 %7027  ;;  %v7814_v2 = vsel %vm618_vm0, %v6406_v27, %v7030_v37  ;;  %v10940_v20 = vpop.f32.mrf.mxu1  ;;  %v6410_v18 = vld [vmem:[#allocation2 + $0x4c8] sm:$0xff]  ;;  %v6409_v46 = vld [vmem:[#allocation2 + $0x4c0] sm:$0xff] }
 0x65f   : > { %v8714_v50 = vpop.f32.mrf.mxu0  ;;  %v7813_v7 = vsel %vm618_vm0, %v6405_v47, %v7028_v15 }
 0x660   : > { %9637 = vst.msk [vmem:[%s14690_s17 + $0x1d0] sm:$0xff] %vm618_vm0, %v9509_v58  ;;  %v9249_v22 = vmul.f32 %v15323_v51, %v9114_v26  ;;  %v9113_v52 = vadd.f32 %v8714_v50, %v5956_v40  ;;  %v5985_v47 = vpop.f32.mrf.mxu1 }
 0x661   : > { %v7542_v61 = vpop.permute.xlu1 %7541 }
 0x662   : > { %v9384_v6 = vadd.f32 %v15336_v21, %v9249_v22  ;;  %v9248_v11 = vmul.f32 %v15323_v51, %v9113_v52  ;;  %v7540_v14 = vpop.permute.xlu0 %7539  ;;  %v7942_v33 = vsel %vm2312_vm3, %v7814_v2, %v7542_v61  ;;  %v16594_v52 = vld [vmem:[#allocation261_spill] sm:$0xff]  ;;  %v16595_v61 = vld [vmem:[#allocation262_spill] sm:$0xff] }
 0x663   : > { %v7941_v45 = vsel %vm2312_vm3, %v7813_v7, %v7540_v14  ;;  %v5986_v14 = vadd.f32 %v5985_v47, %v16595_v61 }
 0x664   : > { %v9512_v8 = vmax.f32 %v9384_v6, 0.0  ;;  %v9383_v48 = vadd.f32 %v15336_v21, %v9248_v11  ;;  %11198 = vmatprep.mubr.msk.f32.mxu0 %vm4108_vm4, %v7941_v45  ;;  %v5991_v6 = vadd.f32 %v10940_v20, %v16594_v52 }
 0x665   : > { %v11128_v59 = vpop.f32.mrf.mxu0  ;;  %11199 = vmatmul.mubr.msk.f32.gmra.mxu0 %vm4108_vm4, %v7942_v33  ;;  %v7034_v42 = vpop.permute.xlu1 %7033 }
 0x666   : > { %9640 = vst.msk [vmem:[%s14690_s17 + $0x1e8] sm:$0xff] %vm618_vm0, %v9512_v8  ;;  %v9511_v30 = vmax.f32 %v9383_v48, 0.0  ;;  %v9116_v35 = vadd.f32 %v11128_v59, %v5971_v63  ;;  %v7032_v5 = vpop.permute.xlu0 %7031  ;;  %v7816_v62 = vsel %vm618_vm0, %v6408_v36, %v7034_v42  ;;  %v10943_v63 = vpop.f32.mrf.mxu1  ;;  %v6412_v8 = vld [vmem:[#allocation2 + $0x4e0] sm:$0xff]  ;;  %v6411_v48 = vld [vmem:[#allocation2 + $0x4d8] sm:$0xff] }
 0x667   : > { %v8724_v25 = vpop.f32.mrf.mxu0  ;;  %v7815_v16 = vsel %vm618_vm0, %v6407_v55, %v7032_v5 }
 0x668   : > { %9639 = vst.msk [vmem:[%s14690_s17 + $0x1e0] sm:$0xff] %vm618_vm0, %v9511_v30  ;;  %v9251_v9 = vmul.f32 %v15323_v51, %v9116_v35  ;;  %v9115_v10 = vadd.f32 %v8724_v25, %v5966_v19  ;;  %v5995_v55 = vpop.f32.mrf.mxu1 }
 0x669   : > { %v7546_v29 = vpop.permute.xlu1 %7545 }
 0x66a   : > { %v9386_v32 = vadd.f32 %v15336_v21, %v9251_v9  ;;  %v9250_v54 = vmul.f32 %v15323_v51, %v9115_v10  ;;  %v7544_v53 = vpop.permute.xlu0 %7543  ;;  %v7944_v13 = vsel %vm2312_vm3, %v7816_v62, %v7546_v29  ;;  %v16596_v10 = vld [vmem:[#allocation263_spill] sm:$0xff]  ;;  %v16597_v29 = vld [vmem:[#allocation264_spill] sm:$0xff] }
 0x66b   : > { %v7943_v4 = vsel %vm2312_vm3, %v7815_v16, %v7544_v53  ;;  %v5996_v53 = vadd.f32 %v5995_v55, %v16597_v29 }
 0x66c   : > { %v9514_v3 = vmax.f32 %v9386_v32, 0.0  ;;  %v9385_v12 = vadd.f32 %v15336_v21, %v9250_v54  ;;  %11201 = vmatprep.mubr.msk.f32.mxu0 %vm4108_vm4, %v7943_v4  ;;  %v6001_v32 = vadd.f32 %v10943_v63, %v16596_v10 }
 0x66d   : > { %v11131_v56 = vpop.f32.mrf.mxu0  ;;  %11202 = vmatmul.mubr.msk.f32.gmra.mxu0 %vm4108_vm4, %v7944_v13  ;;  %v7038_v28 = vpop.permute.xlu1 %7037 }
 0x66e   : > { %9642 = vst.msk [vmem:[%s14690_s17 + $0x1f8] sm:$0xff] %vm618_vm0, %v9514_v3  ;;  %v9513_v0 = vmax.f32 %v9385_v12, 0.0  ;;  %v9118_v44 = vadd.f32 %v11131_v56, %v5981_v23  ;;  %v7036_v43 = vpop.permute.xlu0 %7035  ;;  %v7818_v26 = vsel %vm618_vm0, %v6410_v18, %v7038_v28  ;;  %v10946_v23 = vpop.f32.mrf.mxu1  ;;  %v6414_v3 = vld [vmem:[#allocation2 + $0x4f0] sm:$0xff]  ;;  %v6413_v12 = vld [vmem:[#allocation2 + $0x4e8] sm:$0xff] }
 0x66f   : > { %v8734_v1 = vpop.f32.mrf.mxu0  ;;  %v7817_v37 = vsel %vm618_vm0, %v6409_v46, %v7036_v43 }
 0x670   : > { %9641 = vst.msk [vmem:[%s14690_s17 + $0x1f0] sm:$0xff] %vm618_vm0, %v9513_v0  ;;  %v9253_v57 = vmul.f32 %v15323_v51, %v9118_v44  ;;  %v9117_v40 = vadd.f32 %v8734_v1, %v5976_v34  ;;  %v6005_v46 = vpop.f32.mrf.mxu1 }
 0x671   : > { %v7550_v31 = vpop.permute.xlu1 %7549 }
 0x672   : > { %v9388_v58 = vadd.f32 %v15336_v21, %v9253_v57  ;;  %v9252_v15 = vmul.f32 %v15323_v51, %v9117_v40  ;;  %v7548_v27 = vpop.permute.xlu0 %7547  ;;  %v7946_v50 = vsel %vm2312_vm3, %v7818_v26, %v7550_v31  ;;  %v16598_v40 = vld [vmem:[#allocation265_spill] sm:$0xff]  ;;  %v16599_v31 = vld [vmem:[#allocation266_spill] sm:$0xff] }
 0x673   : > { %v7945_v22 = vsel %vm2312_vm3, %v7817_v37, %v7548_v27  ;;  %v6006_v27 = vadd.f32 %v6005_v46, %v16599_v31 }
 0x674   : > { %v9516_v2 = vmax.f32 %v9388_v58, 0.0  ;;  %v9387_v7 = vadd.f32 %v15336_v21, %v9252_v15  ;;  %11204 = vmatprep.mubr.msk.f32.mxu0 %vm4108_vm4, %v7945_v22  ;;  %v6011_v58 = vadd.f32 %v10946_v23, %v16598_v40 }
 0x675   : > { %v11134_v11 = vpop.f32.mrf.mxu0  ;;  %11205 = vmatmul.mubr.msk.f32.gmra.mxu0 %vm4108_vm4, %v7946_v50  ;;  %v7042_v45 = vpop.permute.xlu1 %7041 }
 0x676   : > { %9644 = vst.msk [vmem:[%s14690_s17 + $0x208] sm:$0xff] %vm618_vm0, %v9516_v2  ;;  %v9515_v38 = vmax.f32 %v9387_v7, 0.0  ;;  %v9120_v33 = vadd.f32 %v11134_v11, %v5991_v6  ;;  %v7040_v49 = vpop.permute.xlu0 %7039  ;;  %v7820_v35 = vsel %vm618_vm0, %v6412_v8, %v7042_v45  ;;  %v10949_v6 = vpop.f32.mrf.mxu1  ;;  %v6416_v2 = vld [vmem:[#allocation2 + $0x508] sm:$0xff]  ;;  %v6415_v7 = vld [vmem:[#allocation2 + $0x500] sm:$0xff] }
 0x677   : > { %v8744_v59 = vpop.f32.mrf.mxu0  ;;  %v7819_v42 = vsel %vm618_vm0, %v6411_v48, %v7040_v49 }
 0x678   : > { %9643 = vst.msk [vmem:[%s14690_s17 + $0x200] sm:$0xff] %vm618_vm0, %v9515_v38  ;;  %v9255_v39 = vmul.f32 %v15323_v51, %v9120_v33  ;;  %v9119_v19 = vadd.f32 %v8744_v59, %v5986_v14  ;;  %v6015_v48 = vpop.f32.mrf.mxu1 }
 0x679   : > { %v7554_v60 = vpop.permute.xlu1 %7553 }
 0x67a   : > { %v9390_v30 = vadd.f32 %v15336_v21, %v9255_v39  ;;  %v9254_v5 = vmul.f32 %v15323_v51, %v9119_v19  ;;  %v7552_v36 = vpop.permute.xlu0 %7551  ;;  %v7948_v25 = vsel %vm2312_vm3, %v7820_v35, %v7554_v60  ;;  %v16600_v19 = vld [vmem:[#allocation267_spill] sm:$0xff]  ;;  %v16601_v60 = vld [vmem:[#allocation268_spill] sm:$0xff] }
 0x67b   : > { %v7947_v9 = vsel %vm2312_vm3, %v7819_v42, %v7552_v36  ;;  %v6016_v36 = vadd.f32 %v6015_v48, %v16601_v60 }
 0x67c   : > { %v9518_v62 = vmax.f32 %v9390_v30, 0.0  ;;  %v9389_v16 = vadd.f32 %v15336_v21, %v9254_v5  ;;  %11207 = vmatprep.mubr.msk.f32.mxu0 %vm4108_vm4, %v7947_v9  ;;  %v6021_v30 = vadd.f32 %v10949_v6, %v16600_v19 }
 0x67d   : > { %v11137_v54 = vpop.f32.mrf.mxu0  ;;  %11208 = vmatmul.mubr.msk.f32.gmra.mxu0 %vm4108_vm4, %v7948_v25  ;;  %v7046_v4 = vpop.permute.xlu1 %7045 }
 0x67e   : > { %9646 = vst.msk [vmem:[%s14690_s17 + $0x218] sm:$0xff] %vm618_vm0, %v9518_v62  ;;  %v9517_v24 = vmax.f32 %v9389_v16, 0.0  ;;  %v9122_v13 = vadd.f32 %v11137_v54, %v6001_v32  ;;  %v7044_v17 = vpop.permute.xlu0 %7043  ;;  %v7822_v44 = vsel %vm618_vm0, %v6414_v3, %v7046_v4  ;;  %v10952_v32 = vpop.f32.mrf.mxu1  ;;  %v6418_v62 = vld [vmem:[#allocation2 + $0x518] sm:$0xff]  ;;  %v6417_v16 = vld [vmem:[#allocation2 + $0x510] sm:$0xff] }
 0x67f   : > { %v8754_v56 = vpop.f32.mrf.mxu0  ;;  %v7821_v28 = vsel %vm618_vm0, %v6413_v12, %v7044_v17 }
 0x680   : > { %9645 = vst.msk [vmem:[%s14690_s17 + $0x210] sm:$0xff] %vm618_vm0, %v9517_v24  ;;  %v9257_v41 = vmul.f32 %v15323_v51, %v9122_v13  ;;  %v9121_v34 = vadd.f32 %v8754_v56, %v5996_v53  ;;  %v6025_v12 = vpop.f32.mrf.mxu1 }
 0x681   : > { %v7558_v20 = vpop.permute.xlu1 %7557 }
 0x682   : > { %v9392_v0 = vadd.f32 %v15336_v21, %v9257_v41  ;;  %v9256_v43 = vmul.f32 %v15323_v51, %v9121_v34  ;;  %v7556_v18 = vpop.permute.xlu0 %7555  ;;  %v7950_v1 = vsel %vm2312_vm3, %v7822_v44, %v7558_v20  ;;  %v16602_v34 = vld [vmem:[#allocation269_spill] sm:$0xff]  ;;  %v16603_v20 = vld [vmem:[#allocation272_spill] sm:$0xff] }
 0x683   : > { %v7949_v57 = vsel %vm2312_vm3, %v7821_v28, %v7556_v18  ;;  %v6026_v18 = vadd.f32 %v6025_v12, %v16603_v20 }
 0x684   : > { %v9520_v26 = vmax.f32 %v9392_v0, 0.0  ;;  %v9391_v37 = vadd.f32 %v15336_v21, %v9256_v43  ;;  %11210 = vmatprep.mubr.msk.f32.mxu0 %vm4108_vm4, %v7949_v57  ;;  %v6031_v0 = vadd.f32 %v10952_v32, %v16602_v34 }
 0x685   : > { %v11140_v15 = vpop.f32.mrf.mxu0  ;;  %11211 = vmatmul.mubr.msk.f32.gmra.mxu0 %vm4108_vm4, %v7950_v1  ;;  %v7050_v22 = vpop.permute.xlu1 %7049 }
 0x686   : > { %9648 = vst.msk [vmem:[%s14690_s17 + $0x228] sm:$0xff] %vm618_vm0, %v9520_v26  ;;  %v9519_v47 = vmax.f32 %v9391_v37, 0.0  ;;  %v9124_v50 = vadd.f32 %v11140_v15, %v6011_v58  ;;  %v7048_v52 = vpop.permute.xlu0 %7047  ;;  %v7824_v33 = vsel %vm618_vm0, %v6416_v2, %v7050_v22  ;;  %v10955_v58 = vpop.f32.mrf.mxu1  ;;  %v6420_v26 = vld [vmem:[#allocation2 + $0x530] sm:$0xff]  ;;  %v6419_v37 = vld [vmem:[#allocation2 + $0x528] sm:$0xff] }
 0x687   : > { %v8764_v11 = vpop.f32.mrf.mxu0  ;;  %v7823_v45 = vsel %vm618_vm0, %v6415_v7, %v7048_v52 }
 0x688   : > { %9647 = vst.msk [vmem:[%s14690_s17 + $0x220] sm:$0xff] %vm618_vm0, %v9519_v47  ;;  %v9259_v61 = vmul.f32 %v15323_v51, %v9124_v50  ;;  %v9123_v14 = vadd.f32 %v8764_v11, %v6006_v27  ;;  %v6035_v7 = vpop.f32.mrf.mxu1 }
 0x689   : > { %v7562_v63 = vpop.permute.xlu1 %7561 }
 0x68a   : > { %v9394_v38 = vadd.f32 %v15336_v21, %v9259_v61  ;;  %v9258_v49 = vmul.f32 %v15323_v51, %v9123_v14  ;;  %v7560_v8 = vpop.permute.xlu0 %7559  ;;  %v7952_v59 = vsel %vm2312_vm3, %v7824_v33, %v7562_v63  ;;  %v16604_v14 = vld [vmem:[#allocation273_spill] sm:$0xff]  ;;  %v16605_v63 = vld [vmem:[#allocation274_spill] sm:$0xff] }
 0x68b   : > { %v7951_v39 = vsel %vm2312_vm3, %v7823_v45, %v7560_v8  ;;  %v6036_v8 = vadd.f32 %v6035_v7, %v16605_v63 }
 0x68c   : > { %v9522_v35 = vmax.f32 %v9394_v38, 0.0  ;;  %v9393_v42 = vadd.f32 %v15336_v21, %v9258_v49  ;;  %11213 = vmatprep.mubr.msk.f32.mxu0 %vm4108_vm4, %v7951_v39  ;;  %v6041_v38 = vadd.f32 %v10955_v58, %v16604_v14  ;;  %v16609_v58 = vld [vmem:[#allocation278_spill] sm:$0xff] }
 0x68d   : > { %v11143_v5 = vpop.f32.mrf.mxu0  ;;  %11214 = vmatmul.mubr.msk.f32.gmra.mxu0 %vm4108_vm4, %v7952_v59  ;;  %v7054_v9 = vpop.permute.xlu1 %7053 }
 0x68e   : > { %9650 = vst.msk [vmem:[%s14690_s17 + $0x238] sm:$0xff] %vm618_vm0, %v9522_v35  ;;  %v9521_v55 = vmax.f32 %v9393_v42, 0.0  ;;  %v9126_v25 = vadd.f32 %v11143_v5, %v6021_v30  ;;  %v7052_v10 = vpop.permute.xlu0 %7051  ;;  %v7826_v13 = vsel %vm618_vm0, %v6418_v62, %v7054_v9  ;;  %v10958_v30 = vpop.f32.mrf.mxu1  ;;  %v6422_v35 = vld [vmem:[#allocation2 + $0x540] sm:$0xff]  ;;  %v6421_v42 = vld [vmem:[#allocation2 + $0x538] sm:$0xff] }
 0x68f   : > { %v8774_v54 = vpop.f32.mrf.mxu0  ;;  %v7825_v4 = vsel %vm618_vm0, %v6417_v16, %v7052_v10 }
 0x690   : > { %9649 = vst.msk [vmem:[%s14690_s17 + $0x230] sm:$0xff] %vm618_vm0, %v9521_v55  ;;  %v9261_v29 = vmul.f32 %v15323_v51, %v9126_v25  ;;  %v9125_v53 = vadd.f32 %v8774_v54, %v6016_v36  ;;  %v6045_v16 = vpop.f32.mrf.mxu1 }
 0x691   : > { %v7566_v23 = vpop.permute.xlu1 %7565 }
 0x692   : > { %v9396_v24 = vadd.f32 %v15336_v21, %v9261_v29  ;;  %v9260_v17 = vmul.f32 %v15323_v51, %v9125_v53  ;;  %v7564_v3 = vpop.permute.xlu0 %7563  ;;  %v7954_v56 = vsel %vm2312_vm3, %v7826_v13, %v7566_v23  ;;  %v16606_v53 = vld [vmem:[#allocation275_spill] sm:$0xff]  ;;  %v16607_v23 = vld [vmem:[#allocation276_spill] sm:$0xff] }
 0x693   : > { %v7953_v41 = vsel %vm2312_vm3, %v7825_v4, %v7564_v3  ;;  %v6046_v3 = vadd.f32 %v6045_v16, %v16607_v23 }
 0x694   : > { %v9524_v44 = vmax.f32 %v9396_v24, 0.0  ;;  %v9395_v28 = vadd.f32 %v15336_v21, %v9260_v17  ;;  %11216 = vmatprep.mubr.msk.f32.mxu0 %vm4108_vm4, %v7953_v41  ;;  %v6051_v24 = vadd.f32 %v10958_v30, %v16606_v53  ;;  %v10961_v41 = vpop.f32.mrf.mxu1 }
 0x695   : > { %v11146_v43 = vpop.f32.mrf.mxu0  ;;  %11217 = vmatmul.mubr.msk.f32.gmra.mxu0 %vm4108_vm4, %v7954_v56  ;;  %v7058_v57 = vpop.permute.xlu1 %7057 }
 0x696   : > { %9652 = vst.msk [vmem:[%s14690_s17 + $0x248] sm:$0xff] %vm618_vm0, %v9524_v44  ;;  %v9523_v46 = vmax.f32 %v9395_v28, 0.0  ;;  %v9128_v1 = vadd.f32 %v11146_v43, %v6031_v0  ;;  %v7056_v40 = vpop.permute.xlu0 %7055  ;;  %v7828_v50 = vsel %vm618_vm0, %v6420_v26, %v7058_v57  ;;  %v6055_v20 = vpop.f32.mrf.mxu1 }
 0x697   : > { %v8784_v15 = vpop.f32.mrf.mxu0  ;;  %v7827_v22 = vsel %vm618_vm0, %v6419_v37, %v7056_v40  ;;  %v6056_v26 = vadd.f32 %v6055_v20, %v16609_v58 }
 0x698   : > { %9651 = vst.msk [vmem:[%s14690_s17 + $0x240] sm:$0xff] %vm618_vm0, %v9523_v46  ;;  %v9263_v31 = vmul.f32 %v15323_v51, %v9128_v1  ;;  %v9127_v27 = vadd.f32 %v8784_v15, %v6026_v18  ;;  %v16608_v18 = vld [vmem:[#allocation277_spill] sm:$0xff] }
 0x699   : > { %v7570_v6 = vpop.permute.xlu1 %7569  ;;  %v6061_v46 = vadd.f32 %v10961_v41, %v16608_v18 }
 0x69a   : > { %v9398_v47 = vadd.f32 %v15336_v21, %v9263_v31  ;;  %v9262_v52 = vmul.f32 %v15323_v51, %v9127_v27  ;;  %v7568_v2 = vpop.permute.xlu0 %7567  ;;  %v7956_v11 = vsel %vm2312_vm3, %v7828_v50, %v7570_v6  ;;  %v10964_v31 = vpop.f32.mrf.mxu1 }
 0x69b   : > { %v7955_v61 = vsel %vm2312_vm3, %v7827_v22, %v7568_v2  ;;  %v16610_v2 = vld [vmem:[#allocation279_spill] sm:$0xff] }
 0x69c   : > { %v9526_v33 = vmax.f32 %v9398_v47, 0.0  ;;  %v9397_v45 = vadd.f32 %v15336_v21, %v9262_v52  ;;  %11219 = vmatprep.mubr.msk.f32.mxu0 %vm4108_vm4, %v7955_v61  ;;  %v6065_v6 = vpop.f32.mrf.mxu1  ;;  %v6071_v7 = vadd.f32 %v10964_v31, %v16610_v2 }
 0x69d   : > { %v11149_v49 = vpop.f32.mrf.mxu0  ;;  %11220 = vmatmul.mubr.msk.f32.gmra.mxu0 %vm4108_vm4, %v7956_v11  ;;  %v7062_v39 = vpop.permute.xlu1 %7061 }
 0x69e   : > { %9654 = vst.msk [vmem:[%s14690_s17 + $0x258] sm:$0xff] %vm618_vm0, %v9526_v33  ;;  %v9525_v48 = vmax.f32 %v9397_v45, 0.0  ;;  %v9130_v59 = vadd.f32 %v11149_v49, %v6041_v38  ;;  %v7060_v19 = vpop.permute.xlu0 %7059  ;;  %v7830_v25 = vsel %vm618_vm0, %v6422_v35, %v7062_v39  ;;  %v16611_v38 = vld [vmem:[#allocation280_spill] sm:$0xff]  ;;  %v10967_v63 = vpop.f32.mrf.mxu1  ;;  %v16612_v35 = vld [vmem:[#allocation282_spill] sm:$0xff] }
 0x69f   : > { %v8794_v5 = vpop.f32.mrf.mxu0  ;;  %v7829_v9 = vsel %vm618_vm0, %v6421_v42, %v7060_v19  ;;  %v6066_v33 = vadd.f32 %v6065_v6, %v16611_v38  ;;  %v6081_v42 = vadd.f32 %v10967_v63, %v16612_v35 }
 0x6a0   : > { %9653 = vst.msk [vmem:[%s14690_s17 + $0x250] sm:$0xff] %vm618_vm0, %v9525_v48  ;;  %v9265_v60 = vmul.f32 %v15323_v51, %v9130_v59  ;;  %v9129_v36 = vadd.f32 %v8794_v5, %v6036_v8  ;;  %v6075_v30 = vpop.f32.mrf.mxu1 }
 0x6a1   : > { %v7574_v32 = vpop.permute.xlu1 %7573 }
 0x6a2   : > { %v9400_v55 = vadd.f32 %v15336_v21, %v9265_v60  ;;  %v9264_v10 = vmul.f32 %v15323_v51, %v9129_v36  ;;  %v7572_v62 = vpop.permute.xlu0 %7571  ;;  %v7958_v54 = vsel %vm2312_vm3, %v7830_v25, %v7574_v32  ;;  %v10970_v32 = vpop.f32.mrf.mxu1 }
 0x6a3   : > { %v7957_v29 = vsel %vm2312_vm3, %v7829_v9, %v7572_v62 }
 0x6a4   : > { %v9528_v13 = vmax.f32 %v9400_v55, 0.0  ;;  %v9399_v4 = vadd.f32 %v15336_v21, %v9264_v10  ;;  %11222 = vmatprep.mubr.msk.f32.mxu0 %vm4108_vm4, %v7957_v29  ;;  %v16613_v55 = vld [vmem:[#allocation283_spill] sm:$0xff] }
 0x6a5   : > { %v11152_v17 = vpop.f32.mrf.mxu0  ;;  %11223 = vmatmul.mubr.msk.f32.gmra.mxu0 %vm4108_vm4, %v7958_v54  ;;  %v6076_v25 = vadd.f32 %v6075_v30, %v16613_v55 }
 0x6a6   : > { %9656 = vst.msk [vmem:[%s14690_s17 + $0x268] sm:$0xff] %vm618_vm0, %v9528_v13  ;;  %v9527_v12 = vmax.f32 %v9399_v4, 0.0  ;;  %v9132_v56 = vadd.f32 %v11152_v17, %v6051_v24  ;;  %v6085_v24 = vpop.f32.mrf.mxu1  ;;  %v16614_v13 = vld [vmem:[#allocation285_spill] sm:$0xff] }
 0x6a7   : > { %v8804_v34 = vpop.f32.mrf.mxu0  ;;  %v6091_v4 = vadd.f32 %v10970_v32, %v16614_v13 }
 0x6a8   : > { %9655 = vst.msk [vmem:[%s14690_s17 + $0x260] sm:$0xff] %vm618_vm0, %v9527_v12  ;;  %v9267_v0 = vmul.f32 %v15323_v51, %v9132_v56  ;;  %v9131_v44 = vadd.f32 %v8804_v34, %v6046_v3  ;;  %v16615_v12 = vld [vmem:[#allocation286_spill] sm:$0xff] }
 0x6a9   : > { %v6086_v56 = vadd.f32 %v6085_v24, %v16615_v12 }
 0x6aa   : > { %v9402_v28 = vadd.f32 %v15336_v21, %v9267_v0  ;;  %v9266_v43 = vmul.f32 %v15323_v51, %v9131_v44  ;;  %v10973_v0 = vpop.f32.mrf.mxu1 }
 0x6ac   : > { %v9530_v1 = vmax.f32 %v9402_v28, 0.0  ;;  %v9401_v57 = vadd.f32 %v15336_v21, %v9266_v43 }
 0x6ad   : > { %v11155_v40 = vpop.f32.mrf.mxu0 }
 0x6ae   : > { %9658 = vst.msk [vmem:[%s14690_s17 + $0x278] sm:$0xff] %vm618_vm0, %v9530_v1  ;;  %v9529_v37 = vmax.f32 %v9401_v57, 0.0  ;;  %v9134_v15 = vadd.f32 %v11155_v40, %v6061_v46  ;;  %v6095_v46 = vpop.f32.mrf.mxu1  ;;  %v16616_v1 = vld [vmem:[#allocation288_spill] sm:$0xff] }
 0x6af   : > { %v8814_v27 = vpop.f32.mrf.mxu0  ;;  %v6101_v57 = vadd.f32 %v10973_v0, %v16616_v1 }
 0x6b0   : > { %9657 = vst.msk [vmem:[%s14690_s17 + $0x270] sm:$0xff] %vm618_vm0, %v9529_v37  ;;  %v9269_v47 = vmul.f32 %v15323_v51, %v9134_v15  ;;  %v9133_v50 = vadd.f32 %v8814_v27, %v6056_v26  ;;  %v16617_v37 = vld [vmem:[#allocation289_spill] sm:$0xff] }
 0x6b1   : > { %v6096_v15 = vadd.f32 %v6095_v46, %v16617_v37 }
 0x6b2   : > { %v9404_v22 = vadd.f32 %v15336_v21, %v9269_v47  ;;  %v9268_v52 = vmul.f32 %v15323_v51, %v9133_v50  ;;  %v10976_v47 = vpop.f32.mrf.mxu1 }
 0x6b4   : > { %v9532_v11 = vmax.f32 %v9404_v22, 0.0  ;;  %v9403_v61 = vadd.f32 %v15336_v21, %v9268_v52 }
 0x6b5   : > { %v11158_v14 = vpop.f32.mrf.mxu0 }
 0x6b6   : > { %9660 = vst.msk [vmem:[%s14690_s17 + $0x288] sm:$0xff] %vm618_vm0, %v9532_v11  ;;  %v9531_v45 = vmax.f32 %v9403_v61, 0.0  ;;  %v9136_v49 = vadd.f32 %v11158_v14, %v6071_v7  ;;  %v6105_v7 = vpop.f32.mrf.mxu1  ;;  %v16618_v11 = vld [vmem:[#allocation291_spill] sm:$0xff] }
 0x6b7   : > { %v8824_v8 = vpop.f32.mrf.mxu0  ;;  %v6111_v61 = vadd.f32 %v10976_v47, %v16618_v11 }
 0x6b8   : > { %9659 = vst.msk [vmem:[%s14690_s17 + $0x280] sm:$0xff] %vm618_vm0, %v9531_v45  ;;  %v9271_v48 = vmul.f32 %v15323_v51, %v9136_v49  ;;  %v9135_v59 = vadd.f32 %v8824_v8, %v6066_v33  ;;  %v16619_v45 = vld [vmem:[#allocation292_spill] sm:$0xff] }
 0x6b9   : > { %v6106_v49 = vadd.f32 %v6105_v7, %v16619_v45 }
 0x6ba   : > { %v9406_v39 = vadd.f32 %v15336_v21, %v9271_v48  ;;  %v9270_v19 = vmul.f32 %v15323_v51, %v9135_v59  ;;  %v10979_v48 = vpop.f32.mrf.mxu1 }
 0x6bc   : > { %v9534_v5 = vmax.f32 %v9406_v39, 0.0  ;;  %v9405_v60 = vadd.f32 %v15336_v21, %v9270_v19 }
 0x6bd   : > { %v11161_v36 = vpop.f32.mrf.mxu0 }
 0x6be   : > { %9662 = vst.msk [vmem:[%s14690_s17 + $0x298] sm:$0xff] %vm618_vm0, %v9534_v5  ;;  %v9533_v9 = vmax.f32 %v9405_v60, 0.0  ;;  %v9138_v10 = vadd.f32 %v11161_v36, %v6081_v42  ;;  %v6115_v42 = vpop.f32.mrf.mxu1  ;;  %v16620_v5 = vld [vmem:[#allocation294_spill] sm:$0xff] }
 0x6bf   : > { %v8834_v62 = vpop.f32.mrf.mxu0  ;;  %v6121_v60 = vadd.f32 %v10979_v48, %v16620_v5 }
 0x6c0   : > { %9661 = vst.msk [vmem:[%s14690_s17 + $0x290] sm:$0xff] %vm618_vm0, %v9533_v9  ;;  %v9273_v16 = vmul.f32 %v15323_v51, %v9138_v10  ;;  %v9137_v54 = vadd.f32 %v8834_v62, %v6076_v25  ;;  %v16621_v9 = vld [vmem:[#allocation295_spill] sm:$0xff] }
 0x6c1   : > { %v6116_v10 = vadd.f32 %v6115_v42, %v16621_v9  ;;  %v15650_v9 = vld [vmem:[%s15810_s5] ss:$0 sm:$0xff] }
 0x6c2   : > { %v9408_v29 = vadd.f32 %v15336_v21, %v9273_v16  ;;  %v9272_v53 = vmul.f32 %v15323_v51, %v9137_v54  ;;  %v10982_v16 = vpop.f32.mrf.mxu1 }
 0x6c4   : > { %v9536_v17 = vmax.f32 %v9408_v29, 0.0  ;;  %v9407_v23 = vadd.f32 %v15336_v21, %v9272_v53 }
 0x6c5   : > { %v11164_v3 = vpop.f32.mrf.mxu0 }
 0x6c6   : > { %9664 = vst.msk [vmem:[%s14690_s17 + $0x2a8] sm:$0xff] %vm618_vm0, %v9536_v17  ;;  %v9535_v41 = vmax.f32 %v9407_v23, 0.0  ;;  %v9140_v34 = vadd.f32 %v11164_v3, %v6091_v4  ;;  %v6125_v4 = vpop.f32.mrf.mxu1  ;;  %v16622_v17 = vld [vmem:[#allocation297_spill] sm:$0xff] }
 0x6c7   : > { %v8844_v44 = vpop.f32.mrf.mxu0  ;;  %v6131_v23 = vadd.f32 %v10982_v16, %v16622_v17 }
 0x6c8   : > { %9663 = vst.msk [vmem:[%s14690_s17 + $0x2a0] sm:$0xff] %vm618_vm0, %v9535_v41  ;;  %v9275_v28 = vmul.f32 %v15323_v51, %v9140_v34  ;;  %v9139_v43 = vadd.f32 %v8844_v44, %v6086_v56  ;;  %v16623_v41 = vld [vmem:[#allocation298_spill] sm:$0xff] }
 0x6c9   : > { %v6126_v34 = vadd.f32 %v6125_v4, %v16623_v41 }
 0x6ca   : > { %v9410_v20 = vadd.f32 %v15336_v21, %v9275_v28  ;;  %v9274_v18 = vmul.f32 %v15323_v51, %v9139_v43  ;;  %v10985_v28 = vpop.f32.mrf.mxu1 }
 0x6cc   : > { %v9538_v40 = vmax.f32 %v9410_v20, 0.0  ;;  %v9409_v58 = vadd.f32 %v15336_v21, %v9274_v18 }
 0x6cd   : > { %v11167_v26 = vpop.f32.mrf.mxu0 }
 0x6ce   : > { %9666 = vst.msk [vmem:[%s14690_s17 + $0x2b8] sm:$0xff] %vm618_vm0, %v9538_v40  ;;  %v9537_v31 = vmax.f32 %v9409_v58, 0.0  ;;  %v9142_v27 = vadd.f32 %v11167_v26, %v6101_v57  ;;  %v6135_v57 = vpop.f32.mrf.mxu1  ;;  %v16624_v40 = vld [vmem:[#allocation300_spill] sm:$0xff] }
 0x6cf   : > { %v8854_v50 = vpop.f32.mrf.mxu0  ;;  %v6141_v58 = vadd.f32 %v10985_v28, %v16624_v40 }
 0x6d0   : > { %9665 = vst.msk [vmem:[%s14690_s17 + $0x2b0] sm:$0xff] %vm618_vm0, %v9537_v31  ;;  %v9277_v22 = vmul.f32 %v15323_v51, %v9142_v27  ;;  %v9141_v52 = vadd.f32 %v8854_v50, %v6096_v15  ;;  %v16625_v31 = vld [vmem:[#allocation301_spill] sm:$0xff] }
 0x6d1   : > { %v6136_v27 = vadd.f32 %v6135_v57, %v16625_v31 }
 0x6d2   : > { %v9412_v6 = vadd.f32 %v15336_v21, %v9277_v22  ;;  %v9276_v2 = vmul.f32 %v15323_v51, %v9141_v52  ;;  %v10988_v22 = vpop.f32.mrf.mxu1 }
 0x6d4   : > { %v9540_v14 = vmax.f32 %v9412_v6, 0.0  ;;  %v9411_v38 = vadd.f32 %v15336_v21, %v9276_v2 }
 0x6d5   : > { %v11170_v33 = vpop.f32.mrf.mxu0 }
 0x6d6   : > { %9668 = vst.msk [vmem:[%s14690_s17 + $0x2c8] sm:$0xff] %vm618_vm0, %v9540_v14  ;;  %v9539_v63 = vmax.f32 %v9411_v38, 0.0  ;;  %v9144_v8 = vadd.f32 %v11170_v33, %v6111_v61  ;;  %v6145_v61 = vpop.f32.mrf.mxu1  ;;  %v16626_v14 = vld [vmem:[#allocation303_spill] sm:$0xff] }
 0x6d7   : > { %v8864_v59 = vpop.f32.mrf.mxu0  ;;  %v6151_v38 = vadd.f32 %v10988_v22, %v16626_v14 }
 0x6d8   : > { %9667 = vst.msk [vmem:[%s14690_s17 + $0x2c0] sm:$0xff] %vm618_vm0, %v9539_v63  ;;  %v9279_v39 = vmul.f32 %v15323_v51, %v9144_v8  ;;  %v9143_v19 = vadd.f32 %v8864_v59, %v6106_v49  ;;  %v16627_v63 = vld [vmem:[#allocation304_spill] sm:$0xff] }
 0x6d9   : > { %v6146_v8 = vadd.f32 %v6145_v61, %v16627_v63 }
 0x6da   : > { %v9414_v30 = vadd.f32 %v15336_v21, %v9279_v39  ;;  %v9278_v35 = vmul.f32 %v15323_v51, %v9143_v19  ;;  %v10991_v39 = vpop.f32.mrf.mxu1 }
 0x6dc   : > { %v9542_v36 = vmax.f32 %v9414_v30, 0.0  ;;  %v9413_v55 = vadd.f32 %v15336_v21, %v9278_v35 }
 0x6dd   : > { %v11173_v25 = vpop.f32.mrf.mxu0 }
 0x6de   : > { %9670 = vst.msk [vmem:[%s14690_s17 + $0x2d8] sm:$0xff] %vm618_vm0, %v9542_v36  ;;  %v9541_v32 = vmax.f32 %v9413_v55, 0.0  ;;  %v9146_v62 = vadd.f32 %v11173_v25, %v6121_v60  ;;  %v6155_v60 = vpop.f32.mrf.mxu1  ;;  %v16628_v36 = vld [vmem:[#allocation306_spill] sm:$0xff] }
 0x6df   : > { %v8874_v54 = vpop.f32.mrf.mxu0  ;;  %v6161_v55 = vadd.f32 %v10991_v39, %v16628_v36 }
 0x6e0   : > { %9669 = vst.msk [vmem:[%s14690_s17 + $0x2d0] sm:$0xff] %vm618_vm0, %v9541_v32  ;;  %v9281_v29 = vmul.f32 %v15323_v51, %v9146_v62  ;;  %v9145_v53 = vadd.f32 %v8874_v54, %v6116_v10  ;;  %v16629_v62 = vld [vmem:[#allocation307_spill] sm:$0xff] }
 0x6e1   : > { %v6156_v16 = vadd.f32 %v6155_v60, %v16629_v62 }
 0x6e2   : > { %v9416_v24 = vadd.f32 %v15336_v21, %v9281_v29  ;;  %v9280_v13 = vmul.f32 %v15323_v51, %v9145_v53  ;;  %v10994_v29 = vpop.f32.mrf.mxu1 }
 0x6e4   : > { %v9544_v3 = vmax.f32 %v9416_v24, 0.0  ;;  %v9415_v12 = vadd.f32 %v15336_v21, %v9280_v13 }
 0x6e5   : > { %v11176_v56 = vpop.f32.mrf.mxu0 }
 0x6e6   : > { %9672 = vst.msk [vmem:[%s14690_s17 + $0x2e8] sm:$0xff] %vm618_vm0, %v9544_v3  ;;  %v9543_v0 = vmax.f32 %v9415_v12, 0.0  ;;  %v9148_v44 = vadd.f32 %v11176_v56, %v6131_v23  ;;  %v6165_v23 = vpop.f32.mrf.mxu1  ;;  %v16630_v3 = vld [vmem:[#allocation309_spill] sm:$0xff] }
 0x6e7   : > { %v8884_v43 = vpop.f32.mrf.mxu0  ;;  %v6171_v12 = vadd.f32 %v10994_v29, %v16630_v3 }
 0x6e8   : > { %9671 = vst.msk [vmem:[%s14690_s17 + $0x2e0] sm:$0xff] %vm618_vm0, %v9543_v0  ;;  %v9283_v20 = vmul.f32 %v15323_v51, %v9148_v44  ;;  %v9147_v18 = vadd.f32 %v8884_v43, %v6126_v34  ;;  %v16631_v0 = vld [vmem:[#allocation310_spill] sm:$0xff] }
 0x6e9   : > { %v6166_v44 = vadd.f32 %v6165_v23, %v16631_v0 }
 0x6ea   : > { %v9418_v46 = vadd.f32 %v15336_v21, %v9283_v20  ;;  %v9282_v1 = vmul.f32 %v15323_v51, %v9147_v18  ;;  %v10997_v20 = vpop.f32.mrf.mxu1 }
 0x6ec   : > { %v9546_v26 = vmax.f32 %v9418_v46, 0.0  ;;  %v9417_v37 = vadd.f32 %v15336_v21, %v9282_v1 }
 0x6ed   : > { %v11179_v15 = vpop.f32.mrf.mxu0 }
 0x6ee   : > { %9674 = vst.msk [vmem:[%s14690_s17 + $0x2f8] sm:$0xff] %vm618_vm0, %v9546_v26  ;;  %v9545_v47 = vmax.f32 %v9417_v37, 0.0  ;;  %v9150_v50 = vadd.f32 %v11179_v15, %v6141_v58  ;;  %v6175_v58 = vpop.f32.mrf.mxu1  ;;  %v16632_v26 = vld [vmem:[#allocation312_spill] sm:$0xff] }
 0x6ef   : > { %v8894_v52 = vpop.f32.mrf.mxu0  ;;  %v6181_v37 = vadd.f32 %v10997_v20, %v16632_v26 }
 0x6f0   : > { %9673 = vst.msk [vmem:[%s14690_s17 + $0x2f0] sm:$0xff] %vm618_vm0, %v9545_v47  ;;  %v9285_v6 = vmul.f32 %v15323_v51, %v9150_v50  ;;  %v9149_v2 = vadd.f32 %v8894_v52, %v6136_v27  ;;  %v16633_v47 = vld [vmem:[#allocation313_spill] sm:$0xff] }
 0x6f1   : > { %v6176_v50 = vadd.f32 %v6175_v58, %v16633_v47 }
 0x6f2   : > { %v9420_v7 = vadd.f32 %v15336_v21, %v9285_v6  ;;  %v9284_v11 = vmul.f32 %v15323_v51, %v9149_v2  ;;  %v15641_v51 = vld [vmem:[%s15809_s4] ss:$0 sm:$0xff]  ;;  %v11000_v6 = vpop.f32.mrf.mxu1 }
 0x6f4   : > { %v9548_v33 = vmax.f32 %v9420_v7, 0.0  ;;  %v9419_v45 = vadd.f32 %v15336_v21, %v9284_v11 }
 0x6f5   : > { %v11182_v49 = vpop.f32.mrf.mxu0 }
 0x6f6   : > { %9676 = vst.msk [vmem:[%s14690_s17 + $0x308] sm:$0xff] %vm618_vm0, %v9548_v33  ;;  %v9547_v48 = vmax.f32 %v9419_v45, 0.0  ;;  %v9152_v59 = vadd.f32 %v11182_v49, %v6151_v38  ;;  %v6185_v38 = vpop.f32.mrf.mxu1  ;;  %v16634_v33 = vld [vmem:[#allocation315_spill] sm:$0xff] }
 0x6f7   : > { %v8904_v19 = vpop.f32.mrf.mxu0  ;;  %v6191_v45 = vadd.f32 %v11000_v6, %v16634_v33 }
 0x6f8   : > { %9675 = vst.msk [vmem:[%s14690_s17 + $0x300] sm:$0xff] %vm618_vm0, %v9547_v48  ;;  %v9287_v30 = vmul.f32 %v15641_v51, %v9152_v59  ;;  %v9151_v35 = vadd.f32 %v8904_v19, %v6146_v8  ;;  %v16635_v48 = vld [vmem:[#allocation316_spill] sm:$0xff] }
 0x6f9   : > { %v6186_v59 = vadd.f32 %v6185_v38, %v16635_v48 }
 0x6fa   : > { %v9422_v42 = vadd.f32 %v15336_v21, %v9287_v30  ;;  %v9286_v5 = vmul.f32 %v15641_v51, %v9151_v35  ;;  %v11003_v30 = vpop.f32.mrf.mxu1 }
 0x6fc   : > { %v9550_v25 = vmax.f32 %v9422_v42, 0.0  ;;  %v9421_v10 = vadd.f32 %v15650_v9, %v9286_v5 }
 0x6fd   : > { %v11185_v32 = vpop.f32.mrf.mxu0 }
 0x6fe   : > { %9678 = vst.msk [vmem:[%s14690_s17 + $0x318] sm:$0xff] %vm618_vm0, %v9550_v25  ;;  %v9549_v21 = vmax.f32 %v9421_v10, 0.0  ;;  %v9154_v54 = vadd.f32 %v11185_v32, %v6161_v55  ;;  %v6195_v55 = vpop.f32.mrf.mxu1  ;;  %v16636_v25 = vld [vmem:[#allocation318_spill] sm:$0xff] }
 0x6ff   : > { %v8914_v53 = vpop.f32.mrf.mxu0  ;;  %v6201_v10 = vadd.f32 %v11003_v30, %v16636_v25 }
 0x700   : > { %9677 = vst.msk [vmem:[%s14690_s17 + $0x310] sm:$0xff] %vm618_vm0, %v9549_v21  ;;  %v9289_v24 = vmul.f32 %v15641_v51, %v9154_v54  ;;  %v9153_v13 = vadd.f32 %v8914_v53, %v6156_v16  ;;  %v16637_v21 = vld [vmem:[#allocation319_spill] sm:$0xff] }
 0x701   : > { %v6196_v54 = vadd.f32 %v6195_v55, %v16637_v21 }
 0x702   : > { %v9424_v4 = vadd.f32 %v15650_v9, %v9289_v24  ;;  %v9288_v17 = vmul.f32 %v15641_v51, %v9153_v13  ;;  %v11006_v24 = vpop.f32.mrf.mxu1 }
 0x704   : > { %v9552_v56 = vmax.f32 %v9424_v4, 0.0  ;;  %v9423_v41 = vadd.f32 %v15650_v9, %v9288_v17 }
 0x705   : > { %v11188_v34 = vpop.f32.mrf.mxu0 }
 0x706   : > { %9680 = vst.msk [vmem:[%s14690_s17 + $0x328] sm:$0xff] %vm618_vm0, %v9552_v56  ;;  %v9551_v28 = vmax.f32 %v9423_v41, 0.0  ;;  %v9156_v43 = vadd.f32 %v11188_v34, %v6171_v12  ;;  %v6205_v12 = vpop.f32.mrf.mxu1  ;;  %v16638_v56 = vld [vmem:[#allocation321_spill] sm:$0xff] }
 0x707   : > { %v8924_v18 = vpop.f32.mrf.mxu0  ;;  %v6211_v41 = vadd.f32 %v11006_v24, %v16638_v56 }
 0x708   : > { %9679 = vst.msk [vmem:[%s14690_s17 + $0x320] sm:$0xff] %vm618_vm0, %v9551_v28  ;;  %v9291_v46 = vmul.f32 %v15641_v51, %v9156_v43  ;;  %v9155_v1 = vadd.f32 %v8924_v18, %v6166_v44  ;;  %v16639_v28 = vld [vmem:[#allocation322_spill] sm:$0xff] }
 0x709   : > { %v6206_v43 = vadd.f32 %v6205_v12, %v16639_v28 }
 0x70a   : > { %v9426_v57 = vadd.f32 %v15650_v9, %v9291_v46  ;;  %v9290_v40 = vmul.f32 %v15641_v51, %v9155_v1  ;;  %v11009_v46 = vpop.f32.mrf.mxu1 }
 0x70c   : > { %v9554_v15 = vmax.f32 %v9426_v57, 0.0  ;;  %v9425_v31 = vadd.f32 %v15650_v9, %v9290_v40 }
 0x70d   : > { %v11191_v27 = vpop.f32.mrf.mxu0 }
 0x70e   : > { %9682 = vst.msk [vmem:[%s14690_s17 + $0x338] sm:$0xff] %vm618_vm0, %v9554_v15  ;;  %v9553_v22 = vmax.f32 %v9425_v31, 0.0  ;;  %v9158_v52 = vadd.f32 %v11191_v27, %v6181_v37  ;;  %v6215_v37 = vpop.f32.mrf.mxu1  ;;  %v16640_v15 = vld [vmem:[#allocation324_spill] sm:$0xff] }
 0x70f   : > { %v8934_v2 = vpop.f32.mrf.mxu0  ;;  %v6221_v31 = vadd.f32 %v11009_v46, %v16640_v15 }
 0x710   : > { %9681 = vst.msk [vmem:[%s14690_s17 + $0x330] sm:$0xff] %vm618_vm0, %v9553_v22  ;;  %v9293_v7 = vmul.f32 %v15641_v51, %v9158_v52  ;;  %v9157_v11 = vadd.f32 %v8934_v2, %v6176_v50  ;;  %v16641_v22 = vld [vmem:[#allocation325_spill] sm:$0xff] }
 0x711   : > { %v6216_v52 = vadd.f32 %v6215_v37, %v16641_v22 }
 0x712   : > { %v9428_v61 = vadd.f32 %v15650_v9, %v9293_v7  ;;  %v9292_v14 = vmul.f32 %v15641_v51, %v9157_v11  ;;  %v11012_v7 = vpop.f32.mrf.mxu1 }
 0x714   : > { %v9556_v49 = vmax.f32 %v9428_v61, 0.0  ;;  %v9427_v63 = vadd.f32 %v15650_v9, %v9292_v14 }
 0x715   : > { %v11194_v8 = vpop.f32.mrf.mxu0 }
 0x716   : > { %9684 = vst.msk [vmem:[%s14690_s17 + $0x348] sm:$0xff] %vm618_vm0, %v9556_v49  ;;  %v9555_v39 = vmax.f32 %v9427_v63, 0.0  ;;  %v9160_v19 = vadd.f32 %v11194_v8, %v6191_v45  ;;  %v6225_v45 = vpop.f32.mrf.mxu1  ;;  %v16642_v49 = vld [vmem:[#allocation327_spill] sm:$0xff] }
 0x717   : > { %v8944_v35 = vpop.f32.mrf.mxu0  ;;  %v6231_v63 = vadd.f32 %v11012_v7, %v16642_v49 }
 0x718   : > { %9683 = vst.msk [vmem:[%s14690_s17 + $0x340] sm:$0xff] %vm618_vm0, %v9555_v39  ;;  %v9295_v42 = vmul.f32 %v15641_v51, %v9160_v19  ;;  %v9159_v5 = vadd.f32 %v8944_v35, %v6186_v59  ;;  %v16643_v39 = vld [vmem:[#allocation328_spill] sm:$0xff] }
 0x719   : > { %v6226_v19 = vadd.f32 %v6225_v45, %v16643_v39 }
 0x71a   : > { %v9430_v60 = vadd.f32 %v15650_v9, %v9295_v42  ;;  %v9294_v36 = vmul.f32 %v15641_v51, %v9159_v5  ;;  %v11015_v42 = vpop.f32.mrf.mxu1 }
 0x71c   : > { %v9558_v32 = vmax.f32 %v9430_v60, 0.0  ;;  %v9429_v62 = vadd.f32 %v15650_v9, %v9294_v36 }
 0x71d   : > { %v11197_v16 = vpop.f32.mrf.mxu0 }
 0x71e   : > { %9686 = vst.msk [vmem:[%s14690_s17 + $0x358] sm:$0xff] %vm618_vm0, %v9558_v32  ;;  %v9557_v29 = vmax.f32 %v9429_v62, 0.0  ;;  %v9162_v53 = vadd.f32 %v11197_v16, %v6201_v10  ;;  %v6235_v10 = vpop.f32.mrf.mxu1  ;;  %v16644_v32 = vld [vmem:[#allocation330_spill] sm:$0xff] }
 0x71f   : > { %v8954_v13 = vpop.f32.mrf.mxu0  ;;  %v6241_v62 = vadd.f32 %v11015_v42, %v16644_v32 }
 0x720   : > { %9685 = vst.msk [vmem:[%s14690_s17 + $0x350] sm:$0xff] %vm618_vm0, %v9557_v29  ;;  %v9297_v4 = vmul.f32 %v15641_v51, %v9162_v53  ;;  %v9161_v17 = vadd.f32 %v8954_v13, %v6196_v54  ;;  %v16645_v29 = vld [vmem:[#allocation331_spill] sm:$0xff] }
 0x721   : > { %v6236_v53 = vadd.f32 %v6235_v10, %v16645_v29 }
 0x722   : > { %v9432_v23 = vadd.f32 %v15650_v9, %v9297_v4  ;;  %v9296_v3 = vmul.f32 %v15641_v51, %v9161_v17  ;;  %v11018_v4 = vpop.f32.mrf.mxu1 }
 0x724   : > { %v9560_v34 = vmax.f32 %v9432_v23, 0.0  ;;  %v9431_v0 = vadd.f32 %v15650_v9, %v9296_v3 }
 0x725   : > { %v11200_v44 = vpop.f32.mrf.mxu0 }
 0x726   : > { %9688 = vst.msk [vmem:[%s14690_s17 + $0x368] sm:$0xff] %vm618_vm0, %v9560_v34  ;;  %v9559_v20 = vmax.f32 %v9431_v0, 0.0  ;;  %v9164_v18 = vadd.f32 %v11200_v44, %v6211_v41  ;;  %v6245_v41 = vpop.f32.mrf.mxu1  ;;  %v16646_v34 = vld [vmem:[#allocation333_spill] sm:$0xff] }
 0x727   : > { %v8964_v1 = vpop.f32.mrf.mxu0  ;;  %v6251_v0 = vadd.f32 %v11018_v4, %v16646_v34 }
 0x728   : > { %9687 = vst.msk [vmem:[%s14690_s17 + $0x360] sm:$0xff] %vm618_vm0, %v9559_v20  ;;  %v9299_v57 = vmul.f32 %v15641_v51, %v9164_v18  ;;  %v9163_v40 = vadd.f32 %v8964_v1, %v6206_v43  ;;  %v16647_v20 = vld [vmem:[#allocation334_spill] sm:$0xff] }
 0x729   : > { %v6246_v18 = vadd.f32 %v6245_v41, %v16647_v20 }
 0x72a   : > { %v9434_v58 = vadd.f32 %v15650_v9, %v9299_v57  ;;  %v9298_v26 = vmul.f32 %v15641_v51, %v9163_v40  ;;  %v11021_v57 = vpop.f32.mrf.mxu1 }
 0x72c   : > { %v9562_v27 = vmax.f32 %v9434_v58, 0.0  ;;  %v9433_v47 = vadd.f32 %v15650_v9, %v9298_v26 }
 0x72d   : > { %v11203_v50 = vpop.f32.mrf.mxu0 }
 0x72e   : > { %9690 = vst.msk [vmem:[%s14690_s17 + $0x378] sm:$0xff] %vm618_vm0, %v9562_v27  ;;  %v9561_v6 = vmax.f32 %v9433_v47, 0.0  ;;  %v9166_v2 = vadd.f32 %v11203_v50, %v6221_v31  ;;  %v6255_v31 = vpop.f32.mrf.mxu1  ;;  %v16648_v27 = vld [vmem:[#allocation4_spill] sm:$0xff] }
 0x72f   : > { %v8974_v11 = vpop.f32.mrf.mxu0  ;;  %v6261_v47 = vadd.f32 %v11021_v57, %v16648_v27 }
 0x730   : > { %9689 = vst.msk [vmem:[%s14690_s17 + $0x370] sm:$0xff] %vm618_vm0, %v9561_v6  ;;  %v9301_v61 = vmul.f32 %v15641_v51, %v9166_v2  ;;  %v9165_v14 = vadd.f32 %v8974_v11, %v6216_v52  ;;  %v16649_v6 = vld [vmem:[#allocation132_spill] sm:$0xff] }
 0x731   : > { %v6256_v2 = vadd.f32 %v6255_v31, %v16649_v6 }
 0x732   : > { %v9436_v38 = vadd.f32 %v15650_v9, %v9301_v61  ;;  %v9300_v33 = vmul.f32 %v15641_v51, %v9165_v14  ;;  %v11024_v61 = vpop.f32.mrf.mxu1 }
 0x734   : > { %v9564_v8 = vmax.f32 %v9436_v38, 0.0  ;;  %v9435_v48 = vadd.f32 %v15650_v9, %v9300_v33 }
 0x735   : > { %v11206_v59 = vpop.f32.mrf.mxu0 }
 0x736   : > { %9692 = vst.msk [vmem:[%s14690_s17 + $0x388] sm:$0xff] %vm618_vm0, %v9564_v8  ;;  %v9563_v30 = vmax.f32 %v9435_v48, 0.0  ;;  %v9168_v35 = vadd.f32 %v11206_v59, %v6231_v63  ;;  %v6265_v63 = vpop.f32.mrf.mxu1  ;;  %v16650_v8 = vld [vmem:[#allocation271_spill] sm:$0xff] }
 0x737   : > { %v8984_v5 = vpop.f32.mrf.mxu0  ;;  %v6271_v48 = vadd.f32 %v11024_v61, %v16650_v8 }
 0x738   : > { %9691 = vst.msk [vmem:[%s14690_s17 + $0x380] sm:$0xff] %vm618_vm0, %v9563_v30  ;;  %v9303_v60 = vmul.f32 %v15641_v51, %v9168_v35  ;;  %v9167_v36 = vadd.f32 %v8984_v5, %v6226_v19  ;;  %v16651_v30 = vld [vmem:[#allocation6_spill] sm:$0xff] }
 0x739   : > { %v6266_v35 = vadd.f32 %v6265_v63, %v16651_v30 }
 0x73a   : > { %v9438_v55 = vadd.f32 %v15650_v9, %v9303_v60  ;;  %v9302_v25 = vmul.f32 %v15641_v51, %v9167_v36  ;;  %v11027_v60 = vpop.f32.mrf.mxu1 }
 0x73c   : > { %v9566_v16 = vmax.f32 %v9438_v55, 0.0  ;;  %v9437_v21 = vadd.f32 %v15650_v9, %v9302_v25 }
 0x73d   : > { %v11209_v54 = vpop.f32.mrf.mxu0 }
 0x73e   : > { %9694 = vst.msk [vmem:[%s14690_s17 + $0x398] sm:$0xff] %vm618_vm0, %v9566_v16  ;;  %v9565_v24 = vmax.f32 %v9437_v21, 0.0  ;;  %v9170_v13 = vadd.f32 %v11209_v54, %v6241_v62  ;;  %v6275_v62 = vpop.f32.mrf.mxu1  ;;  %v16652_v16 = vld [vmem:[#allocation131_spill] sm:$0xff] }
 0x73f   : > { %v8994_v17 = vpop.f32.mrf.mxu0  ;;  %v6281_v21 = vadd.f32 %v11027_v60, %v16652_v16 }
 0x740   : > { %9693 = vst.msk [vmem:[%s14690_s17 + $0x390] sm:$0xff] %vm618_vm0, %v9565_v24  ;;  %v9305_v23 = vmul.f32 %v15641_v51, %v9170_v13  ;;  %v9169_v3 = vadd.f32 %v8994_v17, %v6236_v53  ;;  %v16653_v24 = vld [vmem:[#allocation134_spill] sm:$0xff] }
 0x741   : > { %v6276_v13 = vadd.f32 %v6275_v62, %v16653_v24 }
 0x742   : > { %v9440_v12 = vadd.f32 %v15650_v9, %v9305_v23  ;;  %v9304_v56 = vmul.f32 %v15641_v51, %v9169_v3  ;;  %v11030_v23 = vpop.f32.mrf.mxu1 }
 0x744   : > { %v9568_v44 = vmax.f32 %v9440_v12, 0.0  ;;  %v9439_v28 = vadd.f32 %v15650_v9, %v9304_v56 }
 0x745   : > { %v11212_v43 = vpop.f32.mrf.mxu0 }
 0x746   : > { %9696 = vst.msk [vmem:[%s14690_s17 + $0x3a8] sm:$0xff] %vm618_vm0, %v9568_v44  ;;  %v9567_v46 = vmax.f32 %v9439_v28, 0.0  ;;  %v9172_v1 = vadd.f32 %v11212_v43, %v6251_v0  ;;  %v6285_v0 = vpop.f32.mrf.mxu1  ;;  %v16654_v44 = vld [vmem:[#allocation8_spill] sm:$0xff] }
 0x747   : > { %v9004_v40 = vpop.f32.mrf.mxu0  ;;  %v6291_v28 = vadd.f32 %v11030_v23, %v16654_v44 }
 0x748   : > { %9695 = vst.msk [vmem:[%s14690_s17 + $0x3a0] sm:$0xff] %vm618_vm0, %v9567_v46  ;;  %v9307_v58 = vmul.f32 %v15641_v51, %v9172_v1  ;;  %v9171_v26 = vadd.f32 %v9004_v40, %v6246_v18  ;;  %v16655_v46 = vld [vmem:[#allocation133_spill] sm:$0xff] }
 0x749   : > { %v6286_v1 = vadd.f32 %v6285_v0, %v16655_v46 }
 0x74a   : > { %v9442_v37 = vadd.f32 %v15650_v9, %v9307_v58  ;;  %v9306_v15 = vmul.f32 %v15641_v51, %v9171_v26 }
 0x74c   : > { %v9570_v50 = vmax.f32 %v9442_v37, 0.0  ;;  %v9441_v22 = vadd.f32 %v15650_v9, %v9306_v15 }
 0x74d   : > { %v11215_v52 = vpop.f32.mrf.mxu0 }
 0x74e   : > { %9698 = vst.msk [vmem:[%s14690_s17 + $0x3b8] sm:$0xff] %vm618_vm0, %v9570_v50  ;;  %v9569_v7 = vmax.f32 %v9441_v22, 0.0  ;;  %v9174_v11 = vadd.f32 %v11215_v52, %v6261_v47 }
 0x74f   : > { %v9014_v14 = vpop.f32.mrf.mxu0 }
 0x750   : > { %9697 = vst.msk [vmem:[%s14690_s17 + $0x3b0] sm:$0xff] %vm618_vm0, %v9569_v7  ;;  %v9309_v38 = vmul.f32 %v15641_v51, %v9174_v11  ;;  %v9173_v33 = vadd.f32 %v9014_v14, %v6256_v2 }
 0x752   : > { %v9444_v45 = vadd.f32 %v15650_v9, %v9309_v38  ;;  %v9308_v49 = vmul.f32 %v15641_v51, %v9173_v33 }
 0x754   : > { %v9572_v59 = vmax.f32 %v9444_v45, 0.0  ;;  %v9443_v39 = vadd.f32 %v15650_v9, %v9308_v49 }
 0x755   : > { %v11218_v19 = vpop.f32.mrf.mxu0 }
 0x756   : > { %9700 = vst.msk [vmem:[%s14690_s17 + $0x3c8] sm:$0xff] %vm618_vm0, %v9572_v59  ;;  %v9571_v42 = vmax.f32 %v9443_v39, 0.0  ;;  %v9176_v5 = vadd.f32 %v11218_v19, %v6271_v48 }
 0x757   : > { %v9024_v36 = vpop.f32.mrf.mxu0 }
 0x758   : > { %9699 = vst.msk [vmem:[%s14690_s17 + $0x3c0] sm:$0xff] %vm618_vm0, %v9571_v42  ;;  %v9311_v55 = vmul.f32 %v15641_v51, %v9176_v5  ;;  %v9175_v25 = vadd.f32 %v9024_v36, %v6266_v35 }
 0x75a   : > { %v9446_v10 = vadd.f32 %v15650_v9, %v9311_v55  ;;  %v9310_v32 = vmul.f32 %v15641_v51, %v9175_v25 }
 0x75c   : > { %v9574_v54 = vmax.f32 %v9446_v10, 0.0  ;;  %v9445_v29 = vadd.f32 %v15650_v9, %v9310_v32 }
 0x75d   : > { %v11221_v53 = vpop.f32.mrf.mxu0 }
 0x75e   : > { %9702 = vst.msk [vmem:[%s14690_s17 + $0x3d8] sm:$0xff] %vm618_vm0, %v9574_v54  ;;  %v9573_v4 = vmax.f32 %v9445_v29, 0.0  ;;  %v9178_v17 = vadd.f32 %v11221_v53, %v6281_v21 }
 0x75f   : > { %v9034_v3 = vpop.f32.mrf.mxu0 }
 0x760   : > { %9701 = vst.msk [vmem:[%s14690_s17 + $0x3d0] sm:$0xff] %vm618_vm0, %v9573_v4  ;;  %v9313_v12 = vmul.f32 %v15641_v51, %v9178_v17  ;;  %v9177_v56 = vadd.f32 %v9034_v3, %v6276_v13 }
 0x762   : > { %v9448_v41 = vadd.f32 %v15650_v9, %v9313_v12  ;;  %v9312_v34 = vmul.f32 %v15641_v51, %v9177_v56 }
 0x764   : > { %v9576_v43 = vmax.f32 %v9448_v41, 0.0  ;;  %v9447_v20 = vadd.f32 %v15650_v9, %v9312_v34 }
 0x765   : > { %v11224_v18 = vpop.f32.mrf.mxu0 }
 0x766   : > { %9704 = vst.msk [vmem:[%s14690_s17 + $0x3e8] sm:$0xff] %vm618_vm0, %v9576_v43  ;;  %v9575_v57 = vmax.f32 %v9447_v20, 0.0  ;;  %v9180_v40 = vadd.f32 %v11224_v18, %v6291_v28 }
 0x767   : > { %v9044_v58 = vpop.f32.mrf.mxu0 }
 0x768   : > { %9703 = vst.msk [vmem:[%s14690_s17 + $0x3e0] sm:$0xff] %vm618_vm0, %v9575_v57  ;;  %v9315_v26 = vmul.f32 %v15641_v51, %v9180_v40  ;;  %v9179_v37 = vadd.f32 %v9044_v58, %v6286_v1 }
 0x76a   : > { %v9450_v15 = vadd.f32 %v15650_v9, %v9315_v26  ;;  %v9314_v31 = vmul.f32 %v15641_v51, %v9179_v37 }
 0x76c   : > { %v9578_v27 = vmax.f32 %v9450_v15, 0.0  ;;  %v9449_v47 = vadd.f32 %v15650_v9, %v9314_v31 }
 0x76e   : > { %9706 = vst.msk [vmem:[%s14690_s17 + $0x3f8] sm:$0xff] %vm618_vm0, %v9578_v27  ;;  %v9577_v50 = vmax.f32 %v9449_v47, 0.0 }
 0x770   : > { %9705 = vst.msk [vmem:[%s14690_s17 + $0x3f0] sm:$0xff] %vm618_vm0, %v9577_v50 }
 0x771 PF: > { %s16_s1 = sadd.s32 1, %s11282_s1   ;;  %s16656_s21 = smov %s11278_s22 }
 0x772   : > { %p13_p5 = scmp.ge.s32.totalorder %s16_s1, 4   ;;  %s16657_s22 = smov %s16659_s2 }
 0x774   :  { %15 = sbr.rel (!%p13_p5) target bundleno = 2 (0x2), region = 85 }

</bundles_post_ra>
